<compile_context>
chip_gen: v7x
topology: tpu7x:2x2x1
jax: 0.10.0
libtpu: 0.0.40
codegen_flags: <defaults>
</compile_context>

<pallas_src>
import functools

import jax
import jax.numpy as jnp
from jax.experimental import pallas as pl
from jax.experimental.pallas import tpu as pltpu


_LANE = 256            # lo-split width of the re-tiled volume slab (MXU M dim)
_RAYS_PER_BLOCK = 256  # default rays per grid step (lane dim of every block)


def _ct_forward_kernel(params_ref,   # SMEM (12,) f32: M_inv row-major (9) then b (3)
                       t_ref,        # VMEM (n_int, TR) f32  -- rays on lanes
                       geom_ref,     # VMEM (6, TR)  f32  -- src(3), dir(3)
                       vol_ref,      # VMEM (_LANE, n_hi) f32  -- volT[lo, hi]
                       out_ref,      # VMEM (1, TR)  f32
                       *, n_x, n_y, n_z):
    n_int, tr = t_ref.shape
    n_seg = n_int - 1
    lane, n_hi = vol_ref.shape
    lo_bits = lane.bit_length() - 1           # lane is a power of two
    lo_mask = lane - 1

    t = t_ref[...]                            # (n_int, TR)
    t0 = t[:-1, :]                            # (n_seg, TR)
    t1 = t[1:, :]                             # (n_seg, TR)

    # Per-axis endpoint / midpoint / length / inf-mask math, accumulated one
    # axis at a time (keeps ~6 live (n_seg,TR) temporaries instead of ~20)
    # while matching the torch reference's f32 evaluation order exactly.
    i_f = j_f = k_f = None
    seg2 = None
    inf_mask = None
    for c in range(3):
        s_c = geom_ref[c:c + 1, :]            # (1, TR)
        d_c = geom_ref[3 + c:4 + c, :]        # (1, TR)
        p0 = s_c + t0 * d_c                   # endpoint coord at t0, (n_seg, TR)
        p1 = s_c + t1 * d_c                   # endpoint coord at t1
        isinf_c = jnp.isinf(p0) | jnp.isinf(p1)
        inf_mask = isinf_c if inf_mask is None else (inf_mask | isinf_c)
        d2 = (p1 - p0) * (p1 - p0)
        seg2 = d2 if seg2 is None else seg2 + d2
        m_c = 0.5 * (p0 + p1) - params_ref[9 + c]     # shifted midpoint coord
        f_i = params_ref[0 * 3 + c] * m_c
        f_j = params_ref[1 * 3 + c] * m_c
        f_k = params_ref[2 * 3 + c] * m_c
        i_f = f_i if i_f is None else i_f + f_i
        j_f = f_j if j_f is None else j_f + f_j
        k_f = f_k if k_f is None else k_f + f_k

    seg_len = jnp.sqrt(seg2)                  # same formula as the reference

    # torch.round and jnp.round are both round-half-to-even.
    i_idx = jnp.round(i_f).astype(jnp.int32)
    j_idx = jnp.round(j_f).astype(jnp.int32)
    k_idx = jnp.round(k_f).astype(jnp.int32)

    oob = ((i_idx < 0) | (i_idx >= n_x) | (j_idx < 0) | (j_idx >= n_y)
           | (k_idx < 0) | (k_idx >= n_z))
    valid = jnp.logical_not(inf_mask | oob)

    flat = i_idx * (n_y * n_z) + j_idx * n_z + k_idx
    # Mask BEFORE deriving hi/lo: invalid (inf / OOB) rows carry garbage ints.
    flat = jnp.where(valid, flat, 0)                  # always in [0, n_hi*lane)
    hi = jnp.right_shift(flat, lo_bits)               # flat // lane, (n_seg, TR)
    lo = jnp.bitwise_and(flat, lo_mask)               # flat %  lane

    # Per-segment weight: seg_len where valid else 0 (also kills padded rays,
    # whose dir == 0 => seg_len == 0).
    w = jnp.where(valid, seg_len, 0.0)

    hi_iota = jax.lax.broadcasted_iota(jnp.int32, (n_hi, tr), 0)
    lo_iota = jax.lax.broadcasted_iota(jnp.int32, (lane, tr), 0)

    # Two-level one-hot gather, volume slab stationary on the MXU:
    #   rows[v, p]  = sum_h volT[v, h] * (hi[s, p] == h)      (one GEMM / segment)
    #   picked[p]   = rows[lo[s, p], p]                       (sublane one-hot)
    # The per-segment loop bounds the one-hot working set to (n_hi, TR).
    # One-hot kept exactly {0,1} so the MXU result is the exact f32 voxel
    # value; seg_len is applied on the (1, TR) result instead (negligible).
    acc = jnp.zeros((1, tr), jnp.float32)
    for s in range(n_seg):
        onehot = (hi_iota == hi[s:s + 1, :]).astype(jnp.float32)    # (n_hi, TR)
        rows = jnp.dot(vol_ref[...], onehot,
                       preferred_element_type=jnp.float32)          # (lane, TR)
        picked = jnp.sum(jnp.where(lo_iota == lo[s:s + 1, :], rows, 0.0),
                         axis=0, keepdims=True)                     # (1, TR)
        acc = acc + picked * w[s:s + 1, :]
    out_ref[...] = acc


def _vmem_budget_bytes():
    """Generation-aware VMEM budget (v7x: 64 MiB/TC, v5e/v6e: 128 MiB)."""
    try:
        cap = int(pltpu.get_tpu_info().vmem_capacity_bytes)
    except Exception:
        cap = 64 * 1024 * 1024
    return max(16 * 1024 * 1024, min(cap * 3 // 4, 96 * 1024 * 1024))


def _estimate_vmem_bytes(tr, n_int, lane, n_hi):
    f32 = 4
    slab = 2 * lane * n_hi * f32               # double-buffered grid-invariant slab
    streams = 2 * (n_int + 6 + 1) * tr * f32   # double-buffered t / geom / out tiles
    gather = (n_hi + 2 * lane) * tr * f32      # per-segment one-hot + MXU rows + select
    temps = 24 * n_int * tr * f32              # elementwise temporaries / spill slack
    return slab + streams + gather + temps


def forward_project_3d_pallas(volume, t_sorted, M, b, src, dst,
                              *, rays_per_block=_RAYS_PER_BLOCK):
    """volume: [n_x,n_y,n_z]; t_sorted: [n_ray,n_int]; M:[3,3]; b:[3];
    src,dst: [n_ray,3].  Returns line integrals [n_ray] (float32)."""
    f32 = jnp.float32
    n_x, n_y, n_z = (int(d) for d in volume.shape)
    n_ray, n_int = (int(d) for d in t_sorted.shape)

    volume = volume.astype(f32)
    t_sorted = t_sorted.astype(f32)
    src = src.astype(f32)
    dst = dst.astype(f32)
    M = M.astype(f32)
    b = b.astype(f32)

    # ---- cheap precompute on the XLA side (no (n_ray, n_int, 3) buffers) ----
    M_inv = jnp.linalg.inv(M)
    params = jnp.concatenate([M_inv.reshape(-1), b.reshape(-1)]).astype(f32)  # (12,)

    dirv = dst - src                                            # (n_ray, 3)
    geom = jnp.concatenate([src.T, dirv.T], axis=0)             # (6, n_ray)
    t_T = t_sorted.T                                            # (n_int, n_ray)

    # Volume as a lane/sublane dense slab: flat = hi*_LANE + lo; the kernel
    # reads volT[lo, hi].  Pad n_hi to a multiple of 8 sublanes with zeros.
    n_vox = n_x * n_y * n_z
    n_hi = -(-n_vox // _LANE)
    n_hi = -(-n_hi // 8) * 8
    vol_flat = jnp.pad(volume.reshape(-1), (0, n_hi * _LANE - n_vox))
    volT = vol_flat.reshape(n_hi, _LANE).T                      # (_LANE, n_hi)

    # Pick the rays-per-block against the per-generation VMEM budget.
    vmem_budget = _vmem_budget_bytes()
    tr = max(128, (int(rays_per_block) // 128) * 128)
    while tr > 128 and _estimate_vmem_bytes(tr, n_int, _LANE, n_hi) > vmem_budget:
        tr //= 2

    # Pad the ray axis to a multiple of the block width (padded rays give 0:
    # their dir is 0 so every segment weight is 0).
    n_ray_p = -(-n_ray // tr) * tr
    pad = n_ray_p - n_ray
    if pad:
        t_T = jnp.pad(t_T, ((0, 0), (0, pad)))
        geom = jnp.pad(geom, ((0, 0), (0, pad)))

    kernel = functools.partial(_ct_forward_kernel, n_x=n_x, n_y=n_y, n_z=n_z)

    out = pl.pallas_call(
        kernel,
        out_shape=jax.ShapeDtypeStruct((1, n_ray_p), f32),
        grid_spec=pltpu.PrefetchScalarGridSpec(
            num_scalar_prefetch=0,
            grid=(n_ray_p // tr,),
            in_specs=[
                pl.BlockSpec(memory_space=pltpu.MemorySpace.SMEM),   # params
                pl.BlockSpec((n_int, tr), lambda i: (0, i)),         # t_sorted^T
                pl.BlockSpec((6, tr), lambda i: (0, i)),             # src / dir
                # grid-invariant volume slab (constant index map -> fetched once)
                pl.BlockSpec((_LANE, n_hi), lambda i: (0, 0)),
            ],
            out_specs=pl.BlockSpec((1, tr), lambda i: (0, i)),
        ),
        compiler_params=pltpu.CompilerParams(
            dimension_semantics=("parallel",),
            vmem_limit_bytes=vmem_budget),
    )(params, t_T, geom, volT)
    return out[0, :n_ray]


class CTProjector3D:
    """JAX/Pallas equivalent of the PyTorch CTProjector3D module (forward only)."""

    def __init__(self, M, b, src, dst, t_sorted):
        self.M = M
        self.b = b
        self.src = src
        self.dst = dst
        self.t_sorted = t_sorted

    def __call__(self, volume):
        return forward_project_3d_pallas(
            volume, self.t_sorted, self.M, self.b, self.src, self.dst)


def forward_project_3d_ref(volume, t_sorted, M, b, src, dst):
    """Pure-jnp mirror of forward_project_3d_torch (for verification)."""
    n_x, n_y, n_z = volume.shape
    M_inv = jnp.linalg.inv(M)
    pts = src[:, None, :] + t_sorted[:, :, None] * (dst - src)[:, None, :]
    x0, x1 = pts[:, :-1, 0], pts[:, 1:, 0]
    y0, y1 = pts[:, :-1, 1], pts[:, 1:, 1]
    z0, z1 = pts[:, :-1, 2], pts[:, 1:, 2]
    inf_mask = (jnp.isinf(x0) | jnp.isinf(x1) | jnp.isinf(y0) | jnp.isinf(y1)
                | jnp.isinf(z0) | jnp.isinf(z1))
    seg_len = jnp.sqrt((x1 - x0) ** 2 + (y1 - y0) ** 2 + (z1 - z0) ** 2)
    mx, my, mz = 0.5 * (x0 + x1), 0.5 * (y0 + y1), 0.5 * (z0 + z1)
    mxs, mys, mzs = mx - b[0], my - b[1], mz - b[2]
    i_f = M_inv[0, 0] * mxs + M_inv[0, 1] * mys + M_inv[0, 2] * mzs
    j_f = M_inv[1, 0] * mxs + M_inv[1, 1] * mys + M_inv[1, 2] * mzs
    k_f = M_inv[2, 0] * mxs + M_inv[2, 1] * mys + M_inv[2, 2] * mzs
    i_idx = jnp.round(i_f).astype(jnp.int32)
    j_idx = jnp.round(j_f).astype(jnp.int32)
    k_idx = jnp.round(k_f).astype(jnp.int32)
    oob = ((i_idx < 0) | (i_idx >= n_x) | (j_idx < 0) | (j_idx >= n_y)
           | (k_idx < 0) | (k_idx >= n_z))
    valid = (~inf_mask) & (~oob)
    flat_idx = i_idx * (n_y * n_z) + j_idx * n_z + k_idx
    flat_idx = jnp.where(valid, flat_idx, 0)
    pixel_vals = volume.reshape(-1)[flat_idx]
    pixel_vals = jnp.where(valid, pixel_vals, 0.0)
    segment_val = jnp.where(valid, pixel_vals * seg_len, 0.0)
    return jnp.sum(segment_val, axis=1)


if __name__ == "__main__":
    key = jax.random.PRNGKey(0)
    k_vol, k_t, k_sy, k_sz, k_dy, k_dz = jax.random.split(key, 6)

    n_x = n_y = n_z = 8
    n_ray, n_int = 512, 17          # 2 grid steps of 256 rays (both TCs on v7x)

    # Geometry: 1mm isotropic voxels centered at the origin.
    M = jnp.eye(3, dtype=jnp.float32)
    b = jnp.array([-3.5, -3.5, -3.5], dtype=jnp.float32)

    # Rays traveling roughly along +x through the volume.
    src = jnp.stack([jnp.full((n_ray,), -10.0),
                     jax.random.uniform(k_sy, (n_ray,), minval=-3.0, maxval=3.0),
                     jax.random.uniform(k_sz, (n_ray,), minval=-3.0, maxval=3.0)],
                    axis=1).astype(jnp.float32)
    dst = jnp.stack([jnp.full((n_ray,), 10.0),
                     jax.random.uniform(k_dy, (n_ray,), minval=-3.0, maxval=3.0),
                     jax.random.uniform(k_dz, (n_ray,), minval=-3.0, maxval=3.0)],
                    axis=1).astype(jnp.float32)

    # Sorted intersection parameters; exercise the +inf (masked-segment) path
    # on every 8th ray like real CT intersection tables do.
    t_sorted = jnp.sort(
        jax.random.uniform(k_t, (n_ray, n_int), minval=0.3, maxval=0.7), axis=1
    ).astype(jnp.float32)
    t_sorted = t_sorted.at[::8, -1].set(jnp.inf)

    volume = jax.random.uniform(k_vol, (n_x, n_y, n_z), dtype=jnp.float32)

    projector = CTProjector3D(M, b, src, dst, t_sorted)
    sino = jax.block_until_ready(projector(volume))

    sino_ref = forward_project_3d_ref(volume, t_sorted, M, b, src, dst)
    assert sino.shape == (n_ray,)
    max_err = float(jnp.max(jnp.abs(sino - sino_ref)))
    assert jnp.allclose(sino, sino_ref, rtol=1e-4, atol=1e-4), max_err

    print("KERNEL_OK")
</pallas_src>

<mosaic_0001>
module attributes {stable_mosaic.version = 11 : i64} {
  func.func @_ct_forward_kernel(%arg0: i32, %arg1: memref<12xf32, #tpu.memory_space<smem>>, %arg2: memref<17x256xf32, #tpu.memory_space<vmem>>, %arg3: memref<6x256xf32, #tpu.memory_space<vmem>>, %arg4: memref<256x8xf32, #tpu.memory_space<vmem>>, %arg5: memref<1x256xf32, #tpu.memory_space<vmem>>) attributes {dimension_semantics = [#tpu.dimension_semantics<parallel>], iteration_bounds = array<i64: 2>, scalar_prefetch = 0 : i64, scratch_operands = 0 : i64, tpu.core_type = #tpu.core_type<tc>, window_params = [{transform_indices = @transform_0, window_bounds = array<i64: 12>}, {transform_indices = @transform_1, window_bounds = array<i64: 17, 256>}, {transform_indices = @transform_2, window_bounds = array<i64: 6, 256>}, {pipeline_mode = #tpu.pipeline_mode<synchronous>, transform_indices = @transform_3, window_bounds = array<i64: 256, 8>}, {transform_indices = @transform_4, window_bounds = array<i64: 1, 256>}]} {
    %c0 = arith.constant 0 : index
    %c0_0 = arith.constant 0 : index
    %0 = vector.load %arg2[%c0, %c0_0] : memref<17x256xf32, #tpu.memory_space<vmem>>, vector<17x256xf32>
    %1 = vector.extract_strided_slice %0 {offsets = [0, 0], sizes = [16, 256], strides = [1, 1]} : vector<17x256xf32> to vector<16x256xf32>
    %2 = vector.extract_strided_slice %0 {offsets = [1, 0], sizes = [16, 256], strides = [1, 1]} : vector<17x256xf32> to vector<16x256xf32>
    %c0_1 = arith.constant 0 : index
    %c0_2 = arith.constant 0 : index
    %3 = vector.load %arg3[%c0_1, %c0_2] : memref<6x256xf32, #tpu.memory_space<vmem>>, vector<1x256xf32>
    %c3 = arith.constant 3 : index
    %c0_3 = arith.constant 0 : index
    %4 = vector.load %arg3[%c3, %c0_3] : memref<6x256xf32, #tpu.memory_space<vmem>>, vector<1x256xf32>
    %5 = vector.broadcast %4 : vector<1x256xf32> to vector<16x256xf32>
    %6 = arith.mulf %1, %5 : vector<16x256xf32>
    %7 = vector.broadcast %3 : vector<1x256xf32> to vector<16x256xf32>
    %8 = arith.addf %7, %6 : vector<16x256xf32>
    %9 = vector.broadcast %4 : vector<1x256xf32> to vector<16x256xf32>
    %10 = arith.mulf %2, %9 : vector<16x256xf32>
    %11 = vector.broadcast %3 : vector<1x256xf32> to vector<16x256xf32>
    %12 = arith.addf %11, %10 : vector<16x256xf32>
    %13 = math.absf %8 : vector<16x256xf32>
    %cst = arith.constant 0x7F800000 : f32
    %14 = vector.broadcast %cst : f32 to vector<16x256xf32>
    %15 = arith.cmpf oeq, %13, %14 : vector<16x256xf32>
    %16 = math.absf %12 : vector<16x256xf32>
    %cst_4 = arith.constant 0x7F800000 : f32
    %17 = vector.broadcast %cst_4 : f32 to vector<16x256xf32>
    %18 = arith.cmpf oeq, %16, %17 : vector<16x256xf32>
    %19 = arith.ori %15, %18 : vector<16x256xi1>
    %20 = arith.subf %12, %8 : vector<16x256xf32>
    %21 = arith.subf %12, %8 : vector<16x256xf32>
    %22 = arith.mulf %20, %21 : vector<16x256xf32>
    %23 = arith.addf %8, %12 : vector<16x256xf32>
    %cst_5 = arith.constant 5.000000e-01 : f32
    %24 = vector.broadcast %cst_5 : f32 to vector<16x256xf32>
    %25 = arith.mulf %24, %23 : vector<16x256xf32>
    %c9 = arith.constant 9 : index
    %26 = memref.load %arg1[%c9] : memref<12xf32, #tpu.memory_space<smem>>
    %27 = vector.broadcast %26 : f32 to vector<16x256xf32>
    %28 = arith.subf %25, %27 : vector<16x256xf32>
    %c0_6 = arith.constant 0 : index
    %29 = memref.load %arg1[%c0_6] : memref<12xf32, #tpu.memory_space<smem>>
    %30 = vector.broadcast %29 : f32 to vector<16x256xf32>
    %31 = arith.mulf %30, %28 : vector<16x256xf32>
    %c3_7 = arith.constant 3 : index
    %32 = memref.load %arg1[%c3_7] : memref<12xf32, #tpu.memory_space<smem>>
    %33 = vector.broadcast %32 : f32 to vector<16x256xf32>
    %34 = arith.mulf %33, %28 : vector<16x256xf32>
    %c6 = arith.constant 6 : index
    %35 = memref.load %arg1[%c6] : memref<12xf32, #tpu.memory_space<smem>>
    %36 = vector.broadcast %35 : f32 to vector<16x256xf32>
    %37 = arith.mulf %36, %28 : vector<16x256xf32>
    %c1 = arith.constant 1 : index
    %c0_8 = arith.constant 0 : index
    %38 = vector.load %arg3[%c1, %c0_8] : memref<6x256xf32, #tpu.memory_space<vmem>>, vector<1x256xf32>
    %c4 = arith.constant 4 : index
    %c0_9 = arith.constant 0 : index
    %39 = vector.load %arg3[%c4, %c0_9] : memref<6x256xf32, #tpu.memory_space<vmem>>, vector<1x256xf32>
    %40 = vector.broadcast %39 : vector<1x256xf32> to vector<16x256xf32>
    %41 = arith.mulf %1, %40 : vector<16x256xf32>
    %42 = vector.broadcast %38 : vector<1x256xf32> to vector<16x256xf32>
    %43 = arith.addf %42, %41 : vector<16x256xf32>
    %44 = vector.broadcast %39 : vector<1x256xf32> to vector<16x256xf32>
    %45 = arith.mulf %2, %44 : vector<16x256xf32>
    %46 = vector.broadcast %38 : vector<1x256xf32> to vector<16x256xf32>
    %47 = arith.addf %46, %45 : vector<16x256xf32>
    %48 = math.absf %43 : vector<16x256xf32>
    %cst_10 = arith.constant 0x7F800000 : f32
    %49 = vector.broadcast %cst_10 : f32 to vector<16x256xf32>
    %50 = arith.cmpf oeq, %48, %49 : vector<16x256xf32>
    %51 = math.absf %47 : vector<16x256xf32>
    %cst_11 = arith.constant 0x7F800000 : f32
    %52 = vector.broadcast %cst_11 : f32 to vector<16x256xf32>
    %53 = arith.cmpf oeq, %51, %52 : vector<16x256xf32>
    %54 = arith.ori %50, %53 : vector<16x256xi1>
    %55 = arith.ori %19, %54 : vector<16x256xi1>
    %56 = arith.subf %47, %43 : vector<16x256xf32>
    %57 = arith.subf %47, %43 : vector<16x256xf32>
    %58 = arith.mulf %56, %57 : vector<16x256xf32>
    %59 = arith.addf %22, %58 : vector<16x256xf32>
    %60 = arith.addf %43, %47 : vector<16x256xf32>
    %cst_12 = arith.constant 5.000000e-01 : f32
    %61 = vector.broadcast %cst_12 : f32 to vector<16x256xf32>
    %62 = arith.mulf %61, %60 : vector<16x256xf32>
    %c10 = arith.constant 10 : index
    %63 = memref.load %arg1[%c10] : memref<12xf32, #tpu.memory_space<smem>>
    %64 = vector.broadcast %63 : f32 to vector<16x256xf32>
    %65 = arith.subf %62, %64 : vector<16x256xf32>
    %c1_13 = arith.constant 1 : index
    %66 = memref.load %arg1[%c1_13] : memref<12xf32, #tpu.memory_space<smem>>
    %67 = vector.broadcast %66 : f32 to vector<16x256xf32>
    %68 = arith.mulf %67, %65 : vector<16x256xf32>
    %c4_14 = arith.constant 4 : index
    %69 = memref.load %arg1[%c4_14] : memref<12xf32, #tpu.memory_space<smem>>
    %70 = vector.broadcast %69 : f32 to vector<16x256xf32>
    %71 = arith.mulf %70, %65 : vector<16x256xf32>
    %c7 = arith.constant 7 : index
    %72 = memref.load %arg1[%c7] : memref<12xf32, #tpu.memory_space<smem>>
    %73 = vector.broadcast %72 : f32 to vector<16x256xf32>
    %74 = arith.mulf %73, %65 : vector<16x256xf32>
    %75 = arith.addf %31, %68 : vector<16x256xf32>
    %76 = arith.addf %34, %71 : vector<16x256xf32>
    %77 = arith.addf %37, %74 : vector<16x256xf32>
    %c2 = arith.constant 2 : index
    %c0_15 = arith.constant 0 : index
    %78 = vector.load %arg3[%c2, %c0_15] : memref<6x256xf32, #tpu.memory_space<vmem>>, vector<1x256xf32>
    %c5 = arith.constant 5 : index
    %c0_16 = arith.constant 0 : index
    %79 = vector.load %arg3[%c5, %c0_16] : memref<6x256xf32, #tpu.memory_space<vmem>>, vector<1x256xf32>
    %80 = vector.broadcast %79 : vector<1x256xf32> to vector<16x256xf32>
    %81 = arith.mulf %1, %80 : vector<16x256xf32>
    %82 = vector.broadcast %78 : vector<1x256xf32> to vector<16x256xf32>
    %83 = arith.addf %82, %81 : vector<16x256xf32>
    %84 = vector.broadcast %79 : vector<1x256xf32> to vector<16x256xf32>
    %85 = arith.mulf %2, %84 : vector<16x256xf32>
    %86 = vector.broadcast %78 : vector<1x256xf32> to vector<16x256xf32>
    %87 = arith.addf %86, %85 : vector<16x256xf32>
    %88 = math.absf %83 : vector<16x256xf32>
    %cst_17 = arith.constant 0x7F800000 : f32
    %89 = vector.broadcast %cst_17 : f32 to vector<16x256xf32>
    %90 = arith.cmpf oeq, %88, %89 : vector<16x256xf32>
    %91 = math.absf %87 : vector<16x256xf32>
    %cst_18 = arith.constant 0x7F800000 : f32
    %92 = vector.broadcast %cst_18 : f32 to vector<16x256xf32>
    %93 = arith.cmpf oeq, %91, %92 : vector<16x256xf32>
    %94 = arith.ori %90, %93 : vector<16x256xi1>
    %95 = arith.ori %55, %94 : vector<16x256xi1>
    %96 = arith.subf %87, %83 : vector<16x256xf32>
    %97 = arith.subf %87, %83 : vector<16x256xf32>
    %98 = arith.mulf %96, %97 : vector<16x256xf32>
    %99 = arith.addf %59, %98 : vector<16x256xf32>
    %100 = arith.addf %83, %87 : vector<16x256xf32>
    %cst_19 = arith.constant 5.000000e-01 : f32
    %101 = vector.broadcast %cst_19 : f32 to vector<16x256xf32>
    %102 = arith.mulf %101, %100 : vector<16x256xf32>
    %c11 = arith.constant 11 : index
    %103 = memref.load %arg1[%c11] : memref<12xf32, #tpu.memory_space<smem>>
    %104 = vector.broadcast %103 : f32 to vector<16x256xf32>
    %105 = arith.subf %102, %104 : vector<16x256xf32>
    %c2_20 = arith.constant 2 : index
    %106 = memref.load %arg1[%c2_20] : memref<12xf32, #tpu.memory_space<smem>>
    %107 = vector.broadcast %106 : f32 to vector<16x256xf32>
    %108 = arith.mulf %107, %105 : vector<16x256xf32>
    %c5_21 = arith.constant 5 : index
    %109 = memref.load %arg1[%c5_21] : memref<12xf32, #tpu.memory_space<smem>>
    %110 = vector.broadcast %109 : f32 to vector<16x256xf32>
    %111 = arith.mulf %110, %105 : vector<16x256xf32>
    %c8 = arith.constant 8 : index
    %112 = memref.load %arg1[%c8] : memref<12xf32, #tpu.memory_space<smem>>
    %113 = vector.broadcast %112 : f32 to vector<16x256xf32>
    %114 = arith.mulf %113, %105 : vector<16x256xf32>
    %115 = arith.addf %75, %108 : vector<16x256xf32>
    %116 = arith.addf %76, %111 : vector<16x256xf32>
    %117 = arith.addf %77, %114 : vector<16x256xf32>
    %118 = math.sqrt %99 : vector<16x256xf32>
    %119 = math.roundeven %115 : vector<16x256xf32>
    %120 = arith.fptosi %119 : vector<16x256xf32> to vector<16x256xi32>
    %121 = math.roundeven %116 : vector<16x256xf32>
    %122 = arith.fptosi %121 : vector<16x256xf32> to vector<16x256xi32>
    %123 = math.roundeven %117 : vector<16x256xf32>
    %124 = arith.fptosi %123 : vector<16x256xf32> to vector<16x256xi32>
    %c0_i32 = arith.constant 0 : i32
    %125 = vector.broadcast %c0_i32 : i32 to vector<16x256xi32>
    %126 = arith.cmpi slt, %120, %125 : vector<16x256xi32>
    %c8_i32 = arith.constant 8 : i32
    %127 = vector.broadcast %c8_i32 : i32 to vector<16x256xi32>
    %128 = arith.cmpi sge, %120, %127 : vector<16x256xi32>
    %129 = arith.ori %126, %128 : vector<16x256xi1>
    %c0_i32_22 = arith.constant 0 : i32
    %130 = vector.broadcast %c0_i32_22 : i32 to vector<16x256xi32>
    %131 = arith.cmpi slt, %122, %130 : vector<16x256xi32>
    %132 = arith.ori %129, %131 : vector<16x256xi1>
    %c8_i32_23 = arith.constant 8 : i32
    %133 = vector.broadcast %c8_i32_23 : i32 to vector<16x256xi32>
    %134 = arith.cmpi sge, %122, %133 : vector<16x256xi32>
    %135 = arith.ori %132, %134 : vector<16x256xi1>
    %c0_i32_24 = arith.constant 0 : i32
    %136 = vector.broadcast %c0_i32_24 : i32 to vector<16x256xi32>
    %137 = arith.cmpi slt, %124, %136 : vector<16x256xi32>
    %138 = arith.ori %135, %137 : vector<16x256xi1>
    %c8_i32_25 = arith.constant 8 : i32
    %139 = vector.broadcast %c8_i32_25 : i32 to vector<16x256xi32>
    %140 = arith.cmpi sge, %124, %139 : vector<16x256xi32>
    %141 = arith.ori %138, %140 : vector<16x256xi1>
    %142 = arith.ori %95, %141 : vector<16x256xi1>
    %cst_26 = arith.constant dense<true> : vector<16x256xi1>
    %143 = arith.xori %142, %cst_26 : vector<16x256xi1>
    %c64_i32 = arith.constant 64 : i32
    %144 = vector.broadcast %c64_i32 : i32 to vector<16x256xi32>
    %145 = arith.muli %120, %144 : vector<16x256xi32>
    %c8_i32_27 = arith.constant 8 : i32
    %146 = vector.broadcast %c8_i32_27 : i32 to vector<16x256xi32>
    %147 = arith.muli %122, %146 : vector<16x256xi32>
    %148 = arith.addi %145, %147 : vector<16x256xi32>
    %149 = arith.addi %148, %124 : vector<16x256xi32>
    %c0_i32_28 = arith.constant 0 : i32
    %150 = vector.broadcast %c0_i32_28 : i32 to vector<16x256xi32>
    %151 = arith.select %143, %149, %150 : vector<16x256xi1>, vector<16x256xi32>
    %c8_i32_29 = arith.constant 8 : i32
    %152 = vector.broadcast %c8_i32_29 : i32 to vector<16x256xi32>
    %153 = arith.shrsi %151, %152 : vector<16x256xi32>
    %c255_i32 = arith.constant 255 : i32
    %154 = vector.broadcast %c255_i32 : i32 to vector<16x256xi32>
    %155 = arith.andi %151, %154 : vector<16x256xi32>
    %cst_30 = arith.constant 0.000000e+00 : f32
    %156 = vector.broadcast %cst_30 : f32 to vector<16x256xf32>
    %157 = arith.select %143, %118, %156 : vector<16x256xi1>, vector<16x256xf32>
    %158 = tpu.iota {dimensions = array<i32: 0>} : vector<8x256xi32>
    %159 = tpu.iota {dimensions = array<i32: 0>} : vector<256x256xi32>
    %cst_31 = arith.constant 0.000000e+00 : f32
    %160 = vector.broadcast %cst_31 : f32 to vector<1x256xf32>
    %161 = vector.extract_strided_slice %153 {offsets = [0, 0], sizes = [1, 256], strides = [1, 1]} : vector<16x256xi32> to vector<1x256xi32>
    %162 = vector.broadcast %161 : vector<1x256xi32> to vector<8x256xi32>
    %163 = arith.cmpi eq, %158, %162 : vector<8x256xi32>
    %164 = arith.extui %163 : vector<8x256xi1> to vector<8x256xi32>
    %165 = arith.sitofp %164 : vector<8x256xi32> to vector<8x256xf32>
    %c0_32 = arith.constant 0 : index
    %c0_33 = arith.constant 0 : index
    %166 = vector.load %arg4[%c0_32, %c0_33] : memref<256x8xf32, #tpu.memory_space<vmem>>, vector<256x8xf32>
    %cst_34 = arith.constant dense<0.000000e+00> : vector<256x256xf32>
    %167 = tpu.matmul %166, %165, %cst_34 {dimension_numbers = #tpu.dot_dimension_numbers<[1], [0], [0], [1], [0, 0, 1, 1], [], []>} : vector<256x8xf32>, vector<8x256xf32>, vector<256x256xf32> -> vector<256x256xf32>
    %168 = vector.extract_strided_slice %155 {offsets = [0, 0], sizes = [1, 256], strides = [1, 1]} : vector<16x256xi32> to vector<1x256xi32>
    %169 = vector.broadcast %168 : vector<1x256xi32> to vector<256x256xi32>
    %170 = arith.cmpi eq, %159, %169 : vector<256x256xi32>
    %cst_35 = arith.constant 0.000000e+00 : f32
    %171 = vector.broadcast %cst_35 : f32 to vector<256x256xf32>
    %172 = arith.select %170, %167, %171 : vector<256x256xi1>, vector<256x256xf32>
    %cst_36 = arith.constant dense<0.000000e+00> : vector<256xf32>
    %173 = vector.multi_reduction <add>, %172, %cst_36 [0] : vector<256x256xf32> to vector<256xf32>
    %174 = vector.shape_cast %173 : vector<256xf32> to vector<1x256xf32>
    %175 = vector.extract_strided_slice %157 {offsets = [0, 0], sizes = [1, 256], strides = [1, 1]} : vector<16x256xf32> to vector<1x256xf32>
    %176 = arith.mulf %174, %175 : vector<1x256xf32>
    %177 = arith.addf %160, %176 : vector<1x256xf32>
    %178 = vector.extract_strided_slice %153 {offsets = [1, 0], sizes = [1, 256], strides = [1, 1]} : vector<16x256xi32> to vector<1x256xi32>
    %179 = vector.broadcast %178 : vector<1x256xi32> to vector<8x256xi32>
    %180 = arith.cmpi eq, %158, %179 : vector<8x256xi32>
    %181 = arith.extui %180 : vector<8x256xi1> to vector<8x256xi32>
    %182 = arith.sitofp %181 : vector<8x256xi32> to vector<8x256xf32>
    %c0_37 = arith.constant 0 : index
    %c0_38 = arith.constant 0 : index
    %183 = vector.load %arg4[%c0_37, %c0_38] : memref<256x8xf32, #tpu.memory_space<vmem>>, vector<256x8xf32>
    %cst_39 = arith.constant dense<0.000000e+00> : vector<256x256xf32>
    %184 = tpu.matmul %183, %182, %cst_39 {dimension_numbers = #tpu.dot_dimension_numbers<[1], [0], [0], [1], [0, 0, 1, 1], [], []>} : vector<256x8xf32>, vector<8x256xf32>, vector<256x256xf32> -> vector<256x256xf32>
    %185 = vector.extract_strided_slice %155 {offsets = [1, 0], sizes = [1, 256], strides = [1, 1]} : vector<16x256xi32> to vector<1x256xi32>
    %186 = vector.broadcast %185 : vector<1x256xi32> to vector<256x256xi32>
    %187 = arith.cmpi eq, %159, %186 : vector<256x256xi32>
    %cst_40 = arith.constant 0.000000e+00 : f32
    %188 = vector.broadcast %cst_40 : f32 to vector<256x256xf32>
    %189 = arith.select %187, %184, %188 : vector<256x256xi1>, vector<256x256xf32>
    %cst_41 = arith.constant dense<0.000000e+00> : vector<256xf32>
    %190 = vector.multi_reduction <add>, %189, %cst_41 [0] : vector<256x256xf32> to vector<256xf32>
    %191 = vector.shape_cast %190 : vector<256xf32> to vector<1x256xf32>
    %192 = vector.extract_strided_slice %157 {offsets = [1, 0], sizes = [1, 256], strides = [1, 1]} : vector<16x256xf32> to vector<1x256xf32>
    %193 = arith.mulf %191, %192 : vector<1x256xf32>
    %194 = arith.addf %177, %193 : vector<1x256xf32>
    %195 = vector.extract_strided_slice %153 {offsets = [2, 0], sizes = [1, 256], strides = [1, 1]} : vector<16x256xi32> to vector<1x256xi32>
    %196 = vector.broadcast %195 : vector<1x256xi32> to vector<8x256xi32>
    %197 = arith.cmpi eq, %158, %196 : vector<8x256xi32>
    %198 = arith.extui %197 : vector<8x256xi1> to vector<8x256xi32>
    %199 = arith.sitofp %198 : vector<8x256xi32> to vector<8x256xf32>
    %c0_42 = arith.constant 0 : index
    %c0_43 = arith.constant 0 : index
    %200 = vector.load %arg4[%c0_42, %c0_43] : memref<256x8xf32, #tpu.memory_space<vmem>>, vector<256x8xf32>
    %cst_44 = arith.constant dense<0.000000e+00> : vector<256x256xf32>
    %201 = tpu.matmul %200, %199, %cst_44 {dimension_numbers = #tpu.dot_dimension_numbers<[1], [0], [0], [1], [0, 0, 1, 1], [], []>} : vector<256x8xf32>, vector<8x256xf32>, vector<256x256xf32> -> vector<256x256xf32>
    %202 = vector.extract_strided_slice %155 {offsets = [2, 0], sizes = [1, 256], strides = [1, 1]} : vector<16x256xi32> to vector<1x256xi32>
    %203 = vector.broadcast %202 : vector<1x256xi32> to vector<256x256xi32>
    %204 = arith.cmpi eq, %159, %203 : vector<256x256xi32>
    %cst_45 = arith.constant 0.000000e+00 : f32
    %205 = vector.broadcast %cst_45 : f32 to vector<256x256xf32>
    %206 = arith.select %204, %201, %205 : vector<256x256xi1>, vector<256x256xf32>
    %cst_46 = arith.constant dense<0.000000e+00> : vector<256xf32>
    %207 = vector.multi_reduction <add>, %206, %cst_46 [0] : vector<256x256xf32> to vector<256xf32>
    %208 = vector.shape_cast %207 : vector<256xf32> to vector<1x256xf32>
    %209 = vector.extract_strided_slice %157 {offsets = [2, 0], sizes = [1, 256], strides = [1, 1]} : vector<16x256xf32> to vector<1x256xf32>
    %210 = arith.mulf %208, %209 : vector<1x256xf32>
    %211 = arith.addf %194, %210 : vector<1x256xf32>
    %212 = vector.extract_strided_slice %153 {offsets = [3, 0], sizes = [1, 256], strides = [1, 1]} : vector<16x256xi32> to vector<1x256xi32>
    %213 = vector.broadcast %212 : vector<1x256xi32> to vector<8x256xi32>
    %214 = arith.cmpi eq, %158, %213 : vector<8x256xi32>
    %215 = arith.extui %214 : vector<8x256xi1> to vector<8x256xi32>
    %216 = arith.sitofp %215 : vector<8x256xi32> to vector<8x256xf32>
    %c0_47 = arith.constant 0 : index
    %c0_48 = arith.constant 0 : index
    %217 = vector.load %arg4[%c0_47, %c0_48] : memref<256x8xf32, #tpu.memory_space<vmem>>, vector<256x8xf32>
    %cst_49 = arith.constant dense<0.000000e+00> : vector<256x256xf32>
    %218 = tpu.matmul %217, %216, %cst_49 {dimension_numbers = #tpu.dot_dimension_numbers<[1], [0], [0], [1], [0, 0, 1, 1], [], []>} : vector<256x8xf32>, vector<8x256xf32>, vector<256x256xf32> -> vector<256x256xf32>
    %219 = vector.extract_strided_slice %155 {offsets = [3, 0], sizes = [1, 256], strides = [1, 1]} : vector<16x256xi32> to vector<1x256xi32>
    %220 = vector.broadcast %219 : vector<1x256xi32> to vector<256x256xi32>
    %221 = arith.cmpi eq, %159, %220 : vector<256x256xi32>
    %cst_50 = arith.constant 0.000000e+00 : f32
    %222 = vector.broadcast %cst_50 : f32 to vector<256x256xf32>
    %223 = arith.select %221, %218, %222 : vector<256x256xi1>, vector<256x256xf32>
    %cst_51 = arith.constant dense<0.000000e+00> : vector<256xf32>
    %224 = vector.multi_reduction <add>, %223, %cst_51 [0] : vector<256x256xf32> to vector<256xf32>
    %225 = vector.shape_cast %224 : vector<256xf32> to vector<1x256xf32>
    %226 = vector.extract_strided_slice %157 {offsets = [3, 0], sizes = [1, 256], strides = [1, 1]} : vector<16x256xf32> to vector<1x256xf32>
    %227 = arith.mulf %225, %226 : vector<1x256xf32>
    %228 = arith.addf %211, %227 : vector<1x256xf32>
    %229 = vector.extract_strided_slice %153 {offsets = [4, 0], sizes = [1, 256], strides = [1, 1]} : vector<16x256xi32> to vector<1x256xi32>
    %230 = vector.broadcast %229 : vector<1x256xi32> to vector<8x256xi32>
    %231 = arith.cmpi eq, %158, %230 : vector<8x256xi32>
    %232 = arith.extui %231 : vector<8x256xi1> to vector<8x256xi32>
    %233 = arith.sitofp %232 : vector<8x256xi32> to vector<8x256xf32>
    %c0_52 = arith.constant 0 : index
    %c0_53 = arith.constant 0 : index
    %234 = vector.load %arg4[%c0_52, %c0_53] : memref<256x8xf32, #tpu.memory_space<vmem>>, vector<256x8xf32>
    %cst_54 = arith.constant dense<0.000000e+00> : vector<256x256xf32>
    %235 = tpu.matmul %234, %233, %cst_54 {dimension_numbers = #tpu.dot_dimension_numbers<[1], [0], [0], [1], [0, 0, 1, 1], [], []>} : vector<256x8xf32>, vector<8x256xf32>, vector<256x256xf32> -> vector<256x256xf32>
    %236 = vector.extract_strided_slice %155 {offsets = [4, 0], sizes = [1, 256], strides = [1, 1]} : vector<16x256xi32> to vector<1x256xi32>
    %237 = vector.broadcast %236 : vector<1x256xi32> to vector<256x256xi32>
    %238 = arith.cmpi eq, %159, %237 : vector<256x256xi32>
    %cst_55 = arith.constant 0.000000e+00 : f32
    %239 = vector.broadcast %cst_55 : f32 to vector<256x256xf32>
    %240 = arith.select %238, %235, %239 : vector<256x256xi1>, vector<256x256xf32>
    %cst_56 = arith.constant dense<0.000000e+00> : vector<256xf32>
    %241 = vector.multi_reduction <add>, %240, %cst_56 [0] : vector<256x256xf32> to vector<256xf32>
    %242 = vector.shape_cast %241 : vector<256xf32> to vector<1x256xf32>
    %243 = vector.extract_strided_slice %157 {offsets = [4, 0], sizes = [1, 256], strides = [1, 1]} : vector<16x256xf32> to vector<1x256xf32>
    %244 = arith.mulf %242, %243 : vector<1x256xf32>
    %245 = arith.addf %228, %244 : vector<1x256xf32>
    %246 = vector.extract_strided_slice %153 {offsets = [5, 0], sizes = [1, 256], strides = [1, 1]} : vector<16x256xi32> to vector<1x256xi32>
    %247 = vector.broadcast %246 : vector<1x256xi32> to vector<8x256xi32>
    %248 = arith.cmpi eq, %158, %247 : vector<8x256xi32>
    %249 = arith.extui %248 : vector<8x256xi1> to vector<8x256xi32>
    %250 = arith.sitofp %249 : vector<8x256xi32> to vector<8x256xf32>
    %c0_57 = arith.constant 0 : index
    %c0_58 = arith.constant 0 : index
    %251 = vector.load %arg4[%c0_57, %c0_58] : memref<256x8xf32, #tpu.memory_space<vmem>>, vector<256x8xf32>
    %cst_59 = arith.constant dense<0.000000e+00> : vector<256x256xf32>
    %252 = tpu.matmul %251, %250, %cst_59 {dimension_numbers = #tpu.dot_dimension_numbers<[1], [0], [0], [1], [0, 0, 1, 1], [], []>} : vector<256x8xf32>, vector<8x256xf32>, vector<256x256xf32> -> vector<256x256xf32>
    %253 = vector.extract_strided_slice %155 {offsets = [5, 0], sizes = [1, 256], strides = [1, 1]} : vector<16x256xi32> to vector<1x256xi32>
    %254 = vector.broadcast %253 : vector<1x256xi32> to vector<256x256xi32>
    %255 = arith.cmpi eq, %159, %254 : vector<256x256xi32>
    %cst_60 = arith.constant 0.000000e+00 : f32
    %256 = vector.broadcast %cst_60 : f32 to vector<256x256xf32>
    %257 = arith.select %255, %252, %256 : vector<256x256xi1>, vector<256x256xf32>
    %cst_61 = arith.constant dense<0.000000e+00> : vector<256xf32>
    %258 = vector.multi_reduction <add>, %257, %cst_61 [0] : vector<256x256xf32> to vector<256xf32>
    %259 = vector.shape_cast %258 : vector<256xf32> to vector<1x256xf32>
    %260 = vector.extract_strided_slice %157 {offsets = [5, 0], sizes = [1, 256], strides = [1, 1]} : vector<16x256xf32> to vector<1x256xf32>
    %261 = arith.mulf %259, %260 : vector<1x256xf32>
    %262 = arith.addf %245, %261 : vector<1x256xf32>
    %263 = vector.extract_strided_slice %153 {offsets = [6, 0], sizes = [1, 256], strides = [1, 1]} : vector<16x256xi32> to vector<1x256xi32>
    %264 = vector.broadcast %263 : vector<1x256xi32> to vector<8x256xi32>
    %265 = arith.cmpi eq, %158, %264 : vector<8x256xi32>
    %266 = arith.extui %265 : vector<8x256xi1> to vector<8x256xi32>
    %267 = arith.sitofp %266 : vector<8x256xi32> to vector<8x256xf32>
    %c0_62 = arith.constant 0 : index
    %c0_63 = arith.constant 0 : index
    %268 = vector.load %arg4[%c0_62, %c0_63] : memref<256x8xf32, #tpu.memory_space<vmem>>, vector<256x8xf32>
    %cst_64 = arith.constant dense<0.000000e+00> : vector<256x256xf32>
    %269 = tpu.matmul %268, %267, %cst_64 {dimension_numbers = #tpu.dot_dimension_numbers<[1], [0], [0], [1], [0, 0, 1, 1], [], []>} : vector<256x8xf32>, vector<8x256xf32>, vector<256x256xf32> -> vector<256x256xf32>
    %270 = vector.extract_strided_slice %155 {offsets = [6, 0], sizes = [1, 256], strides = [1, 1]} : vector<16x256xi32> to vector<1x256xi32>
    %271 = vector.broadcast %270 : vector<1x256xi32> to vector<256x256xi32>
    %272 = arith.cmpi eq, %159, %271 : vector<256x256xi32>
    %cst_65 = arith.constant 0.000000e+00 : f32
    %273 = vector.broadcast %cst_65 : f32 to vector<256x256xf32>
    %274 = arith.select %272, %269, %273 : vector<256x256xi1>, vector<256x256xf32>
    %cst_66 = arith.constant dense<0.000000e+00> : vector<256xf32>
    %275 = vector.multi_reduction <add>, %274, %cst_66 [0] : vector<256x256xf32> to vector<256xf32>
    %276 = vector.shape_cast %275 : vector<256xf32> to vector<1x256xf32>
    %277 = vector.extract_strided_slice %157 {offsets = [6, 0], sizes = [1, 256], strides = [1, 1]} : vector<16x256xf32> to vector<1x256xf32>
    %278 = arith.mulf %276, %277 : vector<1x256xf32>
    %279 = arith.addf %262, %278 : vector<1x256xf32>
    %280 = vector.extract_strided_slice %153 {offsets = [7, 0], sizes = [1, 256], strides = [1, 1]} : vector<16x256xi32> to vector<1x256xi32>
    %281 = vector.broadcast %280 : vector<1x256xi32> to vector<8x256xi32>
    %282 = arith.cmpi eq, %158, %281 : vector<8x256xi32>
    %283 = arith.extui %282 : vector<8x256xi1> to vector<8x256xi32>
    %284 = arith.sitofp %283 : vector<8x256xi32> to vector<8x256xf32>
    %c0_67 = arith.constant 0 : index
    %c0_68 = arith.constant 0 : index
    %285 = vector.load %arg4[%c0_67, %c0_68] : memref<256x8xf32, #tpu.memory_space<vmem>>, vector<256x8xf32>
    %cst_69 = arith.constant dense<0.000000e+00> : vector<256x256xf32>
    %286 = tpu.matmul %285, %284, %cst_69 {dimension_numbers = #tpu.dot_dimension_numbers<[1], [0], [0], [1], [0, 0, 1, 1], [], []>} : vector<256x8xf32>, vector<8x256xf32>, vector<256x256xf32> -> vector<256x256xf32>
    %287 = vector.extract_strided_slice %155 {offsets = [7, 0], sizes = [1, 256], strides = [1, 1]} : vector<16x256xi32> to vector<1x256xi32>
    %288 = vector.broadcast %287 : vector<1x256xi32> to vector<256x256xi32>
    %289 = arith.cmpi eq, %159, %288 : vector<256x256xi32>
    %cst_70 = arith.constant 0.000000e+00 : f32
    %290 = vector.broadcast %cst_70 : f32 to vector<256x256xf32>
    %291 = arith.select %289, %286, %290 : vector<256x256xi1>, vector<256x256xf32>
    %cst_71 = arith.constant dense<0.000000e+00> : vector<256xf32>
    %292 = vector.multi_reduction <add>, %291, %cst_71 [0] : vector<256x256xf32> to vector<256xf32>
    %293 = vector.shape_cast %292 : vector<256xf32> to vector<1x256xf32>
    %294 = vector.extract_strided_slice %157 {offsets = [7, 0], sizes = [1, 256], strides = [1, 1]} : vector<16x256xf32> to vector<1x256xf32>
    %295 = arith.mulf %293, %294 : vector<1x256xf32>
    %296 = arith.addf %279, %295 : vector<1x256xf32>
    %297 = vector.extract_strided_slice %153 {offsets = [8, 0], sizes = [1, 256], strides = [1, 1]} : vector<16x256xi32> to vector<1x256xi32>
    %298 = vector.broadcast %297 : vector<1x256xi32> to vector<8x256xi32>
    %299 = arith.cmpi eq, %158, %298 : vector<8x256xi32>
    %300 = arith.extui %299 : vector<8x256xi1> to vector<8x256xi32>
    %301 = arith.sitofp %300 : vector<8x256xi32> to vector<8x256xf32>
    %c0_72 = arith.constant 0 : index
    %c0_73 = arith.constant 0 : index
    %302 = vector.load %arg4[%c0_72, %c0_73] : memref<256x8xf32, #tpu.memory_space<vmem>>, vector<256x8xf32>
    %cst_74 = arith.constant dense<0.000000e+00> : vector<256x256xf32>
    %303 = tpu.matmul %302, %301, %cst_74 {dimension_numbers = #tpu.dot_dimension_numbers<[1], [0], [0], [1], [0, 0, 1, 1], [], []>} : vector<256x8xf32>, vector<8x256xf32>, vector<256x256xf32> -> vector<256x256xf32>
    %304 = vector.extract_strided_slice %155 {offsets = [8, 0], sizes = [1, 256], strides = [1, 1]} : vector<16x256xi32> to vector<1x256xi32>
    %305 = vector.broadcast %304 : vector<1x256xi32> to vector<256x256xi32>
    %306 = arith.cmpi eq, %159, %305 : vector<256x256xi32>
    %cst_75 = arith.constant 0.000000e+00 : f32
    %307 = vector.broadcast %cst_75 : f32 to vector<256x256xf32>
    %308 = arith.select %306, %303, %307 : vector<256x256xi1>, vector<256x256xf32>
    %cst_76 = arith.constant dense<0.000000e+00> : vector<256xf32>
    %309 = vector.multi_reduction <add>, %308, %cst_76 [0] : vector<256x256xf32> to vector<256xf32>
    %310 = vector.shape_cast %309 : vector<256xf32> to vector<1x256xf32>
    %311 = vector.extract_strided_slice %157 {offsets = [8, 0], sizes = [1, 256], strides = [1, 1]} : vector<16x256xf32> to vector<1x256xf32>
    %312 = arith.mulf %310, %311 : vector<1x256xf32>
    %313 = arith.addf %296, %312 : vector<1x256xf32>
    %314 = vector.extract_strided_slice %153 {offsets = [9, 0], sizes = [1, 256], strides = [1, 1]} : vector<16x256xi32> to vector<1x256xi32>
    %315 = vector.broadcast %314 : vector<1x256xi32> to vector<8x256xi32>
    %316 = arith.cmpi eq, %158, %315 : vector<8x256xi32>
    %317 = arith.extui %316 : vector<8x256xi1> to vector<8x256xi32>
    %318 = arith.sitofp %317 : vector<8x256xi32> to vector<8x256xf32>
    %c0_77 = arith.constant 0 : index
    %c0_78 = arith.constant 0 : index
    %319 = vector.load %arg4[%c0_77, %c0_78] : memref<256x8xf32, #tpu.memory_space<vmem>>, vector<256x8xf32>
    %cst_79 = arith.constant dense<0.000000e+00> : vector<256x256xf32>
    %320 = tpu.matmul %319, %318, %cst_79 {dimension_numbers = #tpu.dot_dimension_numbers<[1], [0], [0], [1], [0, 0, 1, 1], [], []>} : vector<256x8xf32>, vector<8x256xf32>, vector<256x256xf32> -> vector<256x256xf32>
    %321 = vector.extract_strided_slice %155 {offsets = [9, 0], sizes = [1, 256], strides = [1, 1]} : vector<16x256xi32> to vector<1x256xi32>
    %322 = vector.broadcast %321 : vector<1x256xi32> to vector<256x256xi32>
    %323 = arith.cmpi eq, %159, %322 : vector<256x256xi32>
    %cst_80 = arith.constant 0.000000e+00 : f32
    %324 = vector.broadcast %cst_80 : f32 to vector<256x256xf32>
    %325 = arith.select %323, %320, %324 : vector<256x256xi1>, vector<256x256xf32>
    %cst_81 = arith.constant dense<0.000000e+00> : vector<256xf32>
    %326 = vector.multi_reduction <add>, %325, %cst_81 [0] : vector<256x256xf32> to vector<256xf32>
    %327 = vector.shape_cast %326 : vector<256xf32> to vector<1x256xf32>
    %328 = vector.extract_strided_slice %157 {offsets = [9, 0], sizes = [1, 256], strides = [1, 1]} : vector<16x256xf32> to vector<1x256xf32>
    %329 = arith.mulf %327, %328 : vector<1x256xf32>
    %330 = arith.addf %313, %329 : vector<1x256xf32>
    %331 = vector.extract_strided_slice %153 {offsets = [10, 0], sizes = [1, 256], strides = [1, 1]} : vector<16x256xi32> to vector<1x256xi32>
    %332 = vector.broadcast %331 : vector<1x256xi32> to vector<8x256xi32>
    %333 = arith.cmpi eq, %158, %332 : vector<8x256xi32>
    %334 = arith.extui %333 : vector<8x256xi1> to vector<8x256xi32>
    %335 = arith.sitofp %334 : vector<8x256xi32> to vector<8x256xf32>
    %c0_82 = arith.constant 0 : index
    %c0_83 = arith.constant 0 : index
    %336 = vector.load %arg4[%c0_82, %c0_83] : memref<256x8xf32, #tpu.memory_space<vmem>>, vector<256x8xf32>
    %cst_84 = arith.constant dense<0.000000e+00> : vector<256x256xf32>
    %337 = tpu.matmul %336, %335, %cst_84 {dimension_numbers = #tpu.dot_dimension_numbers<[1], [0], [0], [1], [0, 0, 1, 1], [], []>} : vector<256x8xf32>, vector<8x256xf32>, vector<256x256xf32> -> vector<256x256xf32>
    %338 = vector.extract_strided_slice %155 {offsets = [10, 0], sizes = [1, 256], strides = [1, 1]} : vector<16x256xi32> to vector<1x256xi32>
    %339 = vector.broadcast %338 : vector<1x256xi32> to vector<256x256xi32>
    %340 = arith.cmpi eq, %159, %339 : vector<256x256xi32>
    %cst_85 = arith.constant 0.000000e+00 : f32
    %341 = vector.broadcast %cst_85 : f32 to vector<256x256xf32>
    %342 = arith.select %340, %337, %341 : vector<256x256xi1>, vector<256x256xf32>
    %cst_86 = arith.constant dense<0.000000e+00> : vector<256xf32>
    %343 = vector.multi_reduction <add>, %342, %cst_86 [0] : vector<256x256xf32> to vector<256xf32>
    %344 = vector.shape_cast %343 : vector<256xf32> to vector<1x256xf32>
    %345 = vector.extract_strided_slice %157 {offsets = [10, 0], sizes = [1, 256], strides = [1, 1]} : vector<16x256xf32> to vector<1x256xf32>
    %346 = arith.mulf %344, %345 : vector<1x256xf32>
    %347 = arith.addf %330, %346 : vector<1x256xf32>
    %348 = vector.extract_strided_slice %153 {offsets = [11, 0], sizes = [1, 256], strides = [1, 1]} : vector<16x256xi32> to vector<1x256xi32>
    %349 = vector.broadcast %348 : vector<1x256xi32> to vector<8x256xi32>
    %350 = arith.cmpi eq, %158, %349 : vector<8x256xi32>
    %351 = arith.extui %350 : vector<8x256xi1> to vector<8x256xi32>
    %352 = arith.sitofp %351 : vector<8x256xi32> to vector<8x256xf32>
    %c0_87 = arith.constant 0 : index
    %c0_88 = arith.constant 0 : index
    %353 = vector.load %arg4[%c0_87, %c0_88] : memref<256x8xf32, #tpu.memory_space<vmem>>, vector<256x8xf32>
    %cst_89 = arith.constant dense<0.000000e+00> : vector<256x256xf32>
    %354 = tpu.matmul %353, %352, %cst_89 {dimension_numbers = #tpu.dot_dimension_numbers<[1], [0], [0], [1], [0, 0, 1, 1], [], []>} : vector<256x8xf32>, vector<8x256xf32>, vector<256x256xf32> -> vector<256x256xf32>
    %355 = vector.extract_strided_slice %155 {offsets = [11, 0], sizes = [1, 256], strides = [1, 1]} : vector<16x256xi32> to vector<1x256xi32>
    %356 = vector.broadcast %355 : vector<1x256xi32> to vector<256x256xi32>
    %357 = arith.cmpi eq, %159, %356 : vector<256x256xi32>
    %cst_90 = arith.constant 0.000000e+00 : f32
    %358 = vector.broadcast %cst_90 : f32 to vector<256x256xf32>
    %359 = arith.select %357, %354, %358 : vector<256x256xi1>, vector<256x256xf32>
    %cst_91 = arith.constant dense<0.000000e+00> : vector<256xf32>
    %360 = vector.multi_reduction <add>, %359, %cst_91 [0] : vector<256x256xf32> to vector<256xf32>
    %361 = vector.shape_cast %360 : vector<256xf32> to vector<1x256xf32>
    %362 = vector.extract_strided_slice %157 {offsets = [11, 0], sizes = [1, 256], strides = [1, 1]} : vector<16x256xf32> to vector<1x256xf32>
    %363 = arith.mulf %361, %362 : vector<1x256xf32>
    %364 = arith.addf %347, %363 : vector<1x256xf32>
    %365 = vector.extract_strided_slice %153 {offsets = [12, 0], sizes = [1, 256], strides = [1, 1]} : vector<16x256xi32> to vector<1x256xi32>
    %366 = vector.broadcast %365 : vector<1x256xi32> to vector<8x256xi32>
    %367 = arith.cmpi eq, %158, %366 : vector<8x256xi32>
    %368 = arith.extui %367 : vector<8x256xi1> to vector<8x256xi32>
    %369 = arith.sitofp %368 : vector<8x256xi32> to vector<8x256xf32>
    %c0_92 = arith.constant 0 : index
    %c0_93 = arith.constant 0 : index
    %370 = vector.load %arg4[%c0_92, %c0_93] : memref<256x8xf32, #tpu.memory_space<vmem>>, vector<256x8xf32>
    %cst_94 = arith.constant dense<0.000000e+00> : vector<256x256xf32>
    %371 = tpu.matmul %370, %369, %cst_94 {dimension_numbers = #tpu.dot_dimension_numbers<[1], [0], [0], [1], [0, 0, 1, 1], [], []>} : vector<256x8xf32>, vector<8x256xf32>, vector<256x256xf32> -> vector<256x256xf32>
    %372 = vector.extract_strided_slice %155 {offsets = [12, 0], sizes = [1, 256], strides = [1, 1]} : vector<16x256xi32> to vector<1x256xi32>
    %373 = vector.broadcast %372 : vector<1x256xi32> to vector<256x256xi32>
    %374 = arith.cmpi eq, %159, %373 : vector<256x256xi32>
    %cst_95 = arith.constant 0.000000e+00 : f32
    %375 = vector.broadcast %cst_95 : f32 to vector<256x256xf32>
    %376 = arith.select %374, %371, %375 : vector<256x256xi1>, vector<256x256xf32>
    %cst_96 = arith.constant dense<0.000000e+00> : vector<256xf32>
    %377 = vector.multi_reduction <add>, %376, %cst_96 [0] : vector<256x256xf32> to vector<256xf32>
    %378 = vector.shape_cast %377 : vector<256xf32> to vector<1x256xf32>
    %379 = vector.extract_strided_slice %157 {offsets = [12, 0], sizes = [1, 256], strides = [1, 1]} : vector<16x256xf32> to vector<1x256xf32>
    %380 = arith.mulf %378, %379 : vector<1x256xf32>
    %381 = arith.addf %364, %380 : vector<1x256xf32>
    %382 = vector.extract_strided_slice %153 {offsets = [13, 0], sizes = [1, 256], strides = [1, 1]} : vector<16x256xi32> to vector<1x256xi32>
    %383 = vector.broadcast %382 : vector<1x256xi32> to vector<8x256xi32>
    %384 = arith.cmpi eq, %158, %383 : vector<8x256xi32>
    %385 = arith.extui %384 : vector<8x256xi1> to vector<8x256xi32>
    %386 = arith.sitofp %385 : vector<8x256xi32> to vector<8x256xf32>
    %c0_97 = arith.constant 0 : index
    %c0_98 = arith.constant 0 : index
    %387 = vector.load %arg4[%c0_97, %c0_98] : memref<256x8xf32, #tpu.memory_space<vmem>>, vector<256x8xf32>
    %cst_99 = arith.constant dense<0.000000e+00> : vector<256x256xf32>
    %388 = tpu.matmul %387, %386, %cst_99 {dimension_numbers = #tpu.dot_dimension_numbers<[1], [0], [0], [1], [0, 0, 1, 1], [], []>} : vector<256x8xf32>, vector<8x256xf32>, vector<256x256xf32> -> vector<256x256xf32>
    %389 = vector.extract_strided_slice %155 {offsets = [13, 0], sizes = [1, 256], strides = [1, 1]} : vector<16x256xi32> to vector<1x256xi32>
    %390 = vector.broadcast %389 : vector<1x256xi32> to vector<256x256xi32>
    %391 = arith.cmpi eq, %159, %390 : vector<256x256xi32>
    %cst_100 = arith.constant 0.000000e+00 : f32
    %392 = vector.broadcast %cst_100 : f32 to vector<256x256xf32>
    %393 = arith.select %391, %388, %392 : vector<256x256xi1>, vector<256x256xf32>
    %cst_101 = arith.constant dense<0.000000e+00> : vector<256xf32>
    %394 = vector.multi_reduction <add>, %393, %cst_101 [0] : vector<256x256xf32> to vector<256xf32>
    %395 = vector.shape_cast %394 : vector<256xf32> to vector<1x256xf32>
    %396 = vector.extract_strided_slice %157 {offsets = [13, 0], sizes = [1, 256], strides = [1, 1]} : vector<16x256xf32> to vector<1x256xf32>
    %397 = arith.mulf %395, %396 : vector<1x256xf32>
    %398 = arith.addf %381, %397 : vector<1x256xf32>
    %399 = vector.extract_strided_slice %153 {offsets = [14, 0], sizes = [1, 256], strides = [1, 1]} : vector<16x256xi32> to vector<1x256xi32>
    %400 = vector.broadcast %399 : vector<1x256xi32> to vector<8x256xi32>
    %401 = arith.cmpi eq, %158, %400 : vector<8x256xi32>
    %402 = arith.extui %401 : vector<8x256xi1> to vector<8x256xi32>
    %403 = arith.sitofp %402 : vector<8x256xi32> to vector<8x256xf32>
    %c0_102 = arith.constant 0 : index
    %c0_103 = arith.constant 0 : index
    %404 = vector.load %arg4[%c0_102, %c0_103] : memref<256x8xf32, #tpu.memory_space<vmem>>, vector<256x8xf32>
    %cst_104 = arith.constant dense<0.000000e+00> : vector<256x256xf32>
    %405 = tpu.matmul %404, %403, %cst_104 {dimension_numbers = #tpu.dot_dimension_numbers<[1], [0], [0], [1], [0, 0, 1, 1], [], []>} : vector<256x8xf32>, vector<8x256xf32>, vector<256x256xf32> -> vector<256x256xf32>
    %406 = vector.extract_strided_slice %155 {offsets = [14, 0], sizes = [1, 256], strides = [1, 1]} : vector<16x256xi32> to vector<1x256xi32>
    %407 = vector.broadcast %406 : vector<1x256xi32> to vector<256x256xi32>
    %408 = arith.cmpi eq, %159, %407 : vector<256x256xi32>
    %cst_105 = arith.constant 0.000000e+00 : f32
    %409 = vector.broadcast %cst_105 : f32 to vector<256x256xf32>
    %410 = arith.select %408, %405, %409 : vector<256x256xi1>, vector<256x256xf32>
    %cst_106 = arith.constant dense<0.000000e+00> : vector<256xf32>
    %411 = vector.multi_reduction <add>, %410, %cst_106 [0] : vector<256x256xf32> to vector<256xf32>
    %412 = vector.shape_cast %411 : vector<256xf32> to vector<1x256xf32>
    %413 = vector.extract_strided_slice %157 {offsets = [14, 0], sizes = [1, 256], strides = [1, 1]} : vector<16x256xf32> to vector<1x256xf32>
    %414 = arith.mulf %412, %413 : vector<1x256xf32>
    %415 = arith.addf %398, %414 : vector<1x256xf32>
    %416 = vector.extract_strided_slice %153 {offsets = [15, 0], sizes = [1, 256], strides = [1, 1]} : vector<16x256xi32> to vector<1x256xi32>
    %417 = vector.broadcast %416 : vector<1x256xi32> to vector<8x256xi32>
    %418 = arith.cmpi eq, %158, %417 : vector<8x256xi32>
    %419 = arith.extui %418 : vector<8x256xi1> to vector<8x256xi32>
    %420 = arith.sitofp %419 : vector<8x256xi32> to vector<8x256xf32>
    %c0_107 = arith.constant 0 : index
    %c0_108 = arith.constant 0 : index
    %421 = vector.load %arg4[%c0_107, %c0_108] : memref<256x8xf32, #tpu.memory_space<vmem>>, vector<256x8xf32>
    %cst_109 = arith.constant dense<0.000000e+00> : vector<256x256xf32>
    %422 = tpu.matmul %421, %420, %cst_109 {dimension_numbers = #tpu.dot_dimension_numbers<[1], [0], [0], [1], [0, 0, 1, 1], [], []>} : vector<256x8xf32>, vector<8x256xf32>, vector<256x256xf32> -> vector<256x256xf32>
    %423 = vector.extract_strided_slice %155 {offsets = [15, 0], sizes = [1, 256], strides = [1, 1]} : vector<16x256xi32> to vector<1x256xi32>
    %424 = vector.broadcast %423 : vector<1x256xi32> to vector<256x256xi32>
    %425 = arith.cmpi eq, %159, %424 : vector<256x256xi32>
    %cst_110 = arith.constant 0.000000e+00 : f32
    %426 = vector.broadcast %cst_110 : f32 to vector<256x256xf32>
    %427 = arith.select %425, %422, %426 : vector<256x256xi1>, vector<256x256xf32>
    %cst_111 = arith.constant dense<0.000000e+00> : vector<256xf32>
    %428 = vector.multi_reduction <add>, %427, %cst_111 [0] : vector<256x256xf32> to vector<256xf32>
    %429 = vector.shape_cast %428 : vector<256xf32> to vector<1x256xf32>
    %430 = vector.extract_strided_slice %157 {offsets = [15, 0], sizes = [1, 256], strides = [1, 1]} : vector<16x256xf32> to vector<1x256xf32>
    %431 = arith.mulf %429, %430 : vector<1x256xf32>
    %432 = arith.addf %415, %431 : vector<1x256xf32>
    %c0_112 = arith.constant 0 : index
    %c0_113 = arith.constant 0 : index
    %433 = vector.load %arg5[%c0_112, %c0_113] : memref<1x256xf32, #tpu.memory_space<vmem>>, vector<1x256xf32>
    tpu.vector_store %arg5[%c0_112, %c0_113], %432 {strides = array<i32>} : memref<1x256xf32, #tpu.memory_space<vmem>>, vector<1x256xf32>,
    return
  }
  func.func @transform_0(%arg0: i32) -> i32 {
    %c0_i32 = arith.constant 0 : i32
    %c0_i32_0 = arith.constant 0 : i32
    return %c0_i32 : i32
  }
  func.func @transform_1(%arg0: i32) -> (i32, i32) {
    %c0_i32 = arith.constant 0 : i32
    %c0_i32_0 = arith.constant 0 : i32
    return %c0_i32, %arg0 : i32, i32
  }
  func.func @transform_2(%arg0: i32) -> (i32, i32) {
    %c0_i32 = arith.constant 0 : i32
    %c0_i32_0 = arith.constant 0 : i32
    return %c0_i32, %arg0 : i32, i32
  }
  func.func @transform_3(%arg0: i32) -> (i32, i32) {
    %c0_i32 = arith.constant 0 : i32
    %c0_i32_0 = arith.constant 0 : i32
    %c0_i32_1 = arith.constant 0 : i32
    return %c0_i32, %c0_i32_0 : i32, i32
  }
  func.func @transform_4(%arg0: i32) -> (i32, i32) {
    %c0_i32 = arith.constant 0 : i32
    %c0_i32_0 = arith.constant 0 : i32
    return %c0_i32, %arg0 : i32, i32
  }
}

</mosaic_0001>

<bundles_post_ra>
// kernel: tpu_custom_call.1
= control target key start
LH: loop header
LB: loop body
LE: loop exit
PB: predicated region body
PF: predicated region fallthrough
CT: control target
= control target key end

     0   :  { %9 = vsyncpa [#allocation4], 0  ;;  %s17162_s0 = inlined_call_operand.vmem [shape: f32[12], index: 0, kind: input, shape index: {}]   ;;  %s17163_s1 = inlined_call_operand.vmem [shape: f32[17,512], index: 1, kind: input, shape index: {}]   ;;  %s17164_s2 = inlined_call_operand.vmem [shape: f32[6,512], index: 2, kind: input, shape index: {}]   ;;  %s17165_s3 = inlined_call_operand.vmem [shape: f32[256,8], index: 3, kind: input, shape index: {}]   ;;  %s17166_s4 = inlined_call_operand.hbm [shape: f32[1,512], index: 4, kind: output, shape index: {}]  }
   0x1   :  { %10 = vsyncpa [#allocation3], 0 }
   0x2   :  { %12 = vsyncpa [#allocation3 + $0x1], 0  ;;  %s10078_s15 = smov 0   ;;  %s10080_s16 = smov 0  }
   0x3   :  { %s10082_s17 = smov 0   ;;  %s10084_s18 = smov 0  }
   0x4 LB: > { %s10099_s19 = sadd.s32 4294967295, %s10044_s18   ;;  %s9056_s20 = sadd.s32 4294967294, %s10044_s18   ;;  %s10044_s18 = sphi %s10084_s18, %s18210_s18   ;;  %s10040_s17 = sphi %s10082_s17, %s18209_s17   ;;  %s10036_s16 = sphi %s10080_s16, %s18208_s16   ;;  %s10032_s15 = sphi %s10078_s15, %s18207_s15  }
   0x5   : > { %s10103_s21 = sadd.s32 1, %s10044_s18   ;;  %s46_s22 = sadd.s32 1, %s10040_s17 }
   0x6   : > { %s43_s23 = ssub.s32 %s10044_s18, %s10103_s21  ;;  %p53_p0 = scmp.ne.s32.totalorder %s10040_s17, %s10036_s16 }
   0x7   : > { %p44_p1 = scmp.eq.s32.totalorder %s43_s23, 0  ;;  %p54_p2 = scmp.eq.s32.totalorder %s10044_s18, 0 }
   0x8   : > { %p130_p3 = scmp.eq.s32.totalorder %s10099_s19, 1  ;;  %p135_p4 = scmp.ne.s32.totalorder %s10036_s16, %s10032_s15 }
   0x9   : > { %s10115_s24 = scalar_select %p44_p1, %s10040_s17, %s46_s22  }
   0xa   : > { %p10117_p5 = por %p54_p2, %p53_p0  ;;  %p10121_p6 = por %p130_p3, %p53_p0 }
   0xb   : > { %p136_p7 = scmp.eq.s32.totalorder %s9056_s20, 1  ;;  %p9057_p8 = scmp.ge.s32.totalorder %s10044_s18, 1 }
   0xc   : > { %s17384_s26 = scalar_select %p10121_p6, 1, 0 }
   0xd   : > { %p143_p9 = scmp.lt.s32.totalorder %s10044_s18, 3  ;;  %p10127_p10 = por %p136_p7, %p135_p4 }
   0xe   : > { %p9718_p11 = scmp.eq.s32.totalorder %s10099_s19, 0  ;;  %s156_s5 = sshll.u32 %s17162_s0, 4  ;;  %s157_s5 = int_to_ptr.vmem [resolvable:$true] %s156_s5 }
   0xf   : > { %s17385_s27 = scalar_select %p10127_p10, 1, 0 }
  0x10   : > { %p10132_p12 = pnand %p9057_p8, %p143_p9  ;;  %s9963_s6 = scalar_lea.vmem %s157_s5, 16 }
  0x11   : > { %p9964_p1 = scmp.ne.s32.totalorder %s157_s5, %s9963_s6  ;;  %p9971_p7 = scmp.lt.s32.totalorder %s157_s5, %s157_s5 }
  0x12   : > { %p9710_p13 = pneg %p10132_p12  ;;  %p9972_p8 = scmp.lt.s32.totalorder %s9963_s6, %s9963_s6 }
  0x14   : > { %p9711_p0 = pnand %p9718_p11, %p9710_p13  ;;  %p9973_p9 = por %p9972_p8, %p9971_p7 }
  0x16   : > { %p9965_p2 = pneg %p9711_p0 }
  0x18   : > { %p9966_p3 = pnand %p9965_p2, %p9964_p1 }
  0x1a   : > { %p9967_p4 = pneg %p9966_p3 }
  0x1c   : > { %p9974_p10 = pnand %p9973_p9, %p9967_p4 }
  0x1e   : > { %9977 = shalt.err (!%p9974_p10)
}
  0x1f   : > { %s10046_s7 = smov [#allocation2]   ;;  %p9059_p6 = scmp.ge.s32.totalorder %s10044_s18, 2 }
  0x20   : > { %9713 = dma.vmem_to_smem (!%p9711_p0), %s157_s5, 16, %s10046_s7, [#allocation4]  }
  0x21   : > { %166 = sbr.rel (%p9059_p6) target bundleno = 47 (0x2f), region = 24 }
  0x28   : > { %169 = sbr.rel (!%p10117_p5) target bundleno = 47 (0x2f), region = 28  ;;  %s171_s8 = sand.u32 (%p10117_p5), 1, %s10040_s17  }
  0x29   : > { %s9664_s9 = sshll.u32 (%p10117_p5), %s10044_s18, 4  ;;  %s9666_s10 = smul.u32 (%p10117_p5), 48, %s171_s8 }
  0x2a   : > { %s176_s13 = scalar_lea.vmem (%p10117_p5), %s17163_s1, %s9664_s9 }
  0x2b   : > { %v189_v0 = vld [vmem:[%s176_s13] sm:$0xff] (%p10117_p5)  ;;  %v191_v1 = vld [vmem:[%s176_s13 + $0x8] sm:$0xff] (%p10117_p5)  ;;  %s173_s14 = scalar_lea.vmem (%p10117_p5), [#allocation5], %s9666_s10 }
  0x2c   : > { %v193_v2 = vld [vmem:[%s176_s13 + $0x20] sm:$0xff] (%p10117_p5)  ;;  %v195_v3 = vld [vmem:[%s176_s13 + $0x28] sm:$0xff] (%p10117_p5)  ;;  %190 = vst [vmem:[%s173_s14] sm:$0xff] (%p10117_p5), %v189_v0  ;;  %192 = vst [vmem:[%s173_s14 + $0x8] sm:$0xff] (%p10117_p5), %v191_v1 }
  0x2d   : > { %v197_v4 = vld [vmem:[%s176_s13 + $0x40] sm:$0xff] (%p10117_p5)  ;;  %v199_v5 = vld [vmem:[%s176_s13 + $0x48] sm:$0xff] (%p10117_p5)  ;;  %194 = vst [vmem:[%s173_s14 + $0x10] sm:$0xff] (%p10117_p5), %v193_v2  ;;  %196 = vst [vmem:[%s173_s14 + $0x18] sm:$0xff] (%p10117_p5), %v195_v3 }
  0x2e   : > { %198 = vst [vmem:[%s173_s14 + $0x20] sm:$0xff] (%p10117_p5), %v197_v4  ;;  %200 = vst [vmem:[%s173_s14 + $0x28] sm:$0xff] (%p10117_p5), %v199_v5 }
  0x2f PF: > { %218 = sbr.rel (%p10132_p12) target bundleno = 1466 (0x5ba), region = 55 }
  0x36   : > { %10023 = dma.done.wait (%p9718_p11), [#allocation4], 16  }
  0x37   : > { %10025 = vsyncadd (%p9718_p11), [#allocation4], 4294967280  ;;  %s10160_s20 = sand.u32 1, %s10036_s16  }
  0x38   : > { %s9667_s22 = smul.u32 48, %s10160_s20 }
  0x3a   : > { %s10163_s23 = scalar_lea.vmem [#allocation5], %s9667_s22 }
  0x3b   : > { %231 = sfence }
  0x3c   : > { %s9065_s25 = sshll.u32 %s10099_s19, 1  ;;  %v17168_v6 = vlaneseq  ;;  %s9068_s28 = sld [smem:[#allocation2 + $0x9]]  ;;  %v17174_v8 = vmov 0.0   ;;  %v265_v10 = vld [vmem:[%s10163_s23 + $0x8] sm:$0xff]  ;;  %v267_v11 = vld [vmem:[%s10163_s23 + $0x18] sm:$0xff]  ;;  %vm17185_vm0 = vcmask 1046528  }
  0x3d   : > { %p258_p5 = scmp.lt.s32.totalorder %s9065_s25, 3  ;;  %s403_s29 = sld [smem:[#allocation2]]  ;;  %1163 = vmatprep.mubr.f32.mxu0 %v17174_v8  ;;  %1648 = vmatprep.mubr.f32.mxu1 %v17174_v8  ;;  %v17401_v49 = vmov 0  ;;  %v17176_v52 = vmov 0   ;;  %v17407_v59 = vmov 0 }
  0x3e   : > { %v10167_v7 = vshrl.u32 %v17168_v6, 7  ;;  %s9069_s30 = sld [smem:[#allocation2 + $0x3]]  ;;  %s9070_s5 = sld [smem:[#allocation2 + $0x6]] }
  0x3f   : > { %s18212_s25 = smov (!%p258_p5, %s9065_s25), 3  ;;  %s10214_s10 = sld [smem:[#allocation2 + $0xa]] }
  0x40   : > { %17387 = vst [vmem:[#allocation9_spill] sm:$0xff] %v10167_v7  ;;  %v10172_v9 = vsub.s32 1, %v10167_v7  ;;  %s9066_s6 = sshll.u32 %s18212_s25, 3  ;;  %v10180_v12 = vsub.s32 0, %v10167_v7  ;;  %s10231_s11 = sld [smem:[#allocation2 + $0x1]] }
  0x41   : > { %s261_s9 = scalar_lea.vmem %s17164_s2, %s9066_s6  ;;  %s10233_s12 = sld [smem:[#allocation2 + $0x4]] }
  0x42   : > { %17388 = vst [vmem:[#allocation10_spill] sm:$0xff] %v10172_v9  ;;  %17389 = vst [vmem:[#allocation11_spill] sm:$0xff] %v10180_v12  ;;  %v270_v13 = vld [vmem:[%s261_s9] ss:$8 sm:$0x3]  ;;  %v10192_v19 = vstv %s9068_s28  ;;  %s10244_s13 = sld [smem:[#allocation2 + $0x7]] }
  0x43   : > { %v9067_v14 = vld [vmem:[%s261_s9 + $0x3] ss:$8 sm:$0x3]  ;;  %v10186_v16 = vrot.slane %v270_v13, %v10172_v9  ;;  %v10188_v17 = vld [vmem:[%s261_s9 + $0x1] ss:$8 sm:$0x3]  ;;  %v10204_v24 = vstv %s403_s29  ;;  %v10236_v35 = vrot.slane %v270_v13, %v10180_v12 }
  0x44   : > { %v10183_v15 = vrot.slane %v9067_v14, %v10172_v9  ;;  %v10190_v18 = vld [vmem:[%s261_s9 + $0x4] ss:$8 sm:$0x3]  ;;  %17390 = vst [vmem:[#allocation12_spill] sm:$0xff] %v10192_v19  ;;  %v10200_v21 = vrot.slane %v10188_v17, %v10172_v9  ;;  %17391 = vst [vmem:[#allocation13_spill] sm:$0xff] %v10204_v24  ;;  %v10206_v25 = vstv %s9069_s30  ;;  %v10221_v31 = vrot.slane %v9067_v14, %v10180_v12  ;;  %s10251_s14 = sld [smem:[#allocation2 + $0xb]] }
  0x45   : > { %v10196_v20 = vrot.slane %v10190_v18, %v10172_v9  ;;  %17392 = vst [vmem:[#allocation14_spill] sm:$0xff] %v10206_v25  ;;  %v10208_v26 = vld [vmem:[%s261_s9 + $0x2] ss:$8 sm:$0x3]  ;;  %v10229_v34 = vstv %s9070_s5  ;;  %17396 = vst [vmem:[#allocation18_spill] sm:$0xff] %v10236_v35  ;;  %s10310_s22 = sld [smem:[#allocation2 + $0x2]]  ;;  %v10392_v8 = vrot.slane %v10188_v17, %v10180_v12 }
  0x46   : > { %v285_v22 = vmul.f32 %v10183_v15, %v265_v10  ;;  %v287_v23 = vmul.f32 %v10183_v15, %v267_v11  ;;  %v10210_v27 = vld [vmem:[%s261_s9 + $0x5] ss:$8 sm:$0x3]  ;;  %17393 = vst [vmem:[#allocation15_spill] sm:$0xff] %v10221_v31  ;;  %17395 = vst [vmem:[#allocation17_spill] sm:$0xff] %v10229_v34  ;;  %v10249_v39 = vrot.slane %v10208_v26, %v10172_v9  ;;  %s10312_s25 = sld [smem:[#allocation2 + $0x5]] }
  0x47   : > { %v437_v28 = vmul.f32 %v10196_v20, %v265_v10  ;;  %v439_v29 = vmul.f32 %v10196_v20, %v267_v11  ;;  %v10218_v30 = vrot.slane %v10210_v27, %v10172_v9  ;;  %s10331_s28 = sld [smem:[#allocation2 + $0x8]]  ;;  %17427 = vst [vmem:[#allocation37_spill] sm:$0xff] %v10392_v8  ;;  %s9064_s8 = sshll.u32 %s10160_s20, 1 }
  0x48   : > { %v10224_v32 = vadd.f32 %v10186_v16, %v285_v22  ;;  %v10227_v33 = vadd.f32 %v10186_v16, %v287_v23  ;;  %17398 = vst [vmem:[#allocation20_spill] sm:$0xff] %v10249_v39  ;;  %v10325_v22 = vstv %s10233_s12  ;;  %v10328_v23 = vstv %s10244_s13  ;;  %s9665_s9 = sshll.u32 %s10099_s19, 5  ;;  %p18205_p11 = scmp.ne.s32.totalorder %s17384_s26, 0 }
  0x49   : > { %v10239_v36 = vadd.f32 %v10200_v21, %v437_v28  ;;  %v10242_v37 = vadd.f32 %v10200_v21, %v439_v29  ;;  %v609_v38 = vmul.f32 %v10218_v30, %v265_v10  ;;  %v611_v51 = vmul.f32 %v10218_v30, %v267_v11  ;;  %17414 = vst [vmem:[#allocation28_spill] sm:$0xff] %v10325_v22  ;;  %s17118_s13 = scalar_lea.hbm %s17166_s4, %s9665_s9  ;;  %s10052_s19 = smov [#allocation6]  }
  0x4a   : > { %17394 = vst [vmem:[#allocation16_spill] sm:$0xff] %v10227_v33  ;;  %v308_v40 = vand.u32 2147483647, %v10224_v32  ;;  %v310_v41 = vand.u32 2147483647, %v10227_v33  ;;  %v378_v42 = vrot.slane %v10224_v32, 1  ;;  %v10316_v10 = vstv %s10214_s10 }
  0x4b   : > { %17397 = vst [vmem:[#allocation19_spill] sm:$0xff] %v10242_v37  ;;  %v17173_v43 = vrot.slane %v10227_v33, 1  ;;  %v460_v44 = vand.u32 2147483647, %v10239_v36  ;;  %v462_v45 = vand.u32 2147483647, %v10242_v37  ;;  %v10308_v4 = vadd.f32 %v10249_v39, %v609_v38 }
  0x4c   : > { %v538_v46 = vrot.slane %v10239_v36, 1  ;;  %v17171_v47 = vrot.slane %v10242_v37, 1  ;;  %vm10261_vm1 = vcmp.eq.f32.partialorder %v308_v40, inf  ;;  %vm10265_vm2 = vcmp.eq.f32.partialorder %v310_v41, inf  ;;  %17411 = vst [vmem:[#allocation25_spill] sm:$0xff] %v10316_v10  ;;  %17415 = vst [vmem:[#allocation29_spill] sm:$0xff] %v10328_v23 }
  0x4d   : > { %v17402_v49 = vsel %vm10265_vm2, 4294967295, %v17401_v49  ;;  %v380_v50 = vsel %vm17185_vm0, %v378_v42, %v17173_v43  ;;  %v320_v53 = vsel %vm10261_vm1, 1, %v17176_v52  ;;  %v10279_v54 = vsel %vm10265_vm2, 1, %v17176_v52  ;;  %s255_s10 = scalar_lea.vmem [#allocation6], %s9064_s8 }
  0x4e   : > { %17403 = vst [vmem:[#allocation21_spill] sm:$0xff] %v17402_v49  ;;  %17404 = vst [vmem:[#allocation22_spill] sm:$0xff] %v10279_v54  ;;  %v390_v55 = vadd.f32 %v380_v50, %v10224_v32  ;;  %vm10282_vm3 = vcmp.eq.f32.partialorder %v460_v44, inf  ;;  %v329_v57 = vrot.slane %v320_v53, 1  ;;  %v17170_v58 = vrot.slane %v10279_v54, 1  ;;  %v10862_v49 = vld [vmem:[%s17165_s3 + $0x98] sm:$0xff] }
  0x4f   : > { %vm10287_vm4 = vcmp.eq.f32.partialorder %v462_v45, inf  ;;  %v472_v60 = vsel %vm10282_vm3, 1, %v17176_v52  ;;  %v540_v0 = vsel %vm17185_vm0, %v538_v46, %v17171_v47  ;;  %v10319_v11 = vstv %s10231_s11  ;;  %v264_v46 = vld [vmem:[%s10163_s23] sm:$0xff]  ;;  %s8967_s11 = sshll.u32 %s255_s10, 4  ;;  %s17120_s11 = int_to_ptr.vmem [resolvable:$true] %s8967_s11 }
  0x50   : > { %v17408_v59 = vsel %vm10287_vm4, 4294967295, %v17407_v59  ;;  %v394_v61 = vmul.f32 0.5, %v390_v55  ;;  %v10297_v62 = vsel %vm10287_vm4, 1, %v17176_v52  ;;  %v480_v63 = vrot.slane %v472_v60, 1  ;;  %17412 = vst [vmem:[#allocation26_spill] sm:$0xff] %v10319_v11  ;;  %v10983_v54 = vld [vmem:[%s17165_s3 + $0xf0] sm:$0xff] }
  0x51   : > { %17409 = vst [vmem:[#allocation23_spill] sm:$0xff] %v17408_v59  ;;  %17410 = vst [vmem:[#allocation24_spill] sm:$0xff] %v10297_v62  ;;  %v331_v1 = vsel %vm17185_vm0, %v329_v57, %v17170_v58  ;;  %v17169_v2 = vrot.slane %v10297_v62, 1  ;;  %v550_v3 = vadd.f32 %v540_v0, %v10239_v36  ;;  %v10322_v13 = vadd.f32 %v10249_v39, %v611_v51  ;;  %v10829_v59 = vld [vmem:[%s17165_s3 + $0x80] sm:$0xff]  ;;  %v10928_v62 = vld [vmem:[%s17165_s3 + $0xc8] sm:$0xff] }
  0x52   : > { %v400_v5 = vsub.f32 %v394_v61, %v10192_v19  ;;  %v632_v28 = vand.u32 2147483647, %v10308_v4  ;;  %vm337_vm5 = vcmp.ne.s32.totalorder %v331_v1, 0  ;;  %v710_v38 = vrot.slane %v10308_v4, 1 }
  0x53   : > { %17413 = vst [vmem:[#allocation27_spill] sm:$0xff] %v10322_v13  ;;  %v554_v14 = vmul.f32 0.5, %v550_v3  ;;  %v482_v29 = vsel %vm17185_vm0, %v480_v63, %v17169_v2  ;;  %v10338_v40 = vstv %s10251_s14  ;;  %v634_v42 = vand.u32 2147483647, %v10322_v13  ;;  %v266_v63 = vld [vmem:[%s10163_s23 + $0x10] sm:$0xff]  ;;  %vm10407_vm9 = vmor %vm10261_vm1, %vm337_vm5  ;;  %s8953_s14 = scalar_lea.sflag [#allocation3], %s10160_s20 }
  0x54   : > { %17416 = vst [vmem:[#allocation30_spill] sm:$0xff] %v10338_v40  ;;  %vm10342_vm6 = vcmp.eq.f32.partialorder %v632_v28, inf  ;;  %v17172_v45 = vrot.slane %v10322_v13, 1  ;;  %v406_v50 = vmul.f32 %v10204_v24, %v400_v5  ;;  %v412_v51 = vmul.f32 %v10206_v25, %v400_v5 }
  0x55   : > { %v560_v41 = vsub.f32 %v554_v14, %v10316_v10  ;;  %v418_v53 = vmul.f32 %v10229_v34, %v400_v5  ;;  %v644_v55 = vsel %vm10342_vm6, 1, %v17176_v52  ;;  %vm488_vm7 = vcmp.ne.s32.totalorder %v482_v29, 0 }
  0x56   : > { %vm10356_vm8 = vcmp.eq.f32.partialorder %v634_v42, inf  ;;  %v17419_v61 = vmov 0  ;;  %v652_v3 = vrot.slane %v644_v55, 1  ;;  %v712_v5 = vsel %vm17185_vm0, %v710_v38, %v17172_v45  ;;  %vm10421_vm10 = vmor %vm10282_vm3, %vm488_vm7 }
  0x57   : > { %v566_v57 = vmul.f32 %v10319_v11, %v560_v41  ;;  %v572_v60 = vmul.f32 %v10325_v22, %v560_v41  ;;  %v17420_v61 = vsel %vm10356_vm8, 4294967295, %v17419_v61  ;;  %v10364_v0 = vsel %vm10356_vm8, 1, %v17176_v52  ;;  %vm496_vm14 = vmor %vm10407_vm9, %vm10421_vm10 }
  0x58   : > { %17421 = vst [vmem:[#allocation31_spill] sm:$0xff] %v17420_v61  ;;  %17422 = vst [vmem:[#allocation32_spill] sm:$0xff] %v10364_v0  ;;  %v284_v14 = vmul.f32 %v10221_v31, %v264_v46  ;;  %v578_v28 = vmul.f32 %v10328_v23, %v560_v41  ;;  %v17179_v42 = vrot.slane %v10364_v0, 1  ;;  %v10373_v6 = vstv %s10310_s22  ;;  %v10884_v0 = vld [vmem:[%s17165_s3 + $0xa8] sm:$0xff]  ;;  %s9978_s22 = scalar_lea.vmem %s17120_s11, 32 }
  0x59   : > { %17423 = vst [vmem:[#allocation33_spill] sm:$0xff] %v10373_v6  ;;  %v10376_v2 = vstv %s10312_s25  ;;  %v722_v58 = vadd.f32 %v712_v5, %v10308_v4  ;;  %v286_v47 = vmul.f32 %v10221_v31, %v266_v63  ;;  %v10385_v38 = vrot.slane %v10190_v18, %v10180_v12  ;;  %p9979_p10 = scmp.ne.s32.totalorder %s17120_s11, %s9978_s22  ;;  %s9982_s25 = sshll.u32 %s10052_s19, 4  ;;  %s9983_s25 = int_to_ptr.vmem [resolvable:$false] %s9982_s25 }
  0x5a   : > { %17424 = vst [vmem:[#allocation34_spill] sm:$0xff] %v10376_v2  ;;  %v10381_v55 = vadd.f32 %v10236_v35, %v284_v14  ;;  %v582_v45 = vadd.f32 %v566_v57, %v406_v50  ;;  %v586_v43 = vadd.f32 %v572_v60, %v412_v51  ;;  %v10388_v41 = vstv %s10331_s28  ;;  %s9984_s28 = scalar_lea.vmem %s9983_s25, 64  ;;  %p9985_p0 = scmp.lt.s32.totalorder %s17120_s11, %s9983_s25 }
  0x5b   : > { %17425 = vst [vmem:[#allocation35_spill] sm:$0xff] %v10385_v38  ;;  %17426 = vst [vmem:[#allocation36_spill] sm:$0xff] %v10388_v41  ;;  %v654_v5 = vsel %vm17185_vm0, %v652_v3, %v17179_v42  ;;  %v726_v52 = vmul.f32 0.5, %v722_v58  ;;  %v10398_v14 = vadd.f32 %v10236_v35, %v286_v47  ;;  %v590_v18 = vadd.f32 %v578_v28, %v418_v53  ;;  %p9980_p12 = pnand %p9979_p10, %p18205_p11  ;;  %p9986_p1 = scmp.lt.s32.totalorder %s9984_s28, %s9978_s22 }
  0x5c   : > { %v307_v31 = vand.u32 2147483647, %v10381_v55  ;;  %v375_v50 = vrot.slane %v10381_v55, 1  ;;  %v436_v51 = vmul.f32 %v10385_v38, %v264_v46  ;;  %v438_v57 = vmul.f32 %v10385_v38, %v266_v63 }
  0x5d   : > { %17428 = vst [vmem:[#allocation38_spill] sm:$0xff] %v10398_v14  ;;  %v732_v58 = vsub.f32 %v726_v52, %v10338_v40  ;;  %v309_v47 = vand.u32 2147483647, %v10398_v14  ;;  %v17181_v60 = vrot.slane %v10398_v14, 1  ;;  %v10416_v53 = vrot.slane %v10210_v27, %v10180_v12  ;;  %p9981_p13 = pneg %p9980_p12  ;;  %p9987_p2 = por %p9986_p1, %p9985_p0 }
  0x5e   : > { %vm660_vm11 = vcmp.ne.s32.totalorder %v654_v5, 0  ;;  %v10426_v48 = vadd.f32 %v10392_v8, %v436_v51  ;;  %v10430_v52 = vrot.slane %v10208_v26, %v10180_v12  ;;  %vm10435_vm12 = vcmp.eq.f32.partialorder %v307_v31, inf }
  0x5f   : > { %17431 = vst [vmem:[#allocation39_spill] sm:$0xff] %v10416_v53  ;;  %v738_v3 = vmul.f32 %v10373_v6, %v732_v58  ;;  %v744_v27 = vmul.f32 %v10376_v2, %v732_v58  ;;  %v750_v29 = vmul.f32 %v10388_v41, %v732_v58  ;;  %vm10439_vm13 = vcmp.eq.f32.partialorder %v309_v47, inf  ;;  %vm664_vm15 = vmor %vm10342_vm6, %vm660_vm11  ;;  %p9988_p3 = pnand %p9987_p2, %p9981_p13 }
  0x60   : > { %17434 = vst [vmem:[#allocation40_spill] sm:$0xff] %v10430_v52  ;;  %v17437_v28 = vmov 0  ;;  %v377_v51 = vsel %vm17185_vm0, %v375_v50, %v17181_v60  ;;  %v10447_v26 = vadd.f32 %v10392_v8, %v438_v57  ;;  %v459_v42 = vand.u32 2147483647, %v10426_v48  ;;  %vm10483_vm5 = vmor %vm496_vm14, %vm664_vm15 }
  0x61   : > { %v17438_v28 = vsel %vm10439_vm13, 4294967295, %v17437_v28  ;;  %v754_v31 = vadd.f32 %v738_v3, %v582_v45  ;;  %v758_v58 = vadd.f32 %v744_v27, %v586_v43  ;;  %v762_v47 = vadd.f32 %v750_v29, %v590_v18 }
  0x62   : > { %17439 = vst [vmem:[#allocation41_spill] sm:$0xff] %v17438_v28  ;;  %17440 = vst [vmem:[#allocation42_spill] sm:$0xff] %v10447_v26  ;;  %v608_v35 = vmul.f32 %v10416_v53, %v264_v46  ;;  %v17441_v50 = vmov 0   ;;  %v389_v60 = vadd.f32 %v377_v51, %v10381_v55  ;;  %v461_v8 = vand.u32 2147483647, %v10447_v26 }
  0x63   : > { %v319_v57 = vsel %vm10435_vm12, 1, %v17441_v50  ;;  %v610_v38 = vmul.f32 %v10416_v53, %v266_v63  ;;  %v9673_v61 = vcvt.f32.s32 %v754_v31  ;;  %v9685_v45 = vcvt.f32.s32 %v758_v58  ;;  %v10807_v53 = vld [vmem:[%s17165_s3 + $0x70] sm:$0xff] }
  0x64   : > { %v9697_v43 = vcvt.f32.s32 %v762_v47  ;;  %v10467_v46 = vsel %vm10439_vm13, 1, %v17441_v50  ;;  %v393_v44 = vmul.f32 0.5, %v389_v60  ;;  %vm10469_vm1 = vcmp.eq.f32.partialorder %v459_v42, inf }
  0x65   : > { %17442 = vst [vmem:[#allocation43_spill] sm:$0xff] %v10467_v46  ;;  %vm10473_vm3 = vcmp.eq.f32.partialorder %v461_v8, inf  ;;  %v17445_v18 = vmov 0  ;;  %v535_v3 = vrot.slane %v10426_v48, 1  ;;  %vm820_vm6 = vcmp.lt.s32.totalorder %v9673_v61, 0 }
  0x66   : > { %v17446_v18 = vsel %vm10473_vm3, 4294967295, %v17445_v18  ;;  %vm824_vm7 = vcmp.ge.s32.totalorder %v9673_v61, 8  ;;  %vm832_vm11 = vcmp.lt.s32.totalorder %v9685_v45, 0  ;;  %vm840_vm0 = vcmp.ge.s32.totalorder %v9685_v45, 8 }
  0x67   : > { %17447 = vst [vmem:[#allocation44_spill] sm:$0xff] %v17446_v18  ;;  %vm828_vm13 = vmor %vm820_vm6, %vm824_vm7  ;;  %vm848_vm8 = vcmp.lt.s32.totalorder %v9697_v43, 0  ;;  %v872_v8 = vmul.u32 64, %v9673_v61  ;;  %v876_v42 = vmul.u32 8, %v9685_v45  ;;  %v326_v60 = vrot.slane %v319_v57, 1 }
  0x68   : > { %vm836_vm4 = vmor %vm828_vm13, %vm832_vm11  ;;  %vm856_vm2 = vcmp.ge.s32.totalorder %v9697_v43, 8  ;;  %v471_v1 = vsel %vm10469_vm1, 1, %v17441_v50  ;;  %v17190_v27 = vrot.slane %v10447_v26, 1  ;;  %v10495_v51 = vsel %vm10473_vm3, 1, %v17441_v50 }
  0x69   : > { %vm844_vm9 = vmor %vm836_vm4, %vm840_vm0  ;;  %v880_v29 = vadd.s32 %v876_v42, %v872_v8  ;;  %17450 = vst [vmem:[#allocation45_spill] sm:$0xff] %v10495_v51  ;;  %v10498_v61 = vadd.f32 %v10430_v52, %v608_v35  ;;  %v10501_v31 = vadd.f32 %v10430_v52, %v610_v38  ;;  %v399_v58 = vsub.f32 %v393_v44, %v10192_v19  ;;  %v10796_v52 = vld [vmem:[%s17165_s3 + $0x68] sm:$0xff]  ;;  %v10994_v19 = vld [vmem:[%s17165_s3 + $0xf8] sm:$0xff] }
  0x6a   : > { %vm852_vm10 = vmor %vm844_vm9, %vm848_vm8  ;;  %vm17452_vm13 = vcmask 1046528   ;;  %v477_v45 = vrot.slane %v471_v1, 1  ;;  %vm17201_vm8 = vmmov 1  }
  0x6b   : > { %17451 = vst [vmem:[#allocation46_spill] sm:$0xff] %v10501_v31  ;;  %v537_v47 = vsel %vm17452_vm13, %v535_v3, %v17190_v27  ;;  %vm860_vm0 = vmor %vm852_vm10, %vm856_vm2  ;;  %v884_v57 = vadd.s32 %v9697_v43, %v880_v29  ;;  %v631_v42 = vand.u32 2147483647, %v10498_v61  ;;  %v633_v38 = vand.u32 2147483647, %v10501_v31 }
  0x6c   : > { %v549_v8 = vadd.f32 %v537_v47, %v10426_v48  ;;  %vm864_vm4 = vmor %vm10483_vm5, %vm860_vm0  ;;  %v707_v44 = vrot.slane %v10498_v61, 1  ;;  %v17194_v17 = vrot.slane %v10501_v31, 1  ;;  %v17453_v43 = vmov 0 }
  0x6d   : > { %vm10516_vm2 = vmxor %vm864_vm4, %vm17201_vm8  ;;  %v17456_v3 = vrot.slane %v10467_v46, 1  ;;  %vm10523_vm15 = vcmp.eq.f32.partialorder %v631_v42, inf  ;;  %vm10531_vm5 = vcmp.eq.f32.partialorder %v633_v38, inf  ;;  %v17460_v27 = vmov 0 }
  0x6e   : > { %v17454_v43 = vsel %vm10516_vm2, 4294967295, %v17453_v43  ;;  %vm17457_vm14 = vmmov %vm17452_vm13  ;;  %v553_v63 = vmul.f32 0.5, %v549_v8  ;;  %v10529_v47 = vsel %vm10516_vm2, %v884_v57, 0  ;;  %v17461_v27 = vsel %vm10531_vm5, 4294967295, %v17460_v27 }
  0x6f   : > { %17455 = vst [vmem:[#allocation47_spill] sm:$0xff] %v17454_v43  ;;  %v328_v1 = vsel %vm17457_vm14, %v326_v60, %v17456_v3  ;;  %17462 = vst [vmem:[#allocation48_spill] sm:$0xff] %v17461_v27  ;;  %v643_v35 = vsel %vm10523_vm15, 1, %v17441_v50  ;;  %v10542_v8 = vshra.s32 %v10529_v47, 8  ;;  %v405_v42 = vmul.f32 %v10204_v24, %v399_v58  ;;  %v10972_v24 = vld [vmem:[%s17165_s3 + $0xe8] sm:$0xff] }
  0x70   : > { %vm17463_vm6 = vmmov %vm17452_vm13  ;;  %v559_v57 = vsub.f32 %v553_v63, %v10316_v10  ;;  %v10549_v38 = vsel %vm10531_vm5, 1, %v17441_v50  ;;  %v17465_v3 = vrot.slane %v10495_v51, 1  ;;  %v649_v28 = vrot.slane %v643_v35, 1  ;;  %v10950_v10 = vld [vmem:[%s17165_s3 + $0xd8] sm:$0xff] }
  0x71   : > { %v709_v60 = vsel %vm17463_vm6, %v707_v44, %v17194_v17  ;;  %17464 = vst [vmem:[#allocation49_spill] sm:$0xff] %v10549_v38  ;;  %vm17466_vm7 = vmmov %vm17463_vm6  ;;  %v17200_v46 = vrot.slane %v10549_v38, 1  ;;  %v963_v17 = vrot.slane %v10542_v8, %v10180_v12  ;;  %v1577_v63 = vrot.slane %v10542_v8, %v10172_v9  ;;  %v10774_v38 = vld [vmem:[%s17165_s3 + $0x58] sm:$0xff] }
  0x72   : > { %v479_v18 = vsel %vm17466_vm7, %v477_v45, %v17465_v3  ;;  %v721_v44 = vadd.f32 %v709_v60, %v10498_v61  ;;  %v411_v43 = vmul.f32 %v10206_v25, %v399_v58  ;;  %v417_v27 = vmul.f32 %v10229_v34, %v399_v58  ;;  %vm17467_vm0 = vmmov %vm17463_vm6  ;;  %v10939_v34 = vld [vmem:[%s17165_s3 + $0xd0] sm:$0xff]  ;;  %v10961_v25 = vld [vmem:[%s17165_s3 + $0xe0] sm:$0xff] }
  0x73   : > { %vm336_vm11 = vcmp.ne.s32.totalorder %v328_v1, 0  ;;  %v565_v51 = vmul.f32 %v10319_v11, %v559_v57  ;;  %v571_v45 = vmul.f32 %v10325_v22, %v559_v57  ;;  %v577_v35 = vmul.f32 %v10328_v23, %v559_v57  ;;  %v10895_v23 = vld [vmem:[%s17165_s3 + $0xb0] sm:$0xff]  ;;  %v10906_v22 = vld [vmem:[%s17165_s3 + $0xb8] sm:$0xff]  ;;  %v10917_v11 = vld [vmem:[%s17165_s3 + $0xc0] sm:$0xff] }
  0x74   : > { %vm965_vm9 = vcmp.eq.s32.totalorder %v10167_v7, %v963_v17  ;;  %vm1579_vm10 = vcmp.eq.s32.totalorder %v10167_v7, %v1577_v63  ;;  %vm487_vm13 = vcmp.ne.s32.totalorder %v479_v18, 0  ;;  %v725_v60 = vmul.f32 0.5, %v721_v44  ;;  %vm10574_vm4 = vmor %vm10435_vm12, %vm336_vm11 }
  0x75   : > { %v17198_v3 = vmov 1.0   ;;  %v651_v58 = vsel %vm17467_vm0, %v649_v28, %v17200_v46  ;;  %v581_v17 = vadd.f32 %v565_v51, %v405_v42  ;;  %v585_v57 = vadd.f32 %v571_v45, %v411_v43  ;;  %vm491_vm14 = vmor %vm10469_vm1, %vm487_vm13 }
  0x76   : > { %9085 = vmatprep.subr.msk.mxu0 %vm965_vm9, %v17198_v3  ;;  %9121 = vmatprep.subr.msk.mxu1 %vm1579_vm10, %v17198_v3  ;;  %v589_v63 = vadd.f32 %v577_v35, %v417_v27  ;;  %v731_v18 = vsub.f32 %v725_v60, %v10338_v40  ;;  %vm659_vm6 = vcmp.ne.s32.totalorder %v651_v58, 0  ;;  %vm495_vm12 = vmor %vm10574_vm4, %vm491_vm14  ;;  %v10593_v60 = vsub.s32 2, %v10167_v7  ;;  %v10873_v40 = vld [vmem:[%s17165_s3 + $0xa0] sm:$0xff] }
  0x77   : > { %vm663_vm7 = vmor %vm10523_vm15, %vm659_vm6  ;;  %v17475_v58 = vmov 0  ;;  %v10652_v42 = vsub.s32 5, %v10167_v7 }
  0x78   : > { %v737_v44 = vmul.f32 %v10373_v6, %v731_v18  ;;  %v743_v3 = vmul.f32 %v10376_v2, %v731_v18  ;;  %v749_v28 = vmul.f32 %v10388_v41, %v731_v18  ;;  %vm10588_vm1 = vmor %vm495_vm12, %vm663_vm7  ;;  %17472 = vst [vmem:[#allocation50_spill] sm:$0xff] %v10593_v60  ;;  %vm17474_vm7 = vmmov 1   ;;  %v10818_v41 = vld [vmem:[%s17165_s3 + $0x78] sm:$0xff]  ;;  %v10840_v2 = vld [vmem:[%s17165_s3 + $0x88] sm:$0xff] }
  0x79   : > { %17480 = vst [vmem:[#allocation54_spill] sm:$0xff] %v10652_v42  ;;  %v10851_v6 = vld [vmem:[%s17165_s3 + $0x90] sm:$0xff] }
  0x7a   : > { %v753_v56 = vadd.f32 %v737_v44, %v581_v17  ;;  %v757_v46 = vadd.f32 %v743_v3, %v585_v57  ;;  %v761_v51 = vadd.f32 %v749_v28, %v589_v63  ;;  %v10596_v3 = vsub.s32 3, %v10167_v7  ;;  %v10623_v28 = vld [vmem:[%s17165_s3] sm:$0xff] }
  0x7b   : > { %v2068_v57 = vrot.slane %v10542_v8, %v10593_v60 }
  0x7c   : > { %v9670_v27 = vcvt.f32.s32 %v753_v56  ;;  %v9682_v43 = vcvt.f32.s32 %v757_v46  ;;  %v9694_v5 = vcvt.f32.s32 %v761_v51  ;;  %17473 = vst [vmem:[#allocation51_spill] sm:$0xff] %v10596_v3  ;;  %v2559_v63 = vrot.slane %v10542_v8, %v10596_v3 }
  0x7e   : > { %vm819_vm11 = vcmp.lt.s32.totalorder %v9670_v27, 0  ;;  %vm823_vm9 = vcmp.ge.s32.totalorder %v9670_v27, 8  ;;  %vm831_vm10 = vcmp.lt.s32.totalorder %v9682_v43, 0  ;;  %vm839_vm13 = vcmp.ge.s32.totalorder %v9682_v43, 8 }
  0x7f   : > { %vm827_vm0 = vmor %vm819_vm11, %vm823_vm9  ;;  %vm847_vm8 = vcmp.lt.s32.totalorder %v9694_v5, 0  ;;  %v871_v45 = vmul.u32 64, %v9670_v27  ;;  %v875_v35 = vmul.u32 8, %v9682_v43  ;;  %vm855_vm14 = vcmp.ge.s32.totalorder %v9694_v5, 8 }
  0x80   : > { %vm835_vm4 = vmor %vm827_vm0, %vm831_vm10  ;;  %vm2070_vm9 = vcmp.eq.s32.totalorder %v10167_v7, %v2068_v57  ;;  %vm2561_vm10 = vcmp.eq.s32.totalorder %v10167_v7, %v2559_v63  ;;  %v17478_v27 = vmov 1.0   ;;  %v10642_v43 = vsub.s32 4, %v10167_v7  ;;  %v10686_v57 = vld [vmem:[%s17165_s3 + $0x18] sm:$0xff]  ;;  %v10697_v63 = vld [vmem:[%s17165_s3 + $0x20] sm:$0xff] }
  0x81   : > { %vm843_vm5 = vmor %vm835_vm4, %vm839_vm13  ;;  %v879_v29 = vadd.s32 %v875_v35, %v871_v45  ;;  %v17481_v45 = vmov 0.0  }
  0x82   : > { %vm851_vm15 = vmor %vm843_vm5, %vm847_vm8  ;;  %vm17315_vm8 = vcmask 64512   ;;  %17479 = vst [vmem:[#allocation53_spill] sm:$0xff] %v10642_v43  ;;  %v3050_v35 = vrot.slane %v10542_v8, %v10642_v43 }
  0x83   : > { %vm859_vm6 = vmor %vm851_vm15, %vm855_vm14  ;;  %v883_v46 = vadd.s32 %v9694_v5, %v879_v29  ;;  %v10649_v5 = vld [vmem:[%s17165_s3 + $0x8] sm:$0xff]  ;;  %v3541_v29 = vrot.slane %v10542_v8, %v10652_v42 }
  0x84   : > { %vm863_vm12 = vmor %vm10588_vm1, %vm859_vm6  ;;  %vm3052_vm4 = vcmp.eq.s32.totalorder %v10167_v7, %v3050_v35  ;;  %v10752_v35 = vld [vmem:[%s17165_s3 + $0x48] sm:$0xff] }
  0x85   : > { %vm10601_vm11 = vmxor %vm863_vm12, %vm17474_vm7  ;;  %vm3543_vm14 = vcmp.eq.s32.totalorder %v10167_v7, %v3541_v29  ;;  %v10763_v29 = vld [vmem:[%s17165_s3 + $0x50] sm:$0xff] }
  0x86   : > { %v17476_v58 = vsel %vm10601_vm11, 4294967295, %v17475_v58  ;;  %v10607_v1 = vsel %vm10601_vm11, %v883_v46, 0  ;;  %v10672_v46 = vld [vmem:[%s17165_s3 + $0x10] sm:$0xff] }
  0x87   : > { %17477 = vst [vmem:[#allocation52_spill] sm:$0xff] %v17476_v58  ;;  %v10610_v17 = vshra.s32 %v10607_v1, 8  ;;  %v10785_v58 = vld [vmem:[%s17165_s3 + $0x60] sm:$0xff] }
  0x89   : > { %v959_v18 = vrot.slane %v10610_v17, %v10180_v12  ;;  %v1573_v44 = vrot.slane %v10610_v17, %v10172_v9  ;;  %v2064_v56 = vrot.slane %v10610_v17, %v10593_v60  ;;  %v2555_v51 = vrot.slane %v10610_v17, %v10596_v3 }
  0x8a   : > { %v3046_v50 = vrot.slane %v10610_v17, %v10642_v43  ;;  %v3537_v39 = vrot.slane %v10610_v17, %v10652_v42  ;;  %v11017_v42 = vsub.s32 6, %v10167_v7  ;;  %v11313_v43 = vadd.s32 88, %v10167_v7 }
  0x8b   : > { %vm964_vm5 = vcmp.eq.s32.totalorder %v10167_v7, %v959_v18  ;;  %vm1578_vm1 = vcmp.eq.s32.totalorder %v10167_v7, %v1573_v44  ;;  %vm2069_vm13 = vcmp.eq.s32.totalorder %v10167_v7, %v2064_v56  ;;  %vm2560_vm0 = vcmp.eq.s32.totalorder %v10167_v7, %v2555_v51  ;;  %v10708_v18 = vld [vmem:[%s17165_s3 + $0x28] sm:$0xff]  ;;  %v10719_v44 = vld [vmem:[%s17165_s3 + $0x30] sm:$0xff]  ;;  %v10730_v56 = vld [vmem:[%s17165_s3 + $0x38] sm:$0xff] }
  0x8c   : > { %9086 = vmatpush1.msk.msra.mxu0 %vm964_vm5, %v17478_v27  ;;  %9122 = vmatpush1.msk.msra.mxu1 %vm1578_vm1, %v17478_v27  ;;  %v10741_v51 = vld [vmem:[%s17165_s3 + $0x40] sm:$0xff]  ;;  %vm3051_vm15 = vcmp.eq.s32.totalorder %v10167_v7, %v3046_v50  ;;  %vm3542_vm6 = vcmp.eq.s32.totalorder %v10167_v7, %v3537_v39  ;;  %17482 = vst [vmem:[#allocation55_spill] sm:$0xff] %v11017_v42  ;;  %v11020_v50 = vsub.s32 7, %v10167_v7  ;;  %17499 = vst [vmem:[#allocation72_spill] sm:$0xff] %v11313_v43 }
  0x8d   : > { %9087 = vmatmul.mubr.msk.f32.vlgmr.msra.gmra.mrb[0].mxu0 %vm17315_vm8, %v10623_v28  ;;  %9123 = vmatmul.mubr.msk.f32.vlgmr.msra.gmra.mrb[0].mxu1 %vm17315_vm8, %v10623_v28  ;;  %v4032_v39 = vrot.slane %v10542_v8, %v11017_v42 }
  0x8e   : > { %9157 = vmatprep.subr.msk.mxu0 %vm2070_vm9, %v17478_v27  ;;  %9193 = vmatprep.subr.msk.mxu1 %vm2561_vm10, %v17478_v27  ;;  %17483 = vst [vmem:[#allocation56_spill] sm:$0xff] %v11020_v50 }
  0x8f   : > { %9158 = vmatpush1.msk.msra.mxu0 %vm2069_vm13, %v17478_v27  ;;  %1169 = vmatprep.mubr.f32.mxu0 %v17481_v45  ;;  %vm4034_vm12 = vcmp.eq.s32.totalorder %v10167_v7, %v4032_v39 }
  0x90   : > { %1654 = vmatprep.mubr.f32.mxu1 %v17481_v45  ;;  %9194 = vmatpush1.msk.msra.mxu1 %vm2560_vm0, %v17478_v27 }
  0x91   : > { %9088 = vmatmul.mubr.msk.f32.gmra.mrb[2].mxu0 %vm17315_vm8, %v10649_v5  ;;  %9124 = vmatmul.mubr.msk.f32.gmra.mrb[2].mxu1 %vm17315_vm8, %v10649_v5 }
  0x92   : > { %1175 = vmatprep.mubr.f32.mxu0 %v17481_v45  ;;  %1660 = vmatprep.mubr.f32.mxu1 %v17481_v45 }
  0x93   : > { %9229 = vmatprep.subr.msk.mxu0 %vm3052_vm4, %v17478_v27  ;;  %9265 = vmatprep.subr.msk.mxu1 %vm3543_vm14, %v17478_v27 }
  0x95   : > { %9089 = vmatmul.mubr.msk.f32.gmra.mrb[4].mxu0 %vm17315_vm8, %v10672_v46  ;;  %9125 = vmatmul.mubr.msk.f32.gmra.mrb[4].mxu1 %vm17315_vm8, %v10672_v46 }
  0x96   : > { %1181 = vmatprep.mubr.f32.mxu0 %v17481_v45  ;;  %1666 = vmatprep.mubr.f32.mxu1 %v17481_v45 }
  0x99   : > { %9090 = vmatmul.mubr.msk.f32.gmra.mrb[6].mxu0 %vm17315_vm8, %v10686_v57  ;;  %9126 = vmatmul.mubr.msk.f32.gmra.mrb[6].mxu1 %vm17315_vm8, %v10686_v57 }
  0x9a   : > { %1187 = vmatprep.mubr.f32.mxu0 %v17481_v45  ;;  %1672 = vmatprep.mubr.f32.mxu1 %v17481_v45 }
  0x9d   : > { %9091 = vmatmul.mubr.msk.f32.gmra.mrb[8].mxu0 %vm17315_vm8, %v10697_v63  ;;  %9127 = vmatmul.mubr.msk.f32.gmra.mrb[8].mxu1 %vm17315_vm8, %v10697_v63 }
  0x9e   : > { %1193 = vmatprep.mubr.f32.mxu0 %v17481_v45  ;;  %1678 = vmatprep.mubr.f32.mxu1 %v17481_v45 }
  0xa1   : > { %9092 = vmatmul.mubr.msk.f32.gmra.mrb[10].mxu0 %vm17315_vm8, %v10708_v18  ;;  %9128 = vmatmul.mubr.msk.f32.gmra.mrb[10].mxu1 %vm17315_vm8, %v10708_v18 }
  0xa2   : > { %1199 = vmatprep.mubr.f32.mxu0 %v17481_v45  ;;  %1684 = vmatprep.mubr.f32.mxu1 %v17481_v45 }
  0xa5   : > { %9093 = vmatmul.mubr.msk.f32.gmra.mrb[12].mxu0 %vm17315_vm8, %v10719_v44  ;;  %9129 = vmatmul.mubr.msk.f32.gmra.mrb[12].mxu1 %vm17315_vm8, %v10719_v44 }
  0xa6   : > { %1205 = vmatprep.mubr.f32.mxu0 %v17481_v45  ;;  %1690 = vmatprep.mubr.f32.mxu1 %v17481_v45 }
  0xa9   : > { %9094 = vmatmul.mubr.msk.f32.gmra.mrb[14].mxu0 %vm17315_vm8, %v10730_v56  ;;  %9130 = vmatmul.mubr.msk.f32.gmra.mrb[14].mxu1 %vm17315_vm8, %v10730_v56 }
  0xaa   : > { %1211 = vmatprep.mubr.f32.mxu0 %v17481_v45  ;;  %1696 = vmatprep.mubr.f32.mxu1 %v17481_v45 }
  0xad   : > { %9095 = vmatmul.mubr.msk.f32.gmra.mrb[16].mxu0 %vm17315_vm8, %v10741_v51  ;;  %9131 = vmatmul.mubr.msk.f32.gmra.mrb[16].mxu1 %vm17315_vm8, %v10741_v51 }
  0xae   : > { %1217 = vmatprep.mubr.f32.mxu0 %v17481_v45  ;;  %1702 = vmatprep.mubr.f32.mxu1 %v17481_v45 }
  0xb1   : > { %9096 = vmatmul.mubr.msk.f32.gmra.mrb[18].mxu0 %vm17315_vm8, %v10752_v35  ;;  %9132 = vmatmul.mubr.msk.f32.gmra.mrb[18].mxu1 %vm17315_vm8, %v10752_v35 }
  0xb2   : > { %1223 = vmatprep.mubr.f32.mxu0 %v17481_v45  ;;  %1708 = vmatprep.mubr.f32.mxu1 %v17481_v45 }
  0xb5   : > { %9097 = vmatmul.mubr.msk.f32.gmra.mrb[20].mxu0 %vm17315_vm8, %v10763_v29  ;;  %9133 = vmatmul.mubr.msk.f32.gmra.mrb[20].mxu1 %vm17315_vm8, %v10763_v29 }
  0xb6   : > { %1229 = vmatprep.mubr.f32.mxu0 %v17481_v45  ;;  %1714 = vmatprep.mubr.f32.mxu1 %v17481_v45 }
  0xb9   : > { %9098 = vmatmul.mubr.msk.f32.gmra.mrb[22].mxu0 %vm17315_vm8, %v10774_v38  ;;  %9134 = vmatmul.mubr.msk.f32.gmra.mrb[22].mxu1 %vm17315_vm8, %v10774_v38 }
  0xba   : > { %1235 = vmatprep.mubr.f32.mxu0 %v17481_v45  ;;  %1720 = vmatprep.mubr.f32.mxu1 %v17481_v45 }
  0xbd   : > { %9099 = vmatmul.mubr.msk.f32.gmra.mrb[24].mxu0 %vm17315_vm8, %v10785_v58  ;;  %9135 = vmatmul.mubr.msk.f32.gmra.mrb[24].mxu1 %vm17315_vm8, %v10785_v58 }
  0xbe   : > { %1241 = vmatprep.mubr.f32.mxu0 %v17481_v45  ;;  %1726 = vmatprep.mubr.f32.mxu1 %v17481_v45 }
  0xc1   : > { %9100 = vmatmul.mubr.msk.f32.gmra.mrb[26].mxu0 %vm17315_vm8, %v10796_v52  ;;  %9136 = vmatmul.mubr.msk.f32.gmra.mrb[26].mxu1 %vm17315_vm8, %v10796_v52 }
  0xc2   : > { %1247 = vmatprep.mubr.f32.mxu0 %v17481_v45  ;;  %1732 = vmatprep.mubr.f32.mxu1 %v17481_v45 }
  0xc5   : > { %9101 = vmatmul.mubr.msk.f32.gmra.mrb[28].mxu0 %vm17315_vm8, %v10807_v53  ;;  %9137 = vmatmul.mubr.msk.f32.gmra.mrb[28].mxu1 %vm17315_vm8, %v10807_v53 }
  0xc6   : > { %1253 = vmatprep.mubr.f32.mxu0 %v17481_v45  ;;  %1738 = vmatprep.mubr.f32.mxu1 %v17481_v45 }
  0xc9   : > { %9102 = vmatmul.mubr.msk.f32.gmra.mrb[30].mxu0 %vm17315_vm8, %v10818_v41  ;;  %9138 = vmatmul.mubr.msk.f32.gmra.mrb[30].mxu1 %vm17315_vm8, %v10818_v41 }
  0xca   : > { %1259 = vmatprep.mubr.f32.mxu0 %v17481_v45  ;;  %1744 = vmatprep.mubr.f32.mxu1 %v17481_v45 }
  0xcd   : > { %9103 = vmatmul.mubr.msk.f32.gmra.mrb[32].mxu0 %vm17315_vm8, %v10829_v59  ;;  %9139 = vmatmul.mubr.msk.f32.gmra.mrb[32].mxu1 %vm17315_vm8, %v10829_v59 }
  0xce   : > { %1265 = vmatprep.mubr.f32.mxu0 %v17481_v45  ;;  %1750 = vmatprep.mubr.f32.mxu1 %v17481_v45 }
  0xd1   : > { %9104 = vmatmul.mubr.msk.f32.gmra.mrb[34].mxu0 %vm17315_vm8, %v10840_v2  ;;  %9140 = vmatmul.mubr.msk.f32.gmra.mrb[34].mxu1 %vm17315_vm8, %v10840_v2 }
  0xd2   : > { %1271 = vmatprep.mubr.f32.mxu0 %v17481_v45  ;;  %1756 = vmatprep.mubr.f32.mxu1 %v17481_v45 }
  0xd5   : > { %9105 = vmatmul.mubr.msk.f32.gmra.mrb[36].mxu0 %vm17315_vm8, %v10851_v6  ;;  %9141 = vmatmul.mubr.msk.f32.gmra.mrb[36].mxu1 %vm17315_vm8, %v10851_v6 }
  0xd6   : > { %1277 = vmatprep.mubr.f32.mxu0 %v17481_v45  ;;  %1762 = vmatprep.mubr.f32.mxu1 %v17481_v45 }
  0xd9   : > { %9106 = vmatmul.mubr.msk.f32.gmra.mrb[38].mxu0 %vm17315_vm8, %v10862_v49  ;;  %9142 = vmatmul.mubr.msk.f32.gmra.mrb[38].mxu1 %vm17315_vm8, %v10862_v49 }
  0xda   : > { %1283 = vmatprep.mubr.f32.mxu0 %v17481_v45  ;;  %1768 = vmatprep.mubr.f32.mxu1 %v17481_v45 }
  0xdd   : > { %9107 = vmatmul.mubr.msk.f32.gmra.mrb[40].mxu0 %vm17315_vm8, %v10873_v40  ;;  %9143 = vmatmul.mubr.msk.f32.gmra.mrb[40].mxu1 %vm17315_vm8, %v10873_v40 }
  0xde   : > { %1289 = vmatprep.mubr.f32.mxu0 %v17481_v45  ;;  %1774 = vmatprep.mubr.f32.mxu1 %v17481_v45 }
  0xe1   : > { %9108 = vmatmul.mubr.msk.f32.gmra.mrb[42].mxu0 %vm17315_vm8, %v10884_v0  ;;  %9144 = vmatmul.mubr.msk.f32.gmra.mrb[42].mxu1 %vm17315_vm8, %v10884_v0 }
  0xe2   : > { %1295 = vmatprep.mubr.f32.mxu0 %v17481_v45  ;;  %1780 = vmatprep.mubr.f32.mxu1 %v17481_v45 }
  0xe5   : > { %9109 = vmatmul.mubr.msk.f32.gmra.mrb[44].mxu0 %vm17315_vm8, %v10895_v23  ;;  %9145 = vmatmul.mubr.msk.f32.gmra.mrb[44].mxu1 %vm17315_vm8, %v10895_v23 }
  0xe6   : > { %1301 = vmatprep.mubr.f32.mxu0 %v17481_v45  ;;  %1786 = vmatprep.mubr.f32.mxu1 %v17481_v45 }
  0xe9   : > { %9110 = vmatmul.mubr.msk.f32.gmra.mrb[46].mxu0 %vm17315_vm8, %v10906_v22  ;;  %9146 = vmatmul.mubr.msk.f32.gmra.mrb[46].mxu1 %vm17315_vm8, %v10906_v22 }
  0xea   : > { %1307 = vmatprep.mubr.f32.mxu0 %v17481_v45  ;;  %1792 = vmatprep.mubr.f32.mxu1 %v17481_v45 }
  0xed   : > { %9111 = vmatmul.mubr.msk.f32.gmra.mrb[48].mxu0 %vm17315_vm8, %v10917_v11  ;;  %9147 = vmatmul.mubr.msk.f32.gmra.mrb[48].mxu1 %vm17315_vm8, %v10917_v11 }
  0xee   : > { %1313 = vmatprep.mubr.f32.mxu0 %v17481_v45  ;;  %1798 = vmatprep.mubr.f32.mxu1 %v17481_v45 }
  0xf1   : > { %9112 = vmatmul.mubr.msk.f32.gmra.mrb[50].mxu0 %vm17315_vm8, %v10928_v62  ;;  %9148 = vmatmul.mubr.msk.f32.gmra.mrb[50].mxu1 %vm17315_vm8, %v10928_v62 }
  0xf2   : > { %1319 = vmatprep.mubr.f32.mxu0 %v17481_v45  ;;  %1804 = vmatprep.mubr.f32.mxu1 %v17481_v45 }
  0xf5   : > { %9113 = vmatmul.mubr.msk.f32.gmra.mrb[52].mxu0 %vm17315_vm8, %v10939_v34  ;;  %9149 = vmatmul.mubr.msk.f32.gmra.mrb[52].mxu1 %vm17315_vm8, %v10939_v34 }
  0xf6   : > { %1325 = vmatprep.mubr.f32.mxu0 %v17481_v45  ;;  %1810 = vmatprep.mubr.f32.mxu1 %v17481_v45 }
  0xf9   : > { %9114 = vmatmul.mubr.msk.f32.gmra.mrb[54].mxu0 %vm17315_vm8, %v10950_v10  ;;  %9150 = vmatmul.mubr.msk.f32.gmra.mrb[54].mxu1 %vm17315_vm8, %v10950_v10 }
  0xfa   : > { %1331 = vmatprep.mubr.f32.mxu0 %v17481_v45  ;;  %1816 = vmatprep.mubr.f32.mxu1 %v17481_v45 }
  0xfd   : > { %9115 = vmatmul.mubr.msk.f32.gmra.mrb[56].mxu0 %vm17315_vm8, %v10961_v25  ;;  %9151 = vmatmul.mubr.msk.f32.gmra.mrb[56].mxu1 %vm17315_vm8, %v10961_v25 }
  0xfe   : > { %1337 = vmatprep.mubr.f32.mxu0 %v17481_v45  ;;  %1822 = vmatprep.mubr.f32.mxu1 %v17481_v45 }
 0x101   : > { %9116 = vmatmul.mubr.msk.f32.gmra.mrb[58].mxu0 %vm17315_vm8, %v10972_v24  ;;  %9152 = vmatmul.mubr.msk.f32.gmra.mrb[58].mxu1 %vm17315_vm8, %v10972_v24 }
 0x102   : > { %1343 = vmatprep.mubr.f32.mxu0 %v17481_v45  ;;  %1828 = vmatprep.mubr.f32.mxu1 %v17481_v45 }
 0x105   : > { %9117 = vmatmul.mubr.msk.f32.gmra.mrb[60].mxu0 %vm17315_vm8, %v10983_v54  ;;  %9153 = vmatmul.mubr.msk.f32.gmra.mrb[60].mxu1 %vm17315_vm8, %v10983_v54 }
 0x106   : > { %1349 = vmatprep.mubr.f32.mxu0 %v17481_v45  ;;  %1834 = vmatprep.mubr.f32.mxu1 %v17481_v45 }
 0x109   : > { %9118 = vmatmul.mubr.msk.f32.gmra.mrb[62].mxu0 %vm17315_vm8, %v10994_v19  ;;  %9154 = vmatmul.mubr.msk.f32.gmra.mrb[62].mxu1 %vm17315_vm8, %v10994_v19 }
 0x10a   : > { %2139 = vmatprep.mubr.f32.mxu0 %v17481_v45  ;;  %2630 = vmatprep.mubr.f32.mxu1 %v17481_v45 }
 0x10d   : > { %9159 = vmatmul.mubr.msk.f32.vlgmr.msra.gmra.mrb[64].mxu0 %vm17315_vm8, %v10623_v28  ;;  %9195 = vmatmul.mubr.msk.f32.vlgmr.msra.gmra.mrb[64].mxu1 %vm17315_vm8, %v10623_v28  ;;  %v4523_v28 = vrot.slane %v10542_v8, %v11020_v50 }
 0x10e   : > { %9230 = vmatpush1.msk.msra.mxu0 %vm3051_vm15, %v17478_v27  ;;  %2145 = vmatprep.mubr.f32.mxu0 %v17481_v45 }
 0x10f   : > { %2636 = vmatprep.mubr.f32.mxu1 %v17481_v45  ;;  %9266 = vmatpush1.msk.msra.mxu1 %vm3542_vm6, %v17478_v27  ;;  %vm4525_vm5 = vcmp.eq.s32.totalorder %v10167_v7, %v4523_v28 }
 0x110   : > { %9301 = vmatprep.subr.msk.mxu0 %vm4034_vm12, %v17478_v27  ;;  %9337 = vmatprep.subr.msk.mxu1 %vm4525_vm5, %v17478_v27 }
 0x111   : > { %9160 = vmatmul.mubr.msk.f32.gmra.mrb[66].mxu0 %vm17315_vm8, %v10649_v5  ;;  %9196 = vmatmul.mubr.msk.f32.gmra.mrb[66].mxu1 %vm17315_vm8, %v10649_v5 }
 0x112   : > { %2151 = vmatprep.mubr.f32.mxu0 %v17481_v45  ;;  %2642 = vmatprep.mubr.f32.mxu1 %v17481_v45 }
 0x115   : > { %9161 = vmatmul.mubr.msk.f32.gmra.mrb[68].mxu0 %vm17315_vm8, %v10672_v46  ;;  %9197 = vmatmul.mubr.msk.f32.gmra.mrb[68].mxu1 %vm17315_vm8, %v10672_v46 }
 0x116   : > { %2157 = vmatprep.mubr.f32.mxu0 %v17481_v45  ;;  %2648 = vmatprep.mubr.f32.mxu1 %v17481_v45 }
 0x119   : > { %9162 = vmatmul.mubr.msk.f32.gmra.mrb[70].mxu0 %vm17315_vm8, %v10686_v57  ;;  %9198 = vmatmul.mubr.msk.f32.gmra.mrb[70].mxu1 %vm17315_vm8, %v10686_v57 }
 0x11a   : > { %2163 = vmatprep.mubr.f32.mxu0 %v17481_v45  ;;  %2654 = vmatprep.mubr.f32.mxu1 %v17481_v45 }
 0x11d   : > { %9163 = vmatmul.mubr.msk.f32.gmra.mrb[72].mxu0 %vm17315_vm8, %v10697_v63  ;;  %9199 = vmatmul.mubr.msk.f32.gmra.mrb[72].mxu1 %vm17315_vm8, %v10697_v63 }
 0x11e   : > { %2169 = vmatprep.mubr.f32.mxu0 %v17481_v45  ;;  %2660 = vmatprep.mubr.f32.mxu1 %v17481_v45 }
 0x121   : > { %9164 = vmatmul.mubr.msk.f32.gmra.mrb[74].mxu0 %vm17315_vm8, %v10708_v18  ;;  %9200 = vmatmul.mubr.msk.f32.gmra.mrb[74].mxu1 %vm17315_vm8, %v10708_v18  ;;  %v11203_v18 = vadd.s32 24, %v10167_v7 }
 0x122   : > { %2175 = vmatprep.mubr.f32.mxu0 %v17481_v45  ;;  %2666 = vmatprep.mubr.f32.mxu1 %v17481_v45 }
 0x123   : > { %17491 = vst [vmem:[#allocation64_spill] sm:$0xff] %v11203_v18 }
 0x125   : > { %9165 = vmatmul.mubr.msk.f32.gmra.mrb[76].mxu0 %vm17315_vm8, %v10719_v44  ;;  %9201 = vmatmul.mubr.msk.f32.gmra.mrb[76].mxu1 %vm17315_vm8, %v10719_v44 }
 0x126   : > { %2181 = vmatprep.mubr.f32.mxu0 %v17481_v45  ;;  %2672 = vmatprep.mubr.f32.mxu1 %v17481_v45 }
 0x129   : > { %9166 = vmatmul.mubr.msk.f32.gmra.mrb[78].mxu0 %vm17315_vm8, %v10730_v56  ;;  %9202 = vmatmul.mubr.msk.f32.gmra.mrb[78].mxu1 %vm17315_vm8, %v10730_v56 }
 0x12a   : > { %2187 = vmatprep.mubr.f32.mxu0 %v17481_v45  ;;  %2678 = vmatprep.mubr.f32.mxu1 %v17481_v45 }
 0x12d   : > { %9167 = vmatmul.mubr.msk.f32.gmra.mrb[80].mxu0 %vm17315_vm8, %v10741_v51  ;;  %9203 = vmatmul.mubr.msk.f32.gmra.mrb[80].mxu1 %vm17315_vm8, %v10741_v51 }
 0x12e   : > { %2193 = vmatprep.mubr.f32.mxu0 %v17481_v45  ;;  %2684 = vmatprep.mubr.f32.mxu1 %v17481_v45 }
 0x131   : > { %9168 = vmatmul.mubr.msk.f32.gmra.mrb[82].mxu0 %vm17315_vm8, %v10752_v35  ;;  %9204 = vmatmul.mubr.msk.f32.gmra.mrb[82].mxu1 %vm17315_vm8, %v10752_v35 }
 0x132   : > { %2199 = vmatprep.mubr.f32.mxu0 %v17481_v45  ;;  %2690 = vmatprep.mubr.f32.mxu1 %v17481_v45 }
 0x135   : > { %9169 = vmatmul.mubr.msk.f32.gmra.mrb[84].mxu0 %vm17315_vm8, %v10763_v29  ;;  %9205 = vmatmul.mubr.msk.f32.gmra.mrb[84].mxu1 %vm17315_vm8, %v10763_v29  ;;  %v11228_v29 = vadd.s32 32, %v10167_v7 }
 0x136   : > { %2205 = vmatprep.mubr.f32.mxu0 %v17481_v45  ;;  %2696 = vmatprep.mubr.f32.mxu1 %v17481_v45 }
 0x137   : > { %17493 = vst [vmem:[#allocation66_spill] sm:$0xff] %v11228_v29 }
 0x139   : > { %9170 = vmatmul.mubr.msk.f32.gmra.mrb[86].mxu0 %vm17315_vm8, %v10774_v38  ;;  %9206 = vmatmul.mubr.msk.f32.gmra.mrb[86].mxu1 %vm17315_vm8, %v10774_v38 }
 0x13a   : > { %2211 = vmatprep.mubr.f32.mxu0 %v17481_v45  ;;  %2702 = vmatprep.mubr.f32.mxu1 %v17481_v45 }
 0x13d   : > { %9171 = vmatmul.mubr.msk.f32.gmra.mrb[88].mxu0 %vm17315_vm8, %v10785_v58  ;;  %9207 = vmatmul.mubr.msk.f32.gmra.mrb[88].mxu1 %vm17315_vm8, %v10785_v58 }
 0x13e   : > { %2217 = vmatprep.mubr.f32.mxu0 %v17481_v45  ;;  %2708 = vmatprep.mubr.f32.mxu1 %v17481_v45 }
 0x141   : > { %9172 = vmatmul.mubr.msk.f32.gmra.mrb[90].mxu0 %vm17315_vm8, %v10796_v52  ;;  %9208 = vmatmul.mubr.msk.f32.gmra.mrb[90].mxu1 %vm17315_vm8, %v10796_v52 }
 0x142   : > { %2223 = vmatprep.mubr.f32.mxu0 %v17481_v45  ;;  %2714 = vmatprep.mubr.f32.mxu1 %v17481_v45 }
 0x145   : > { %9173 = vmatmul.mubr.msk.f32.gmra.mrb[92].mxu0 %vm17315_vm8, %v10807_v53  ;;  %9209 = vmatmul.mubr.msk.f32.gmra.mrb[92].mxu1 %vm17315_vm8, %v10807_v53 }
 0x146   : > { %2229 = vmatprep.mubr.f32.mxu0 %v17481_v45  ;;  %2720 = vmatprep.mubr.f32.mxu1 %v17481_v45 }
 0x149   : > { %9174 = vmatmul.mubr.msk.f32.gmra.mrb[94].mxu0 %vm17315_vm8, %v10818_v41  ;;  %9210 = vmatmul.mubr.msk.f32.gmra.mrb[94].mxu1 %vm17315_vm8, %v10818_v41  ;;  %v11142_v41 = vand.u32 255, %v10529_v47 }
 0x14a   : > { %2235 = vmatprep.mubr.f32.mxu0 %v17481_v45  ;;  %2726 = vmatprep.mubr.f32.mxu1 %v17481_v45 }
 0x14b   : > { %17485 = vst [vmem:[#allocation58_spill] sm:$0xff] %v11142_v41  ;;  %v11160_v53 = vrot.slane %v11142_v41, %v10180_v12  ;;  %v11164_v52 = vrot.slane %v11142_v41, %v10172_v9  ;;  %v11188_v47 = vrot.slane %v11142_v41, %v10593_v60  ;;  %v11192_v8 = vrot.slane %v11142_v41, %v10596_v3 }
 0x14d   : > { %9175 = vmatmul.mubr.msk.f32.gmra.mrb[96].mxu0 %vm17315_vm8, %v10829_v59  ;;  %9211 = vmatmul.mubr.msk.f32.gmra.mrb[96].mxu1 %vm17315_vm8, %v10829_v59  ;;  %v11137_v59 = vand.u32 255, %v10607_v1  ;;  %vm1365_vm10 = vcmp.eq.s32.totalorder %v10167_v7, %v11160_v53  ;;  %vm1850_vm13 = vcmp.eq.s32.totalorder %v10167_v7, %v11164_v52  ;;  %17488 = vst [vmem:[#allocation61_spill] sm:$0xff] %v11188_v47  ;;  %17489 = vst [vmem:[#allocation62_spill] sm:$0xff] %v11192_v8 }
 0x14e   : > { %2241 = vmatprep.mubr.f32.mxu0 %v17481_v45  ;;  %2732 = vmatprep.mubr.f32.mxu1 %v17481_v45  ;;  %v11364_v8 = vadd.s32 144, %v10167_v7 }
 0x14f   : > { %17484 = vst [vmem:[#allocation57_spill] sm:$0xff] %v11137_v59  ;;  %v11196_v1 = vrot.slane %v11137_v59, %v10593_v60 }
 0x150   : > { %17507 = vst [vmem:[#allocation79_spill] sm:$0xff] %v11364_v8 }
 0x151   : > { %9176 = vmatmul.mubr.msk.f32.gmra.mrb[98].mxu0 %vm17315_vm8, %v10840_v2  ;;  %9212 = vmatmul.mubr.msk.f32.gmra.mrb[98].mxu1 %vm17315_vm8, %v10840_v2  ;;  %v11150_v2 = vrot.slane %v11137_v59, %v10180_v12  ;;  %17490 = vst [vmem:[#allocation63_spill] sm:$0xff] %v11196_v1 }
 0x152   : > { %2247 = vmatprep.mubr.f32.mxu0 %v17481_v45  ;;  %2738 = vmatprep.mubr.f32.mxu1 %v17481_v45 }
 0x153   : > { %vm1364_vm1 = vcmp.eq.s32.totalorder %v10167_v7, %v11150_v2 }
 0x155   : > { %9177 = vmatmul.mubr.msk.f32.gmra.mrb[100].mxu0 %vm17315_vm8, %v10851_v6  ;;  %9213 = vmatmul.mubr.msk.f32.gmra.mrb[100].mxu1 %vm17315_vm8, %v10851_v6  ;;  %v11154_v6 = vrot.slane %v11137_v59, %v10172_v9 }
 0x156   : > { %2253 = vmatprep.mubr.f32.mxu0 %v17481_v45  ;;  %2744 = vmatprep.mubr.f32.mxu1 %v17481_v45 }
 0x157   : > { %vm1849_vm9 = vcmp.eq.s32.totalorder %v10167_v7, %v11154_v6 }
 0x159   : > { %9178 = vmatmul.mubr.msk.f32.gmra.mrb[102].mxu0 %vm17315_vm8, %v10862_v49  ;;  %9214 = vmatmul.mubr.msk.f32.gmra.mrb[102].mxu1 %vm17315_vm8, %v10862_v49  ;;  %v11177_v49 = vadd.s32 8, %v10167_v7 }
 0x15a   : > { %2259 = vmatprep.mubr.f32.mxu0 %v17481_v45  ;;  %2750 = vmatprep.mubr.f32.mxu1 %v17481_v45 }
 0x15b   : > { %17486 = vst [vmem:[#allocation59_spill] sm:$0xff] %v11177_v49  ;;  %vm1366_vm0 = vcmp.eq.s32.totalorder %v11177_v49, %v11150_v2  ;;  %vm1851_vm4 = vcmp.eq.s32.totalorder %v11177_v49, %v11154_v6  ;;  %vm1367_vm14 = vcmp.eq.s32.totalorder %v11177_v49, %v11160_v53  ;;  %vm1852_vm15 = vcmp.eq.s32.totalorder %v11177_v49, %v11164_v52 }
 0x15d   : > { %9179 = vmatmul.mubr.msk.f32.gmra.mrb[104].mxu0 %vm17315_vm8, %v10873_v40  ;;  %9215 = vmatmul.mubr.msk.f32.gmra.mrb[104].mxu1 %vm17315_vm8, %v10873_v40  ;;  %v11184_v40 = vadd.s32 16, %v10167_v7 }
 0x15e   : > { %2265 = vmatprep.mubr.f32.mxu0 %v17481_v45  ;;  %2756 = vmatprep.mubr.f32.mxu1 %v17481_v45 }
 0x15f   : > { %17487 = vst [vmem:[#allocation60_spill] sm:$0xff] %v11184_v40  ;;  %vm1368_vm6 = vcmp.eq.s32.totalorder %v11184_v40, %v11150_v2  ;;  %vm1853_vm12 = vcmp.eq.s32.totalorder %v11184_v40, %v11154_v6  ;;  %vm1369_vm5 = vcmp.eq.s32.totalorder %v11184_v40, %v11160_v53 }
 0x160   : > { %v1165_v38 = vpop.f32.mrb[0].mxu0  ;;  %v1650_v58 = vpop.f32.mrb[0].mxu1 }
 0x161   : > { %v1428_v5 = vsel %vm1364_vm1, %v1165_v38, 0.0  ;;  %v1167_v46 = vpop.f32.mrb[1].mxu0  ;;  %9180 = vmatmul.mubr.msk.f32.gmra.mrb[106].mxu0 %vm17315_vm8, %v10884_v0  ;;  %9216 = vmatmul.mubr.msk.f32.gmra.mrb[106].mxu1 %vm17315_vm8, %v10884_v0  ;;  %v1913_v57 = vsel %vm1849_vm9, %v1650_v58, 0.0  ;;  %v1652_v63 = vpop.f32.mrb[1].mxu1  ;;  %v11213_v0 = vrot.slane %v11137_v59, %v10596_v3  ;;  %vm1854_vm1 = vcmp.eq.s32.totalorder %v11184_v40, %v11164_v52 }
 0x162   : > { %v1429_v44 = vsel %vm1365_vm10, %v1167_v46, 0.0  ;;  %v1914_v56 = vsel %vm1850_vm13, %v1652_v63, 0.0  ;;  %2271 = vmatprep.mubr.f32.mxu0 %v17481_v45  ;;  %2762 = vmatprep.mubr.f32.mxu1 %v17481_v45  ;;  %vm1370_vm9 = vcmp.eq.s32.totalorder %v11203_v18, %v11150_v2  ;;  %v11237_v46 = vadd.s32 40, %v10167_v7 }
 0x163   : > { %17492 = vst [vmem:[#allocation65_spill] sm:$0xff] %v11213_v0  ;;  %vm1855_vm10 = vcmp.eq.s32.totalorder %v11203_v18, %v11154_v6  ;;  %vm1371_vm13 = vcmp.eq.s32.totalorder %v11203_v18, %v11160_v53  ;;  %v11316_v3 = vadd.s32 96, %v10167_v7 }
 0x164   : > { %v1171_v51 = vpop.f32.mrb[2].mxu0  ;;  %v1656_v35 = vpop.f32.mrb[2].mxu1  ;;  %17494 = vst [vmem:[#allocation67_spill] sm:$0xff] %v11237_v46 }
 0x165   : > { %v1430_v39 = vsel %vm1366_vm0, %v1171_v51, 0.0  ;;  %v1915_v28 = vsel %vm1851_vm4, %v1656_v35, 0.0  ;;  %v1173_v38 = vpop.f32.mrb[3].mxu0  ;;  %v1658_v58 = vpop.f32.mrb[3].mxu1  ;;  %9181 = vmatmul.mubr.msk.f32.gmra.mrb[108].mxu0 %vm17315_vm8, %v10895_v23  ;;  %9217 = vmatmul.mubr.msk.f32.gmra.mrb[108].mxu1 %vm17315_vm8, %v10895_v23  ;;  %vm1856_vm0 = vcmp.eq.s32.totalorder %v11203_v18, %v11164_v52  ;;  %vm1372_vm4 = vcmp.eq.s32.totalorder %v11228_v29, %v11150_v2  ;;  %17500 = vst [vmem:[#allocation73_spill] sm:$0xff] %v11316_v3 }
 0x166   : > { %v1492_v63 = vadd.f32 %v1430_v39, %v1428_v5  ;;  %v1977_v41 = vadd.f32 %v1915_v28, %v1913_v57  ;;  %v1431_v51 = vsel %vm1367_vm14, %v1173_v38, 0.0  ;;  %v1916_v35 = vsel %vm1852_vm15, %v1658_v58, 0.0  ;;  %2277 = vmatprep.mubr.f32.mxu0 %v17481_v45  ;;  %2768 = vmatprep.mubr.f32.mxu1 %v17481_v45 }
 0x167   : > { %v1529_v23 = vadd.f32 %v1431_v51, %v1429_v44  ;;  %v2014_v59 = vadd.f32 %v1916_v35, %v1914_v56  ;;  %vm1373_vm15 = vcmp.eq.s32.totalorder %v11228_v29, %v11160_v53  ;;  %v11272_v38 = vadd.s32 48, %v10167_v7 }
 0x168   : > { %v1177_v5 = vpop.f32.mrb[4].mxu0  ;;  %v1662_v57 = vpop.f32.mrb[4].mxu1  ;;  %vm1375_vm14 = vcmp.eq.s32.totalorder %v11237_v46, %v11160_v53 }
 0x169   : > { %v1432_v44 = vsel %vm1368_vm6, %v1177_v5, 0.0  ;;  %v1917_v56 = vsel %vm1853_vm12, %v1662_v57, 0.0  ;;  %v1179_v39 = vpop.f32.mrb[5].mxu0  ;;  %v1664_v28 = vpop.f32.mrb[5].mxu1  ;;  %9182 = vmatmul.mubr.msk.f32.gmra.mrb[110].mxu0 %vm17315_vm8, %v10906_v22  ;;  %9218 = vmatmul.mubr.msk.f32.gmra.mrb[110].mxu1 %vm17315_vm8, %v10906_v22  ;;  %17495 = vst [vmem:[#allocation68_spill] sm:$0xff] %v11272_v38  ;;  %vm1374_vm6 = vcmp.eq.s32.totalorder %v11237_v46, %v11150_v2  ;;  %vm1859_vm12 = vcmp.eq.s32.totalorder %v11237_v46, %v11154_v6 }
 0x16a   : > { %v1493_v58 = vadd.f32 %v1492_v63, %v1432_v44  ;;  %v1978_v51 = vadd.f32 %v1977_v41, %v1917_v56  ;;  %v1433_v35 = vsel %vm1369_vm5, %v1179_v39, 0.0  ;;  %v1918_v5 = vsel %vm1854_vm1, %v1664_v28, 0.0  ;;  %2283 = vmatprep.mubr.f32.mxu0 %v17481_v45  ;;  %2774 = vmatprep.mubr.f32.mxu1 %v17481_v45 }
 0x16b   : > { %v1530_v22 = vadd.f32 %v1529_v23, %v1433_v35  ;;  %v2015_v41 = vadd.f32 %v2014_v59, %v1918_v5  ;;  %vm1860_vm5 = vcmp.eq.s32.totalorder %v11237_v46, %v11164_v52  ;;  %v11291_v44 = vadd.s32 56, %v10167_v7 }
 0x16c   : > { %v1183_v63 = vpop.f32.mrb[6].mxu0  ;;  %v1668_v57 = vpop.f32.mrb[6].mxu1  ;;  %v11294_v56 = vadd.s32 64, %v10167_v7  ;;  %v11297_v39 = vadd.s32 72, %v10167_v7  ;;  %v11300_v23 = vadd.s32 80, %v10167_v7  ;;  %vm1376_vm1 = vcmp.eq.s32.totalorder %v11272_v38, %v11150_v2 }
 0x16d   : > { %17496 = vst [vmem:[#allocation69_spill] sm:$0xff] %v11291_v44  ;;  %v1434_v59 = vsel %vm1370_vm9, %v1183_v63, 0.0  ;;  %v1919_v28 = vsel %vm1855_vm10, %v1668_v57, 0.0  ;;  %v1185_v35 = vpop.f32.mrb[7].mxu0  ;;  %v1670_v5 = vpop.f32.mrb[7].mxu1  ;;  %9183 = vmatmul.mubr.msk.f32.gmra.mrb[112].mxu0 %vm17315_vm8, %v10917_v11  ;;  %9219 = vmatmul.mubr.msk.f32.gmra.mrb[112].mxu1 %vm17315_vm8, %v10917_v11  ;;  %vm1861_vm9 = vcmp.eq.s32.totalorder %v11272_v38, %v11154_v6  ;;  %vm1379_vm10 = vcmp.eq.s32.totalorder %v11291_v44, %v11160_v53 }
 0x16e   : > { %17497 = vst [vmem:[#allocation70_spill] sm:$0xff] %v11297_v39  ;;  %17498 = vst [vmem:[#allocation71_spill] sm:$0xff] %v11300_v23  ;;  %v1494_v60 = vadd.f32 %v1493_v58, %v1434_v59  ;;  %v1979_v63 = vadd.f32 %v1978_v51, %v1919_v28  ;;  %v1435_v57 = vsel %vm1371_vm13, %v1185_v35, 0.0  ;;  %v1920_v40 = vsel %vm1856_vm0, %v1670_v5, 0.0  ;;  %2289 = vmatprep.mubr.f32.mxu0 %v17481_v45 }
 0x16f   : > { %2780 = vmatprep.mubr.f32.mxu1 %v17481_v45  ;;  %v1531_v11 = vadd.f32 %v1530_v22, %v1435_v57  ;;  %v2016_v58 = vadd.f32 %v2015_v41, %v1920_v40  ;;  %v11337_v59 = vadd.s32 104, %v10167_v7  ;;  %v11342_v22 = vadd.s32 112, %v10167_v7 }
 0x170   : > { %v1189_v28 = vpop.f32.mrb[8].mxu0  ;;  %v1674_v35 = vpop.f32.mrb[8].mxu1  ;;  %v11345_v40 = vadd.s32 120, %v10167_v7  ;;  %v11348_v41 = vadd.s32 128, %v10167_v7  ;;  %vm17505_vm0 = vcmp.eq.s32.totalorder %v11228_v29, %v11154_v6  ;;  %v11361_v5 = vadd.s32 136, %v10167_v7 }
 0x171   : > { %17501 = vst [vmem:[#allocation74_spill] sm:$0xff] %v11337_v59  ;;  %17502 = vst [vmem:[#allocation75_spill] sm:$0xff] %v11342_v22  ;;  %v1436_v57 = vsel %vm1372_vm4, %v1189_v28, 0.0  ;;  %v1921_v51 = vsel %vm17505_vm0, %v1674_v35, 0.0  ;;  %v1191_v18 = vpop.f32.mrb[9].mxu0  ;;  %v1676_v49 = vpop.f32.mrb[9].mxu1  ;;  %9184 = vmatmul.mubr.msk.f32.gmra.mrb[114].mxu0 %vm17315_vm8, %v10928_v62  ;;  %9220 = vmatmul.mubr.msk.f32.gmra.mrb[114].mxu1 %vm17315_vm8, %v10928_v62  ;;  %vm17508_vm4 = vcmp.eq.s32.totalorder %v11228_v29, %v11164_v52 }
 0x172   : > { %17503 = vst [vmem:[#allocation76_spill] sm:$0xff] %v11345_v40  ;;  %17504 = vst [vmem:[#allocation77_spill] sm:$0xff] %v11348_v41  ;;  %v1495_v47 = vadd.f32 %v1494_v60, %v1436_v57  ;;  %v1980_v28 = vadd.f32 %v1979_v63, %v1921_v51  ;;  %v1437_v35 = vsel %vm1373_vm15, %v1191_v18, 0.0  ;;  %v1922_v0 = vsel %vm17508_vm4, %v1676_v49, 0.0  ;;  %2295 = vmatprep.mubr.f32.mxu0 %v17481_v45 }
 0x173   : > { %17506 = vst [vmem:[#allocation78_spill] sm:$0xff] %v11361_v5  ;;  %2786 = vmatprep.mubr.f32.mxu1 %v17481_v45  ;;  %vm1378_vm0 = vcmp.eq.s32.totalorder %v11291_v44, %v11150_v2  ;;  %vm1863_vm13 = vcmp.eq.s32.totalorder %v11291_v44, %v11154_v6  ;;  %v1532_v62 = vadd.f32 %v1531_v11, %v1437_v35  ;;  %v11383_v49 = vadd.s32 152, %v10167_v7 }
 0x174   : > { %v2017_v60 = vadd.f32 %v2016_v58, %v1922_v0  ;;  %v11386_v18 = vadd.s32 160, %v10167_v7  ;;  %v1195_v63 = vpop.f32.mrb[10].mxu0  ;;  %v1680_v51 = vpop.f32.mrb[10].mxu1  ;;  %v11389_v57 = vadd.s32 168, %v10167_v7  ;;  %v349_v11 = vrot.slane %v10381_v55, 7 }
 0x175   : > { %17509 = vst [vmem:[#allocation80_spill] sm:$0xff] %v11383_v49  ;;  %v503_v58 = vrot.slane %v10426_v48, 7  ;;  %v1438_v35 = vsel %vm1374_vm6, %v1195_v63, 0.0  ;;  %v1923_v29 = vsel %vm1859_vm12, %v1680_v51, 0.0  ;;  %v1197_v1 = vpop.f32.mrb[11].mxu0  ;;  %v1682_v9 = vpop.f32.mrb[11].mxu1  ;;  %9185 = vmatmul.mubr.msk.f32.gmra.mrb[116].mxu0 %vm17315_vm8, %v10939_v34  ;;  %9221 = vmatmul.mubr.msk.f32.gmra.mrb[116].mxu1 %vm17315_vm8, %v10939_v34  ;;  %vm1380_vm6 = vcmp.eq.s32.totalorder %v11294_v56, %v11150_v2 }
 0x176   : > { %17510 = vst [vmem:[#allocation81_spill] sm:$0xff] %v11386_v18  ;;  %17511 = vst [vmem:[#allocation82_spill] sm:$0xff] %v11389_v57  ;;  %vm348_vm4 = vcmask 1040384   ;;  %v1496_v12 = vadd.f32 %v1495_v47, %v1438_v35  ;;  %v1981_v57 = vadd.f32 %v1980_v28, %v1923_v29  ;;  %v1439_v63 = vsel %vm1375_vm14, %v1197_v1, 0.0  ;;  %2301 = vmatprep.mubr.f32.mxu0 %v17481_v45  ;;  %2792 = vmatprep.mubr.f32.mxu1 %v17481_v45 }
 0x177   : > { %v1924_v51 = vsel %vm1860_vm5, %v1682_v9, 0.0  ;;  %vm1865_vm12 = vcmp.eq.s32.totalorder %v11294_v56, %v11154_v6  ;;  %v1533_v34 = vadd.f32 %v1532_v62, %v1439_v63  ;;  %v11422_v9 = vadd.s32 176, %v10167_v7 }
 0x178   : > { %v2018_v47 = vadd.f32 %v2017_v60, %v1924_v51  ;;  %v11425_v1 = vadd.s32 184, %v10167_v7  ;;  %v1201_v29 = vpop.f32.mrb[12].mxu0  ;;  %v1686_v28 = vpop.f32.mrb[12].mxu1  ;;  %v11428_v35 = vadd.s32 192, %v10167_v7  ;;  %v17515_v62 = vrot.slane %v10398_v14, 7 }
 0x179   : > { %17512 = vst [vmem:[#allocation83_spill] sm:$0xff] %v11422_v9  ;;  %v361_v63 = vsub.f32 %v10381_v55, %v349_v11  ;;  %v675_v51 = vrot.slane %v10498_v61, 7  ;;  %v1440_v0 = vsel %vm1376_vm1, %v1201_v29, 0.0  ;;  %v1925_v46 = vsel %vm1861_vm9, %v1686_v28, 0.0  ;;  %v1688_v9 = vpop.f32.mrb[13].mxu1  ;;  %9186 = vmatmul.mubr.msk.f32.gmra.mrb[118].mxu0 %vm17315_vm8, %v10950_v10  ;;  %9222 = vmatmul.mubr.msk.f32.gmra.mrb[118].mxu1 %vm17315_vm8, %v10950_v10 }
 0x17a   : > { %17513 = vst [vmem:[#allocation84_spill] sm:$0xff] %v11425_v1  ;;  %17514 = vst [vmem:[#allocation85_spill] sm:$0xff] %v11428_v35  ;;  %v352_v60 = vsel %vm348_vm4, %v349_v11, %v17515_v62  ;;  %v1203_v1 = vpop.f32.mrb[13].mxu0  ;;  %v17516_v55 = vrot.slane %v10447_v26, 7  ;;  %v1497_v35 = vadd.f32 %v1496_v12, %v1440_v0  ;;  %v1982_v29 = vadd.f32 %v1981_v57, %v1925_v46 }
 0x17b   : > { %vm17517_vm5 = vcmp.eq.s32.totalorder %v11272_v38, %v11160_v53  ;;  %vm17518_vm1 = vcmp.eq.s32.totalorder %v11272_v38, %v11164_v52  ;;  %2307 = vmatprep.mubr.f32.mxu0 %v17481_v45  ;;  %2798 = vmatprep.mubr.f32.mxu1 %v17481_v45  ;;  %vm1382_vm9 = vcmp.eq.s32.totalorder %v11297_v39, %v11150_v2  ;;  %v11466_v46 = vadd.s32 200, %v10167_v7 }
 0x17c   : > { %v506_v11 = vsel %vm348_vm4, %v503_v58, %v17516_v55  ;;  %v1441_v28 = vsel %vm17517_vm5, %v1203_v1, 0.0  ;;  %v1926_v18 = vsel %vm17518_vm1, %v1688_v9, 0.0  ;;  %vm1867_vm14 = vcmp.eq.s32.totalorder %v11297_v39, %v11154_v6  ;;  %v1207_v0 = vpop.f32.mrb[14].mxu0  ;;  %v1692_v9 = vpop.f32.mrb[14].mxu1 }
 0x17d   : > { %v1534_v12 = vadd.f32 %v1533_v34, %v1441_v28  ;;  %v2019_v10 = vadd.f32 %v2018_v47, %v1926_v18  ;;  %vm1383_vm15 = vcmp.eq.s32.totalorder %v11297_v39, %v11160_v53  ;;  %17519 = vst [vmem:[#allocation86_spill] sm:$0xff] %v11466_v46  ;;  %v515_v57 = vsub.f32 %v10426_v48, %v503_v58  ;;  %v1209_v58 = vpop.f32.mrb[15].mxu0  ;;  %v1694_v28 = vpop.f32.mrb[15].mxu1 }
 0x17e   : > { %v11470_v1 = vadd.s32 208, %v10167_v7  ;;  %v11473_v55 = vadd.s32 216, %v10167_v7  ;;  %v363_v18 = vsub.f32 %v10398_v14, %v352_v60  ;;  %v517_v34 = vsub.f32 %v10447_v26, %v506_v11  ;;  %9187 = vmatmul.mubr.msk.f32.gmra.mrb[120].mxu0 %vm17315_vm8, %v10961_v25  ;;  %9223 = vmatmul.mubr.msk.f32.gmra.mrb[120].mxu1 %vm17315_vm8, %v10961_v25 }
 0x17f   : > { %v1442_v47 = vsel %vm1378_vm0, %v1207_v0, 0.0  ;;  %v1927_v48 = vsel %vm1863_vm13, %v1692_v9, 0.0  ;;  %v367_v62 = vmul.f32 %v361_v63, %v361_v63  ;;  %v17522_v60 = vrot.slane %v10501_v31, 7  ;;  %2313 = vmatprep.mubr.f32.mxu0 %v17481_v45  ;;  %2804 = vmatprep.mubr.f32.mxu1 %v17481_v45 }
 0x180   : > { %17520 = vst [vmem:[#allocation87_spill] sm:$0xff] %v11470_v1  ;;  %17521 = vst [vmem:[#allocation88_spill] sm:$0xff] %v11473_v55  ;;  %v1498_v38 = vadd.f32 %v1497_v35, %v1442_v47  ;;  %v1983_v26 = vadd.f32 %v1982_v29, %v1927_v48  ;;  %v1443_v0 = vsel %vm1379_vm10, %v1209_v58, 0.0  ;;  %vm17523_vm13 = vcmp.eq.s32.totalorder %v11291_v44, %v11164_v52  ;;  %v1213_v47 = vpop.f32.mrb[16].mxu0  ;;  %v1698_v48 = vpop.f32.mrb[16].mxu1 }
 0x181   : > { %v678_v11 = vsel %vm348_vm4, %v675_v51, %v17522_v60  ;;  %v1928_v9 = vsel %vm17523_vm13, %v1694_v28, 0.0  ;;  %vm1384_vm0 = vcmp.eq.s32.totalorder %v11300_v23, %v11150_v2  ;;  %vm1869_vm1 = vcmp.eq.s32.totalorder %v11300_v23, %v11154_v6 }
 0x182   : > { %v1535_v25 = vadd.f32 %v1534_v12, %v1443_v0  ;;  %v2020_v35 = vadd.f32 %v2019_v10, %v1928_v9  ;;  %v521_v63 = vmul.f32 %v515_v57, %v515_v57  ;;  %v687_v29 = vsub.f32 %v10498_v61, %v675_v51  ;;  %v1215_v57 = vpop.f32.mrb[17].mxu0  ;;  %v1700_v0 = vpop.f32.mrb[17].mxu1  ;;  %9188 = vmatmul.mubr.msk.f32.gmra.mrb[122].mxu0 %vm17315_vm8, %v10972_v24 }
 0x183   : > { %v11508_v58 = vadd.s32 224, %v10167_v7  ;;  %v369_v28 = vmul.f32 %v363_v18, %v363_v18  ;;  %v523_v60 = vmul.f32 %v517_v34, %v517_v34  ;;  %v689_v44 = vsub.f32 %v10501_v31, %v678_v11  ;;  %9224 = vmatmul.mubr.msk.f32.gmra.mrb[122].mxu1 %vm17315_vm8, %v10972_v24  ;;  %2319 = vmatprep.mubr.f32.mxu0 %v17481_v45 }
 0x184   : > { %v1444_v12 = vsel %vm1380_vm6, %v1213_v47, 0.0  ;;  %v1929_v10 = vsel %vm1865_vm12, %v1698_v48, 0.0  ;;  %v350_v61 = vrot.slane %v10224_v32, 7  ;;  %v17280_v51 = vrot.slane %v10227_v33, 7  ;;  %2810 = vmatprep.mubr.f32.mxu1 %v17481_v45 }
 0x185   : > { %17524 = vst [vmem:[#allocation89_spill] sm:$0xff] %v11508_v58  ;;  %v1499_v18 = vadd.f32 %v1498_v38, %v1444_v12  ;;  %v1984_v34 = vadd.f32 %v1983_v26, %v1929_v10  ;;  %vm17525_vm6 = vcmp.eq.s32.totalorder %v11294_v56, %v11160_v53  ;;  %vm17526_vm12 = vcmp.eq.s32.totalorder %v11294_v56, %v11164_v52  ;;  %v1219_v10 = vpop.f32.mrb[18].mxu0 }
 0x186   : > { %v1445_v11 = vsel %vm17525_vm6, %v1215_v57, 0.0  ;;  %v1930_v9 = vsel %vm17526_vm12, %v1700_v0, 0.0  ;;  %vm1386_vm13 = vcmp.eq.s32.totalorder %v11313_v43, %v11150_v2  ;;  %v17527_v38 = vrot.slane %v10610_v17, %v11017_v42  ;;  %v1704_v57 = vpop.f32.mrb[18].mxu1  ;;  %9189 = vmatmul.mubr.msk.f32.gmra.mrb[124].mxu0 %vm17315_vm8, %v10983_v54 }
 0x187   : > { %v1536_v24 = vadd.f32 %v1535_v25, %v1445_v11  ;;  %v2021_v26 = vadd.f32 %v2020_v35, %v1930_v9  ;;  %v527_v48 = vadd.f32 %v521_v63, %v367_v62  ;;  %v693_v12 = vmul.f32 %v687_v29, %v687_v29  ;;  %v1221_v63 = vpop.f32.mrb[19].mxu0  ;;  %v1706_v29 = vpop.f32.mrb[19].mxu1  ;;  %9225 = vmatmul.mubr.msk.f32.gmra.mrb[124].mxu1 %vm17315_vm8, %v10983_v54 }
 0x188   : > { %vm11543_vm12 = vcmp.eq.s32.totalorder %v10167_v7, %v17527_v38  ;;  %v17530_v25 = vrot.slane %v10610_v17, %v11020_v50  ;;  %v11556_v0 = vadd.s32 232, %v10167_v7  ;;  %v529_v11 = vadd.f32 %v523_v60, %v369_v28  ;;  %2325 = vmatprep.mubr.f32.mxu0 %v17481_v45  ;;  %2816 = vmatprep.mubr.f32.mxu1 %v17481_v45 }
 0x189   : > { %v695_v9 = vmul.f32 %v689_v44, %v689_v44  ;;  %v504_v38 = vrot.slane %v10239_v36, 7  ;;  %v1446_v62 = vsel %vm1382_vm9, %v1219_v10, 0.0  ;;  %v1931_v17 = vsel %vm1867_vm14, %v1704_v57, 0.0 }
 0x18a   : > { %vm11551_vm5 = vcmp.eq.s32.totalorder %v10167_v7, %v17530_v25  ;;  %17533 = vst [vmem:[#allocation90_spill] sm:$0xff] %v11556_v0  ;;  %v354_v44 = vsel %vm348_vm4, %v350_v61, %v17280_v51  ;;  %v17281_v28 = vrot.slane %v10242_v37, 7  ;;  %v1500_v60 = vadd.f32 %v1499_v18, %v1446_v62  ;;  %9190 = vmatmul.mubr.msk.f32.gmra.mrb[126].mxu0 %vm17315_vm8, %v10994_v19 }
 0x18b   : > { %v1985_v10 = vadd.f32 %v1984_v34, %v1931_v17  ;;  %v1447_v57 = vsel %vm1383_vm15, %v1221_v63, 0.0  ;;  %vm17534_vm14 = vcmp.eq.s32.totalorder %v11297_v39, %v11164_v52  ;;  %vm1388_vm9 = vcmp.eq.s32.totalorder %v11316_v3, %v11150_v2  ;;  %v1225_v17 = vpop.f32.mrb[20].mxu0  ;;  %v1710_v63 = vpop.f32.mrb[20].mxu1  ;;  %9226 = vmatmul.mubr.msk.f32.gmra.mrb[126].mxu1 %vm17315_vm8, %v10994_v19  ;;  %3121 = vmatprep.mubr.f32.mxu0 %v17481_v45 }
 0x18c   : > { %v1932_v25 = vsel %vm17534_vm14, %v1706_v29, 0.0  ;;  %vm1873_vm6 = vcmp.eq.s32.totalorder %v11316_v3, %v11154_v6  ;;  %v1537_v54 = vadd.f32 %v1536_v24, %v1447_v57  ;;  %v11590_v34 = vadd.s32 240, %v10167_v7  ;;  %3612 = vmatprep.mubr.f32.mxu1 %v17481_v45 }
 0x18d   : > { %v2022_v18 = vadd.f32 %v2021_v26, %v1932_v25  ;;  %v11592_v62 = vadd.f32 %v693_v12, %v527_v48  ;;  %v11594_v29 = vadd.f32 %v695_v9, %v529_v11  ;;  %v362_v51 = vsub.f32 %v10224_v32, %v350_v61  ;;  %v1227_v48 = vpop.f32.mrb[21].mxu0  ;;  %v1712_v12 = vpop.f32.mrb[21].mxu1 }
 0x18e   : > { %17535 = vst [vmem:[#allocation91_spill] sm:$0xff] %v11590_v34  ;;  %v364_v24 = vsub.f32 %v10227_v33, %v354_v44  ;;  %v676_v26 = vrot.slane %v10308_v4, 7  ;;  %v1448_v57 = vsel %vm1384_vm0, %v1225_v17, 0.0  ;;  %v1933_v25 = vsel %vm1869_vm1, %v1710_v63, 0.0  ;;  %v1231_v63 = vpop.f32.mrb[22].mxu0 }
 0x18f   : > { %v508_v32 = vsel %vm348_vm4, %v504_v38, %v17281_v28  ;;  %v17282_v61 = vrot.slane %v10322_v13, 7  ;;  %v1501_v11 = vadd.f32 %v1500_v60, %v1448_v57  ;;  %v1986_v9 = vadd.f32 %v1985_v10, %v1933_v25  ;;  %v1716_v57 = vpop.f32.mrb[22].mxu1 }
 0x190   : > { %vm17536_vm0 = vcmp.eq.s32.totalorder %v11300_v23, %v11160_v53  ;;  %vm17537_vm1 = vcmp.eq.s32.totalorder %v11300_v23, %v11164_v52  ;;  %vm1390_vm14 = vcmp.eq.s32.totalorder %v11337_v59, %v11150_v2  ;;  %vm1875_vm15 = vcmp.eq.s32.totalorder %v11337_v59, %v11154_v6  ;;  %v1718_v28 = vpop.f32.mrb[23].mxu1 }
 0x191   : > { %v1449_v44 = vsel %vm17536_vm0, %v1227_v48, 0.0  ;;  %v1934_v17 = vsel %vm17537_vm1, %v1712_v12, 0.0  ;;  %vm1391_vm10 = vcmp.eq.s32.totalorder %v11337_v59, %v11160_v53  ;;  %9759 = vrsqrt.f32 %v11592_v62 }
 0x192   : > { %v1538_v19 = vadd.f32 %v1537_v54, %v1449_v44  ;;  %v2023_v60 = vadd.f32 %v2022_v18, %v1934_v17  ;;  %v516_v10 = vsub.f32 %v10239_v36, %v504_v38  ;;  %v11632_v25 = vadd.s32 248, %v10167_v7  ;;  %v1233_v17 = vpop.f32.mrb[23].mxu0  ;;  %v9771_v36 = vld [vmem:[%s17165_s3] sm:$0xff] }
 0x193   : > { %v368_v48 = vmul.f32 %v362_v51, %v362_v51  ;;  %v370_v12 = vmul.f32 %v364_v24, %v364_v24  ;;  %v518_v54 = vsub.f32 %v10242_v37, %v508_v32  ;;  %v1450_v18 = vsel %vm1386_vm13, %v1231_v63, 0.0  ;;  %9231 = vmatmul.mubr.msk.f32.vlgmr.msra.gmra.mrb[128].mxu0 %vm17315_vm8, %v9771_v36  ;;  %9267 = vmatmul.mubr.msk.f32.vlgmr.msra.gmra.mrb[128].mxu1 %vm17315_vm8, %v9771_v36 }
 0x194   : > { %17538 = vst [vmem:[#allocation92_spill] sm:$0xff] %v11632_v25  ;;  %vm17539_vm1 = vcmp.eq.s32.totalorder %v11313_v43, %v11154_v6  ;;  %v680_v51 = vsel %vm348_vm4, %v676_v26, %v17282_v61  ;;  %v688_v38 = vsub.f32 %v10308_v4, %v676_v26  ;;  %v1502_v24 = vadd.f32 %v1501_v11, %v1450_v18  ;;  %v269_v11 = vld [vmem:[%s10163_s23 + $0x28] sm:$0x1]  ;;  %v1722_v18 = vpop.f32.mrb[24].mxu1 }
 0x195   : > { %v1935_v44 = vsel %vm17539_vm1, %v1716_v57, 0.0  ;;  %vm17540_vm13 = vcmp.eq.s32.totalorder %v11313_v43, %v11160_v53  ;;  %vm17541_vm1 = vcmp.eq.s32.totalorder %v11313_v43, %v11164_v52  ;;  %9302 = vmatpush1.msk.msra.mxu0 %vm11543_vm12, %v17478_v27  ;;  %3127 = vmatprep.mubr.f32.mxu0 %v17481_v45  ;;  %vm1392_vm4 = vcmp.eq.s32.totalorder %v11342_v22, %v11150_v2  ;;  %v12029_v43 = vld [vmem:[%s10163_s23 + $0x20] sm:$0x1] }
 0x196   : > { %v1987_v32 = vadd.f32 %v1986_v9, %v1935_v44  ;;  %v1451_v63 = vsel %vm17540_vm13, %v1233_v17, 0.0  ;;  %v1936_v57 = vsel %vm17541_vm1, %v1718_v28, 0.0  ;;  %vm1877_vm0 = vcmp.eq.s32.totalorder %v11342_v22, %v11154_v6  ;;  %3618 = vmatprep.mubr.f32.mxu1 %v17481_v45  ;;  %9338 = vmatpush1.msk.msra.mxu1 %vm11551_vm5, %v17478_v27  ;;  %v1237_v9 = vpop.f32.mrb[24].mxu0 }
 0x197   : > { %v1539_v4 = vadd.f32 %v1538_v19, %v1451_v63  ;;  %v2024_v26 = vadd.f32 %v2023_v60, %v1936_v57  ;;  %vm1393_vm13 = vcmp.eq.s32.totalorder %v11342_v22, %v11160_v53  ;;  %v522_v28 = vmul.f32 %v516_v10, %v516_v10  ;;  %v1239_v36 = vpop.f32.mrb[25].mxu0  ;;  %v1724_v10 = vpop.f32.mrb[25].mxu1  ;;  %v9772_v63 = vld [vmem:[%s17165_s3 + $0x8] sm:$0xff] }
 0x198   : > { %9761 = vrsqrt.f32 %v11594_v29  ;;  %v524_v19 = vmul.f32 %v518_v54, %v518_v54  ;;  %v690_v60 = vsub.f32 %v10322_v13, %v680_v51  ;;  %v304_v35 = vmul.f32 %v10183_v15, %v269_v11  ;;  %9232 = vmatmul.mubr.msk.f32.gmra.mrb[130].mxu0 %vm17315_vm8, %v9772_v63  ;;  %9268 = vmatmul.mubr.msk.f32.gmra.mrb[130].mxu1 %vm17315_vm8, %v9772_v63 }
 0x199   : > { %v1452_v44 = vsel %vm1388_vm9, %v1237_v9, 0.0  ;;  %v1937_v17 = vsel %vm1873_vm6, %v1722_v18, 0.0  ;;  %v694_v15 = vmul.f32 %v688_v38, %v688_v38  ;;  %v456_v54 = vmul.f32 %v10196_v20, %v269_v11  ;;  %3133 = vmatprep.mubr.f32.mxu0 %v17481_v45  ;;  %3624 = vmatprep.mubr.f32.mxu1 %v17481_v45 }
 0x19a   : > { %v1503_v51 = vadd.f32 %v1502_v24, %v1452_v44  ;;  %v1988_v57 = vadd.f32 %v1987_v32, %v1937_v17  ;;  %vm17542_vm6 = vcmp.eq.s32.totalorder %v11316_v3, %v11160_v53  ;;  %vm17543_vm9 = vcmp.eq.s32.totalorder %v11316_v3, %v11164_v52  ;;  %v1243_v44 = vpop.f32.mrb[26].mxu0  ;;  %v1728_v17 = vpop.f32.mrb[26].mxu1 }
 0x19b   : > { %v1453_v9 = vsel %vm17542_vm6, %v1239_v36, 0.0  ;;  %v1938_v18 = vsel %vm17543_vm9, %v1724_v10, 0.0  ;;  %vm1394_vm1 = vcmp.eq.s32.totalorder %v11345_v40, %v11150_v2  ;;  %vm1879_vm5 = vcmp.eq.s32.totalorder %v11345_v40, %v11154_v6 }
 0x19c   : > { %v1540_v20 = vadd.f32 %v1539_v4, %v1453_v9  ;;  %v2025_v38 = vadd.f32 %v2024_v26, %v1938_v18  ;;  %vm1395_vm12 = vcmp.eq.s32.totalorder %v11345_v40, %v11160_v53  ;;  %v528_v24 = vadd.f32 %v522_v28, %v368_v48  ;;  %v9760_v4 = vpop.eup %9759  ;;  %v1245_v28 = vpop.f32.mrb[27].mxu0 }
 0x19d   : > { %v11707_v32 = vadd.f32 %v304_v35, %v10186_v16  ;;  %v530_v10 = vadd.f32 %v524_v19, %v370_v12  ;;  %v696_v63 = vmul.f32 %v690_v60, %v690_v60  ;;  %v628_v61 = vmul.f32 %v10218_v30, %v269_v11  ;;  %v1730_v16 = vpop.f32.mrb[27].mxu1  ;;  %v9773_v35 = vld [vmem:[%s17165_s3 + $0x10] sm:$0xff]  ;;  %v1249_v18 = vpop.f32.mrb[28].mxu0 }
 0x19e   : > { %v1454_v26 = vsel %vm1390_vm14, %v1243_v44, 0.0  ;;  %v1939_v48 = vsel %vm1875_vm15, %v1728_v17, 0.0  ;;  %9233 = vmatmul.mubr.msk.f32.gmra.mrb[132].mxu0 %vm17315_vm8, %v9773_v35  ;;  %9269 = vmatmul.mubr.msk.f32.gmra.mrb[132].mxu1 %vm17315_vm8, %v9773_v35  ;;  %v11725_v12 = vadd.f32 %v456_v54, %v10200_v21  ;;  %v1455_v60 = vsel %vm1391_vm10, %v1245_v28, 0.0  ;;  %v1734_v44 = vpop.f32.mrb[28].mxu1  ;;  %v1251_v28 = vpop.f32.mrb[29].mxu0 }
 0x19f   : > { %17544 = vst [vmem:[#allocation93_spill] sm:$0xff] %v11707_v32  ;;  %v316_v30 = vand.u32 2147483647, %v11707_v32  ;;  %v1504_v11 = vadd.f32 %v1503_v51, %v1454_v26  ;;  %v1989_v19 = vadd.f32 %v1988_v57, %v1939_v48  ;;  %vm17546_vm15 = vcmp.eq.s32.totalorder %v11337_v59, %v11164_v52  ;;  %3139 = vmatprep.mubr.f32.mxu0 %v17481_v45  ;;  %v9775_v26 = vld [vmem:[%s17165_s3 + $0x20] sm:$0xff] }
 0x1a0   : > { %17545 = vst [vmem:[#allocation94_spill] sm:$0xff] %v11725_v12  ;;  %v1940_v9 = vsel %vm17546_vm15, %v1730_v16, 0.0  ;;  %3630 = vmatprep.mubr.f32.mxu1 %v17481_v45  ;;  %vm1396_vm14 = vcmp.eq.s32.totalorder %v11348_v41, %v11150_v2  ;;  %vm1881_vm9 = vcmp.eq.s32.totalorder %v11348_v41, %v11154_v6  ;;  %v1541_v21 = vadd.f32 %v1540_v20, %v1455_v60  ;;  %v1736_v16 = vpop.f32.mrb[29].mxu1 }
 0x1a1   : > { %v2026_v54 = vadd.f32 %v2025_v38, %v1940_v9  ;;  %v11743_v51 = vadd.f32 %v694_v15, %v528_v24  ;;  %v383_v57 = vrot.slane %v11707_v32, 1  ;;  %v766_v17 = vmul.f32 %v9760_v4, %v11592_v62  ;;  %v17549_v38 = vld [vmem:[#allocation20_spill] sm:$0xff] }
 0x1a2   : > { %vm11747_vm15 = vcmp.eq.f32.partialorder %v316_v30, inf  ;;  %v468_v20 = vand.u32 2147483647, %v11725_v12  ;;  %v11753_v48 = vadd.f32 %v628_v61, %v17549_v38  ;;  %v1456_v15 = vsel %vm1392_vm4, %v1249_v18, 0.0  ;;  %v9774_v4 = vld [vmem:[%s17165_s3 + $0x18] sm:$0xff]  ;;  %v9762_v60 = vpop.eup %9761 }
 0x1a3   : > { %v1941_v24 = vsel %vm1877_vm0, %v1734_v44, 0.0  ;;  %9234 = vmatmul.mubr.msk.f32.gmra.mrb[134].mxu0 %vm17315_vm8, %v9774_v4  ;;  %9270 = vmatmul.mubr.msk.f32.gmra.mrb[134].mxu1 %vm17315_vm8, %v9774_v4  ;;  %v17551_v61 = vrot.slane %v10227_v33, 1  ;;  %vm17552_vm10 = vcmask 1046528   ;;  %v543_v30 = vrot.slane %v11725_v12, 1  ;;  %v9777_v12 = vld [vmem:[%s17165_s3 + $0x30] sm:$0xff]  ;;  %v17579_v32 = vld [vmem:[#allocation24_spill] sm:$0xff] }
 0x1a4   : > { %17550 = vst [vmem:[#allocation20_spill] sm:$0xff] %v11753_v48  ;;  %v1505_v9 = vadd.f32 %v1504_v11, %v1456_v15  ;;  %v1990_v18 = vadd.f32 %v1989_v19, %v1941_v24  ;;  %v1457_v44 = vsel %vm1393_vm13, %v1251_v28, 0.0  ;;  %vm17553_vm0 = vcmp.eq.s32.totalorder %v11342_v22, %v11164_v52  ;;  %3145 = vmatprep.mubr.f32.mxu0 %v17481_v45  ;;  %v1255_v24 = vpop.f32.mrb[30].mxu0  ;;  %v1740_v28 = vpop.f32.mrb[30].mxu1 }
 0x1a5   : > { %v384_v35 = vsel %vm17552_vm10, %v17551_v61, %v383_v57  ;;  %v1942_v38 = vsel %vm17553_vm0, %v1736_v16, 0.0  ;;  %3636 = vmatprep.mubr.f32.mxu1 %v17481_v45  ;;  %vm1398_vm4 = vcmp.eq.s32.totalorder %v11361_v5, %v11150_v2  ;;  %v1542_v11 = vadd.f32 %v1541_v21, %v1457_v44 }
 0x1a6   : > { %v2027_v19 = vadd.f32 %v2026_v54, %v1942_v38  ;;  %vm1399_vm6 = vcmp.eq.s32.totalorder %v11361_v5, %v11160_v53  ;;  %vm1884_vm13 = vcmp.eq.s32.totalorder %v11361_v5, %v11164_v52  ;;  %v11786_v57 = vadd.f32 %v696_v63, %v530_v10 }
 0x1a7   : > { %v392_v15 = vadd.f32 %v384_v35, %v10227_v33  ;;  %vm17554_vm0 = vcmp.eq.f32.partialorder %v11592_v62, inf  ;;  %v17555_v4 = vmov 0   ;;  %vm11795_vm10 = vcmp.eq.f32.partialorder %v468_v20, inf  ;;  %v1257_v35 = vpop.f32.mrb[31].mxu0  ;;  %9235 = vmatmul.mubr.msk.f32.gmra.mrb[136].mxu0 %vm17315_vm8, %v9775_v26  ;;  %9271 = vmatmul.mubr.msk.f32.gmra.mrb[136].mxu1 %vm17315_vm8, %v9775_v26 }
 0x1a8   : > { %v768_v16 = vsel %vm17554_vm0, %v11592_v62, %v766_v17  ;;  %v324_v21 = vsel %vm11747_vm15, 1, %v17555_v4  ;;  %v640_v61 = vand.u32 2147483647, %v11753_v48  ;;  %v1458_v10 = vsel %vm1394_vm1, %v1255_v24, 0.0  ;;  %v1742_v17 = vpop.f32.mrb[31].mxu1  ;;  %3151 = vmatprep.mubr.f32.mxu0 %v17481_v45  ;;  %3642 = vmatprep.mubr.f32.mxu1 %v17481_v45 }
 0x1a9   : > { %v1943_v63 = vsel %vm1879_vm5, %v1740_v28, 0.0  ;;  %v396_v20 = vmul.f32 0.5, %v392_v15  ;;  %v17558_v44 = vrot.slane %v10242_v37, 1  ;;  %vm17559_vm15 = vcmask 1046528  }
 0x1aa   : > { %v1506_v24 = vadd.f32 %v1505_v9, %v1458_v10  ;;  %v1991_v36 = vadd.f32 %v1990_v18, %v1943_v63  ;;  %v1459_v28 = vsel %vm1395_vm12, %v1257_v35, 0.0  ;;  %vm17560_vm5 = vcmp.eq.s32.totalorder %v11345_v40, %v11164_v52  ;;  %v1261_v10 = vpop.f32.mrb[32].mxu0  ;;  %v1746_v63 = vpop.f32.mrb[32].mxu1 }
 0x1ab   : > { %v544_v38 = vsel %vm17559_vm15, %v17558_v44, %v543_v30  ;;  %v1944_v47 = vsel %vm17560_vm5, %v1742_v17, 0.0  ;;  %vm1400_vm1 = vcmp.eq.s32.totalorder %v11364_v8, %v11150_v2  ;;  %vm1885_vm0 = vcmp.eq.s32.totalorder %v11364_v8, %v11154_v6  ;;  %v1263_v44 = vpop.f32.mrb[33].mxu0 }
 0x1ac   : > { %v1543_v30 = vadd.f32 %v1542_v11, %v1459_v28  ;;  %v2028_v9 = vadd.f32 %v2027_v19, %v1944_v47  ;;  %v11831_v18 = vmul.f32 %v9762_v60, %v11594_v29  ;;  %v334_v15 = vrot.slane %v324_v21, 1  ;;  %v17563_v11 = vld [vmem:[#allocation12_spill] sm:$0xff]  ;;  %v1748_v28 = vpop.f32.mrb[33].mxu1 }
 0x1ad   : > { %v17561_v35 = vand.u32 2147483648, %v11592_v62  ;;  %vm17562_vm5 = vcmp.eq.f32.partialorder %v11592_v62, 0.0  ;;  %v402_v47 = vsub.f32 %v396_v20, %v17563_v11  ;;  %v552_v19 = vadd.f32 %v544_v38, %v10242_v37  ;;  %v9776_v62 = vld [vmem:[%s17165_s3 + $0x28] sm:$0xff] }
 0x1ae   : > { %v715_v26 = vrot.slane %v11753_v48, 1  ;;  %v1460_v60 = vsel %vm1396_vm14, %v1261_v10, 0.0  ;;  %v1945_v21 = vsel %vm1881_vm9, %v1746_v63, 0.0  ;;  %9236 = vmatmul.mubr.msk.f32.gmra.mrb[138].mxu0 %vm17315_vm8, %v9776_v62  ;;  %9272 = vmatmul.mubr.msk.f32.gmra.mrb[138].mxu1 %vm17315_vm8, %v9776_v62  ;;  %vm17566_vm9 = vcmp.eq.s32.totalorder %v11348_v41, %v11160_v53 }
 0x1af   : > { %v11837_v17 = vsel %vm17562_vm5, %v17561_v35, %v768_v16  ;;  %v476_v16 = vsel %vm11795_vm10, 1, %v17555_v4  ;;  %vm11856_vm5 = vcmp.eq.f32.partialorder %v640_v61, inf  ;;  %v1507_v38 = vadd.f32 %v1506_v24, %v1460_v60  ;;  %3157 = vmatprep.mubr.f32.mxu0 %v17481_v45  ;;  %3648 = vmatprep.mubr.f32.mxu1 %v17481_v45  ;;  %v17568_v61 = vld [vmem:[#allocation22_spill] sm:$0xff] }
 0x1b0   : > { %v1992_v10 = vadd.f32 %v1991_v36, %v1945_v21  ;;  %v1461_v63 = vsel %vm17566_vm9, %v1263_v44, 0.0  ;;  %vm17567_vm14 = vcmp.eq.s32.totalorder %v11348_v41, %v11164_v52  ;;  %vm1402_vm10 = vcmp.eq.s32.totalorder %v11383_v49, %v11150_v2  ;;  %v1267_v21 = vpop.f32.mrb[34].mxu0  ;;  %v1752_v44 = vpop.f32.mrb[34].mxu1  ;;  %v17588_v41 = vld [vmem:[#allocation32_spill] sm:$0xff] }
 0x1b1   : > { %v1946_v35 = vsel %vm17567_vm14, %v1748_v28, 0.0  ;;  %v1544_v54 = vadd.f32 %v1543_v30, %v1461_v63  ;;  %vm1403_vm15 = vcmp.eq.s32.totalorder %v11383_v49, %v11160_v53  ;;  %9763 = vrsqrt.f32 %v11743_v51  ;;  %v17571_v28 = vld [vmem:[#allocation13_spill] sm:$0xff] }
 0x1b2   : > { %v2029_v36 = vadd.f32 %v2028_v9, %v1946_v35  ;;  %v17569_v24 = vrot.slane %v17568_v61, 1  ;;  %vm17570_vm14 = vcmask 1046528   ;;  %v408_v62 = vmul.f32 %v17571_v28, %v402_v47  ;;  %9237 = vmatmul.mubr.msk.f32.gmra.mrb[140].mxu0 %vm17315_vm8, %v9777_v12  ;;  %9273 = vmatmul.mubr.msk.f32.gmra.mrb[140].mxu1 %vm17315_vm8, %v9777_v12  ;;  %v17575_v12 = vld [vmem:[#allocation81_spill] sm:$0xff] }
 0x1b3   : > { %v485_v48 = vrot.slane %v476_v16, 1  ;;  %v556_v30 = vmul.f32 0.5, %v552_v19  ;;  %v17572_v9 = vrot.slane %v10322_v13, 1  ;;  %vm17573_vm12 = vmmov %vm17570_vm14  ;;  %v1462_v35 = vsel %vm1398_vm4, %v1267_v21, 0.0  ;;  %3163 = vmatprep.mubr.f32.mxu0 %v17481_v45  ;;  %3654 = vmatprep.mubr.f32.mxu1 %v17481_v45 }
 0x1b4   : > { %v11880_v60 = vsel %vm17570_vm14, %v17569_v24, %v334_v15  ;;  %vm17574_vm9 = vcmp.eq.s32.totalorder %v11361_v5, %v11154_v6  ;;  %v1269_v15 = vpop.f32.mrb[35].mxu0  ;;  %v1754_v24 = vpop.f32.mrb[35].mxu1  ;;  %v648_v19 = vsel %vm11856_vm5, 1, %v17555_v4  ;;  %v1508_v16 = vadd.f32 %v1507_v38, %v1462_v35  ;;  %v17577_v35 = vld [vmem:[#allocation25_spill] sm:$0xff] }
 0x1b5   : > { %v716_v63 = vsel %vm17573_vm12, %v17572_v9, %v715_v26  ;;  %v1947_v61 = vsel %vm17574_vm9, %v1752_v44, 0.0  ;;  %vm781_vm12 = vcmp.eq.f32.partialorder %v11594_v29, inf  ;;  %v1463_v44 = vsel %vm1399_vm6, %v1269_v15, 0.0  ;;  %v1273_v15 = vpop.f32.mrb[36].mxu0 }
 0x1b6   : > { %v724_v26 = vadd.f32 %v716_v63, %v10322_v13  ;;  %v1993_v21 = vadd.f32 %v1992_v10, %v1947_v61  ;;  %v1948_v9 = vsel %vm1884_vm13, %v1754_v24, 0.0  ;;  %vm1404_vm4 = vcmp.eq.s32.totalorder %v17575_v12, %v11150_v2  ;;  %v17576_v10 = vld [vmem:[#allocation14_spill] sm:$0xff]  ;;  %v1758_v24 = vpop.f32.mrb[36].mxu1  ;;  %v17578_v13 = vld [vmem:[#allocation17_spill] sm:$0xff]  ;;  %vm17581_vm13 = vmmov %vm17570_vm14  ;;  %v1275_v42 = vpop.f32.mrb[37].mxu0 }
 0x1b7   : > { %vm1889_vm5 = vcmp.eq.s32.totalorder %v17575_v12, %v11154_v6  ;;  %v1545_v20 = vadd.f32 %v1544_v54, %v1463_v44  ;;  %v2030_v38 = vadd.f32 %v2029_v36, %v1948_v9  ;;  %v414_v63 = vmul.f32 %v17576_v10, %v402_v47  ;;  %vm17590_vm14 = vmmov %vm17581_vm13 }
 0x1b8   : > { %v562_v61 = vsub.f32 %v556_v30, %v17577_v35  ;;  %v420_v37 = vmul.f32 %v17578_v13, %v402_v47  ;;  %v17580_v33 = vrot.slane %v17579_v32, 1  ;;  %v657_v54 = vrot.slane %v648_v19, 1  ;;  %v1760_v30 = vpop.f32.mrb[37].mxu1  ;;  %v9778_v47 = vld [vmem:[%s17165_s3 + $0x38] sm:$0xff] }
 0x1b9   : > { %v728_v36 = vmul.f32 0.5, %v724_v26  ;;  %v1464_v44 = vsel %vm1400_vm1, %v1273_v15, 0.0  ;;  %v1949_v9 = vsel %vm1885_vm0, %v1758_v24, 0.0  ;;  %9238 = vmatmul.mubr.msk.f32.gmra.mrb[142].mxu0 %vm17315_vm8, %v9778_v47  ;;  %9274 = vmatmul.mubr.msk.f32.gmra.mrb[142].mxu1 %vm17315_vm8, %v9778_v47  ;;  %vm17584_vm1 = vcmp.eq.s32.totalorder %v11364_v8, %v11160_v53  ;;  %v17586_v47 = vld [vmem:[#allocation82_spill] sm:$0xff] }
 0x1ba   : > { %v486_v50 = vsel %vm17581_vm13, %v17580_v33, %v485_v48  ;;  %v17582_v33 = vld [vmem:[#allocation26_spill] sm:$0xff]  ;;  %v17583_v48 = vld [vmem:[#allocation28_spill] sm:$0xff]  ;;  %v1509_v26 = vadd.f32 %v1508_v16, %v1464_v44  ;;  %v1994_v15 = vadd.f32 %v1993_v21, %v1949_v9  ;;  %v1465_v24 = vsel %vm17584_vm1, %v1275_v42, 0.0  ;;  %3169 = vmatprep.mubr.f32.mxu0 %v17481_v45  ;;  %3660 = vmatprep.mubr.f32.mxu1 %v17481_v45  ;;  %v17587_v42 = vld [vmem:[#allocation29_spill] sm:$0xff]  ;;  %v1279_v9 = vpop.f32.mrb[38].mxu0 }
 0x1bb   : > { %v568_v32 = vmul.f32 %v17582_v33, %v562_v61  ;;  %v574_v19 = vmul.f32 %v17583_v48, %v562_v61  ;;  %vm17585_vm0 = vcmp.eq.s32.totalorder %v11364_v8, %v11164_v52  ;;  %v1546_v16 = vadd.f32 %v1545_v20, %v1465_v24  ;;  %v1281_v59 = vpop.f32.mrb[39].mxu0 }
 0x1bc   : > { %v1950_v5 = vsel %vm17585_vm0, %v1760_v30, 0.0  ;;  %vm339_vm0 = vcmp.ne.s32.totalorder %v11880_v60, 0  ;;  %v580_v44 = vmul.f32 %v17587_v42, %v562_v61  ;;  %v1764_v30 = vpop.f32.mrb[38].mxu1  ;;  %vm490_vm9 = vcmp.ne.s32.totalorder %v486_v50, 0  ;;  %v17601_v60 = vld [vmem:[#allocation23_spill] sm:$0xff] }
 0x1bd   : > { %v2031_v21 = vadd.f32 %v2030_v38, %v1950_v5  ;;  %v584_v8 = vadd.f32 %v568_v32, %v408_v62  ;;  %v17589_v40 = vrot.slane %v17588_v41, 1  ;;  %v17591_v5 = vld [vmem:[#allocation30_spill] sm:$0xff]  ;;  %v11961_v38 = vpop.eup %9763  ;;  %v1466_v24 = vsel %vm1402_vm10, %v1279_v9, 0.0  ;;  %v1766_v3 = vpop.f32.mrb[39].mxu1  ;;  %v9779_v41 = vld [vmem:[%s17165_s3 + $0x40] sm:$0xff] }
 0x1be   : > { %v734_v20 = vsub.f32 %v728_v36, %v17591_v5  ;;  %vm17592_vm1 = vcmp.eq.s32.totalorder %v11383_v49, %v11154_v6  ;;  %9239 = vmatmul.mubr.msk.f32.gmra.mrb[144].mxu0 %vm17315_vm8, %v9779_v41  ;;  %9275 = vmatmul.mubr.msk.f32.gmra.mrb[144].mxu1 %vm17315_vm8, %v9779_v41  ;;  %v592_v62 = vadd.f32 %v580_v44, %v420_v37  ;;  %v1467_v32 = vsel %vm1403_vm15, %v1281_v59, 0.0  ;;  %v17605_v41 = vld [vmem:[#allocation36_spill] sm:$0xff] }
 0x1bf   : > { %v11958_v22 = vsel %vm17590_vm14, %v17589_v40, %v657_v54  ;;  %v1951_v61 = vsel %vm17592_vm1, %v1764_v30, 0.0  ;;  %v588_v40 = vadd.f32 %v574_v19, %v414_v63  ;;  %v1510_v54 = vadd.f32 %v1509_v26, %v1466_v24  ;;  %3175 = vmatprep.mubr.f32.mxu0 %v17481_v45  ;;  %3666 = vmatprep.mubr.f32.mxu1 %v17481_v45  ;;  %v17594_v30 = vld [vmem:[#allocation83_spill] sm:$0xff]  ;;  %v17599_v19 = vld [vmem:[#allocation33_spill] sm:$0xff] }
 0x1c0   : > { %v1995_v36 = vadd.f32 %v1994_v15, %v1951_v61  ;;  %vm17593_vm10 = vcmp.eq.s32.totalorder %v11383_v49, %v11164_v52  ;;  %vm1408_vm14 = vcmp.eq.s32.totalorder %v17594_v30, %v11150_v2  ;;  %v1547_v37 = vadd.f32 %v1546_v16, %v1467_v32  ;;  %v17600_v15 = vld [vmem:[#allocation34_spill] sm:$0xff]  ;;  %v1285_v16 = vpop.f32.mrb[40].mxu0 }
 0x1c1   : > { %v1952_v9 = vsel %vm17593_vm10, %v1766_v3, 0.0  ;;  %v17595_v3 = vld [vmem:[#allocation21_spill] sm:$0xff]  ;;  %v740_v26 = vmul.f32 %v17599_v19, %v734_v20  ;;  %v746_v44 = vmul.f32 %v17600_v15, %v734_v20  ;;  %v12004_v24 = vsel %vm781_vm12, %v11594_v29, %v11831_v18  ;;  %v17622_v61 = vld [vmem:[#allocation18_spill] sm:$0xff] }
 0x1c2   : > { %v2032_v63 = vadd.f32 %v2031_v21, %v1952_v9  ;;  %vm17596_vm10 = vnez %v17595_v3  ;;  %v1770_v21 = vpop.f32.mrb[40].mxu1  ;;  %9765 = vrsqrt.f32 %v11786_v57  ;;  %vm662_vm6 = vcmp.ne.s32.totalorder %v11958_v22, 0  ;;  %v1287_v3 = vpop.f32.mrb[41].mxu0 }
 0x1c3   : > { %vm11994_vm13 = vmor %vm17596_vm10, %vm339_vm0  ;;  %vm17602_vm0 = vnez %v17601_v60  ;;  %v752_v32 = vmul.f32 %v17605_v41, %v734_v20  ;;  %v1468_v18 = vsel %vm1404_vm4, %v1285_v16, 0.0  ;;  %v1953_v9 = vsel %vm1889_vm5, %v1770_v21, 0.0  ;;  %v1772_v50 = vpop.f32.mrb[41].mxu1  ;;  %v9780_v60 = vld [vmem:[%s17165_s3 + $0x48] sm:$0xff] }
 0x1c4   : > { %vm12011_vm10 = vmor %vm17602_vm0, %vm490_vm9  ;;  %9240 = vmatmul.mubr.msk.f32.gmra.mrb[146].mxu0 %vm17315_vm8, %v9780_v60  ;;  %9276 = vmatmul.mubr.msk.f32.gmra.mrb[146].mxu1 %vm17315_vm8, %v9780_v60  ;;  %v756_v49 = vadd.f32 %v740_v26, %v584_v8  ;;  %v760_v20 = vadd.f32 %v746_v44, %v588_v40  ;;  %v1511_v23 = vadd.f32 %v1510_v54, %v1468_v18  ;;  %v17608_v60 = vld [vmem:[#allocation84_spill] sm:$0xff]  ;;  %v1291_v26 = vpop.f32.mrb[42].mxu0  ;;  %v1776_v44 = vpop.f32.mrb[42].mxu1 }
 0x1c5   : > { %v1996_v16 = vadd.f32 %v1995_v36, %v1953_v9  ;;  %vm17606_vm12 = vcmp.eq.s32.totalorder %v17575_v12, %v11160_v53  ;;  %vm17607_vm4 = vcmp.eq.s32.totalorder %v17575_v12, %v11164_v52  ;;  %3181 = vmatprep.mubr.f32.mxu0 %v17481_v45  ;;  %3672 = vmatprep.mubr.f32.mxu1 %v17481_v45  ;;  %v17613_v9 = vld [vmem:[#allocation15_spill] sm:$0xff] }
 0x1c6   : > { %v1469_v21 = vsel %vm17606_vm12, %v1287_v3, 0.0  ;;  %v1954_v39 = vsel %vm17607_vm4, %v1772_v50, 0.0  ;;  %vm498_vm4 = vmor %vm11994_vm13, %vm12011_vm10  ;;  %v764_v54 = vadd.f32 %v752_v32, %v592_v62  ;;  %v12051_v36 = vcvt.f32.s32 %v756_v49  ;;  %v17614_v49 = vld [vmem:[#allocation35_spill] sm:$0xff]  ;;  %v1293_v50 = vpop.f32.mrb[43].mxu0 }
 0x1c7   : > { %v1548_v8 = vadd.f32 %v1547_v37, %v1469_v21  ;;  %v2033_v40 = vadd.f32 %v2032_v63, %v1954_v39  ;;  %v17609_v39 = vld [vmem:[#allocation31_spill] sm:$0xff]  ;;  %v12062_v63 = vcvt.f32.s32 %v760_v20  ;;  %v303_v3 = vmul.f32 %v17613_v9, %v12029_v43  ;;  %v1778_v21 = vpop.f32.mrb[43].mxu1 }
 0x1c8   : > { %vm17610_vm9 = vnez %v17609_v39  ;;  %v12068_v62 = vmul.f32 %v17614_v49, %v12029_v43  ;;  %vm17615_vm12 = vcmp.eq.s32.totalorder %v17586_v47, %v11150_v2  ;;  %vm17616_vm5 = vcmp.eq.s32.totalorder %v17586_v47, %v11154_v6  ;;  %v9781_v20 = vld [vmem:[%s17165_s3 + $0x50] sm:$0xff] }
 0x1c9   : > { %vm12058_vm0 = vmor %vm17610_vm9, %vm662_vm6  ;;  %v1470_v32 = vsel %vm17615_vm12, %v1291_v26, 0.0  ;;  %v1955_v22 = vsel %vm17616_vm5, %v1776_v44, 0.0  ;;  %9241 = vmatmul.mubr.msk.f32.gmra.mrb[148].mxu0 %vm17315_vm8, %v9781_v20  ;;  %9277 = vmatmul.mubr.msk.f32.gmra.mrb[148].mxu1 %vm17315_vm8, %v9781_v20  ;;  %v12081_v39 = vcvt.f32.s32 %v764_v54  ;;  %vm822_vm6 = vcmp.lt.s32.totalorder %v12051_v36, 0  ;;  %v17619_v20 = vld [vmem:[#allocation85_spill] sm:$0xff] }
 0x1ca   : > { %v1512_v9 = vadd.f32 %v1511_v23, %v1470_v32  ;;  %v1997_v26 = vadd.f32 %v1996_v16, %v1955_v22  ;;  %vm17617_vm9 = vcmp.eq.s32.totalorder %v17586_v47, %v11160_v53  ;;  %vm17618_vm5 = vcmp.eq.s32.totalorder %v17586_v47, %v11164_v52  ;;  %3187 = vmatprep.mubr.f32.mxu0 %v17481_v45  ;;  %vm12108_vm12 = vmor %vm498_vm4, %vm12058_vm0 }
 0x1cb   : > { %v1471_v44 = vsel %vm17617_vm9, %v1293_v50, 0.0  ;;  %v1956_v49 = vsel %vm17618_vm5, %v1778_v21, 0.0  ;;  %3678 = vmatprep.mubr.f32.mxu1 %v17481_v45  ;;  %vm826_vm8 = vcmp.ge.s32.totalorder %v12051_v36, 8  ;;  %vm834_vm15 = vcmp.lt.s32.totalorder %v12062_v63, 0 }
 0x1cc   : > { %v1549_v23 = vadd.f32 %v1548_v8, %v1471_v44  ;;  %v2034_v16 = vadd.f32 %v2033_v40, %v1956_v49  ;;  %v1297_v8 = vpop.f32.mrb[44].mxu0  ;;  %v1782_v40 = vpop.f32.mrb[44].mxu1  ;;  %vm830_vm5 = vmor %vm822_vm6, %vm826_vm8  ;;  %vm842_vm9 = vcmp.ge.s32.totalorder %v12062_v63, 8  ;;  %vm850_vm1 = vcmp.lt.s32.totalorder %v12081_v39, 0  ;;  %v9782_v44 = vld [vmem:[%s17165_s3 + $0x58] sm:$0xff] }
 0x1cd   : > { %v874_v59 = vmul.u32 64, %v12051_v36  ;;  %v12120_v37 = vadd.f32 %v303_v3, %v17622_v61  ;;  %v1472_v32 = vsel %vm1408_vm14, %v1297_v8, 0.0  ;;  %vm17624_vm13 = vcmp.eq.s32.totalorder %v17594_v30, %v11154_v6  ;;  %v1299_v50 = vpop.f32.mrb[45].mxu0  ;;  %v1784_v21 = vpop.f32.mrb[45].mxu1  ;;  %vm838_vm4 = vmor %vm830_vm5, %vm834_vm15 }
 0x1ce   : > { %v1957_v22 = vsel %vm17624_vm13, %v1782_v40, 0.0  ;;  %vm17625_vm8 = vcmask 64512   ;;  %vm776_vm0 = vcmp.eq.f32.partialorder %v11743_v51, 0.0  ;;  %vm858_vm14 = vcmp.ge.s32.totalorder %v12081_v39, 8  ;;  %v9766_v3 = vpop.eup %9765 }
 0x1cf   : > { %17623 = vst [vmem:[#allocation12_spill] sm:$0xff] %v12120_v37  ;;  %9242 = vmatmul.mubr.msk.f32.gmra.mrb[150].mxu0 %vm17625_vm8, %v9782_v44  ;;  %vm17626_vm10 = vmmov %vm17625_vm8  ;;  %v878_v36 = vmul.u32 8, %v12062_v63  ;;  %v1513_v49 = vadd.f32 %v1512_v9, %v1472_v32  ;;  %v1998_v8 = vadd.f32 %v1997_v26, %v1957_v22  ;;  %vm17627_vm6 = vcmp.eq.s32.totalorder %v17594_v30, %v11160_v53 }
 0x1d0   : > { %9278 = vmatmul.mubr.msk.f32.gmra.mrb[150].mxu1 %vm17626_vm10, %v9782_v44  ;;  %v1473_v40 = vsel %vm17627_vm6, %v1299_v50, 0.0  ;;  %vm17628_vm13 = vcmp.eq.s32.totalorder %v17594_v30, %v11164_v52  ;;  %3193 = vmatprep.mubr.f32.mxu0 %v17481_v45  ;;  %vm1414_vm15 = vcmp.eq.s32.totalorder %v11466_v46, %v11150_v2  ;;  %vm846_vm8 = vmor %vm838_vm4, %vm842_vm9  ;;  %vm1415_vm10 = vcmp.eq.s32.totalorder %v11466_v46, %v11160_v53  ;;  %v1303_v50 = vpop.f32.mrb[46].mxu0 }
 0x1d1   : > { %v1958_v61 = vsel %vm17628_vm13, %v1784_v21, 0.0  ;;  %3684 = vmatprep.mubr.f32.mxu1 %v17481_v45  ;;  %v1550_v9 = vadd.f32 %v1549_v23, %v1473_v40  ;;  %vm1900_vm6 = vcmp.eq.s32.totalorder %v11466_v46, %v11164_v52  ;;  %v17629_v32 = vand.u32 2147483648, %v11594_v29  ;;  %vm854_vm5 = vmor %vm846_vm8, %vm850_vm1  ;;  %v1788_v23 = vpop.f32.mrb[46].mxu1 }
 0x1d2   : > { %v2035_v26 = vadd.f32 %v2034_v16, %v1958_v61  ;;  %vm17630_vm13 = vcmp.eq.f32.partialorder %v11594_v29, 0.0  ;;  %v882_v63 = vadd.s32 %v878_v36, %v874_v59  ;;  %v773_v16 = vmul.f32 %v11961_v38, %v11743_v51  ;;  %vm12171_vm4 = vmor %vm854_vm5, %vm858_vm14  ;;  %v17634_v29 = vld [vmem:[#allocation37_spill] sm:$0xff]  ;;  %v1305_v36 = vpop.f32.mrb[47].mxu0  ;;  %v1790_v40 = vpop.f32.mrb[47].mxu1 }
 0x1d3   : > { %v12161_v22 = vsel %vm17630_vm13, %v17629_v32, %v12004_v24  ;;  %v777_v21 = vand.u32 2147483648, %v11743_v51  ;;  %vm788_vm9 = vcmp.eq.f32.partialorder %v11786_v57, inf  ;;  %v12177_v24 = vadd.f32 %v12068_v62, %v17634_v29  ;;  %v9783_v61 = vld [vmem:[%s17165_s3 + $0x60] sm:$0xff]  ;;  %vm866_vm13 = vmor %vm12108_vm12, %vm12171_vm4  ;;  %v1794_v44 = vpop.f32.mrb[48].mxu1 }
 0x1d4   : > { %17631 = vst [vmem:[#allocation22_spill] sm:$0xff] %v12161_v22  ;;  %vm17636_vm1 = vcmp.eq.s32.totalorder %v17608_v60, %v11150_v2  ;;  %vm17637_vm8 = vcmp.eq.s32.totalorder %v17608_v60, %v11154_v6  ;;  %vm17638_vm14 = vcmask 64512   ;;  %v886_v62 = vadd.s32 %v12081_v39, %v882_v63  ;;  %v1309_v63 = vpop.f32.mrb[48].mxu0 }
 0x1d5   : > { %17635 = vst [vmem:[#allocation13_spill] sm:$0xff] %v12177_v24  ;;  %v1474_v59 = vsel %vm17636_vm1, %v1303_v50, 0.0  ;;  %v1959_v38 = vsel %vm17637_vm8, %v1788_v23, 0.0  ;;  %9243 = vmatmul.mubr.msk.f32.gmra.mrb[152].mxu0 %vm17638_vm14, %v9783_v61  ;;  %vm17639_vm5 = vmmov %vm17638_vm14  ;;  %v381_v32 = vrot.slane %v12120_v37, 1  ;;  %vm17640_vm1 = vcmp.eq.s32.totalorder %v17608_v60, %v11160_v53 }
 0x1d6   : > { %9279 = vmatmul.mubr.msk.f32.gmra.mrb[152].mxu1 %vm17639_vm5, %v9783_v61  ;;  %v1514_v50 = vadd.f32 %v1513_v49, %v1474_v59  ;;  %v1999_v23 = vadd.f32 %v1998_v8, %v1959_v38  ;;  %v1475_v29 = vsel %vm17640_vm1, %v1305_v36, 0.0  ;;  %vm17641_vm8 = vcmp.eq.s32.totalorder %v17608_v60, %v11164_v52  ;;  %3199 = vmatprep.mubr.f32.mxu0 %v17481_v45  ;;  %vm12209_vm14 = vmxor %vm866_vm13, %vm17474_vm7  ;;  %v1311_v61 = vpop.f32.mrb[49].mxu0 }
 0x1d7   : > { %v1960_v18 = vsel %vm17641_vm8, %v1790_v40, 0.0  ;;  %3690 = vmatprep.mubr.f32.mxu1 %v17481_v45  ;;  %v17642_v39 = vmov 0  ;;  %v1551_v54 = vadd.f32 %v1550_v9, %v1475_v29  ;;  %v12220_v8 = vsel %vm12209_vm14, %v886_v62, 0  ;;  %v17646_v9 = vld [vmem:[#allocation39_spill] sm:$0xff]  ;;  %v1796_v62 = vpop.f32.mrb[49].mxu1  ;;  %vm17649_vm4 = vmmov %vm17639_vm5 }
 0x1d8   : > { %v17643_v39 = vsel %vm12209_vm14, 4294967295, %v17642_v39  ;;  %v2036_v49 = vadd.f32 %v2035_v26, %v1960_v18  ;;  %17645 = vst [vmem:[#allocation14_spill] sm:$0xff] %v12220_v8  ;;  %v787_v59 = vmul.f32 %v9766_v3, %v11786_v57  ;;  %v12224_v38 = vshra.s32 %v12220_v8, 8  ;;  %v9784_v3 = vld [vmem:[%s17165_s3 + $0x68] sm:$0xff] }
 0x1d9   : > { %17644 = vst [vmem:[#allocation81_spill] sm:$0xff] %v17643_v39  ;;  %v541_v18 = vrot.slane %v12177_v24, 1  ;;  %v627_v26 = vmul.f32 %v17646_v9, %v12029_v43  ;;  %vm17647_vm13 = vcmp.eq.s32.totalorder %v17619_v20, %v11150_v2  ;;  %vm17648_vm1 = vcmp.eq.s32.totalorder %v17619_v20, %v11154_v6  ;;  %9244 = vmatmul.mubr.msk.f32.gmra.mrb[154].mxu0 %vm17639_vm5, %v9784_v3 }
 0x1da   : > { %v1476_v36 = vsel %vm17647_vm13, %v1309_v63, 0.0  ;;  %v1961_v40 = vsel %vm17648_vm1, %v1794_v44, 0.0  ;;  %9280 = vmatmul.mubr.msk.f32.gmra.mrb[154].mxu1 %vm17649_vm4, %v9784_v3  ;;  %vm17650_vm12 = vcmp.eq.f32.partialorder %v11743_v51, inf  ;;  %v17651_v29 = vrot.slane %v10398_v14, 1  ;;  %3205 = vmatprep.mubr.f32.mxu0 %v17481_v45  ;;  %v17659_v3 = vld [vmem:[#allocation40_spill] sm:$0xff] }
 0x1db   : > { %v775_v43 = vsel %vm17650_vm12, %v11743_v51, %v773_v16  ;;  %vm17652_vm13 = vcmask 1046528   ;;  %v1515_v9 = vadd.f32 %v1514_v50, %v1476_v36  ;;  %v2000_v44 = vadd.f32 %v1999_v23, %v1961_v40  ;;  %3696 = vmatprep.mubr.f32.mxu1 %v17481_v45  ;;  %v17655_v23 = vld [vmem:[#allocation11_spill] sm:$0xff]  ;;  %v1315_v40 = vpop.f32.mrb[50].mxu0 }
 0x1dc   : > { %v382_v63 = vsel %vm17652_vm13, %v17651_v29, %v381_v32  ;;  %vm17653_vm1 = vcmp.eq.s32.totalorder %v17619_v20, %v11160_v53  ;;  %vm17654_vm8 = vcmp.eq.s32.totalorder %v17619_v20, %v11164_v52  ;;  %vm1418_vm12 = vcmp.eq.s32.totalorder %v11473_v55, %v11150_v2 }
 0x1dd   : > { %v1477_v39 = vsel %vm17653_vm1, %v1311_v61, 0.0  ;;  %v1962_v8 = vsel %vm17654_vm8, %v1796_v62, 0.0  ;;  %vm1903_vm4 = vcmp.eq.s32.totalorder %v11473_v55, %v11154_v6  ;;  %vm1419_vm5 = vcmp.eq.s32.totalorder %v11473_v55, %v11160_v53  ;;  %v1800_v61 = vpop.f32.mrb[50].mxu1 }
 0x1de   : > { %v1552_v16 = vadd.f32 %v1551_v54, %v1477_v39  ;;  %v2037_v32 = vadd.f32 %v2036_v49, %v1962_v8  ;;  %vm1904_vm13 = vcmp.eq.s32.totalorder %v11473_v55, %v11164_v52  ;;  %v791_v50 = vand.u32 2147483648, %v11786_v57  ;;  %v17656_v54 = vld [vmem:[#allocation42_spill] sm:$0xff] }
 0x1df   : > { %v5014_v36 = vrot.slane %v12224_v38, %v17655_v23  ;;  %v12267_v62 = vsel %vm776_vm0, %v777_v21, %v775_v43  ;;  %v789_v39 = vsel %vm788_vm9, %v11786_v57, %v787_v59  ;;  %v17657_v49 = vrot.slane %v17656_v54, 1  ;;  %v1317_v21 = vpop.f32.mrb[51].mxu0  ;;  %v1802_v43 = vpop.f32.mrb[51].mxu1  ;;  %v9785_v59 = vld [vmem:[%s17165_s3 + $0x70] sm:$0xff] }
 0x1e0   : > { %vm17658_vm8 = vcmask 1046528   ;;  %v12276_v29 = vadd.f32 %v627_v26, %v17659_v3  ;;  %v1478_v20 = vsel %vm1414_vm15, %v1315_v40, 0.0  ;;  %vm17661_vm1 = vcmp.eq.s32.totalorder %v11466_v46, %v11154_v6  ;;  %v1806_v3 = vpop.f32.mrb[52].mxu1 }
 0x1e1   : > { %v542_v8 = vsel %vm17658_vm8, %v17657_v49, %v541_v18  ;;  %v1963_v51 = vsel %vm17661_vm1, %v1800_v61, 0.0  ;;  %vm17662_vm0 = vcmask 64512   ;;  %vm5016_vm8 = vcmp.eq.s32.totalorder %v10167_v7, %v5014_v36  ;;  %v1321_v36 = vpop.f32.mrb[52].mxu0 }
 0x1e2   : > { %17660 = vst [vmem:[#allocation25_spill] sm:$0xff] %v12276_v29  ;;  %9245 = vmatmul.mubr.msk.f32.gmra.mrb[156].mxu0 %vm17662_vm0, %v9785_v59  ;;  %vm17663_vm9 = vmmov %vm17662_vm0  ;;  %v391_v18 = vadd.f32 %v382_v63, %v10398_v14  ;;  %v1516_v26 = vadd.f32 %v1515_v9, %v1478_v20  ;;  %v2001_v40 = vadd.f32 %v2000_v44, %v1963_v51  ;;  %v1479_v61 = vsel %vm1415_vm10, %v1317_v21, 0.0  ;;  %v17666_v21 = vld [vmem:[#allocation10_spill] sm:$0xff] }
 0x1e3   : > { %9281 = vmatmul.mubr.msk.f32.gmra.mrb[156].mxu1 %vm17663_vm9, %v9785_v59  ;;  %v1964_v49 = vsel %vm1900_vm6, %v1802_v43, 0.0  ;;  %3211 = vmatprep.mubr.f32.mxu0 %v17481_v45  ;;  %vm1420_vm15 = vcmp.eq.s32.totalorder %v11508_v58, %v11150_v2  ;;  %vm1905_vm1 = vcmp.eq.s32.totalorder %v11508_v58, %v11154_v6  ;;  %v1553_v20 = vadd.f32 %v1552_v16, %v1479_v61  ;;  %v1323_v61 = vpop.f32.mrb[53].mxu0  ;;  %vm17670_vm10 = vmmov %vm17662_vm0 }
 0x1e4   : > { %3702 = vmatprep.mubr.f32.mxu1 %v17481_v45  ;;  %v2038_v63 = vadd.f32 %v2037_v32, %v1964_v49  ;;  %9373 = vmatprep.subr.msk.mxu0 %vm5016_vm8, %v17478_v27  ;;  %v551_v44 = vadd.f32 %v542_v8, %v17656_v54  ;;  %vm17664_vm6 = vcmp.eq.f32.partialorder %v11786_v57, 0.0  ;;  %v908_v16 = vrot.slane %v12267_v62, 1  ;;  %v1808_v49 = vpop.f32.mrb[53].mxu1  ;;  %v9786_v57 = vld [vmem:[%s17165_s3 + $0x78] sm:$0xff] }
 0x1e5   : > { %v12312_v51 = vsel %vm17664_vm6, %v791_v50, %v789_v39  ;;  %v315_v32 = vand.u32 2147483647, %v12120_v37  ;;  %v5499_v43 = vrot.slane %v12224_v38, %v17666_v21  ;;  %vm17667_vm9 = vcmp.eq.s32.totalorder %v11470_v1, %v11150_v2  ;;  %vm17669_vm6 = vmmov %vm17662_vm0 }
 0x1e6   : > { %17665 = vst [vmem:[#allocation17_spill] sm:$0xff] %v12312_v51  ;;  %v1480_v59 = vsel %vm17667_vm9, %v1321_v36, 0.0  ;;  %vm17668_vm8 = vcmp.eq.s32.totalorder %v11470_v1, %v11154_v6  ;;  %9246 = vmatmul.mubr.msk.f32.gmra.mrb[158].mxu0 %vm17669_vm6, %v9786_v57  ;;  %v395_v50 = vmul.f32 0.5, %v391_v18  ;;  %v713_v62 = vrot.slane %v12276_v29, 1 }
 0x1e7   : > { %v1965_v8 = vsel %vm17668_vm8, %v1806_v3, 0.0  ;;  %9282 = vmatmul.mubr.msk.f32.gmra.mrb[158].mxu1 %vm17670_vm10, %v9786_v57  ;;  %v1517_v39 = vadd.f32 %v1516_v26, %v1480_v59  ;;  %vm17671_vm9 = vcmp.eq.s32.totalorder %v11470_v1, %v11160_v53  ;;  %vm17672_vm8 = vcmp.eq.s32.totalorder %v11470_v1, %v11164_v52  ;;  %3217 = vmatprep.mubr.f32.mxu0 %v17481_v45 }
 0x1e8   : > { %v2002_v9 = vadd.f32 %v2001_v40, %v1965_v8  ;;  %v1481_v36 = vsel %vm17671_vm9, %v1323_v61, 0.0  ;;  %v1966_v3 = vsel %vm17672_vm8, %v1808_v49, 0.0  ;;  %3708 = vmatprep.mubr.f32.mxu1 %v17481_v45  ;;  %v555_v59 = vmul.f32 0.5, %v551_v44  ;;  %v1327_v8 = vpop.f32.mrb[54].mxu0  ;;  %v1812_v61 = vpop.f32.mrb[54].mxu1 }
 0x1e9   : > { %v1554_v18 = vadd.f32 %v1553_v20, %v1481_v36  ;;  %v2039_v26 = vadd.f32 %v2038_v63, %v1966_v3  ;;  %v17673_v49 = vrot.slane %v12161_v22, 1  ;;  %v17674_v57 = vrot.slane %v11837_v17, 1  ;;  %v1329_v3 = vpop.f32.mrb[55].mxu0 }
 0x1ea   : > { %vm17675_vm8 = vcmask 1046528   ;;  %vm12354_vm6 = vcmp.eq.f32.partialorder %v315_v32, inf  ;;  %v467_v63 = vand.u32 2147483647, %v12177_v24  ;;  %vm12360_vm9 = vcmp.eq.s32.totalorder %v10167_v7, %v5499_v43  ;;  %v1814_v32 = vpop.f32.mrb[55].mxu1 }
 0x1eb   : > { %v12352_v54 = vsel %vm17675_vm8, %v17674_v57, %v17673_v49  ;;  %v1482_v44 = vsel %vm1418_vm12, %v1327_v8, 0.0  ;;  %v1967_v17 = vsel %vm1903_vm4, %v1812_v61, 0.0  ;;  %v9787_v49 = vld [vmem:[%s17165_s3 + $0x80] sm:$0xff]  ;;  %vm17680_vm8 = vmmov %vm17662_vm0  ;;  %v401_v43 = vsub.f32 %v395_v50, %v17563_v11  ;;  %9409 = vmatprep.subr.msk.mxu1 %vm12360_vm9, %v17478_v27 }
 0x1ec   : > { %9247 = vmatmul.mubr.msk.f32.gmra.mrb[160].mxu0 %vm17680_vm8, %v9787_v49  ;;  %9283 = vmatmul.mubr.msk.f32.gmra.mrb[160].mxu1 %vm17662_vm0, %v9787_v49  ;;  %v17681_v57 = vrot.slane %v10501_v31, 1  ;;  %vm17682_vm10 = vcmask 1046528   ;;  %v1518_v40 = vadd.f32 %v1517_v39, %v1482_v44  ;;  %v2003_v22 = vadd.f32 %v2002_v9, %v1967_v17  ;;  %v1333_v44 = vpop.f32.mrb[56].mxu0 }
 0x1ed   : > { %v1483_v61 = vsel %vm1419_vm5, %v1329_v3, 0.0  ;;  %v1968_v24 = vsel %vm1904_vm13, %v1814_v32, 0.0  ;;  %3223 = vmatprep.mubr.f32.mxu0 %v17481_v45  ;;  %3714 = vmatprep.mubr.f32.mxu1 %v17481_v45  ;;  %vm1424_vm12 = vcmp.eq.s32.totalorder %v11590_v34, %v11150_v2  ;;  %vm1909_vm4 = vcmp.eq.s32.totalorder %v11590_v34, %v11154_v6  ;;  %vm17684_vm13 = vmmov %vm17682_vm10  ;;  %v1335_v36 = vpop.f32.mrb[57].mxu0 }
 0x1ee   : > { %v714_v8 = vsel %vm17682_vm10, %v17681_v57, %v713_v62  ;;  %v1555_v11 = vadd.f32 %v1554_v18, %v1483_v61  ;;  %v2040_v9 = vadd.f32 %v2039_v26, %v1968_v24  ;;  %vm1425_vm0 = vcmp.eq.s32.totalorder %v11590_v34, %v11160_v53  ;;  %v1818_v18 = vpop.f32.mrb[56].mxu1  ;;  %v9789_v26 = vld [vmem:[%s17165_s3 + $0x90] sm:$0xff] }
 0x1ef   : > { %vm1910_vm5 = vcmp.eq.s32.totalorder %v11590_v34, %v11164_v52  ;;  %v17683_v50 = vrot.slane %v12312_v51, 1  ;;  %v561_v39 = vsub.f32 %v555_v59, %v17577_v35  ;;  %v12407_v24 = vsel %vm12354_vm6, 1, %v17555_v4  ;;  %v1820_v20 = vpop.f32.mrb[57].mxu1  ;;  %vm17687_vm6 = vmmov %vm17680_vm8 }
 0x1f0   : > { %vm12409_vm10 = vcmp.eq.f32.partialorder %v467_v63, inf  ;;  %v723_v17 = vadd.f32 %v714_v8, %v10501_v31  ;;  %v1484_v35 = vsel %vm1420_vm15, %v1333_v44, 0.0  ;;  %v1969_v59 = vsel %vm1905_vm1, %v1818_v18, 0.0  ;;  %v9788_v63 = vld [vmem:[%s17165_s3 + $0x88] sm:$0xff]  ;;  %vm17688_vm9 = vmmov %vm17687_vm6  ;;  %v1824_v44 = vpop.f32.mrb[58].mxu1 }
 0x1f1   : > { %v12398_v62 = vsel %vm17684_vm13, %v908_v16, %v17683_v50  ;;  %v639_v16 = vand.u32 2147483647, %v12276_v29  ;;  %9248 = vmatmul.mubr.msk.f32.gmra.mrb[162].mxu0 %vm17687_vm6, %v9788_v63  ;;  %9284 = vmatmul.mubr.msk.f32.gmra.mrb[162].mxu1 %vm17688_vm9, %v9788_v63  ;;  %v407_v3 = vmul.f32 %v17571_v28, %v401_v43  ;;  %v413_v32 = vmul.f32 %v17576_v10, %v401_v43  ;;  %v1339_v50 = vpop.f32.mrb[58].mxu0 }
 0x1f2   : > { %v1519_v49 = vadd.f32 %v1518_v40, %v1484_v35  ;;  %v2004_v57 = vadd.f32 %v2003_v22, %v1969_v59  ;;  %vm17689_vm15 = vcmp.eq.s32.totalorder %v11508_v58, %v11160_v53  ;;  %vm17690_vm1 = vcmp.eq.s32.totalorder %v11508_v58, %v11164_v52  ;;  %3229 = vmatprep.mubr.f32.mxu0 %v17481_v45 }
 0x1f3   : > { %v1485_v8 = vsel %vm17689_vm15, %v1335_v36, 0.0  ;;  %v1970_v61 = vsel %vm17690_vm1, %v1820_v20, 0.0  ;;  %3720 = vmatprep.mubr.f32.mxu1 %v17481_v45  ;;  %vm1426_vm8 = vcmp.eq.s32.totalorder %v11632_v25, %v11150_v2  ;;  %v567_v22 = vmul.f32 %v17582_v33, %v561_v39 }
 0x1f4   : > { %v1556_v28 = vadd.f32 %v1555_v11, %v1485_v8  ;;  %v2041_v10 = vadd.f32 %v2040_v9, %v1970_v61  ;;  %v727_v40 = vmul.f32 0.5, %v723_v17  ;;  %v419_v18 = vmul.f32 %v17578_v13, %v401_v43  ;;  %v1341_v13 = vpop.f32.mrb[59].mxu0  ;;  %v1826_v43 = vpop.f32.mrb[59].mxu1  ;;  %v17698_v8 = vld [vmem:[#allocation63_spill] sm:$0xff] }
 0x1f5   : > { %v12449_v35 = vsel %vm12409_vm10, 1, %v17555_v4  ;;  %v573_v11 = vmul.f32 %v17583_v48, %v561_v39  ;;  %vm12452_vm15 = vcmp.eq.f32.partialorder %v639_v16, inf  ;;  %vm17693_vm1 = vcmp.eq.s32.totalorder %v11556_v0, %v11150_v2  ;;  %vm17695_vm10 = vmmov %vm17687_vm6  ;;  %9285 = vmatmul.mubr.msk.f32.gmra.mrb[164].mxu1 %vm17687_vm6, %v9789_v26  ;;  %v17713_v2 = vld [vmem:[#allocation45_spill] sm:$0xff] }
 0x1f6   : > { %v1486_v33 = vsel %vm17693_vm1, %v1339_v50, 0.0  ;;  %vm17694_vm9 = vcmp.eq.s32.totalorder %v11556_v0, %v11154_v6  ;;  %9249 = vmatmul.mubr.msk.f32.gmra.mrb[164].mxu0 %vm17695_vm10, %v9789_v26  ;;  %v579_v48 = vmul.f32 %v17587_v42, %v561_v39  ;;  %v733_v16 = vsub.f32 %v727_v40, %v17591_v5  ;;  %3726 = vmatprep.mubr.f32.mxu1 %v17481_v45  ;;  %v17699_v42 = vld [vmem:[#allocation65_spill] sm:$0xff]  ;;  %v1345_v50 = vpop.f32.mrb[60].mxu0 }
 0x1f7   : > { %v1971_v17 = vsel %vm17694_vm9, %v1824_v44, 0.0  ;;  %v1520_v59 = vadd.f32 %v1519_v49, %v1486_v33  ;;  %vm17696_vm1 = vcmp.eq.s32.totalorder %v11556_v0, %v11160_v53  ;;  %vm17697_vm9 = vcmp.eq.s32.totalorder %v11556_v0, %v11164_v52  ;;  %3235 = vmatprep.mubr.f32.mxu0 %v17481_v45  ;;  %v17700_v49 = vld [vmem:[#allocation61_spill] sm:$0xff]  ;;  %v1830_v44 = vpop.f32.mrb[60].mxu1 }
 0x1f8   : > { %v2005_v36 = vadd.f32 %v2004_v57, %v1971_v17  ;;  %v1487_v20 = vsel %vm17696_vm1, %v1341_v13, 0.0  ;;  %v1972_v63 = vsel %vm17697_vm9, %v1826_v43, 0.0  ;;  %vm2340_vm6 = vcmp.eq.s32.totalorder %v10167_v7, %v17698_v8  ;;  %v17701_v57 = vld [vmem:[#allocation62_spill] sm:$0xff] }
 0x1f9   : > { %vm2831_vm10 = vcmp.eq.s32.totalorder %v10167_v7, %v17699_v42  ;;  %v1557_v5 = vadd.f32 %v1556_v28, %v1487_v20  ;;  %v2042_v39 = vadd.f32 %v2041_v10, %v1972_v63  ;;  %vm2341_vm13 = vcmp.eq.s32.totalorder %v10167_v7, %v17700_v49 }
 0x1fa   : > { %v583_v61 = vadd.f32 %v567_v22, %v407_v3  ;;  %v739_v40 = vmul.f32 %v17599_v19, %v733_v16  ;;  %v332_v33 = vrot.slane %v12407_v24, 1  ;;  %v483_v17 = vrot.slane %v12449_v35, 1  ;;  %v1347_v3 = vpop.f32.mrb[61].mxu0  ;;  %v1832_v22 = vpop.f32.mrb[61].mxu1  ;;  %v9790_v19 = vld [vmem:[%s17165_s3 + $0x98] sm:$0xff] }
 0x1fb   : > { %v587_v13 = vadd.f32 %v573_v11, %v413_v32  ;;  %v745_v43 = vmul.f32 %v17600_v15, %v733_v16  ;;  %v1488_v28 = vsel %vm1424_vm12, %v1345_v50, 0.0  ;;  %v1973_v10 = vsel %vm1909_vm4, %v1830_v44, 0.0  ;;  %v1351_v63 = vpop.f32.mrb[62].mxu0  ;;  %v1836_v50 = vpop.f32.mrb[62].mxu1 }
 0x1fc   : > { %vm17702_vm9 = vcmask 64512   ;;  %v591_v24 = vadd.f32 %v579_v48, %v419_v18  ;;  %v647_v15 = vsel %vm12452_vm15, 1, %v17555_v4  ;;  %v1521_v32 = vadd.f32 %v1520_v59, %v1488_v28  ;;  %v17704_v18 = vld [vmem:[#allocation59_spill] sm:$0xff] }
 0x1fd   : > { %9250 = vmatmul.mubr.msk.f32.gmra.mrb[166].mxu0 %vm17702_vm9, %v9790_v19  ;;  %vm17703_vm1 = vmmov %vm17702_vm9  ;;  %v2006_v35 = vadd.f32 %v2005_v36, %v1973_v10  ;;  %v1489_v11 = vsel %vm1425_vm0, %v1347_v3, 0.0  ;;  %v1974_v26 = vsel %vm1910_vm5, %v1832_v22, 0.0  ;;  %vm2342_vm12 = vcmp.eq.s32.totalorder %v17704_v18, %v17698_v8 }
 0x1fe   : > { %9286 = vmatmul.mubr.msk.f32.gmra.mrb[166].mxu1 %vm17703_vm1, %v9790_v19  ;;  %3241 = vmatprep.mubr.f32.mxu0 %v17481_v45  ;;  %vm2833_vm4 = vcmp.eq.s32.totalorder %v17704_v18, %v17699_v42  ;;  %v1558_v4 = vadd.f32 %v1557_v5, %v1489_v11  ;;  %v2043_v9 = vadd.f32 %v2042_v39, %v1974_v26  ;;  %v12519_v20 = vsel %vm10601_vm11, %v12352_v54, 0.0  ;;  %v1353_v39 = vpop.f32.mrb[63].mxu0  ;;  %vm17709_vm15 = vmmov %vm17703_vm1 }
 0x1ff   : > { %3732 = vmatprep.mubr.f32.mxu1 %v17481_v45  ;;  %v751_v48 = vmul.f32 %v17605_v41, %v733_v16  ;;  %v755_v59 = vadd.f32 %v739_v40, %v583_v61  ;;  %v12524_v28 = vsel %vm10516_vm2, %v12398_v62, 0.0  ;;  %vm2343_vm0 = vcmp.eq.s32.totalorder %v17704_v18, %v17700_v49  ;;  %v1838_v61 = vpop.f32.mrb[63].mxu1  ;;  %v9791_v62 = vld [vmem:[%s17165_s3 + $0xa0] sm:$0xff]  ;;  %vm17708_vm2 = vmmov %vm17703_vm1  ;;  %v17710_v40 = vld [vmem:[#allocation43_spill] sm:$0xff]  ;;  %v2141_v36 = vpop.f32.mrb[64].mxu0 }
 0x200   : > { %vm2834_vm5 = vcmp.eq.s32.totalorder %v17704_v18, %v17701_v57  ;;  %v655_v41 = vrot.slane %v647_v15, 1  ;;  %v759_v16 = vadd.f32 %v745_v43, %v587_v13  ;;  %v1490_v54 = vsel %vm1426_vm8, %v1351_v63, 0.0  ;;  %v17719_v63 = vld [vmem:[#allocation49_spill] sm:$0xff] }
 0x201   : > { %vm17707_vm11 = vcmp.eq.s32.totalorder %v11632_v25, %v11154_v6  ;;  %9251 = vmatmul.mubr.msk.f32.gmra.mrb[168].mxu0 %vm17708_vm2, %v9791_v62  ;;  %v17711_v13 = vrot.slane %v17710_v40, 1  ;;  %vm17712_vm1 = vcmask 1046528   ;;  %v17714_v10 = vrot.slane %v17713_v2, 1  ;;  %v17725_v40 = vld [vmem:[#allocation64_spill] sm:$0xff] }
 0x202   : > { %v1975_v5 = vsel %vm17707_vm11, %v1836_v50, 0.0  ;;  %9287 = vmatmul.mubr.msk.f32.gmra.mrb[168].mxu1 %vm17709_vm15, %v9791_v62  ;;  %vm17715_vm8 = vmmov %vm17712_vm1  ;;  %v1522_v3 = vadd.f32 %v1521_v32, %v1490_v54  ;;  %vm17716_vm9 = vcmp.eq.s32.totalorder %v11632_v25, %v11160_v53  ;;  %vm17717_vm11 = vcmp.eq.s32.totalorder %v11632_v25, %v11164_v52  ;;  %3247 = vmatprep.mubr.f32.mxu0 %v17481_v45  ;;  %v2632_v52 = vpop.f32.mrb[64].mxu1  ;;  %v9792_v54 = vld [vmem:[%s17165_s3 + $0xa8] sm:$0xff] }
 0x203   : > { %v12544_v43 = vsel %vm17712_vm1, %v17711_v13, %v332_v33  ;;  %v12549_v6 = vsel %vm17715_vm8, %v17714_v10, %v483_v17  ;;  %v2007_v22 = vadd.f32 %v2006_v35, %v1975_v5  ;;  %v1491_v19 = vsel %vm17716_vm9, %v1353_v39, 0.0  ;;  %3738 = vmatprep.mubr.f32.mxu1 %v17481_v45  ;;  %v17718_v33 = vld [vmem:[#allocation60_spill] sm:$0xff]  ;;  %vm17721_vm9 = vmmov %vm17715_vm8 }
 0x204   : > { %v1976_v15 = vsel %vm17717_vm11, %v1838_v61, 0.0  ;;  %vm2344_vm2 = vcmp.eq.s32.totalorder %v17718_v33, %v17698_v8  ;;  %vm2835_vm15 = vcmp.eq.s32.totalorder %v17718_v33, %v17699_v42  ;;  %v1559_v17 = vadd.f32 %v1558_v4, %v1491_v19 }
 0x205   : > { %v2044_v32 = vadd.f32 %v2043_v9, %v1976_v15  ;;  %v763_v35 = vadd.f32 %v751_v48, %v591_v24  ;;  %v12563_v11 = vcvt.f32.s32 %v755_v59  ;;  %v1523_v53 = vrot.slane %v1522_v3, 4  ;;  %v2143_v59 = vpop.f32.mrb[65].mxu0 }
 0x206   : > { %v2008_v26 = vrot.slane %v2007_v22, 4  ;;  %vm2345_vm1 = vcmp.eq.s32.totalorder %v17718_v33, %v17700_v49  ;;  %v17720_v50 = vrot.slane %v17719_v63, 1  ;;  %v12574_v4 = vcvt.f32.s32 %v759_v16  ;;  %v2634_v16 = vpop.f32.mrb[65].mxu1  ;;  %v2147_v19 = vpop.f32.mrb[66].mxu0 }
 0x207   : > { %v1560_v24 = vrot.slane %v1559_v17, 4  ;;  %v2045_v9 = vrot.slane %v2044_v32, 4  ;;  %v2404_v48 = vsel %vm2340_vm6, %v2141_v36, 0.0  ;;  %vm17722_vm11 = vcmask 64512   ;;  %v2638_v15 = vpop.f32.mrb[66].mxu1 }
 0x208   : > { %v12572_v44 = vsel %vm17721_vm9, %v17720_v50, %v655_v41  ;;  %9252 = vmatmul.mubr.msk.f32.gmra.mrb[170].mxu0 %vm17722_vm11, %v9792_v54  ;;  %vm17723_vm8 = vmmov %vm17722_vm11  ;;  %v2895_v41 = vsel %vm2831_vm10, %v2632_v52, 0.0  ;;  %v1524_v5 = vadd.f32 %v1523_v53, %v1522_v3  ;;  %v2009_v39 = vadd.f32 %v2008_v26, %v2007_v22  ;;  %v2149_v26 = vpop.f32.mrb[67].mxu0  ;;  %v2640_v36 = vpop.f32.mrb[67].mxu1  ;;  %v9793_v52 = vld [vmem:[%s17165_s3 + $0xb0] sm:$0xff] }
 0x209   : > { %9288 = vmatmul.mubr.msk.f32.gmra.mrb[170].mxu1 %vm17723_vm8, %v9792_v54  ;;  %v2405_v61 = vsel %vm2341_vm13, %v2143_v59, 0.0  ;;  %vm17724_vm6 = vcmp.eq.s32.totalorder %v10167_v7, %v17701_v57  ;;  %3253 = vmatprep.mubr.f32.mxu0 %v17481_v45  ;;  %v1561_v13 = vadd.f32 %v1560_v24, %v1559_v17  ;;  %v2046_v2 = vadd.f32 %v2045_v9, %v2044_v32  ;;  %v17728_v59 = vld [vmem:[#allocation66_spill] sm:$0xff] }
 0x20a   : > { %v2896_v62 = vsel %vm17724_vm6, %v2634_v16, 0.0  ;;  %3744 = vmatprep.mubr.f32.mxu1 %v17481_v45  ;;  %vm2347_vm13 = vcmp.eq.s32.totalorder %v17725_v40, %v17700_v49  ;;  %v12602_v10 = vcvt.f32.s32 %v763_v35  ;;  %vm821_vm11 = vcmp.lt.s32.totalorder %v12563_v11, 0 }
 0x20b   : > { %v1525_v3 = vrot.slane %v1524_v5, 2  ;;  %v2010_v22 = vrot.slane %v2009_v39, 2  ;;  %vm825_vm9 = vcmp.ge.s32.totalorder %v12563_v11, 8  ;;  %vm833_vm8 = vcmp.lt.s32.totalorder %v12574_v4, 0 }
 0x20c   : > { %v1562_v17 = vrot.slane %v1561_v13, 2  ;;  %v2047_v32 = vrot.slane %v2046_v2, 2  ;;  %v2406_v35 = vsel %vm2342_vm12, %v2147_v19, 0.0  ;;  %v2897_v53 = vsel %vm2833_vm4, %v2638_v15, 0.0 }
 0x20d   : > { %vm17726_vm10 = vcmask 64512   ;;  %v1526_v63 = vadd.f32 %v1525_v3, %v1524_v5  ;;  %v2011_v50 = vadd.f32 %v2010_v22, %v2009_v39  ;;  %v2468_v24 = vadd.f32 %v2406_v35, %v2404_v48  ;;  %v2644_v3 = vpop.f32.mrb[68].mxu1 }
 0x20e   : > { %9253 = vmatmul.mubr.msk.f32.gmra.mrb[172].mxu0 %vm17726_vm10, %v9793_v52  ;;  %vm17727_vm6 = vmmov %vm17726_vm10  ;;  %v2959_v9 = vadd.f32 %v2897_v53, %v2895_v41  ;;  %vm2348_vm12 = vcmp.eq.s32.totalorder %v17728_v59, %v17698_v8  ;;  %vm2839_vm4 = vcmp.eq.s32.totalorder %v17728_v59, %v17699_v42  ;;  %v1563_v54 = vadd.f32 %v1562_v17, %v1561_v13  ;;  %v2646_v53 = vpop.f32.mrb[69].mxu1 }
 0x20f   : > { %9289 = vmatmul.mubr.msk.f32.gmra.mrb[172].mxu1 %vm17727_vm6, %v9793_v52  ;;  %3259 = vmatprep.mubr.f32.mxu0 %v17481_v45  ;;  %v2048_v16 = vadd.f32 %v2047_v32, %v2046_v2  ;;  %v2407_v19 = vsel %vm2343_vm0, %v2149_v26, 0.0  ;;  %v2898_v5 = vsel %vm2834_vm5, %v2640_v36, 0.0  ;;  %v1527_v48 = vrot.slane %v1526_v63, 1  ;;  %v2153_v2 = vpop.f32.mrb[68].mxu0  ;;  %v9794_v26 = vld [vmem:[%s17165_s3 + $0xb8] sm:$0xff]  ;;  %vm17729_vm0 = vmmov %vm17727_vm6 }
 0x210   : > { %3750 = vmatprep.mubr.f32.mxu1 %v17481_v45  ;;  %v2012_v41 = vrot.slane %v2011_v50, 1  ;;  %v2505_v39 = vadd.f32 %v2407_v19, %v2405_v61  ;;  %v2996_v13 = vadd.f32 %v2898_v5, %v2896_v62  ;;  %v1564_v22 = vrot.slane %v1563_v54, 1  ;;  %v2155_v35 = vpop.f32.mrb[69].mxu0  ;;  %vm17730_vm5 = vmmov %vm17729_vm0  ;;  %v17731_v19 = vld [vmem:[#allocation67_spill] sm:$0xff] }
 0x211   : > { %v2049_v15 = vrot.slane %v2048_v16, 1  ;;  %v2408_v17 = vsel %vm2344_vm2, %v2153_v2, 0.0  ;;  %v2899_v32 = vsel %vm2835_vm15, %v2644_v3, 0.0  ;;  %v1528_v61 = vadd.f32 %v1527_v48, %v1526_v63 }
 0x212   : > { %9254 = vmatmul.mubr.msk.f32.gmra.mrb[174].mxu0 %vm17729_vm0, %v9794_v26  ;;  %v2013_v62 = vadd.f32 %v2012_v41, %v2011_v50  ;;  %v2469_v36 = vadd.f32 %v2468_v24, %v2408_v17  ;;  %v2960_v52 = vadd.f32 %v2959_v9, %v2899_v32  ;;  %v1565_v5 = vadd.f32 %v1564_v22, %v1563_v54  ;;  %vm12662_vm0 = vmor %vm821_vm11, %vm825_vm9  ;;  %v2159_v54 = vpop.f32.mrb[70].mxu0 }
 0x213   : > { %9290 = vmatmul.mubr.msk.f32.gmra.mrb[174].mxu1 %vm17730_vm5, %v9794_v26  ;;  %3265 = vmatprep.mubr.f32.mxu0 %v17481_v45  ;;  %v2050_v2 = vadd.f32 %v2049_v15, %v2048_v16  ;;  %v2409_v3 = vsel %vm2345_vm1, %v2155_v35, 0.0  ;;  %vm17732_vm15 = vcmp.eq.s32.totalorder %v17718_v33, %v17701_v57  ;;  %v2650_v16 = vpop.f32.mrb[70].mxu1  ;;  %vm841_vm1 = vcmp.ge.s32.totalorder %v12574_v4, 8  ;;  %v2161_v17 = vpop.f32.mrb[71].mxu0  ;;  %vm17737_vm11 = vmmov %vm17727_vm6 }
 0x214   : > { %v2900_v51 = vsel %vm17732_vm15, %v2646_v53, 0.0  ;;  %3756 = vmatprep.mubr.f32.mxu1 %v17481_v45  ;;  %v2051_v50 = vmul.f32 %v2013_v62, %v12519_v20  ;;  %v2506_v24 = vadd.f32 %v2505_v39, %v2409_v3  ;;  %v1566_v48 = vmul.f32 %v1528_v61, %v12519_v20  ;;  %v2652_v32 = vpop.f32.mrb[71].mxu1  ;;  %vm17738_vm15 = vmmov %vm17727_vm6  ;;  %v17740_v39 = vld [vmem:[#allocation41_spill] sm:$0xff] }
 0x215   : > { %v2997_v9 = vadd.f32 %v2996_v13, %v2900_v51  ;;  %v2052_v41 = vmul.f32 %v2050_v2, %v12524_v28  ;;  %vm17735_vm5 = vcmp.eq.s32.totalorder %v17725_v40, %v17698_v8  ;;  %vm17736_vm9 = vcmp.eq.s32.totalorder %v17725_v40, %v17699_v42  ;;  %v9795_v51 = vld [vmem:[%s17165_s3 + $0xc0] sm:$0xff] }
 0x216   : > { %v2410_v22 = vsel %vm17735_vm5, %v2159_v54, 0.0  ;;  %v2901_v15 = vsel %vm17736_vm9, %v2650_v16, 0.0  ;;  %9255 = vmatmul.mubr.msk.f32.gmra.mrb[176].mxu0 %vm17737_vm11, %v9795_v51  ;;  %vm17739_vm2 = vcmp.ne.s32.totalorder %v12544_v43, 0  ;;  %vm17741_vm6 = vnez %v17740_v39  ;;  %vm12698_vm5 = vmor %vm12662_vm0, %vm833_vm8  ;;  %v2165_v16 = vpop.f32.mrb[72].mxu0 }
 0x217   : > { %9291 = vmatmul.mubr.msk.f32.gmra.mrb[176].mxu1 %vm17738_vm15, %v9795_v51  ;;  %vm12685_vm10 = vmor %vm17741_vm6, %vm17739_vm2  ;;  %v2055_v35 = vrot.slane %v2051_v50, 1  ;;  %v2470_v53 = vadd.f32 %v2469_v36, %v2410_v22  ;;  %v2961_v26 = vadd.f32 %v2960_v52, %v2901_v15  ;;  %v2411_v61 = vsel %vm2347_vm13, %v2161_v17, 0.0  ;;  %3271 = vmatprep.mubr.f32.mxu0 %v17481_v45  ;;  %v2656_v22 = vpop.f32.mrb[72].mxu1 }
 0x218   : > { %3762 = vmatprep.mubr.f32.mxu1 %v17481_v45  ;;  %v1567_v62 = vmul.f32 %v1565_v5, %v12524_v28  ;;  %v2056_v36 = vrot.slane %v2052_v41, 1  ;;  %v2507_v52 = vadd.f32 %v2506_v24, %v2411_v61  ;;  %vm17746_vm6 = vcmp.eq.s32.totalorder %v17725_v40, %v17701_v57  ;;  %v2658_v41 = vpop.f32.mrb[73].mxu1  ;;  %v17773_v61 = vld [vmem:[#allocation69_spill] sm:$0xff] }
 0x219   : > { %v2902_v2 = vsel %vm17746_vm6, %v2652_v32, 0.0  ;;  %vm17747_vm13 = vcmp.ne.s32.totalorder %v12549_v6, 0  ;;  %v12714_v63 = vadd.f32 %v2055_v35, %v1566_v48  ;;  %vm2841_vm8 = vcmp.eq.s32.totalorder %v17731_v19, %v17699_v42  ;;  %v2167_v48 = vpop.f32.mrb[73].mxu0 }
 0x21a   : > { %vm12710_vm2 = vmor %vm10473_vm3, %vm17747_vm13  ;;  %v2998_v54 = vadd.f32 %v2997_v9, %v2902_v2  ;;  %vm661_vm0 = vcmp.ne.s32.totalorder %v12572_v44, 0  ;;  %v12719_v5 = vadd.f32 %v2056_v36, %v1567_v62  ;;  %v2412_v6 = vsel %vm2348_vm12, %v2165_v16, 0.0  ;;  %v9796_v9 = vld [vmem:[%s17165_s3 + $0xc8] sm:$0xff]  ;;  %v2171_v43 = vpop.f32.mrb[74].mxu0  ;;  %v2662_v62 = vpop.f32.mrb[74].mxu1 }
 0x21b   : > { %v2903_v24 = vsel %vm2839_vm4, %v2656_v22, 0.0  ;;  %vm17751_vm3 = vmmov %vm17737_vm11  ;;  %vm849_vm12 = vcmp.lt.s32.totalorder %v12602_v10, 0  ;;  %v2471_v17 = vadd.f32 %v2470_v53, %v2412_v6  ;;  %vm17755_vm4 = vcmp.eq.s32.totalorder %v17728_v59, %v17700_v49  ;;  %v2664_v16 = vpop.f32.mrb[75].mxu1  ;;  %v9797_v22 = vld [vmem:[%s17165_s3 + $0xd0] sm:$0xff] }
 0x21c   : > { %9256 = vmatmul.mubr.msk.f32.gmra.mrb[178].mxu0 %vm17751_vm3, %v9796_v9  ;;  %vm17752_vm9 = vmmov %vm17751_vm3  ;;  %v2962_v32 = vadd.f32 %v2961_v26, %v2903_v24  ;;  %v2413_v51 = vsel %vm17755_vm4, %v2167_v48, 0.0  ;;  %vm17756_vm15 = vcmp.eq.s32.totalorder %v17728_v59, %v17701_v57  ;;  %vm2842_vm6 = vcmp.eq.s32.totalorder %v17731_v19, %v17701_v57  ;;  %v17757_v26 = vld [vmem:[#allocation48_spill] sm:$0xff] }
 0x21d   : > { %9292 = vmatmul.mubr.msk.f32.gmra.mrb[178].mxu1 %vm17752_vm9, %v9796_v9  ;;  %vm12736_vm11 = vmor %vm12698_vm5, %vm841_vm1  ;;  %v2904_v39 = vsel %vm17756_vm15, %v2658_v41, 0.0  ;;  %3277 = vmatprep.mubr.f32.mxu0 %v17481_v45  ;;  %v2508_v35 = vadd.f32 %v2507_v52, %v2413_v51  ;;  %vm2351_vm5 = vcmp.eq.s32.totalorder %v17731_v19, %v17700_v49  ;;  %vm17758_vm13 = vnez %v17757_v26  ;;  %v9798_v26 = vld [vmem:[%s17165_s3 + $0xd8] sm:$0xff] }
 0x21e   : > { %3768 = vmatprep.mubr.f32.mxu1 %v17481_v45  ;;  %vm497_vm1 = vmor %vm12685_vm10, %vm12710_vm2  ;;  %v2999_v53 = vadd.f32 %v2998_v54, %v2904_v39  ;;  %vm857_vm4 = vcmp.ge.s32.totalorder %v12602_v10, 8  ;;  %v873_v44 = vmul.u32 64, %v12563_v11  ;;  %v877_v52 = vmul.u32 8, %v12574_v4  ;;  %v2173_v54 = vpop.f32.mrb[75].mxu0  ;;  %v17766_v11 = vld [vmem:[#allocation68_spill] sm:$0xff] }
 0x21f   : > { %vm12761_vm3 = vmor %vm17758_vm13, %vm661_vm0  ;;  %vm17763_vm0 = vcmp.eq.s32.totalorder %v17731_v19, %v17698_v8  ;;  %v2905_v3 = vsel %vm2841_vm8, %v2662_v62, 0.0  ;;  %vm2352_vm15 = vcmp.eq.s32.totalorder %v17766_v11, %v17698_v8  ;;  %vm2843_vm13 = vcmp.eq.s32.totalorder %v17766_v11, %v17699_v42  ;;  %v2177_v50 = vpop.f32.mrb[76].mxu0 }
 0x220   : > { %vm12769_vm9 = vmor %vm12736_vm11, %vm849_vm12  ;;  %v2414_v2 = vsel %vm17763_vm0, %v2171_v43, 0.0  ;;  %vm17764_vm11 = vcmask 64512   ;;  %v2963_v6 = vadd.f32 %v2962_v32, %v2905_v3  ;;  %v2415_v24 = vsel %vm2351_vm5, %v2173_v54, 0.0 }
 0x221   : > { %9257 = vmatmul.mubr.msk.f32.gmra.mrb[180].mxu0 %vm17764_vm11, %v9797_v22  ;;  %vm17765_vm12 = vmmov %vm17764_vm11  ;;  %v2472_v4 = vadd.f32 %v2471_v17, %v2414_v2  ;;  %v2906_v48 = vsel %vm2842_vm6, %v2664_v16, 0.0  ;;  %v2509_v9 = vadd.f32 %v2508_v35, %v2415_v24  ;;  %vm2353_vm5 = vcmp.eq.s32.totalorder %v17766_v11, %v17700_v49  ;;  %v2668_v17 = vpop.f32.mrb[76].mxu1  ;;  %v2179_v35 = vpop.f32.mrb[77].mxu0 }
 0x222   : > { %9293 = vmatmul.mubr.msk.f32.gmra.mrb[180].mxu1 %vm17765_vm12, %v9797_v22  ;;  %3283 = vmatprep.mubr.f32.mxu0 %v17481_v45  ;;  %vm12806_vm8 = vmor %vm497_vm1, %vm12761_vm3  ;;  %v3000_v15 = vadd.f32 %v2999_v53, %v2906_v48  ;;  %vm2844_vm6 = vcmp.eq.s32.totalorder %v17766_v11, %v17701_v57  ;;  %v881_v32 = vadd.s32 %v877_v52, %v873_v44  ;;  %v2416_v51 = vsel %vm2352_vm15, %v2177_v50, 0.0  ;;  %v2670_v53 = vpop.f32.mrb[77].mxu1  ;;  %v2183_v3 = vpop.f32.mrb[78].mxu0  ;;  %v9799_v48 = vld [vmem:[%s17165_s3 + $0xe0] sm:$0xff] }
 0x223   : > { %3774 = vmatprep.mubr.f32.mxu1 %v17481_v45  ;;  %vm12818_vm0 = vmor %vm12769_vm9, %vm857_vm4  ;;  %v2907_v39 = vsel %vm2843_vm13, %v2668_v17, 0.0  ;;  %vm2354_vm1 = vcmp.eq.s32.totalorder %v17773_v61, %v17698_v8  ;;  %vm2845_vm3 = vcmp.eq.s32.totalorder %v17773_v61, %v17699_v42  ;;  %v2473_v43 = vadd.f32 %v2472_v4, %v2416_v51  ;;  %v2674_v54 = vpop.f32.mrb[78].mxu1 }
 0x224   : > { %vm17771_vm10 = vmmov %vm17764_vm11  ;;  %v2964_v62 = vadd.f32 %v2963_v6, %v2907_v39  ;;  %v2417_v36 = vsel %vm2353_vm5, %v2179_v35, 0.0  ;;  %v2908_v44 = vsel %vm2844_vm6, %v2670_v53, 0.0  ;;  %vm2355_vm4 = vcmp.eq.s32.totalorder %v17773_v61, %v17700_v49  ;;  %v2185_v6 = vpop.f32.mrb[79].mxu0  ;;  %v2676_v24 = vpop.f32.mrb[79].mxu1  ;;  %v17779_v39 = vld [vmem:[#allocation70_spill] sm:$0xff] }
 0x225   : > { %9258 = vmatmul.mubr.msk.f32.gmra.mrb[182].mxu0 %vm17771_vm10, %v9798_v26  ;;  %vm17772_vm2 = vmmov %vm17771_vm10  ;;  %v2510_v52 = vadd.f32 %v2509_v9, %v2417_v36  ;;  %v3001_v2 = vadd.f32 %v3000_v15, %v2908_v44  ;;  %vm2846_vm11 = vcmp.eq.s32.totalorder %v17773_v61, %v17701_v57  ;;  %v885_v16 = vadd.s32 %v12602_v10, %v881_v32  ;;  %v2189_v32 = vpop.f32.mrb[80].mxu0  ;;  %v2680_v51 = vpop.f32.mrb[80].mxu1  ;;  %v9800_v36 = vld [vmem:[%s17165_s3 + $0xe8] sm:$0xff] }
 0x226   : > { %9294 = vmatmul.mubr.msk.f32.gmra.mrb[182].mxu1 %vm17772_vm2, %v9798_v26  ;;  %3289 = vmatprep.mubr.f32.mxu0 %v17481_v45  ;;  %vm865_vm9 = vmor %vm12806_vm8, %vm12818_vm0  ;;  %v2418_v22 = vsel %vm2354_vm1, %v2183_v3, 0.0  ;;  %v2909_v4 = vsel %vm2845_vm3, %v2674_v54, 0.0  ;;  %vm2356_vm13 = vcmp.eq.s32.totalorder %v11294_v56, %v17698_v8  ;;  %vm2847_vm5 = vcmp.eq.s32.totalorder %v11294_v56, %v17699_v42 }
 0x227   : > { %3780 = vmatprep.mubr.f32.mxu1 %v17481_v45  ;;  %vm17774_vm12 = vmmov %vm17772_vm2  ;;  %v17776_v10 = vmov 0  ;;  %v2474_v9 = vadd.f32 %v2473_v43, %v2418_v22  ;;  %v2965_v15 = vadd.f32 %v2964_v62, %v2909_v4  ;;  %v2419_v50 = vsel %vm2355_vm4, %v2185_v6, 0.0  ;;  %v2191_v43 = vpop.f32.mrb[81].mxu0  ;;  %v2682_v62 = vpop.f32.mrb[81].mxu1 }
 0x228   : > { %vm17775_vm15 = vmmov %vm17772_vm2  ;;  %v2910_v17 = vsel %vm2846_vm11, %v2676_v24, 0.0  ;;  %v2511_v41 = vadd.f32 %v2510_v52, %v2419_v50  ;;  %vm2848_vm8 = vcmp.eq.s32.totalorder %v11294_v56, %v17701_v57  ;;  %vm2358_vm0 = vcmp.eq.s32.totalorder %v17779_v39, %v17698_v8  ;;  %v2195_v4 = vpop.f32.mrb[82].mxu0  ;;  %v2686_v6 = vpop.f32.mrb[82].mxu1  ;;  %v17782_v24 = vld [vmem:[#allocation71_spill] sm:$0xff] }
 0x229   : > { %9259 = vmatmul.mubr.msk.f32.gmra.mrb[184].mxu0 %vm17774_vm12, %v9799_v48  ;;  %vm12875_vm6 = vmxor %vm865_vm9, %vm17474_vm7  ;;  %v3002_v13 = vadd.f32 %v3001_v2, %v2910_v17  ;;  %vm2357_vm7 = vcmp.eq.s32.totalorder %v11294_v56, %v17700_v49  ;;  %v2420_v53 = vsel %vm2356_vm13, %v2189_v32, 0.0  ;;  %v2911_v26 = vsel %vm2847_vm5, %v2680_v51, 0.0  ;;  %v2688_v50 = vpop.f32.mrb[83].mxu1  ;;  %v9801_v17 = vld [vmem:[%s17165_s3 + $0xf0] sm:$0xff] }
 0x22a   : > { %9295 = vmatmul.mubr.msk.f32.gmra.mrb[184].mxu1 %vm17775_vm15, %v9799_v48  ;;  %v17777_v10 = vsel %vm12875_vm6, 4294967295, %v17776_v10  ;;  %3295 = vmatprep.mubr.f32.mxu0 %v17481_v45  ;;  %v12895_v35 = vsel %vm12875_vm6, %v885_v16, 0  ;;  %vm17781_vm10 = vmmov %vm17772_vm2  ;;  %vm2849_vm1 = vcmp.eq.s32.totalorder %v17779_v39, %v17699_v42  ;;  %vm2359_vm3 = vcmp.eq.s32.totalorder %v17779_v39, %v17700_v49 }
 0x22b   : > { %17778 = vst [vmem:[#allocation24_spill] sm:$0xff] %v17777_v10  ;;  %3786 = vmatprep.mubr.f32.mxu1 %v17481_v45  ;;  %17780 = vst [vmem:[#allocation26_spill] sm:$0xff] %v12895_v35  ;;  %v2475_v44 = vadd.f32 %v2474_v9, %v2420_v53  ;;  %v2966_v52 = vadd.f32 %v2965_v15, %v2911_v26  ;;  %v2421_v2 = vsel %vm2357_vm7, %v2191_v43, 0.0  ;;  %v2912_v3 = vsel %vm2848_vm8, %v2682_v62, 0.0  ;;  %v2197_v15 = vpop.f32.mrb[83].mxu0 }
 0x22c   : > { %v2512_v54 = vadd.f32 %v2511_v41, %v2421_v2  ;;  %v3003_v16 = vadd.f32 %v3002_v13, %v2912_v3  ;;  %vm2850_vm9 = vcmp.eq.s32.totalorder %v17779_v39, %v17701_v57  ;;  %v12923_v22 = vshra.s32 %v12895_v35, 8  ;;  %vm17783_vm11 = vmmov %vm17772_vm2  ;;  %v2201_v62 = vpop.f32.mrb[84].mxu0 }
 0x22d   : > { %9260 = vmatmul.mubr.msk.f32.gmra.mrb[186].mxu0 %vm17781_vm10, %v9800_v36  ;;  %vm2360_vm4 = vcmp.eq.s32.totalorder %v17782_v24, %v17698_v8  ;;  %v2422_v48 = vsel %vm2358_vm0, %v2195_v4, 0.0  ;;  %v2913_v9 = vsel %vm2849_vm1, %v2686_v6, 0.0  ;;  %vm17784_vm12 = vmmov %vm17772_vm2  ;;  %vm2851_vm15 = vcmp.eq.s32.totalorder %v17782_v24, %v17699_v42  ;;  %v9802_v4 = vld [vmem:[%s17165_s3 + $0xf8] sm:$0xff] }
 0x22e   : > { %9296 = vmatmul.mubr.msk.f32.gmra.mrb[186].mxu1 %vm17772_vm2, %v9800_v36  ;;  %3301 = vmatprep.mubr.f32.mxu0 %v17481_v45  ;;  %vm2361_vm13 = vcmp.eq.s32.totalorder %v17782_v24, %v17700_v49  ;;  %v2476_v41 = vadd.f32 %v2475_v44, %v2422_v48  ;;  %v2967_v13 = vadd.f32 %v2966_v52, %v2913_v9  ;;  %v2423_v32 = vsel %vm2359_vm3, %v2197_v15, 0.0  ;;  %v2692_v36 = vpop.f32.mrb[84].mxu1  ;;  %v17785_v44 = vld [vmem:[#allocation72_spill] sm:$0xff]  ;;  %vm17786_vm8 = vmmov %vm17772_vm2 }
 0x22f   : > { %3792 = vmatprep.mubr.f32.mxu1 %v17481_v45  ;;  %v2914_v51 = vsel %vm2850_vm9, %v2688_v50, 0.0  ;;  %v2513_v53 = vadd.f32 %v2512_v54, %v2423_v32  ;;  %vm2852_vm5 = vcmp.eq.s32.totalorder %v17782_v24, %v17701_v57  ;;  %v5010_v43 = vrot.slane %v12923_v22, %v17655_v23  ;;  %v2203_v54 = vpop.f32.mrb[85].mxu0  ;;  %vm17787_vm0 = vmmov %vm17772_vm2 }
 0x230   : > { %v3004_v26 = vadd.f32 %v3003_v16, %v2914_v51  ;;  %vm2362_vm7 = vcmp.eq.s32.totalorder %v17785_v44, %v17698_v8  ;;  %v5495_v52 = vrot.slane %v12923_v22, %v17666_v21  ;;  %v2424_v2 = vsel %vm2360_vm4, %v2201_v62, 0.0  ;;  %v2694_v16 = vpop.f32.mrb[85].mxu1  ;;  %v17790_v51 = vld [vmem:[#allocation73_spill] sm:$0xff] }
 0x231   : > { %9261 = vmatmul.mubr.msk.f32.gmra.mrb[188].mxu0 %vm17783_vm11, %v9801_v17  ;;  %v2915_v3 = vsel %vm2851_vm15, %v2692_v36, 0.0  ;;  %vm2853_vm10 = vcmp.eq.s32.totalorder %v17785_v44, %v17699_v42  ;;  %vm2363_vm2 = vcmp.eq.s32.totalorder %v17785_v44, %v17700_v49  ;;  %v2477_v6 = vadd.f32 %v2476_v41, %v2424_v2  ;;  %v2698_v32 = vpop.f32.mrb[86].mxu1  ;;  %v9803_v2 = vld [vmem:[%s17165_s3] sm:$0xff]  ;;  %vm17793_vm11 = vmmov %vm17787_vm0 }
 0x232   : > { %9297 = vmatmul.mubr.msk.f32.gmra.mrb[188].mxu1 %vm17784_vm12, %v9801_v17  ;;  %3307 = vmatprep.mubr.f32.mxu0 %v17481_v45  ;;  %v2968_v48 = vadd.f32 %v2967_v13, %v2915_v3  ;;  %v2425_v9 = vsel %vm2361_vm13, %v2203_v54, 0.0  ;;  %v2916_v15 = vsel %vm2852_vm5, %v2694_v16, 0.0  ;;  %vm2854_vm1 = vcmp.eq.s32.totalorder %v17785_v44, %v17701_v57  ;;  %v2207_v13 = vpop.f32.mrb[86].mxu0  ;;  %v2700_v36 = vpop.f32.mrb[87].mxu1  ;;  %vm17794_vm12 = vmmov %vm17787_vm0 }
 0x233   : > { %3798 = vmatprep.mubr.f32.mxu1 %v17481_v45  ;;  %v2514_v50 = vadd.f32 %v2513_v53, %v2425_v9  ;;  %v3005_v17 = vadd.f32 %v3004_v26, %v2916_v15  ;;  %vm12984_vm3 = vcmp.eq.s32.totalorder %v10167_v7, %v5010_v43  ;;  %vm2364_vm9 = vcmp.eq.s32.totalorder %v17790_v51, %v17698_v8  ;;  %v2209_v43 = vpop.f32.mrb[87].mxu0 }
 0x234   : > { %vm12991_vm4 = vcmp.eq.s32.totalorder %v10167_v7, %v5495_v52  ;;  %v2426_v53 = vsel %vm2362_vm7, %v2207_v13, 0.0  ;;  %v2917_v26 = vsel %vm2853_vm10, %v2698_v32, 0.0  ;;  %vm2855_vm15 = vcmp.eq.s32.totalorder %v17790_v51, %v17699_v42  ;;  %v9804_v13 = vld [vmem:[%s17165_s3 + $0x8] sm:$0xff]  ;;  %vm17795_vm7 = vmmov %vm17787_vm0 }
 0x235   : > { %9262 = vmatmul.mubr.msk.f32.gmra.mrb[190].mxu0 %vm17786_vm8, %v9802_v4  ;;  %vm2365_vm13 = vcmp.eq.s32.totalorder %v17790_v51, %v17700_v49  ;;  %v2478_v52 = vadd.f32 %v2477_v6, %v2426_v53  ;;  %v2969_v3 = vadd.f32 %v2968_v48, %v2917_v26  ;;  %v2427_v54 = vsel %vm2363_vm2, %v2209_v43, 0.0  ;;  %v2213_v6 = vpop.f32.mrb[88].mxu0  ;;  %v2704_v48 = vpop.f32.mrb[88].mxu1  ;;  %vm17796_vm8 = vmmov %vm17787_vm0  ;;  %v17797_v32 = vld [vmem:[#allocation74_spill] sm:$0xff] }
 0x236   : > { %9298 = vmatmul.mubr.msk.f32.gmra.mrb[190].mxu1 %vm17787_vm0, %v9802_v4  ;;  %4103 = vmatprep.mubr.f32.mxu0 %v17481_v45  ;;  %v2918_v16 = vsel %vm2854_vm1, %v2700_v36, 0.0  ;;  %v2515_v4 = vadd.f32 %v2514_v50, %v2427_v54  ;;  %vm2856_vm5 = vcmp.eq.s32.totalorder %v17790_v51, %v17701_v57  ;;  %v2428_v15 = vsel %vm2364_vm9, %v2213_v6, 0.0  ;;  %v2706_v41 = vpop.f32.mrb[89].mxu1 }
 0x237   : > { %4594 = vmatprep.mubr.f32.mxu1 %v17481_v45  ;;  %v3006_v9 = vadd.f32 %v3005_v17, %v2918_v16  ;;  %v2919_v50 = vsel %vm2855_vm15, %v2704_v48, 0.0  ;;  %v2215_v17 = vpop.f32.mrb[89].mxu0  ;;  %vm2366_vm0 = vcmp.eq.s32.totalorder %v17797_v32, %v17698_v8  ;;  %vm2857_vm10 = vcmp.eq.s32.totalorder %v17797_v32, %v17699_v42 }
 0x238   : > { %v2479_v62 = vadd.f32 %v2478_v52, %v2428_v15  ;;  %v2970_v53 = vadd.f32 %v2969_v3, %v2919_v50  ;;  %v2429_v26 = vsel %vm2365_vm13, %v2215_v17, 0.0  ;;  %v2920_v43 = vsel %vm2856_vm5, %v2706_v41, 0.0  ;;  %v2219_v54 = vpop.f32.mrb[90].mxu0  ;;  %v2710_v52 = vpop.f32.mrb[90].mxu1  ;;  %v9805_v15 = vld [vmem:[%s17165_s3 + $0x10] sm:$0xff] }
 0x239   : > { %9303 = vmatmul.mubr.msk.f32.vlgmr.msra.gmra.mrb[192].mxu0 %vm17793_vm11, %v9803_v2  ;;  %v2516_v36 = vadd.f32 %v2515_v4, %v2429_v26  ;;  %vm2367_vm2 = vcmp.eq.s32.totalorder %v17797_v32, %v17700_v49  ;;  %vm2858_vm1 = vcmp.eq.s32.totalorder %v17797_v32, %v17701_v57  ;;  %v2430_v3 = vsel %vm2366_vm0, %v2219_v54, 0.0  ;;  %v2221_v6 = vpop.f32.mrb[91].mxu0  ;;  %v2712_v48 = vpop.f32.mrb[91].mxu1  ;;  %v17800_v4 = vld [vmem:[#allocation75_spill] sm:$0xff] }
 0x23a   : > { %9339 = vmatmul.mubr.msk.f32.vlgmr.msra.gmra.mrb[192].mxu1 %vm17794_vm12, %v9803_v2  ;;  %9374 = vmatpush1.msk.msra.mxu0 %vm12984_vm3, %v17478_v27  ;;  %v3007_v2 = vadd.f32 %v3006_v9, %v2920_v43  ;;  %v2921_v16 = vsel %vm2857_vm10, %v2710_v52, 0.0  ;;  %vm17798_vm3 = vmmov %vm17795_vm7  ;;  %vm2859_vm11 = vcmp.eq.s32.totalorder %v17800_v4, %v17699_v42  ;;  %v2480_v9 = vadd.f32 %v2479_v62, %v2430_v3  ;;  %v2225_v43 = vpop.f32.mrb[92].mxu0  ;;  %v2716_v54 = vpop.f32.mrb[92].mxu1  ;;  %v9806_v3 = vld [vmem:[%s17165_s3 + $0x18] sm:$0xff] }
 0x23b   : > { %4109 = vmatprep.mubr.f32.mxu0 %v17481_v45  ;;  %4600 = vmatprep.mubr.f32.mxu1 %v17481_v45  ;;  %vm17799_vm9 = vmmov %vm17798_vm3  ;;  %v2971_v50 = vadd.f32 %v2970_v53, %v2921_v16  ;;  %v2431_v17 = vsel %vm2367_vm2, %v2221_v6, 0.0  ;;  %v2922_v41 = vsel %vm2858_vm1, %v2712_v48, 0.0  ;;  %vm2369_vm12 = vcmp.eq.s32.totalorder %v17800_v4, %v17700_v49  ;;  %v2227_v62 = vpop.f32.mrb[93].mxu0  ;;  %v2718_v53 = vpop.f32.mrb[93].mxu1 }
 0x23c   : > { %9410 = vmatpush1.msk.msra.mxu1 %vm12991_vm4, %v17478_v27  ;;  %vm2368_vm4 = vcmp.eq.s32.totalorder %v17800_v4, %v17698_v8  ;;  %v3008_v26 = vadd.f32 %v3007_v2, %v2922_v41  ;;  %vm2860_vm15 = vcmp.eq.s32.totalorder %v17800_v4, %v17701_v57  ;;  %vm17801_vm13 = vmmov %vm17798_vm3  ;;  %v2433_v6 = vsel %vm2369_vm12, %v2227_v62, 0.0 }
 0x23d   : > { %9304 = vmatmul.mubr.msk.f32.gmra.mrb[194].mxu0 %vm17795_vm7, %v9804_v13  ;;  %v2432_v52 = vsel %vm2368_vm4, %v2225_v43, 0.0  ;;  %vm17802_vm5 = vmmov %vm17798_vm3  ;;  %v2924_v48 = vsel %vm2860_vm15, %v2718_v53, 0.0  ;;  %v2231_v43 = vpop.f32.mrb[94].mxu0 }
 0x23e   : > { %9340 = vmatmul.mubr.msk.f32.gmra.mrb[194].mxu1 %vm17796_vm8, %v9804_v13  ;;  %4115 = vmatprep.mubr.f32.mxu0 %v17481_v45  ;;  %v2517_v13 = vadd.f32 %v2516_v36, %v2431_v17  ;;  %v17803_v36 = vld [vmem:[#allocation76_spill] sm:$0xff]  ;;  %v2481_v2 = vadd.f32 %v2480_v9, %v2432_v52  ;;  %v3009_v41 = vadd.f32 %v3008_v26, %v2924_v48  ;;  %v2233_v9 = vpop.f32.mrb[95].mxu0  ;;  %vm17804_vm2 = vmmov %vm17798_vm3 }
 0x23f   : > { %4606 = vmatprep.mubr.f32.mxu1 %v17481_v45  ;;  %vm2370_vm7 = vcmp.eq.s32.totalorder %v17803_v36, %v17698_v8  ;;  %vm2861_vm8 = vcmp.eq.s32.totalorder %v17803_v36, %v17699_v42  ;;  %vm2371_vm0 = vcmp.eq.s32.totalorder %v17803_v36, %v17700_v49  ;;  %vm2862_vm10 = vcmp.eq.s32.totalorder %v17803_v36, %v17701_v57  ;;  %v9807_v52 = vld [vmem:[%s17165_s3 + $0x20] sm:$0xff]  ;;  %vm17805_vm1 = vmmov %vm17804_vm2 }
 0x240   : > { %v2518_v17 = vadd.f32 %v2517_v13, %v2433_v6  ;;  %v17806_v13 = vld [vmem:[#allocation77_spill] sm:$0xff]  ;;  %v2435_v62 = vsel %vm2371_vm0, %v2233_v9, 0.0  ;;  %vm17807_vm12 = vmmov %vm17805_vm1 }
 0x241   : > { %9305 = vmatmul.mubr.msk.f32.gmra.mrb[196].mxu0 %vm17798_vm3, %v9805_v15  ;;  %vm2372_vm3 = vcmp.eq.s32.totalorder %v17806_v13, %v17698_v8  ;;  %vm2373_vm4 = vcmp.eq.s32.totalorder %v17806_v13, %v17700_v49  ;;  %vm17808_vm15 = vmmov %vm17805_vm1 }
 0x242   : > { %9341 = vmatmul.mubr.msk.f32.gmra.mrb[196].mxu1 %vm17799_vm9, %v9805_v15  ;;  %4121 = vmatprep.mubr.f32.mxu0 %v17481_v45  ;;  %v2923_v15 = vsel %vm2859_vm11, %v2716_v54, 0.0  ;;  %v2722_v54 = vpop.f32.mrb[94].mxu1  ;;  %vm2863_vm9 = vcmp.eq.s32.totalorder %v17806_v13, %v17699_v42  ;;  %v2519_v6 = vadd.f32 %v2518_v17, %v2435_v62  ;;  %vm2864_vm11 = vcmp.eq.s32.totalorder %v17806_v13, %v17701_v57  ;;  %v17809_v17 = vld [vmem:[#allocation78_spill] sm:$0xff]  ;;  %vm17810_vm0 = vmmov %vm17805_vm1 }
 0x243   : > { %4612 = vmatprep.mubr.f32.mxu1 %v17481_v45  ;;  %v2972_v16 = vadd.f32 %v2971_v50, %v2923_v15  ;;  %v2925_v10 = vsel %vm2861_vm8, %v2722_v54, 0.0  ;;  %v2724_v50 = vpop.f32.mrb[95].mxu1  ;;  %vm2866_vm8 = vcmp.eq.s32.totalorder %v17809_v17, %v17701_v57 }
 0x244   : > { %v2926_v53 = vsel %vm2862_vm10, %v2724_v50, 0.0  ;;  %v2728_v54 = vpop.f32.mrb[96].mxu1  ;;  %vm17811_vm10 = vmmov %vm17810_vm0 }
 0x245   : > { %9306 = vmatmul.mubr.msk.f32.gmra.mrb[198].mxu0 %vm17801_vm13, %v9806_v3  ;;  %v2973_v15 = vadd.f32 %v2972_v16, %v2925_v10  ;;  %v3010_v48 = vadd.f32 %v3009_v41, %v2926_v53  ;;  %v2927_v29 = vsel %vm2863_vm9, %v2728_v54, 0.0  ;;  %v2730_v10 = vpop.f32.mrb[97].mxu1  ;;  %v9808_v16 = vld [vmem:[%s17165_s3 + $0x28] sm:$0xff]  ;;  %vm2374_vm13 = vcmp.eq.s32.totalorder %v17809_v17, %v17698_v8 }
 0x246   : > { %9342 = vmatmul.mubr.msk.f32.gmra.mrb[198].mxu1 %vm17802_vm5, %v9806_v3  ;;  %4127 = vmatprep.mubr.f32.mxu0 %v17481_v45  ;;  %v2434_v3 = vsel %vm2370_vm7, %v2231_v43, 0.0  ;;  %v2237_v43 = vpop.f32.mrb[96].mxu0  ;;  %vm2865_vm5 = vcmp.eq.s32.totalorder %v17809_v17, %v17699_v42  ;;  %v2928_v50 = vsel %vm2864_vm11, %v2730_v10, 0.0  ;;  %vm2375_vm7 = vcmp.eq.s32.totalorder %v17809_v17, %v17700_v49  ;;  %v2734_v54 = vpop.f32.mrb[98].mxu1  ;;  %vm17814_vm11 = vmmov %vm17810_vm0 }
 0x247   : > { %4618 = vmatprep.mubr.f32.mxu1 %v17481_v45  ;;  %v2482_v26 = vadd.f32 %v2481_v2, %v2434_v3  ;;  %v2239_v2 = vpop.f32.mrb[97].mxu0  ;;  %v2974_v3 = vadd.f32 %v2973_v15, %v2927_v29  ;;  %v3011_v53 = vadd.f32 %v3010_v48, %v2928_v50  ;;  %v2929_v31 = vsel %vm2865_vm5, %v2734_v54, 0.0  ;;  %v2736_v29 = vpop.f32.mrb[99].mxu1  ;;  %v9809_v15 = vld [vmem:[%s17165_s3 + $0x30] sm:$0xff] }
 0x248   : > { %v2437_v9 = vsel %vm2373_vm4, %v2239_v2, 0.0  ;;  %v2930_v10 = vsel %vm2866_vm8, %v2736_v29, 0.0  ;;  %v2740_v54 = vpop.f32.mrb[100].mxu1  ;;  %vm17813_vm4 = vmmov %vm17810_vm0 }
 0x249   : > { %9307 = vmatmul.mubr.msk.f32.gmra.mrb[200].mxu0 %vm17804_vm2, %v9807_v52  ;;  %v2520_v62 = vadd.f32 %v2519_v6, %v2437_v9  ;;  %v17812_v6 = vld [vmem:[#allocation79_spill] sm:$0xff]  ;;  %v3012_v50 = vadd.f32 %v3011_v53, %v2930_v10  ;;  %vm17817_vm8 = vmmov %vm17810_vm0 }
 0x24a   : > { %9343 = vmatmul.mubr.msk.f32.gmra.mrb[200].mxu1 %vm17805_vm1, %v9807_v52  ;;  %4133 = vmatprep.mubr.f32.mxu0 %v17481_v45  ;;  %v2436_v52 = vsel %vm2372_vm3, %v2237_v43, 0.0  ;;  %v2243_v43 = vpop.f32.mrb[98].mxu0  ;;  %vm2376_vm2 = vcmp.eq.s32.totalorder %v17812_v6, %v17698_v8  ;;  %vm2867_vm1 = vcmp.eq.s32.totalorder %v17812_v6, %v17699_v42  ;;  %vm2377_vm3 = vcmp.eq.s32.totalorder %v17812_v6, %v17700_v49 }
 0x24b   : > { %4624 = vmatprep.mubr.f32.mxu1 %v17481_v45  ;;  %v2483_v41 = vadd.f32 %v2482_v26, %v2436_v52  ;;  %v2245_v26 = vpop.f32.mrb[99].mxu0  ;;  %v2975_v52 = vadd.f32 %v2974_v3, %v2929_v31  ;;  %vm2868_vm9 = vcmp.eq.s32.totalorder %v17812_v6, %v17701_v57  ;;  %v2931_v37 = vsel %vm2867_vm1, %v2740_v54, 0.0  ;;  %v2742_v31 = vpop.f32.mrb[101].mxu1  ;;  %v9810_v3 = vld [vmem:[%s17165_s3 + $0x38] sm:$0xff] }
 0x24c   : > { %v2439_v2 = vsel %vm2375_vm7, %v2245_v26, 0.0  ;;  %v2932_v29 = vsel %vm2868_vm9, %v2742_v31, 0.0  ;;  %v2746_v54 = vpop.f32.mrb[102].mxu1  ;;  %vm17816_vm7 = vmmov %vm17810_vm0  ;;  %vm2872_vm1 = vcmp.eq.s32.totalorder %v17575_v12, %v17701_v57  ;;  %vm2873_vm9 = vcmp.eq.s32.totalorder %v17586_v47, %v17699_v42 }
 0x24d   : > { %9308 = vmatmul.mubr.msk.f32.gmra.mrb[202].mxu0 %vm17807_vm12, %v9808_v16  ;;  %v2521_v9 = vadd.f32 %v2520_v62, %v2439_v2  ;;  %v17815_v62 = vld [vmem:[#allocation80_spill] sm:$0xff]  ;;  %v3013_v10 = vadd.f32 %v3012_v50, %v2932_v29 }
 0x24e   : > { %9344 = vmatmul.mubr.msk.f32.gmra.mrb[202].mxu1 %vm17808_vm15, %v9808_v16  ;;  %4139 = vmatprep.mubr.f32.mxu0 %v17481_v45  ;;  %v2438_v16 = vsel %vm2374_vm13, %v2243_v43, 0.0  ;;  %v2249_v43 = vpop.f32.mrb[100].mxu0  ;;  %vm2378_vm12 = vcmp.eq.s32.totalorder %v17815_v62, %v17698_v8  ;;  %vm2869_vm15 = vcmp.eq.s32.totalorder %v17815_v62, %v17699_v42  ;;  %vm2379_vm13 = vcmp.eq.s32.totalorder %v17815_v62, %v17700_v49 }
 0x24f   : > { %4630 = vmatprep.mubr.f32.mxu1 %v17481_v45  ;;  %v2484_v48 = vadd.f32 %v2483_v41, %v2438_v16  ;;  %v2251_v41 = vpop.f32.mrb[101].mxu0  ;;  %v2976_v16 = vadd.f32 %v2975_v52, %v2931_v37  ;;  %vm2870_vm5 = vcmp.eq.s32.totalorder %v17815_v62, %v17701_v57  ;;  %v2933_v14 = vsel %vm2869_vm15, %v2746_v54, 0.0  ;;  %v2748_v37 = vpop.f32.mrb[103].mxu1  ;;  %v9811_v52 = vld [vmem:[%s17165_s3 + $0x40] sm:$0xff] }
 0x250   : > { %v2441_v26 = vsel %vm2377_vm3, %v2251_v41, 0.0  ;;  %v2934_v41 = vsel %vm2870_vm5, %v2748_v37, 0.0  ;;  %vm2382_vm3 = vcmp.eq.s32.totalorder %v17586_v47, %v17698_v8  ;;  %vm2874_vm15 = vcmp.eq.s32.totalorder %v17586_v47, %v17701_v57 }
 0x251   : > { %9309 = vmatmul.mubr.msk.f32.gmra.mrb[204].mxu0 %vm17810_vm0, %v9809_v15  ;;  %v2522_v2 = vadd.f32 %v2521_v9, %v2441_v26  ;;  %vm2380_vm0 = vcmp.eq.s32.totalorder %v17575_v12, %v17698_v8  ;;  %v2977_v50 = vadd.f32 %v2976_v16, %v2933_v14  ;;  %v3014_v26 = vadd.f32 %v3013_v10, %v2934_v41  ;;  %v17818_v14 = vld [vmem:[#allocation50_spill] sm:$0xff] }
 0x252   : > { %9345 = vmatmul.mubr.msk.f32.gmra.mrb[204].mxu1 %vm17811_vm10, %v9809_v15  ;;  %4145 = vmatprep.mubr.f32.mxu0 %v17481_v45  ;;  %v2440_v15 = vsel %vm2376_vm2, %v2249_v43, 0.0  ;;  %v2255_v43 = vpop.f32.mrb[102].mxu0  ;;  %vm2871_vm10 = vcmp.eq.s32.totalorder %v17575_v12, %v17699_v42  ;;  %vm2381_vm2 = vcmp.eq.s32.totalorder %v17575_v12, %v17700_v49 }
 0x253   : > { %4636 = vmatprep.mubr.f32.mxu1 %v17481_v45  ;;  %v2485_v53 = vadd.f32 %v2484_v48, %v2440_v15  ;;  %v2257_v48 = vpop.f32.mrb[103].mxu0 }
 0x254   : > { %v2443_v15 = vsel %vm2379_vm13, %v2257_v48, 0.0  ;;  %v2261_v29 = vpop.f32.mrb[104].mxu0  ;;  %v17820_v48 = vld [vmem:[#allocation51_spill] sm:$0xff] }
 0x255   : > { %9310 = vmatmul.mubr.msk.f32.gmra.mrb[206].mxu0 %vm17813_vm4, %v9810_v3  ;;  %v2523_v31 = vadd.f32 %v2522_v2, %v2443_v15  ;;  %v2444_v16 = vsel %vm2380_vm0, %v2261_v29, 0.0  ;;  %v2263_v10 = vpop.f32.mrb[105].mxu0  ;;  %v6481_v37 = vrot.slane %v12224_v38, %v17820_v48  ;;  %vm2384_vm0 = vcmp.eq.s32.totalorder %v17594_v30, %v17698_v8 }
 0x256   : > { %9346 = vmatmul.mubr.msk.f32.gmra.mrb[206].mxu1 %vm17814_vm11, %v9810_v3  ;;  %4151 = vmatprep.mubr.f32.mxu0 %v17481_v45  ;;  %v2442_v3 = vsel %vm2378_vm12, %v2255_v43, 0.0  ;;  %v2752_v43 = vpop.f32.mrb[104].mxu1  ;;  %vm17819_vm11 = vmmov %vm17813_vm4  ;;  %vm2383_vm12 = vcmp.eq.s32.totalorder %v17586_v47, %v17700_v49  ;;  %v2445_v41 = vsel %vm2381_vm2, %v2263_v10, 0.0  ;;  %vm2385_vm2 = vcmp.eq.s32.totalorder %v17594_v30, %v17700_v49 }
 0x257   : > { %4642 = vmatprep.mubr.f32.mxu1 %v17481_v45  ;;  %v2486_v9 = vadd.f32 %v2485_v53, %v2442_v3  ;;  %v5990_v53 = vrot.slane %v12224_v38, %v17818_v14  ;;  %v2935_v2 = vsel %vm2871_vm10, %v2752_v43, 0.0  ;;  %v2754_v54 = vpop.f32.mrb[105].mxu1  ;;  %v9812_v3 = vld [vmem:[%s17165_s3 + $0x48] sm:$0xff]  ;;  %v2524_v43 = vadd.f32 %v2523_v31, %v2445_v41 }
 0x258   : > { %v2978_v15 = vadd.f32 %v2977_v50, %v2935_v2  ;;  %v2936_v29 = vsel %vm2872_vm1, %v2754_v54, 0.0  ;;  %v2758_v50 = vpop.f32.mrb[106].mxu1  ;;  %vm13189_vm5 = vcmp.eq.s32.totalorder %v10167_v7, %v6481_v37  ;;  %vm2875_vm10 = vcmp.eq.s32.totalorder %v17594_v30, %v17699_v42 }
 0x259   : > { %9311 = vmatmul.mubr.msk.f32.gmra.mrb[208].mxu0 %vm17816_vm7, %v9811_v52  ;;  %vm5992_vm13 = vcmp.eq.s32.totalorder %v10167_v7, %v5990_v53  ;;  %v2937_v31 = vsel %vm2873_vm9, %v2758_v50, 0.0  ;;  %v2760_v10 = vpop.f32.mrb[107].mxu1  ;;  %v9813_v53 = vld [vmem:[%s17165_s3 + $0x50] sm:$0xff]  ;;  %vm17823_vm7 = vmmov %vm17813_vm4  ;;  %vm2876_vm1 = vcmp.eq.s32.totalorder %v17594_v30, %v17701_v57  ;;  %9481 = vmatprep.subr.msk.mxu1 %vm13189_vm5, %v17478_v27 }
 0x25a   : > { %9347 = vmatmul.mubr.msk.f32.gmra.mrb[208].mxu1 %vm17817_vm8, %v9811_v52  ;;  %4157 = vmatprep.mubr.f32.mxu0 %v17481_v45  ;;  %v2487_v52 = vadd.f32 %v2486_v9, %v2444_v16  ;;  %v2267_v9 = vpop.f32.mrb[106].mxu0  ;;  %vm17824_vm8 = vmmov %vm17813_vm4  ;;  %v2979_v37 = vadd.f32 %v2978_v15, %v2937_v31  ;;  %v2764_v15 = vpop.f32.mrb[108].mxu1 }
 0x25b   : > { %4648 = vmatprep.mubr.f32.mxu1 %v17481_v45  ;;  %9445 = vmatprep.subr.msk.mxu0 %vm5992_vm13, %v17478_v27  ;;  %v2446_v2 = vsel %vm2382_vm3, %v2267_v9, 0.0  ;;  %v2939_v31 = vsel %vm2875_vm10, %v2764_v15, 0.0  ;;  %vm17825_vm3 = vmmov %vm17813_vm4 }
 0x25c   : > { %v2488_v54 = vadd.f32 %v2487_v52, %v2446_v2  ;;  %vm17826_vm9 = vmmov %vm17825_vm3  ;;  %v2980_v16 = vadd.f32 %v2979_v37, %v2939_v31 }
 0x25d   : > { %9312 = vmatmul.mubr.msk.f32.gmra.mrb[210].mxu0 %vm17813_vm4, %v9812_v3  ;;  %vm2386_vm4 = vcmp.eq.s32.totalorder %v17608_v60, %v17698_v8  ;;  %vm17827_vm13 = vmmov %vm17825_vm3 }
 0x25e   : > { %9348 = vmatmul.mubr.msk.f32.gmra.mrb[210].mxu1 %vm17819_vm11, %v9812_v3  ;;  %4163 = vmatprep.mubr.f32.mxu0 %v17481_v45  ;;  %v3015_v3 = vadd.f32 %v3014_v26, %v2936_v29  ;;  %v2269_v26 = vpop.f32.mrb[107].mxu0  ;;  %v2938_v29 = vsel %vm2874_vm15, %v2760_v10, 0.0  ;;  %v2766_v10 = vpop.f32.mrb[109].mxu1  ;;  %vm2877_vm11 = vcmp.eq.s32.totalorder %v17608_v60, %v17699_v42  ;;  %vm2878_vm15 = vcmp.eq.s32.totalorder %v17608_v60, %v17701_v57  ;;  %vm17828_vm5 = vmmov %vm17825_vm3 }
 0x25f   : > { %4654 = vmatprep.mubr.f32.mxu1 %v17481_v45  ;;  %v2447_v41 = vsel %vm2383_vm12, %v2269_v26, 0.0  ;;  %v2273_v52 = vpop.f32.mrb[108].mxu0  ;;  %vm2387_vm12 = vcmp.eq.s32.totalorder %v17608_v60, %v17700_v49  ;;  %v2770_v37 = vpop.f32.mrb[110].mxu1 }
 0x260   : > { %v2525_v9 = vadd.f32 %v2524_v43, %v2447_v41  ;;  %v3016_v50 = vadd.f32 %v3015_v3, %v2938_v29  ;;  %v2448_v2 = vsel %vm2384_vm0, %v2273_v52, 0.0  ;;  %v2275_v26 = vpop.f32.mrb[109].mxu0  ;;  %v9814_v43 = vld [vmem:[%s17165_s3 + $0x58] sm:$0xff]  ;;  %v2940_v41 = vsel %vm2876_vm1, %v2766_v10, 0.0  ;;  %v9815_v10 = vld [vmem:[%s17165_s3 + $0x60] sm:$0xff] }
 0x261   : > { %9313 = vmatmul.mubr.msk.f32.gmra.mrb[212].mxu0 %vm17823_vm7, %v9813_v53  ;;  %v2489_v3 = vadd.f32 %v2488_v54, %v2448_v2  ;;  %v2279_v54 = vpop.f32.mrb[110].mxu0  ;;  %v2941_v2 = vsel %vm2877_vm11, %v2770_v37, 0.0  ;;  %vm2882_vm11 = vcmp.eq.s32.totalorder %v11466_v46, %v17701_v57 }
 0x262   : > { %9349 = vmatmul.mubr.msk.f32.gmra.mrb[212].mxu1 %vm17824_vm8, %v9813_v53  ;;  %4169 = vmatprep.mubr.f32.mxu0 %v17481_v45  ;;  %v2449_v53 = vsel %vm2385_vm2, %v2275_v26, 0.0  ;;  %v3017_v52 = vadd.f32 %v3016_v50, %v2940_v41  ;;  %v2450_v15 = vsel %vm2386_vm4, %v2279_v54, 0.0  ;;  %v2281_v31 = vpop.f32.mrb[111].mxu0  ;;  %v2772_v26 = vpop.f32.mrb[111].mxu1  ;;  %vm17830_vm2 = vmmov %vm17825_vm3  ;;  %vm2391_vm4 = vcmp.eq.s32.totalorder %v11466_v46, %v17700_v49 }
 0x263   : > { %4660 = vmatprep.mubr.f32.mxu1 %v17481_v45  ;;  %v2526_v29 = vadd.f32 %v2525_v9, %v2449_v53  ;;  %v17829_v9 = vld [vmem:[#allocation85_spill] sm:$0xff]  ;;  %v2490_v50 = vadd.f32 %v2489_v3, %v2450_v15  ;;  %v2451_v53 = vsel %vm2387_vm12, %v2281_v31, 0.0  ;;  %v2942_v41 = vsel %vm2878_vm15, %v2772_v26, 0.0  ;;  %v2776_v21 = vpop.f32.mrb[112].mxu1  ;;  %vm17831_vm1 = vmmov %vm17830_vm2 }
 0x264   : > { %vm2388_vm7 = vcmp.eq.s32.totalorder %v17829_v9, %v17698_v8  ;;  %vm2879_vm8 = vcmp.eq.s32.totalorder %v17829_v9, %v17699_v42  ;;  %v3018_v37 = vadd.f32 %v3017_v52, %v2942_v41  ;;  %vm2389_vm0 = vcmp.eq.s32.totalorder %v17829_v9, %v17700_v49  ;;  %v9816_v15 = vld [vmem:[%s17165_s3 + $0x68] sm:$0xff]  ;;  %vm17832_vm12 = vmmov %vm17831_vm1 }
 0x265   : > { %9314 = vmatmul.mubr.msk.f32.gmra.mrb[214].mxu0 %vm17825_vm3, %v9814_v43  ;;  %v2527_v54 = vadd.f32 %v2526_v29, %v2451_v53  ;;  %vm2880_vm10 = vcmp.eq.s32.totalorder %v17829_v9, %v17701_v57  ;;  %v2943_v35 = vsel %vm2879_vm8, %v2776_v21, 0.0  ;;  %vm2390_vm3 = vcmp.eq.s32.totalorder %v11466_v46, %v17698_v8  ;;  %vm17833_vm15 = vmmov %vm17831_vm1 }
 0x266   : > { %9350 = vmatmul.mubr.msk.f32.gmra.mrb[214].mxu1 %vm17826_vm9, %v9814_v43  ;;  %4175 = vmatprep.mubr.f32.mxu0 %v17481_v45  ;;  %v2981_v43 = vadd.f32 %v2980_v16, %v2941_v2  ;;  %v2778_v16 = vpop.f32.mrb[113].mxu1  ;;  %vm2881_vm9 = vcmp.eq.s32.totalorder %v11466_v46, %v17699_v42  ;;  %vm2884_vm8 = vcmp.eq.s32.totalorder %v11470_v1, %v17701_v57 }
 0x267   : > { %4666 = vmatprep.mubr.f32.mxu1 %v17481_v45  ;;  %v2944_v21 = vsel %vm2880_vm10, %v2778_v16, 0.0  ;;  %v2782_v41 = vpop.f32.mrb[114].mxu1 }
 0x268   : > { %v2982_v52 = vadd.f32 %v2981_v43, %v2943_v35  ;;  %v3019_v26 = vadd.f32 %v3018_v37, %v2944_v21  ;;  %v2784_v35 = vpop.f32.mrb[115].mxu1 }
 0x269   : > { %9315 = vmatmul.mubr.msk.f32.gmra.mrb[216].mxu0 %vm17827_vm13, %v9815_v10  ;;  %vm2392_vm13 = vcmp.eq.s32.totalorder %v11470_v1, %v17698_v8 }
 0x26a   : > { %9351 = vmatmul.mubr.msk.f32.gmra.mrb[216].mxu1 %vm17828_vm5, %v9815_v10  ;;  %4181 = vmatprep.mubr.f32.mxu0 %v17481_v45  ;;  %v2285_v10 = vpop.f32.mrb[112].mxu0  ;;  %vm2883_vm5 = vcmp.eq.s32.totalorder %v11470_v1, %v17699_v42 }
 0x26b   : > { %4672 = vmatprep.mubr.f32.mxu1 %v17481_v45  ;;  %v2452_v23 = vsel %vm2388_vm7, %v2285_v10, 0.0  ;;  %v2287_v3 = vpop.f32.mrb[113].mxu0  ;;  %vm2393_vm7 = vcmp.eq.s32.totalorder %v11470_v1, %v17700_v49 }
 0x26c   : > { %v2491_v29 = vadd.f32 %v2490_v50, %v2452_v23  ;;  %v2453_v2 = vsel %vm2389_vm0, %v2287_v3, 0.0  ;;  %v2291_v53 = vpop.f32.mrb[114].mxu0  ;;  %v9817_v50 = vld [vmem:[%s17165_s3 + $0x70] sm:$0xff]  ;;  %v2946_v3 = vsel %vm2882_vm11, %v2784_v35, 0.0  ;;  %vm17834_vm0 = vmmov %vm17831_vm1 }
 0x26d   : > { %9316 = vmatmul.mubr.msk.f32.gmra.mrb[218].mxu0 %vm17830_vm2, %v9816_v15  ;;  %v2528_v31 = vadd.f32 %v2527_v54, %v2453_v2  ;;  %v2454_v10 = vsel %vm2390_vm3, %v2291_v53, 0.0  ;;  %v2293_v23 = vpop.f32.mrb[115].mxu0  ;;  %v3020_v2 = vadd.f32 %v3019_v26, %v2946_v3  ;;  %v2788_v53 = vpop.f32.mrb[116].mxu1  ;;  %vm17835_vm10 = vmmov %vm17834_vm0  ;;  %vm2394_vm2 = vcmp.eq.s32.totalorder %v11473_v55, %v17698_v8 }
 0x26e   : > { %9352 = vmatmul.mubr.msk.f32.gmra.mrb[218].mxu1 %vm17831_vm1, %v9816_v15  ;;  %4187 = vmatprep.mubr.f32.mxu0 %v17481_v45  ;;  %v2945_v15 = vsel %vm2881_vm9, %v2782_v41, 0.0  ;;  %v2492_v43 = vadd.f32 %v2491_v29, %v2454_v10  ;;  %v2455_v37 = vsel %vm2391_vm4, %v2293_v23, 0.0  ;;  %v2297_v21 = vpop.f32.mrb[116].mxu0  ;;  %v9818_v10 = vld [vmem:[%s17165_s3 + $0x78] sm:$0xff]  ;;  %vm2885_vm1 = vcmp.eq.s32.totalorder %v11473_v55, %v17699_v42  ;;  %vm17836_vm4 = vmmov %vm17834_vm0 }
 0x26f   : > { %4678 = vmatprep.mubr.f32.mxu1 %v17481_v45  ;;  %v2983_v54 = vadd.f32 %v2982_v52, %v2945_v15  ;;  %v2529_v16 = vadd.f32 %v2528_v31, %v2455_v37  ;;  %v2456_v41 = vsel %vm2392_vm13, %v2297_v21, 0.0  ;;  %v2299_v29 = vpop.f32.mrb[117].mxu0  ;;  %v2790_v52 = vpop.f32.mrb[117].mxu1  ;;  %vm2395_vm3 = vcmp.eq.s32.totalorder %v11473_v55, %v17700_v49  ;;  %vm17837_vm11 = vmmov %vm17834_vm0 }
 0x270   : > { %v2493_v31 = vadd.f32 %v2492_v43, %v2456_v41  ;;  %v2457_v15 = vsel %vm2393_vm7, %v2299_v29, 0.0  ;;  %v2948_v23 = vsel %vm2884_vm8, %v2790_v52, 0.0  ;;  %vm2886_vm9 = vcmp.eq.s32.totalorder %v11473_v55, %v17701_v57  ;;  %v2303_v3 = vpop.f32.mrb[118].mxu0  ;;  %v2794_v21 = vpop.f32.mrb[118].mxu1  ;;  %v9819_v41 = vld [vmem:[%s17165_s3 + $0x80] sm:$0xff]  ;;  %vm17838_vm7 = vmmov %vm17834_vm0 }
 0x271   : > { %9317 = vmatmul.mubr.msk.f32.gmra.mrb[220].mxu0 %vm17832_vm12, %v9817_v50  ;;  %v2530_v35 = vadd.f32 %v2529_v16, %v2457_v15  ;;  %v3021_v37 = vadd.f32 %v3020_v2, %v2948_v23  ;;  %v2305_v43 = vpop.f32.mrb[119].mxu0  ;;  %vm2396_vm12 = vcmp.eq.s32.totalorder %v11508_v58, %v17698_v8  ;;  %vm2397_vm13 = vcmp.eq.s32.totalorder %v11508_v58, %v17700_v49  ;;  %vm17839_vm8 = vmmov %vm17834_vm0 }
 0x272   : > { %9353 = vmatmul.mubr.msk.f32.gmra.mrb[220].mxu1 %vm17833_vm15, %v9817_v50  ;;  %4193 = vmatprep.mubr.f32.mxu0 %v17481_v45  ;;  %v2947_v50 = vsel %vm2883_vm5, %v2788_v53, 0.0  ;;  %v2458_v53 = vsel %vm2394_vm2, %v2303_v3, 0.0  ;;  %vm2887_vm15 = vcmp.eq.s32.totalorder %v11508_v58, %v17699_v42  ;;  %vm2888_vm5 = vcmp.eq.s32.totalorder %v11508_v58, %v17701_v57  ;;  %v2309_v23 = vpop.f32.mrb[120].mxu0 }
 0x273   : > { %4684 = vmatprep.mubr.f32.mxu1 %v17481_v45  ;;  %v2984_v26 = vadd.f32 %v2983_v54, %v2947_v50  ;;  %v2796_v54 = vpop.f32.mrb[119].mxu1  ;;  %v2494_v16 = vadd.f32 %v2493_v31, %v2458_v53  ;;  %v2459_v50 = vsel %vm2395_vm3, %v2305_v43, 0.0  ;;  %v2311_v31 = vpop.f32.mrb[121].mxu0  ;;  %v9820_v53 = vld [vmem:[%s17165_s3 + $0x88] sm:$0xff]  ;;  %vm2399_vm2 = vcmp.eq.s32.totalorder %v11556_v0, %v17700_v49  ;;  %vm17843_vm3 = vmmov %vm17836_vm4 }
 0x274   : > { %v2950_v29 = vsel %vm2886_vm9, %v2796_v54, 0.0  ;;  %v2531_v52 = vadd.f32 %v2530_v35, %v2459_v50  ;;  %v2800_v3 = vpop.f32.mrb[120].mxu1  ;;  %vm17844_vm9 = vmmov %vm17843_vm3 }
 0x275   : > { %9318 = vmatmul.mubr.msk.f32.gmra.mrb[222].mxu0 %vm17834_vm0, %v9818_v10  ;;  %v3022_v15 = vadd.f32 %v3021_v37, %v2950_v29  ;;  %vm2398_vm0 = vcmp.eq.s32.totalorder %v11556_v0, %v17698_v8  ;;  %v17840_v29 = vld [vmem:[#allocation53_spill] sm:$0xff] }
 0x276   : > { %9354 = vmatmul.mubr.msk.f32.gmra.mrb[222].mxu1 %vm17835_vm10, %v9818_v10  ;;  %4199 = vmatprep.mubr.f32.mxu0 %v17481_v45  ;;  %v2949_v10 = vsel %vm2885_vm1, %v2794_v21, 0.0  ;;  %v2460_v21 = vsel %vm2396_vm12, %v2309_v23, 0.0  ;;  %vm2889_vm10 = vcmp.eq.s32.totalorder %v11556_v0, %v17699_v42  ;;  %vm2890_vm1 = vcmp.eq.s32.totalorder %v11556_v0, %v17701_v57  ;;  %v17841_v23 = vld [vmem:[#allocation57_spill] sm:$0xff] }
 0x277   : > { %4690 = vmatprep.mubr.f32.mxu1 %v17481_v45  ;;  %v2985_v2 = vadd.f32 %v2984_v26, %v2949_v10  ;;  %v2802_v26 = vpop.f32.mrb[121].mxu1  ;;  %v2495_v35 = vadd.f32 %v2494_v16, %v2460_v21  ;;  %v2461_v10 = vsel %vm2397_vm13, %v2311_v31, 0.0  ;;  %v17842_v16 = vld [vmem:[#allocation58_spill] sm:$0xff]  ;;  %v2315_v21 = vpop.f32.mrb[122].mxu0  ;;  %vm2401_vm12 = vcmp.eq.s32.totalorder %v11590_v34, %v17700_v49 }
 0x278   : > { %v2952_v43 = vsel %vm2888_vm5, %v2802_v26, 0.0  ;;  %v2532_v54 = vadd.f32 %v2531_v52, %v2461_v10  ;;  %v2462_v52 = vsel %vm2398_vm0, %v2315_v21, 0.0  ;;  %v2317_v31 = vpop.f32.mrb[123].mxu0  ;;  %vm2402_vm13 = vcmp.eq.s32.totalorder %v11632_v25, %v17698_v8 }
 0x279   : > { %9319 = vmatmul.mubr.msk.f32.gmra.mrb[224].mxu0 %vm17836_vm4, %v9819_v41  ;;  %v3023_v50 = vadd.f32 %v3022_v15, %v2952_v43  ;;  %vm2400_vm4 = vcmp.eq.s32.totalorder %v11590_v34, %v17698_v8  ;;  %v2496_v10 = vadd.f32 %v2495_v35, %v2462_v52  ;;  %v2463_v21 = vsel %vm2399_vm2, %v2317_v31, 0.0  ;;  %v17845_v35 = vld [vmem:[#allocation54_spill] sm:$0xff] }
 0x27a   : > { %9355 = vmatmul.mubr.msk.f32.gmra.mrb[224].mxu1 %vm17837_vm11, %v9819_v41  ;;  %4205 = vmatprep.mubr.f32.mxu0 %v17481_v45  ;;  %v2951_v41 = vsel %vm2887_vm15, %v2800_v3, 0.0  ;;  %v13336_v3 = vrot.slane %v17841_v23, %v17840_v29  ;;  %vm2891_vm11 = vcmp.eq.s32.totalorder %v11590_v34, %v17699_v42  ;;  %vm2892_vm15 = vcmp.eq.s32.totalorder %v11590_v34, %v17701_v57 }
 0x27b   : > { %4696 = vmatprep.mubr.f32.mxu1 %v17481_v45  ;;  %v2986_v37 = vadd.f32 %v2985_v2, %v2951_v41  ;;  %v13340_v2 = vrot.slane %v17842_v16, %v17840_v29  ;;  %v2806_v41 = vpop.f32.mrb[122].mxu1  ;;  %v13375_v52 = vrot.slane %v17842_v16, %v17845_v35  ;;  %vm2893_vm5 = vcmp.eq.s32.totalorder %v11632_v25, %v17699_v42 }
 0x27c   : > { %v2953_v15 = vsel %vm2889_vm10, %v2806_v41, 0.0  ;;  %v2808_v26 = vpop.f32.mrb[123].mxu1  ;;  %vm2403_vm0 = vcmp.eq.s32.totalorder %v11632_v25, %v17700_v49  ;;  %vm2894_vm10 = vcmp.eq.s32.totalorder %v11632_v25, %v17701_v57  ;;  %vm3322_vm2 = vcmp.eq.s32.totalorder %v10167_v7, %v13336_v3 }
 0x27d   : > { %9320 = vmatmul.mubr.msk.f32.gmra.mrb[226].mxu0 %vm17838_vm7, %v9820_v53  ;;  %v2987_v43 = vadd.f32 %v2986_v37, %v2953_v15  ;;  %v2954_v41 = vsel %vm2890_vm1, %v2808_v26, 0.0  ;;  %v13371_v37 = vrot.slane %v17841_v23, %v17845_v35  ;;  %v2321_v15 = vpop.f32.mrb[124].mxu0  ;;  %v2812_v31 = vpop.f32.mrb[124].mxu1  ;;  %vm17846_vm7 = vmmov %vm17843_vm3  ;;  %vm3323_vm1 = vcmp.eq.s32.totalorder %v10167_v7, %v13340_v2 }
 0x27e   : > { %9356 = vmatmul.mubr.msk.f32.gmra.mrb[226].mxu1 %vm17839_vm8, %v9820_v53  ;;  %4211 = vmatprep.mubr.f32.mxu0 %v17481_v45  ;;  %v9821_v53 = vld [vmem:[%s17165_s3 + $0x90] sm:$0xff]  ;;  %v3024_v58 = vadd.f32 %v3023_v50, %v2954_v41  ;;  %v2955_v50 = vsel %vm2891_vm11, %v2812_v31, 0.0  ;;  %v2323_v26 = vpop.f32.mrb[125].mxu0  ;;  %v9822_v41 = vld [vmem:[%s17165_s3 + $0x98] sm:$0xff]  ;;  %vm17847_vm8 = vmmov %vm17843_vm3 }
 0x27f   : > { %4702 = vmatprep.mubr.f32.mxu1 %v17481_v45  ;;  %v2988_v16 = vadd.f32 %v2987_v43, %v2955_v50  ;;  %v2465_v31 = vsel %vm2401_vm12, %v2323_v26, 0.0  ;;  %vm3815_vm11 = vcmp.eq.s32.totalorder %v17704_v18, %v13371_v37  ;;  %v9823_v50 = vld [vmem:[%s17165_s3 + $0xa0] sm:$0xff]  ;;  %vm17848_vm12 = vmmov %vm17846_vm7 }
 0x281   : > { %9321 = vmatmul.mubr.msk.f32.gmra.mrb[228].mxu0 %vm17843_vm3, %v9821_v53  ;;  %vm3813_vm3 = vcmp.eq.s32.totalorder %v10167_v7, %v13371_v37 }
 0x282   : > { %9357 = vmatmul.mubr.msk.f32.gmra.mrb[228].mxu1 %vm17844_vm9, %v9821_v53  ;;  %4217 = vmatprep.mubr.f32.mxu0 %v17481_v45  ;;  %v2533_v53 = vadd.f32 %v2532_v54, %v2463_v21  ;;  %v2464_v54 = vsel %vm2400_vm4, %v2321_v15, 0.0  ;;  %v2814_v21 = vpop.f32.mrb[125].mxu1  ;;  %vm3814_vm9 = vcmp.eq.s32.totalorder %v10167_v7, %v13375_v52  ;;  %vm3324_vm4 = vcmp.eq.s32.totalorder %v17704_v18, %v13336_v3 }
 0x283   : > { %4708 = vmatprep.mubr.f32.mxu1 %v17481_v45  ;;  %v2497_v15 = vadd.f32 %v2496_v10, %v2464_v54  ;;  %v2956_v23 = vsel %vm2892_vm15, %v2814_v21, 0.0  ;;  %v2327_v10 = vpop.f32.mrb[126].mxu0  ;;  %v2818_v43 = vpop.f32.mrb[126].mxu1  ;;  %vm17849_vm15 = vmmov %vm17846_vm7 }
 0x284   : > { %v3025_v0 = vadd.f32 %v3024_v58, %v2956_v23  ;;  %v2466_v58 = vsel %vm2402_vm13, %v2327_v10, 0.0  ;;  %v2957_v23 = vsel %vm2893_vm5, %v2818_v43, 0.0  ;;  %v2820_v54 = vpop.f32.mrb[127].mxu1  ;;  %vm3816_vm13 = vcmp.eq.s32.totalorder %v17704_v18, %v13375_v52 }
 0x285   : > { %9322 = vmatmul.mubr.msk.f32.gmra.mrb[230].mxu0 %vm17846_vm7, %v9822_v41  ;;  %vm3325_vm7 = vcmp.eq.s32.totalorder %v17704_v18, %v13340_v2  ;;  %v2498_v8 = vadd.f32 %v2497_v15, %v2466_v58  ;;  %v2989_v26 = vadd.f32 %v2988_v16, %v2957_v23  ;;  %v2958_v21 = vsel %vm2894_vm10, %v2820_v54, 0.0  ;;  %v3614_v43 = vpop.f32.mrb[128].mxu1  ;;  %v9824_v23 = vld [vmem:[%s17165_s3 + $0xa8] sm:$0xff] }
 0x286   : > { %9358 = vmatmul.mubr.msk.f32.gmra.mrb[230].mxu1 %vm17847_vm8, %v9822_v41  ;;  %4223 = vmatprep.mubr.f32.mxu0 %v17481_v45  ;;  %v2534_v41 = vadd.f32 %v2533_v53, %v2465_v31  ;;  %v2329_v53 = vpop.f32.mrb[127].mxu0  ;;  %v3026_v10 = vadd.f32 %v3025_v0, %v2958_v21  ;;  %vm3326_vm5 = vcmp.eq.s32.totalorder %v17718_v33, %v13336_v3  ;;  %v3616_v54 = vpop.f32.mrb[129].mxu1 }
 0x287   : > { %4714 = vmatprep.mubr.f32.mxu1 %v17481_v45  ;;  %v2467_v42 = vsel %vm2403_vm0, %v2329_v53, 0.0  ;;  %vm3817_vm8 = vcmp.eq.s32.totalorder %v17718_v33, %v13371_v37  ;;  %v2499_v16 = vrot.slane %v2498_v8, 4  ;;  %v2990_v15 = vrot.slane %v2989_v26, 4  ;;  %v3123_v49 = vpop.f32.mrb[128].mxu0 }
 0x288   : > { %v2535_v31 = vadd.f32 %v2534_v41, %v2467_v42  ;;  %vm3327_vm0 = vcmp.eq.s32.totalorder %v17718_v33, %v13340_v2  ;;  %vm3818_vm10 = vcmp.eq.s32.totalorder %v17718_v33, %v13375_v52  ;;  %v3027_v58 = vrot.slane %v3026_v10, 4  ;;  %v3125_v41 = vpop.f32.mrb[129].mxu0 }
 0x289   : > { %9323 = vmatmul.mubr.msk.f32.gmra.mrb[232].mxu0 %vm17848_vm12, %v9823_v50  ;;  %v3386_v0 = vsel %vm3322_vm2, %v3123_v49, 0.0  ;;  %v3877_v53 = vsel %vm3813_vm3, %v3614_v43, 0.0  ;;  %v2991_v42 = vadd.f32 %v2990_v15, %v2989_v26  ;;  %v3387_v21 = vsel %vm3323_vm1, %v3125_v41, 0.0  ;;  %v3620_v15 = vpop.f32.mrb[130].mxu1 }
 0x28a   : > { %9359 = vmatmul.mubr.msk.f32.gmra.mrb[232].mxu1 %vm17849_vm15, %v9823_v50  ;;  %4229 = vmatprep.mubr.f32.mxu0 %v17481_v45  ;;  %v2536_v57 = vrot.slane %v2535_v31, 4  ;;  %vm17850_vm15 = vmmov %vm17848_vm12  ;;  %v2500_v50 = vadd.f32 %v2499_v16, %v2498_v8  ;;  %v3878_v49 = vsel %vm3814_vm9, %v3616_v54, 0.0  ;;  %v3028_v25 = vadd.f32 %v3027_v58, %v3026_v10  ;;  %v3129_v16 = vpop.f32.mrb[130].mxu0  ;;  %v3622_v58 = vpop.f32.mrb[131].mxu1  ;;  %v9825_v54 = vld [vmem:[%s17165_s3 + $0xb0] sm:$0xff] }
 0x28b   : > { %4720 = vmatprep.mubr.f32.mxu1 %v17481_v45  ;;  %vm3328_vm2 = vcmp.eq.s32.totalorder %v17725_v40, %v13336_v3  ;;  %vm3819_vm3 = vcmp.eq.s32.totalorder %v17725_v40, %v13371_v37  ;;  %v2992_v26 = vrot.slane %v2991_v42, 2  ;;  %vm3329_vm1 = vcmp.eq.s32.totalorder %v17725_v40, %v13340_v2 }
 0x28c   : > { %v2501_v8 = vrot.slane %v2500_v50, 2  ;;  %vm3820_vm9 = vcmp.eq.s32.totalorder %v17725_v40, %v13375_v52  ;;  %v3029_v41 = vrot.slane %v3028_v25, 2  ;;  %v3879_v10 = vsel %vm3815_vm11, %v3620_v15, 0.0 }
 0x28d   : > { %9324 = vmatmul.mubr.msk.f32.gmra.mrb[234].mxu0 %vm17848_vm12, %v9824_v23  ;;  %v2993_v55 = vadd.f32 %v2992_v26, %v2991_v42  ;;  %v3941_v46 = vadd.f32 %v3879_v10, %v3877_v53  ;;  %vm3821_vm11 = vcmp.eq.s32.totalorder %v17728_v59, %v13371_v37 }
 0x28e   : > { %9360 = vmatmul.mubr.msk.f32.gmra.mrb[234].mxu1 %vm17850_vm15, %v9824_v23  ;;  %4235 = vmatprep.mubr.f32.mxu0 %v17481_v45  ;;  %v2537_v23 = vadd.f32 %v2536_v57, %v2535_v31  ;;  %v3388_v31 = vsel %vm3324_vm4, %v3129_v16, 0.0  ;;  %v3131_v57 = vpop.f32.mrb[131].mxu0  ;;  %vm17851_vm15 = vmmov %vm17848_vm12  ;;  %v2502_v34 = vadd.f32 %v2501_v8, %v2500_v50  ;;  %vm3330_vm4 = vcmp.eq.s32.totalorder %v17728_v59, %v13336_v3 }
 0x28f   : > { %4726 = vmatprep.mubr.f32.mxu1 %v17481_v45  ;;  %v3450_v1 = vadd.f32 %v3388_v31, %v3386_v0  ;;  %v3030_v15 = vadd.f32 %v3029_v41, %v3028_v25  ;;  %v3389_v9 = vsel %vm3325_vm7, %v3131_v57, 0.0  ;;  %v3880_v50 = vsel %vm3816_vm13, %v3622_v58, 0.0  ;;  %v3135_v26 = vpop.f32.mrb[132].mxu0 }
 0x290   : > { %v2538_v43 = vrot.slane %v2537_v23, 2  ;;  %v2503_v0 = vrot.slane %v2502_v34, 1  ;;  %v2994_v53 = vrot.slane %v2993_v55, 1  ;;  %v3487_v42 = vadd.f32 %v3389_v9, %v3387_v21  ;;  %v3137_v10 = vpop.f32.mrb[133].mxu0  ;;  %v9826_v9 = vld [vmem:[%s17165_s3 + $0xb8] sm:$0xff] }
 0x291   : > { %9325 = vmatmul.mubr.msk.f32.gmra.mrb[236].mxu0 %vm17848_vm12, %v9825_v54  ;;  %vm3331_vm12 = vcmp.eq.s32.totalorder %v17728_v59, %v13340_v2  ;;  %v3978_v8 = vadd.f32 %v3880_v50, %v3878_v49  ;;  %v3390_v41 = vsel %vm3326_vm5, %v3135_v26, 0.0  ;;  %vm17852_vm7 = vcmask 64512  }
 0x292   : > { %9361 = vmatmul.mubr.msk.f32.gmra.mrb[236].mxu1 %vm17851_vm15, %v9825_v54  ;;  %4241 = vmatprep.mubr.f32.mxu0 %v17481_v45  ;;  %v2539_v16 = vadd.f32 %v2538_v43, %v2537_v23  ;;  %v3626_v23 = vpop.f32.mrb[132].mxu1  ;;  %vm3822_vm15 = vcmp.eq.s32.totalorder %v17728_v59, %v13375_v52  ;;  %v3031_v43 = vrot.slane %v3030_v15, 1  ;;  %vm17853_vm13 = vmmov %vm17852_vm7  ;;  %v2504_v21 = vadd.f32 %v2503_v0, %v2502_v34  ;;  %v3141_v0 = vpop.f32.mrb[134].mxu0 }
 0x293   : > { %4732 = vmatprep.mubr.f32.mxu1 %v17481_v45  ;;  %v3881_v31 = vsel %vm3817_vm8, %v3626_v23, 0.0  ;;  %v3628_v57 = vpop.f32.mrb[133].mxu1  ;;  %v2995_v49 = vadd.f32 %v2994_v53, %v2993_v55  ;;  %v3451_v58 = vadd.f32 %v3450_v1, %v3390_v41  ;;  %vm3332_vm5 = vcmp.eq.s32.totalorder %v17731_v19, %v13336_v3  ;;  %v3143_v41 = vpop.f32.mrb[135].mxu0  ;;  %vm17854_vm8 = vmmov %vm17852_vm7 }
 0x294   : > { %v2540_v25 = vrot.slane %v2539_v16, 1  ;;  %v3942_v54 = vadd.f32 %v3941_v46, %v3881_v31  ;;  %v3032_v26 = vadd.f32 %v3031_v43, %v3030_v15  ;;  %v3391_v23 = vsel %vm3327_vm0, %v3137_v10, 0.0  ;;  %v3632_v53 = vpop.f32.mrb[134].mxu1  ;;  %vm17855_vm0 = vmmov %vm17852_vm7 }
 0x295   : > { %9326 = vmatmul.mubr.msk.f32.gmra.mrb[238].mxu0 %vm17852_vm7, %v9826_v9  ;;  %v3882_v18 = vsel %vm3818_vm10, %v3628_v57, 0.0  ;;  %v2542_v1 = vmul.f32 %v2504_v21, %v12519_v20  ;;  %v3033_v46 = vmul.f32 %v2995_v49, %v12519_v20  ;;  %v3488_v55 = vadd.f32 %v3487_v42, %v3391_v23  ;;  %v3634_v31 = vpop.f32.mrb[135].mxu1 }
 0x296   : > { %9362 = vmatmul.mubr.msk.f32.gmra.mrb[238].mxu1 %vm17853_vm13, %v9826_v9  ;;  %4247 = vmatprep.mubr.f32.mxu0 %v17481_v45  ;;  %v2541_v50 = vadd.f32 %v2540_v25, %v2539_v16  ;;  %v3979_v34 = vadd.f32 %v3978_v8, %v3882_v18  ;;  %v3034_v15 = vmul.f32 %v3032_v26, %v12524_v28  ;;  %v3392_v25 = vsel %vm3328_vm2, %v3141_v0, 0.0  ;;  %v9827_v18 = vld [vmem:[%s17165_s3 + $0xc0] sm:$0xff]  ;;  %v3147_v26 = vpop.f32.mrb[136].mxu0  ;;  %v3638_v23 = vpop.f32.mrb[136].mxu1 }
 0x297   : > { %4738 = vmatprep.mubr.f32.mxu1 %v17481_v45  ;;  %v3883_v43 = vsel %vm3819_vm3, %v3632_v53, 0.0  ;;  %v2546_v42 = vrot.slane %v2542_v1, 2  ;;  %v3452_v8 = vadd.f32 %v3451_v58, %v3392_v25  ;;  %vm3823_vm10 = vcmp.eq.s32.totalorder %v17731_v19, %v13371_v37  ;;  %v3149_v25 = vpop.f32.mrb[137].mxu0  ;;  %vm17856_vm3 = vmmov %vm17855_vm0 }
 0x298   : > { %v2543_v16 = vmul.f32 %v2541_v50, %v12524_v28  ;;  %v3943_v10 = vadd.f32 %v3942_v54, %v3883_v43  ;;  %v3393_v9 = vsel %vm3329_vm1, %v3143_v41, 0.0  ;;  %v3884_v21 = vsel %vm3820_vm9, %v3634_v31, 0.0  ;;  %v3640_v43 = vpop.f32.mrb[137].mxu1  ;;  %vm17857_vm1 = vmmov %vm17855_vm0 }
 0x299   : > { %9327 = vmatmul.mubr.msk.f32.gmra.mrb[240].mxu0 %vm17854_vm8, %v9827_v18  ;;  %vm3333_vm2 = vcmp.eq.s32.totalorder %v17731_v19, %v13340_v2  ;;  %v2550_v49 = vadd.f32 %v2546_v42, %v12714_v63  ;;  %v3037_v58 = vrot.slane %v3033_v46, 3  ;;  %v3489_v54 = vadd.f32 %v3488_v55, %v3393_v9  ;;  %v9828_v63 = vld [vmem:[%s17165_s3 + $0xc8] sm:$0xff]  ;;  %v3153_v42 = vpop.f32.mrb[138].mxu0  ;;  %vm17861_vm8 = vmmov %vm17855_vm0 }
 0x29a   : > { %9363 = vmatmul.mubr.msk.f32.gmra.mrb[240].mxu1 %vm17855_vm0, %v9827_v18  ;;  %4253 = vmatprep.mubr.f32.mxu0 %v17481_v45  ;;  %v2547_v57 = vrot.slane %v2543_v16, 2  ;;  %v3980_v50 = vadd.f32 %v3979_v34, %v3884_v21  ;;  %v3038_v0 = vrot.slane %v3034_v15, 3  ;;  %v3394_v53 = vsel %vm3330_vm4, %v3147_v26, 0.0  ;;  %v3155_v9 = vpop.f32.mrb[139].mxu0  ;;  %vm17858_vm4 = vmmov %vm17855_vm0 }
 0x29b   : > { %4744 = vmatprep.mubr.f32.mxu1 %v17481_v45  ;;  %v3885_v16 = vsel %vm3821_vm11, %v3638_v23, 0.0  ;;  %v3453_v46 = vadd.f32 %v3452_v8, %v3394_v53  ;;  %v3395_v34 = vsel %vm3331_vm12, %v3149_v25, 0.0  ;;  %v3886_v31 = vsel %vm3822_vm15, %v3640_v43, 0.0  ;;  %v3644_v8 = vpop.f32.mrb[138].mxu1  ;;  %vm17859_vm11 = vmmov %vm17855_vm0 }
 0x29c   : > { %v2551_v1 = vadd.f32 %v2547_v57, %v12719_v5  ;;  %v13562_v5 = vadd.f32 %v3037_v58, %v2550_v49  ;;  %v3944_v55 = vadd.f32 %v3943_v10, %v3885_v16  ;;  %v3490_v41 = vadd.f32 %v3489_v54, %v3395_v34  ;;  %v3646_v21 = vpop.f32.mrb[139].mxu1  ;;  %v9829_v49 = vld [vmem:[%s17165_s3 + $0xd0] sm:$0xff] }
 0x29d   : > { %9328 = vmatmul.mubr.msk.f32.gmra.mrb[242].mxu0 %vm17856_vm3, %v9828_v63  ;;  %vm3824_vm9 = vcmp.eq.s32.totalorder %v17731_v19, %v13375_v52  ;;  %v3981_v18 = vadd.f32 %v3980_v50, %v3886_v31  ;;  %v3396_v10 = vsel %vm3332_vm5, %v3153_v42, 0.0  ;;  %v3887_v57 = vsel %vm3823_vm10, %v3644_v8, 0.0  ;;  %v3650_v53 = vpop.f32.mrb[140].mxu1  ;;  %vm17860_vm5 = vmmov %vm17855_vm0 }
 0x29e   : > { %9364 = vmatmul.mubr.msk.f32.gmra.mrb[242].mxu1 %vm17857_vm1, %v9828_v63  ;;  %4259 = vmatprep.mubr.f32.mxu0 %v17481_v45  ;;  %v13569_v15 = vadd.f32 %v3038_v0, %v2551_v1  ;;  %vm3334_vm12 = vcmp.eq.s32.totalorder %v17766_v11, %v13336_v3  ;;  %vm3825_vm15 = vcmp.eq.s32.totalorder %v17766_v11, %v13371_v37  ;;  %v3397_v50 = vsel %vm3333_vm2, %v3155_v9, 0.0  ;;  %v3159_v0 = vpop.f32.mrb[140].mxu0  ;;  %v3652_v63 = vpop.f32.mrb[141].mxu1 }
 0x29f   : > { %4750 = vmatprep.mubr.f32.mxu1 %v17481_v45  ;;  %v3454_v58 = vadd.f32 %v3453_v46, %v3396_v10  ;;  %v3945_v54 = vadd.f32 %v3944_v55, %v3887_v57  ;;  %v3888_v26 = vsel %vm3824_vm9, %v3646_v21, 0.0  ;;  %v3491_v23 = vadd.f32 %v3490_v41, %v3397_v50  ;;  %v3161_v43 = vpop.f32.mrb[141].mxu0  ;;  %v9830_v46 = vld [vmem:[%s17165_s3 + $0xd8] sm:$0xff]  ;;  %v3656_v10 = vpop.f32.mrb[142].mxu1  ;;  %vm17862_vm9 = vmmov %vm17857_vm1 }
 0x2a0   : > { %v3982_v1 = vadd.f32 %v3981_v18, %v3888_v26  ;;  %vm3335_vm7 = vcmp.eq.s32.totalorder %v17766_v11, %v13340_v2  ;;  %vm3826_vm13 = vcmp.eq.s32.totalorder %v17766_v11, %v13375_v52  ;;  %v3398_v16 = vsel %vm3334_vm12, %v3159_v0, 0.0  ;;  %v3165_v8 = vpop.f32.mrb[142].mxu0 }
 0x2a1   : > { %9329 = vmatmul.mubr.msk.f32.gmra.mrb[244].mxu0 %vm17858_vm4, %v9829_v49  ;;  %v3889_v25 = vsel %vm3825_vm15, %v3650_v53, 0.0  ;;  %vm3336_vm0 = vcmp.eq.s32.totalorder %v17773_v61, %v13336_v3  ;;  %vm3827_vm10 = vcmp.eq.s32.totalorder %v17773_v61, %v13371_v37  ;;  %v3455_v55 = vadd.f32 %v3454_v58, %v3398_v16  ;;  %v3167_v21 = vpop.f32.mrb[143].mxu0  ;;  %v9831_v58 = vld [vmem:[%s17165_s3 + $0xe0] sm:$0xff] }
 0x2a2   : > { %9365 = vmatmul.mubr.msk.f32.gmra.mrb[244].mxu1 %vm17859_vm11, %v9829_v49  ;;  %4265 = vmatprep.mubr.f32.mxu0 %v17481_v45  ;;  %v3946_v34 = vadd.f32 %v3945_v54, %v3889_v25  ;;  %v3399_v41 = vsel %vm3335_vm7, %v3161_v43, 0.0  ;;  %v3890_v31 = vsel %vm3826_vm13, %v3652_v63, 0.0  ;;  %vm3337_vm2 = vcmp.eq.s32.totalorder %v17773_v61, %v13340_v2  ;;  %v3658_v49 = vpop.f32.mrb[143].mxu1  ;;  %v3171_v53 = vpop.f32.mrb[144].mxu0  ;;  %vm17863_vm7 = vmmov %vm17857_vm1 }
 0x2a3   : > { %4756 = vmatprep.mubr.f32.mxu1 %v17481_v45  ;;  %v3492_v18 = vadd.f32 %v3491_v23, %v3399_v41  ;;  %v3983_v42 = vadd.f32 %v3982_v1, %v3890_v31  ;;  %vm3828_vm3 = vcmp.eq.s32.totalorder %v17773_v61, %v13375_v52  ;;  %v3400_v57 = vsel %vm3336_vm0, %v3165_v8, 0.0  ;;  %v3662_v16 = vpop.f32.mrb[144].mxu1  ;;  %v3173_v63 = vpop.f32.mrb[145].mxu0  ;;  %vm17864_vm13 = vmmov %vm17857_vm1 }
 0x2a4   : > { %v3891_v9 = vsel %vm3827_vm10, %v3656_v10, 0.0  ;;  %vm3338_vm4 = vcmp.eq.s32.totalorder %v11294_v56, %v13336_v3  ;;  %vm3829_vm11 = vcmp.eq.s32.totalorder %v11294_v56, %v13371_v37  ;;  %v3456_v54 = vadd.f32 %v3455_v55, %v3400_v57  ;;  %v9832_v55 = vld [vmem:[%s17165_s3 + $0xe8] sm:$0xff]  ;;  %v3177_v10 = vpop.f32.mrb[146].mxu0 }
 0x2a5   : > { %9330 = vmatmul.mubr.msk.f32.gmra.mrb[246].mxu0 %vm17860_vm5, %v9830_v46  ;;  %v3947_v50 = vadd.f32 %v3946_v34, %v3891_v9  ;;  %v3401_v26 = vsel %vm3337_vm2, %v3167_v21, 0.0  ;;  %v3892_v23 = vsel %vm3828_vm3, %v3658_v49, 0.0  ;;  %vm3339_vm12 = vcmp.eq.s32.totalorder %v11294_v56, %v13340_v2  ;;  %v3179_v49 = vpop.f32.mrb[147].mxu0  ;;  %vm17865_vm3 = vmmov %vm17857_vm1 }
 0x2a6   : > { %9366 = vmatmul.mubr.msk.f32.gmra.mrb[246].mxu1 %vm17861_vm8, %v9830_v46  ;;  %4271 = vmatprep.mubr.f32.mxu0 %v17481_v45  ;;  %v3493_v1 = vadd.f32 %v3492_v18, %v3401_v26  ;;  %v3984_v0 = vadd.f32 %v3983_v42, %v3892_v23  ;;  %vm3830_vm15 = vcmp.eq.s32.totalorder %v11294_v56, %v13375_v52  ;;  %v3402_v25 = vsel %vm3338_vm4, %v3171_v53, 0.0  ;;  %v3664_v46 = vpop.f32.mrb[145].mxu1 }
 0x2a7   : > { %4762 = vmatprep.mubr.f32.mxu1 %v17481_v45  ;;  %v3893_v43 = vsel %vm3829_vm11, %v3662_v16, 0.0  ;;  %vm3340_vm5 = vcmp.eq.s32.totalorder %v17779_v39, %v13336_v3  ;;  %vm3831_vm8 = vcmp.eq.s32.totalorder %v17779_v39, %v13371_v37  ;;  %v3457_v34 = vadd.f32 %v3456_v54, %v3402_v25  ;;  %v3668_v57 = vpop.f32.mrb[146].mxu1  ;;  %v9833_v54 = vld [vmem:[%s17165_s3 + $0xf0] sm:$0xff]  ;;  %v3183_v25 = vpop.f32.mrb[148].mxu0 }
 0x2a8   : > { %v3948_v41 = vadd.f32 %v3947_v50, %v3893_v43  ;;  %v3403_v31 = vsel %vm3339_vm12, %v3173_v63, 0.0  ;;  %v3894_v18 = vsel %vm3830_vm15, %v3664_v46, 0.0  ;;  %vm3341_vm0 = vcmp.eq.s32.totalorder %v17779_v39, %v13340_v2  ;;  %vm17866_vm15 = vmmov %vm17857_vm1 }
 0x2a9   : > { %9331 = vmatmul.mubr.msk.f32.gmra.mrb[248].mxu0 %vm17857_vm1, %v9831_v58  ;;  %v3494_v42 = vadd.f32 %v3493_v1, %v3403_v31  ;;  %v3985_v8 = vadd.f32 %v3984_v0, %v3894_v18  ;;  %vm3832_vm10 = vcmp.eq.s32.totalorder %v17779_v39, %v13375_v52  ;;  %vm3342_vm2 = vcmp.eq.s32.totalorder %v17782_v24, %v13336_v3  ;;  %v9834_v31 = vld [vmem:[%s17165_s3 + $0xf8] sm:$0xff] }
 0x2aa   : > { %9367 = vmatmul.mubr.msk.f32.gmra.mrb[248].mxu1 %vm17862_vm9, %v9831_v58  ;;  %4277 = vmatprep.mubr.f32.mxu0 %v17481_v45  ;;  %v3404_v9 = vsel %vm3340_vm5, %v3177_v10, 0.0  ;;  %v3895_v21 = vsel %vm3831_vm8, %v3668_v57, 0.0  ;;  %v3670_v58 = vpop.f32.mrb[147].mxu1  ;;  %vm3833_vm9 = vcmp.eq.s32.totalorder %v17782_v24, %v13371_v37  ;;  %vm3343_vm4 = vcmp.eq.s32.totalorder %v17782_v24, %v13340_v2 }
 0x2ab   : > { %4768 = vmatprep.mubr.f32.mxu1 %v17481_v45  ;;  %v3458_v50 = vadd.f32 %v3457_v34, %v3404_v9  ;;  %v3949_v26 = vadd.f32 %v3948_v41, %v3895_v21  ;;  %v3405_v23 = vsel %vm3341_vm0, %v3179_v49, 0.0  ;;  %v3896_v1 = vsel %vm3832_vm10, %v3670_v58, 0.0  ;;  %v3674_v43 = vpop.f32.mrb[148].mxu1  ;;  %v3185_v34 = vpop.f32.mrb[149].mxu0 }
 0x2ac   : > { %v3495_v0 = vadd.f32 %v3494_v42, %v3405_v23  ;;  %v3986_v53 = vadd.f32 %v3985_v8, %v3896_v1  ;;  %vm3834_vm11 = vcmp.eq.s32.totalorder %v17782_v24, %v13375_v52  ;;  %v5986_v16 = vrot.slane %v12923_v22, %v17818_v14  ;;  %v3676_v41 = vpop.f32.mrb[149].mxu1  ;;  %v3189_v49 = vpop.f32.mrb[150].mxu0 }
 0x2ad   : > { %9332 = vmatmul.mubr.msk.f32.gmra.mrb[250].mxu0 %vm17863_vm7, %v9832_v55  ;;  %vm3344_vm12 = vcmp.eq.s32.totalorder %v17785_v44, %v13336_v3  ;;  %v6477_v63 = vrot.slane %v12923_v22, %v17820_v48  ;;  %v3406_v46 = vsel %vm3342_vm2, %v3183_v25, 0.0  ;;  %vm17867_vm7 = vmmov %vm17857_vm1  ;;  %vm3345_vm5 = vcmp.eq.s32.totalorder %v17785_v44, %v13340_v2  ;;  %v3680_v58 = vpop.f32.mrb[150].mxu1  ;;  %v3191_v23 = vpop.f32.mrb[151].mxu0 }
 0x2ae   : > { %9368 = vmatmul.mubr.msk.f32.gmra.mrb[250].mxu1 %vm17864_vm13, %v9832_v55  ;;  %4283 = vmatprep.mubr.f32.mxu0 %v17481_v45  ;;  %v3897_v55 = vsel %vm3833_vm9, %v3674_v43, 0.0  ;;  %vm3835_vm13 = vcmp.eq.s32.totalorder %v17785_v44, %v13371_v37  ;;  %v3459_v18 = vadd.f32 %v3458_v50, %v3406_v46  ;;  %v3407_v8 = vsel %vm3343_vm4, %v3185_v34, 0.0  ;;  %v3682_v1 = vpop.f32.mrb[151].mxu1 }
 0x2af   : > { %4774 = vmatprep.mubr.f32.mxu1 %v17481_v45  ;;  %v3950_v42 = vadd.f32 %v3949_v26, %v3897_v55  ;;  %v3898_v10 = vsel %vm3834_vm11, %v3676_v41, 0.0  ;;  %v3496_v57 = vadd.f32 %v3495_v0, %v3407_v8  ;;  %vm3836_vm8 = vcmp.eq.s32.totalorder %v17785_v44, %v13375_v52  ;;  %v9835_v0 = vld [vmem:[%s17165_s3] sm:$0xff]  ;;  %v3195_v55 = vpop.f32.mrb[152].mxu0  ;;  %v3686_v34 = vpop.f32.mrb[152].mxu1 }
 0x2b0   : > { %v3987_v9 = vadd.f32 %v3986_v53, %v3898_v10  ;;  %vm13701_vm0 = vcmp.eq.s32.totalorder %v10167_v7, %v5986_v16  ;;  %vm3346_vm10 = vcmp.eq.s32.totalorder %v17790_v51, %v13336_v3  ;;  %vm13708_vm2 = vcmp.eq.s32.totalorder %v10167_v7, %v6477_v63  ;;  %v3197_v8 = vpop.f32.mrb[153].mxu0  ;;  %v3688_v10 = vpop.f32.mrb[153].mxu1 }
 0x2b1   : > { %9333 = vmatmul.mubr.msk.f32.gmra.mrb[252].mxu0 %vm17865_vm3, %v9833_v54  ;;  %v3408_v50 = vsel %vm3344_vm12, %v3189_v49, 0.0  ;;  %v3899_v26 = vsel %vm3835_vm13, %v3680_v58, 0.0  ;;  %vm17872_vm3 = vmmov %vm17857_vm1  ;;  %vm3837_vm9 = vcmp.eq.s32.totalorder %v17790_v51, %v13371_v37  ;;  %vm3347_vm4 = vcmp.eq.s32.totalorder %v17790_v51, %v13340_v2 }
 0x2b2   : > { %9369 = vmatmul.mubr.msk.f32.gmra.mrb[252].mxu1 %vm17857_vm1, %v9833_v54  ;;  %4289 = vmatprep.mubr.f32.mxu0 %v17481_v45  ;;  %v3460_v53 = vadd.f32 %v3459_v18, %v3408_v50  ;;  %v3951_v16 = vadd.f32 %v3950_v42, %v3899_v26  ;;  %v3409_v25 = vsel %vm3345_vm5, %v3191_v23, 0.0  ;;  %v3900_v43 = vsel %vm3836_vm8, %v3682_v1, 0.0  ;;  %v3201_v26 = vpop.f32.mrb[154].mxu0  ;;  %v3692_v23 = vpop.f32.mrb[154].mxu1 }
 0x2b3   : > { %4780 = vmatprep.mubr.f32.mxu1 %v17481_v45  ;;  %v3497_v63 = vadd.f32 %v3496_v57, %v3409_v25  ;;  %v3988_v46 = vadd.f32 %v3987_v9, %v3900_v43  ;;  %vm3838_vm11 = vcmp.eq.s32.totalorder %v17790_v51, %v13375_v52  ;;  %vm3348_vm12 = vcmp.eq.s32.totalorder %v17797_v32, %v13336_v3  ;;  %v9836_v57 = vld [vmem:[%s17165_s3 + $0x8] sm:$0xff]  ;;  %v3694_v25 = vpop.f32.mrb[155].mxu1  ;;  %v9837_v43 = vld [vmem:[%s17165_s3 + $0x10] sm:$0xff] }
 0x2b4   : > { %v6972_v41 = vrot.slane %v12224_v38, %v17840_v29  ;;  %v3410_v18 = vsel %vm3346_vm10, %v3195_v55, 0.0  ;;  %v3901_v42 = vsel %vm3837_vm9, %v3686_v34, 0.0  ;;  %vm3839_vm13 = vcmp.eq.s32.totalorder %v17797_v32, %v13371_v37 }
 0x2b5   : > { %9334 = vmatmul.mubr.msk.f32.gmra.mrb[254].mxu0 %vm17866_vm15, %v9834_v31  ;;  %vm17873_vm15 = vmmov %vm17857_vm1  ;;  %vm3349_vm5 = vcmp.eq.s32.totalorder %v17797_v32, %v13340_v2  ;;  %v3461_v9 = vadd.f32 %v3460_v53, %v3410_v18  ;;  %v3952_v21 = vadd.f32 %v3951_v16, %v3901_v42  ;;  %v3411_v49 = vsel %vm3347_vm4, %v3197_v8, 0.0  ;;  %v3203_v16 = vpop.f32.mrb[155].mxu0 }
 0x2b6   : > { %9370 = vmatmul.mubr.msk.f32.gmra.mrb[254].mxu1 %vm17867_vm7, %v9834_v31  ;;  %5085 = vmatprep.mubr.f32.mxu0 %v17481_v45  ;;  %v7463_v31 = vrot.slane %v12224_v38, %v17845_v35  ;;  %vm17874_vm7 = vmmov %vm17857_vm1  ;;  %v3902_v58 = vsel %vm3838_vm11, %v3688_v10, 0.0  ;;  %v3498_v54 = vadd.f32 %v3497_v63, %v3411_v49  ;;  %vm3840_vm8 = vcmp.eq.s32.totalorder %v17797_v32, %v13375_v52  ;;  %v3207_v18 = vpop.f32.mrb[156].mxu0  ;;  %v3698_v42 = vpop.f32.mrb[156].mxu1 }
 0x2b7   : > { %5570 = vmatprep.mubr.f32.mxu1 %v17481_v45  ;;  %v3989_v50 = vadd.f32 %v3988_v46, %v3902_v58  ;;  %v3903_v53 = vsel %vm3839_vm13, %v3692_v23, 0.0  ;;  %vm3841_vm9 = vcmp.eq.s32.totalorder %v17800_v4, %v13371_v37  ;;  %v3413_v55 = vsel %vm3349_vm5, %v3203_v16, 0.0 }
 0x2b8   : > { %vm13777_vm10 = vcmp.eq.s32.totalorder %v10167_v7, %v7463_v31  ;;  %v3953_v46 = vadd.f32 %v3952_v21, %v3903_v53  ;;  %v3904_v34 = vsel %vm3840_vm8, %v3694_v25, 0.0  ;;  %vm3351_vm4 = vcmp.eq.s32.totalorder %v17800_v4, %v13340_v2  ;;  %v9838_v21 = vld [vmem:[%s17165_s3 + $0x18] sm:$0xff] }
 0x2b9   : > { %9375 = vmatmul.mubr.msk.f32.vlgmr.msra.gmra.mrb[0].mxu0 %vm17872_vm3, %v9835_v0  ;;  %vm17878_vm3 = vmmov %vm17857_vm1  ;;  %v3990_v31 = vadd.f32 %v3989_v50, %v3904_v34  ;;  %vm3842_vm11 = vcmp.eq.s32.totalorder %v17800_v4, %v13375_v52  ;;  %v3905_v10 = vsel %vm3841_vm9, %v3698_v42, 0.0  ;;  %vm3843_vm13 = vcmp.eq.s32.totalorder %v17803_v36, %v13371_v37 }
 0x2ba   : > { %9411 = vmatmul.mubr.msk.f32.vlgmr.msra.gmra.mrb[0].mxu1 %vm17857_vm1, %v9835_v0  ;;  %9446 = vmatpush1.msk.msra.mxu0 %vm13701_vm0, %v17478_v27  ;;  %vm6974_vm0 = vcmp.eq.s32.totalorder %v10167_v7, %v6972_v41  ;;  %v3412_v0 = vsel %vm3348_vm12, %v3201_v26, 0.0  ;;  %v3499_v41 = vadd.f32 %v3498_v54, %v3413_v55  ;;  %v3954_v58 = vadd.f32 %v3953_v46, %v3905_v10 }
 0x2bb   : > { %5091 = vmatprep.mubr.f32.mxu0 %v17481_v45  ;;  %5576 = vmatprep.mubr.f32.mxu1 %v17481_v45  ;;  %v3462_v63 = vadd.f32 %v3461_v9, %v3412_v0  ;;  %v3700_v9 = vpop.f32.mrb[157].mxu1  ;;  %vm3353_vm5 = vcmp.eq.s32.totalorder %v17803_v36, %v13340_v2  ;;  %vm3844_vm8 = vcmp.eq.s32.totalorder %v17803_v36, %v13375_v52 }
 0x2bc   : > { %9482 = vmatpush1.msk.msra.mxu1 %vm13708_vm2, %v17478_v27  ;;  %9517 = vmatprep.subr.msk.mxu0 %vm6974_vm0, %v17478_v27  ;;  %vm17877_vm2 = vmmov %vm17857_vm1  ;;  %vm3350_vm1 = vcmp.eq.s32.totalorder %v17800_v4, %v13336_v3  ;;  %v3906_v50 = vsel %vm3842_vm11, %v3700_v9, 0.0  ;;  %v3704_v0 = vpop.f32.mrb[158].mxu1  ;;  %vm3846_vm9 = vcmp.eq.s32.totalorder %v17806_v13, %v13375_v52 }
 0x2bd   : > { %9376 = vmatmul.mubr.msk.f32.gmra.mrb[2].mxu0 %vm17873_vm15, %v9836_v57  ;;  %9553 = vmatprep.subr.msk.mxu1 %vm13777_vm10, %v17478_v27  ;;  %v3414_v8 = vsel %vm3350_vm1, %v3207_v18, 0.0  ;;  %vm17879_vm12 = vmmov %vm17877_vm2  ;;  %v3991_v23 = vadd.f32 %v3990_v31, %v3906_v50  ;;  %v3907_v16 = vsel %vm3843_vm13, %v3704_v0, 0.0  ;;  %vm3355_vm1 = vcmp.eq.s32.totalorder %v17806_v13, %v13340_v2 }
 0x2be   : > { %9412 = vmatmul.mubr.msk.f32.gmra.mrb[2].mxu1 %vm17874_vm7, %v9836_v57  ;;  %5097 = vmatprep.mubr.f32.mxu0 %v17481_v45  ;;  %v3209_v57 = vpop.f32.mrb[157].mxu0  ;;  %vm17880_vm15 = vmmov %vm17877_vm2  ;;  %vm3352_vm7 = vcmp.eq.s32.totalorder %v17803_v36, %v13336_v3  ;;  %v3463_v49 = vadd.f32 %v3462_v63, %v3414_v8  ;;  %v9839_v63 = vld [vmem:[%s17165_s3 + $0x20] sm:$0xff]  ;;  %v3955_v55 = vadd.f32 %v3954_v58, %v3907_v16 }
 0x2bf   : > { %5582 = vmatprep.mubr.f32.mxu1 %v17481_v45  ;;  %v3415_v54 = vsel %vm3351_vm4, %v3209_v57, 0.0  ;;  %v3213_v1 = vpop.f32.mrb[158].mxu0  ;;  %vm17881_vm0 = vmmov %vm17877_vm2  ;;  %vm3848_vm13 = vcmp.eq.s32.totalorder %v17809_v17, %v13375_v52 }
 0x2c0   : > { %v3500_v26 = vadd.f32 %v3499_v41, %v3415_v54  ;;  %v3416_v53 = vsel %vm3352_vm7, %v3213_v1, 0.0  ;;  %v3215_v25 = vpop.f32.mrb[159].mxu0  ;;  %vm17882_vm10 = vmmov %vm17881_vm0  ;;  %vm3357_vm7 = vcmp.eq.s32.totalorder %v17809_v17, %v13340_v2 }
 0x2c1   : > { %9377 = vmatmul.mubr.msk.f32.gmra.mrb[4].mxu0 %vm17877_vm2, %v9837_v43  ;;  %vm3354_vm2 = vcmp.eq.s32.totalorder %v17806_v13, %v13336_v3  ;;  %v3464_v46 = vadd.f32 %v3463_v49, %v3416_v53  ;;  %v3417_v34 = vsel %vm3353_vm5, %v3215_v25, 0.0  ;;  %v3219_v42 = vpop.f32.mrb[160].mxu0  ;;  %v9840_v49 = vld [vmem:[%s17165_s3 + $0x28] sm:$0xff]  ;;  %vm17883_vm4 = vmmov %vm17881_vm0 }
 0x2c2   : > { %9413 = vmatmul.mubr.msk.f32.gmra.mrb[4].mxu1 %vm17878_vm3, %v9837_v43  ;;  %5103 = vmatprep.mubr.f32.mxu0 %v17481_v45  ;;  %v3706_v43 = vpop.f32.mrb[159].mxu1  ;;  %vm3845_vm3 = vcmp.eq.s32.totalorder %v17806_v13, %v13371_v37  ;;  %v3501_v31 = vadd.f32 %v3500_v26, %v3417_v34  ;;  %v3418_v10 = vsel %vm3354_vm2, %v3219_v42, 0.0  ;;  %v3221_v9 = vpop.f32.mrb[161].mxu0  ;;  %vm17884_vm11 = vmmov %vm17881_vm0  ;;  %vm3359_vm2 = vcmp.eq.s32.totalorder %v17812_v6, %v13340_v2 }
 0x2c3   : > { %5588 = vmatprep.mubr.f32.mxu1 %v17481_v45  ;;  %v3908_v41 = vsel %vm3844_vm8, %v3706_v43, 0.0  ;;  %v3710_v8 = vpop.f32.mrb[160].mxu1  ;;  %v3465_v58 = vadd.f32 %v3464_v46, %v3418_v10  ;;  %v3419_v50 = vsel %vm3355_vm1, %v3221_v9, 0.0  ;;  %v9841_v46 = vld [vmem:[%s17165_s3 + $0x30] sm:$0xff]  ;;  %vm17885_vm5 = vmmov %vm17881_vm0 }
 0x2c4   : > { %v3992_v18 = vadd.f32 %v3991_v23, %v3908_v41  ;;  %v3909_v57 = vsel %vm3845_vm3, %v3710_v8, 0.0  ;;  %v3502_v23 = vadd.f32 %v3501_v31, %v3419_v50  ;;  %v3225_v0 = vpop.f32.mrb[162].mxu0  ;;  %vm17886_vm8 = vmmov %vm17881_vm0  ;;  %vm3850_vm3 = vcmp.eq.s32.totalorder %v17812_v6, %v13375_v52 }
 0x2c5   : > { %9378 = vmatmul.mubr.msk.f32.gmra.mrb[6].mxu0 %vm17879_vm12, %v9838_v21  ;;  %vm3356_vm12 = vcmp.eq.s32.totalorder %v17809_v17, %v13336_v3  ;;  %v3956_v54 = vadd.f32 %v3955_v55, %v3909_v57  ;;  %v3227_v43 = vpop.f32.mrb[163].mxu0  ;;  %vm17887_vm1 = vmmov %vm17883_vm4 }
 0x2c6   : > { %9414 = vmatmul.mubr.msk.f32.gmra.mrb[6].mxu1 %vm17880_vm15, %v9838_v21  ;;  %5109 = vmatprep.mubr.f32.mxu0 %v17481_v45  ;;  %v3712_v21 = vpop.f32.mrb[161].mxu1  ;;  %vm3847_vm15 = vcmp.eq.s32.totalorder %v17809_v17, %v13371_v37  ;;  %v3420_v16 = vsel %vm3356_vm12, %v3225_v0, 0.0  ;;  %v3421_v41 = vsel %vm3357_vm7, %v3227_v43, 0.0  ;;  %vm3361_vm12 = vcmp.eq.s32.totalorder %v17815_v62, %v13340_v2  ;;  %vm17889_vm7 = vmmov %vm17887_vm1 }
 0x2c7   : > { %5594 = vmatprep.mubr.f32.mxu1 %v17481_v45  ;;  %v3910_v26 = vsel %vm3846_vm9, %v3712_v21, 0.0  ;;  %v3716_v53 = vpop.f32.mrb[162].mxu1  ;;  %v3466_v55 = vadd.f32 %v3465_v58, %v3420_v16  ;;  %v9842_v58 = vld [vmem:[%s17165_s3 + $0x38] sm:$0xff]  ;;  %vm17888_vm9 = vmmov %vm17887_vm1 }
 0x2c8   : > { %v3993_v1 = vadd.f32 %v3992_v18, %v3910_v26  ;;  %v3911_v25 = vsel %vm3847_vm15, %v3716_v53, 0.0  ;;  %v3503_v18 = vadd.f32 %v3502_v23, %v3421_v41  ;;  %vm3852_vm15 = vcmp.eq.s32.totalorder %v17815_v62, %v13375_v52 }
 0x2c9   : > { %9379 = vmatmul.mubr.msk.f32.gmra.mrb[8].mxu0 %vm17881_vm0, %v9839_v63  ;;  %vm3358_vm0 = vcmp.eq.s32.totalorder %v17812_v6, %v13336_v3  ;;  %v3957_v34 = vadd.f32 %v3956_v54, %v3911_v25  ;;  %v3231_v8 = vpop.f32.mrb[164].mxu0 }
 0x2ca   : > { %9415 = vmatmul.mubr.msk.f32.gmra.mrb[8].mxu1 %vm17882_vm10, %v9839_v63  ;;  %5115 = vmatprep.mubr.f32.mxu0 %v17481_v45  ;;  %v3718_v63 = vpop.f32.mrb[163].mxu1  ;;  %vm3849_vm10 = vcmp.eq.s32.totalorder %v17812_v6, %v13371_v37  ;;  %v3422_v57 = vsel %vm3358_vm0, %v3231_v8, 0.0  ;;  %v3233_v21 = vpop.f32.mrb[165].mxu0  ;;  %vm3363_vm0 = vcmp.eq.s32.totalorder %v17575_v12, %v13340_v2 }
 0x2cb   : > { %5600 = vmatprep.mubr.f32.mxu1 %v17481_v45  ;;  %v3912_v31 = vsel %vm3848_vm13, %v3718_v63, 0.0  ;;  %v3722_v10 = vpop.f32.mrb[164].mxu1  ;;  %v3467_v54 = vadd.f32 %v3466_v55, %v3422_v57  ;;  %v3423_v26 = vsel %vm3359_vm2, %v3233_v21, 0.0  ;;  %v9843_v55 = vld [vmem:[%s17165_s3 + $0x40] sm:$0xff]  ;;  %vm17890_vm13 = vmmov %vm17887_vm1 }
 0x2cc   : > { %v3994_v42 = vadd.f32 %v3993_v1, %v3912_v31  ;;  %v3913_v9 = vsel %vm3849_vm10, %v3722_v10, 0.0  ;;  %v3504_v1 = vadd.f32 %v3503_v18, %v3423_v26  ;;  %vm3854_vm10 = vcmp.eq.s32.totalorder %v17575_v12, %v13375_v52  ;;  %vm17891_vm2 = vmmov %vm17887_vm1 }
 0x2cd   : > { %9380 = vmatmul.mubr.msk.f32.gmra.mrb[10].mxu0 %vm17883_vm4, %v9840_v49  ;;  %vm3360_vm4 = vcmp.eq.s32.totalorder %v17815_v62, %v13336_v3  ;;  %v3958_v50 = vadd.f32 %v3957_v34, %v3913_v9 }
 0x2ce   : > { %9416 = vmatmul.mubr.msk.f32.gmra.mrb[10].mxu1 %vm17884_vm11, %v9840_v49  ;;  %5121 = vmatprep.mubr.f32.mxu0 %v17481_v45  ;;  %v3724_v49 = vpop.f32.mrb[165].mxu1  ;;  %vm3851_vm11 = vcmp.eq.s32.totalorder %v17815_v62, %v13371_v37 }
 0x2cf   : > { %5606 = vmatprep.mubr.f32.mxu1 %v17481_v45  ;;  %v3914_v23 = vsel %vm3850_vm3, %v3724_v49, 0.0  ;;  %vm17892_vm3 = vmmov %vm17887_vm1 }
 0x2d0   : > { %v3995_v0 = vadd.f32 %v3994_v42, %v3914_v23  ;;  %v3237_v53 = vpop.f32.mrb[166].mxu0 }
 0x2d1   : > { %9381 = vmatmul.mubr.msk.f32.gmra.mrb[12].mxu0 %vm17885_vm5, %v9841_v46  ;;  %v3728_v16 = vpop.f32.mrb[166].mxu1  ;;  %v3424_v25 = vsel %vm3360_vm4, %v3237_v53, 0.0  ;;  %v3239_v63 = vpop.f32.mrb[167].mxu0  ;;  %vm3362_vm5 = vcmp.eq.s32.totalorder %v17575_v12, %v13336_v3  ;;  %vm3365_vm4 = vcmp.eq.s32.totalorder %v17586_v47, %v13340_v2 }
 0x2d2   : > { %9417 = vmatmul.mubr.msk.f32.gmra.mrb[12].mxu1 %vm17886_vm8, %v9841_v46  ;;  %5127 = vmatprep.mubr.f32.mxu0 %v17481_v45  ;;  %v3915_v43 = vsel %vm3851_vm11, %v3728_v16, 0.0  ;;  %v3730_v46 = vpop.f32.mrb[167].mxu1  ;;  %vm3853_vm8 = vcmp.eq.s32.totalorder %v17575_v12, %v13371_v37  ;;  %v3468_v34 = vadd.f32 %v3467_v54, %v3424_v25  ;;  %v3425_v31 = vsel %vm3361_vm12, %v3239_v63, 0.0  ;;  %v9844_v54 = vld [vmem:[%s17165_s3 + $0x48] sm:$0xff]  ;;  %vm17893_vm12 = vmmov %vm17891_vm2 }
 0x2d3   : > { %5612 = vmatprep.mubr.f32.mxu1 %v17481_v45  ;;  %v3959_v41 = vadd.f32 %v3958_v50, %v3915_v43  ;;  %v3916_v18 = vsel %vm3852_vm15, %v3730_v46, 0.0  ;;  %v3505_v42 = vadd.f32 %v3504_v1, %v3425_v31  ;;  %vm3856_vm11 = vcmp.eq.s32.totalorder %v17586_v47, %v13375_v52  ;;  %vm17894_vm15 = vmmov %vm17891_vm2 }
 0x2d4   : > { %v3996_v8 = vadd.f32 %v3995_v0, %v3916_v18  ;;  %v3243_v10 = vpop.f32.mrb[168].mxu0 }
 0x2d5   : > { %9382 = vmatmul.mubr.msk.f32.gmra.mrb[14].mxu0 %vm17887_vm1, %v9842_v58  ;;  %v3734_v57 = vpop.f32.mrb[168].mxu1  ;;  %v3426_v9 = vsel %vm3362_vm5, %v3243_v10, 0.0  ;;  %v3245_v49 = vpop.f32.mrb[169].mxu0  ;;  %vm3364_vm1 = vcmp.eq.s32.totalorder %v17586_v47, %v13336_v3  ;;  %vm3367_vm5 = vcmp.eq.s32.totalorder %v17594_v30, %v13340_v2 }
 0x2d6   : > { %9418 = vmatmul.mubr.msk.f32.gmra.mrb[14].mxu1 %vm17888_vm9, %v9842_v58  ;;  %5133 = vmatprep.mubr.f32.mxu0 %v17481_v45  ;;  %v3917_v21 = vsel %vm3853_vm8, %v3734_v57, 0.0  ;;  %v3736_v58 = vpop.f32.mrb[169].mxu1  ;;  %vm3855_vm9 = vcmp.eq.s32.totalorder %v17586_v47, %v13371_v37  ;;  %v3469_v50 = vadd.f32 %v3468_v34, %v3426_v9  ;;  %v3427_v23 = vsel %vm3363_vm0, %v3245_v49, 0.0  ;;  %v9845_v34 = vld [vmem:[%s17165_s3 + $0x50] sm:$0xff]  ;;  %vm17895_vm0 = vmmov %vm17891_vm2 }
 0x2d7   : > { %5618 = vmatprep.mubr.f32.mxu1 %v17481_v45  ;;  %v3960_v26 = vadd.f32 %v3959_v41, %v3917_v21  ;;  %v3918_v1 = vsel %vm3854_vm10, %v3736_v58, 0.0  ;;  %v3506_v0 = vadd.f32 %v3505_v42, %v3427_v23  ;;  %vm3858_vm8 = vcmp.eq.s32.totalorder %v17594_v30, %v13375_v52  ;;  %vm17896_vm10 = vmmov %vm17895_vm0 }
 0x2d8   : > { %v3997_v53 = vadd.f32 %v3996_v8, %v3918_v1 }
 0x2d9   : > { %9383 = vmatmul.mubr.msk.f32.gmra.mrb[16].mxu0 %vm17889_vm7, %v9843_v55  ;;  %vm3366_vm7 = vcmp.eq.s32.totalorder %v17594_v30, %v13336_v3 }
 0x2da   : > { %9419 = vmatmul.mubr.msk.f32.gmra.mrb[16].mxu1 %vm17890_vm13, %v9843_v55  ;;  %5139 = vmatprep.mubr.f32.mxu0 %v17481_v45  ;;  %vm3857_vm13 = vcmp.eq.s32.totalorder %v17594_v30, %v13371_v37 }
 0x2db   : > { %5624 = vmatprep.mubr.f32.mxu1 %v17481_v45  ;;  %v3249_v16 = vpop.f32.mrb[170].mxu0 }
 0x2dc   : > { %v3740_v25 = vpop.f32.mrb[170].mxu1  ;;  %v3428_v43 = vsel %vm3364_vm1, %v3249_v16, 0.0  ;;  %v3251_v46 = vpop.f32.mrb[171].mxu0  ;;  %vm3369_vm1 = vcmp.eq.s32.totalorder %v17608_v60, %v13340_v2 }
 0x2dd   : > { %9384 = vmatmul.mubr.msk.f32.gmra.mrb[18].mxu0 %vm17891_vm2, %v9844_v54  ;;  %v3919_v63 = vsel %vm3855_vm9, %v3740_v25, 0.0  ;;  %v3742_v55 = vpop.f32.mrb[171].mxu1  ;;  %v3470_v41 = vadd.f32 %v3469_v50, %v3428_v43  ;;  %v3429_v18 = vsel %vm3365_vm4, %v3251_v46, 0.0  ;;  %v9846_v50 = vld [vmem:[%s17165_s3 + $0x58] sm:$0xff]  ;;  %vm3368_vm2 = vcmp.eq.s32.totalorder %v17608_v60, %v13336_v3  ;;  %vm17897_vm4 = vmmov %vm17895_vm0 }
 0x2de   : > { %9420 = vmatmul.mubr.msk.f32.gmra.mrb[18].mxu1 %vm17892_vm3, %v9844_v54  ;;  %5145 = vmatprep.mubr.f32.mxu0 %v17481_v45  ;;  %v3961_v31 = vadd.f32 %v3960_v26, %v3919_v63  ;;  %v3920_v42 = vsel %vm3856_vm11, %v3742_v55, 0.0  ;;  %v3507_v8 = vadd.f32 %v3506_v0, %v3429_v18  ;;  %vm3859_vm3 = vcmp.eq.s32.totalorder %v17608_v60, %v13371_v37  ;;  %vm17898_vm11 = vmmov %vm17895_vm0 }
 0x2df   : > { %5630 = vmatprep.mubr.f32.mxu1 %v17481_v45  ;;  %v3998_v10 = vadd.f32 %v3997_v53, %v3920_v42  ;;  %vm3860_vm9 = vcmp.eq.s32.totalorder %v17608_v60, %v13375_v52 }
 0x2e1   : > { %9385 = vmatmul.mubr.msk.f32.gmra.mrb[20].mxu0 %vm17893_vm12, %v9845_v34  ;;  %v3255_v57 = vpop.f32.mrb[172].mxu0 }
 0x2e2   : > { %9421 = vmatmul.mubr.msk.f32.gmra.mrb[20].mxu1 %vm17894_vm15, %v9845_v34  ;;  %5151 = vmatprep.mubr.f32.mxu0 %v17481_v45  ;;  %v3746_v9 = vpop.f32.mrb[172].mxu1  ;;  %v3430_v21 = vsel %vm3366_vm7, %v3255_v57, 0.0  ;;  %v3257_v58 = vpop.f32.mrb[173].mxu0 }
 0x2e3   : > { %5636 = vmatprep.mubr.f32.mxu1 %v17481_v45  ;;  %v3921_v49 = vsel %vm3857_vm13, %v3746_v9, 0.0  ;;  %v3748_v54 = vpop.f32.mrb[173].mxu1  ;;  %v3471_v26 = vadd.f32 %v3470_v41, %v3430_v21  ;;  %v3431_v1 = vsel %vm3367_vm5, %v3257_v58, 0.0  ;;  %v9847_v41 = vld [vmem:[%s17165_s3 + $0x60] sm:$0xff]  ;;  %vm17900_vm5 = vmmov %vm17895_vm0 }
 0x2e4   : > { %v3962_v23 = vadd.f32 %v3961_v31, %v3921_v49  ;;  %v3922_v0 = vsel %vm3858_vm8, %v3748_v54, 0.0  ;;  %v3508_v53 = vadd.f32 %v3507_v8, %v3431_v1  ;;  %v17899_v31 = vld [vmem:[#allocation85_spill] sm:$0xff]  ;;  %vm17901_vm8 = vmmov %vm17895_vm0  ;;  %v17902_v1 = vld [vmem:[#allocation86_spill] sm:$0xff] }
 0x2e5   : > { %9386 = vmatmul.mubr.msk.f32.gmra.mrb[22].mxu0 %vm17895_vm0, %v9846_v50  ;;  %v3999_v16 = vadd.f32 %v3998_v10, %v3922_v0  ;;  %v3261_v25 = vpop.f32.mrb[174].mxu0  ;;  %vm3370_vm12 = vcmp.eq.s32.totalorder %v17899_v31, %v13336_v3  ;;  %vm3861_vm15 = vcmp.eq.s32.totalorder %v17899_v31, %v13371_v37  ;;  %vm3371_vm7 = vcmp.eq.s32.totalorder %v17899_v31, %v13340_v2 }
 0x2e6   : > { %9422 = vmatmul.mubr.msk.f32.gmra.mrb[22].mxu1 %vm17896_vm10, %v9846_v50  ;;  %5157 = vmatprep.mubr.f32.mxu0 %v17481_v45  ;;  %v3752_v43 = vpop.f32.mrb[174].mxu1  ;;  %v3432_v63 = vsel %vm3368_vm2, %v3261_v25, 0.0  ;;  %v3263_v55 = vpop.f32.mrb[175].mxu0  ;;  %vm3862_vm13 = vcmp.eq.s32.totalorder %v17899_v31, %v13375_v52  ;;  %vm3372_vm0 = vcmp.eq.s32.totalorder %v17902_v1, %v13336_v3  ;;  %vm3863_vm10 = vcmp.eq.s32.totalorder %v17902_v1, %v13371_v37 }
 0x2e7   : > { %5642 = vmatprep.mubr.f32.mxu1 %v17481_v45  ;;  %v3923_v46 = vsel %vm3859_vm3, %v3752_v43, 0.0  ;;  %v3754_v34 = vpop.f32.mrb[175].mxu1  ;;  %v3472_v18 = vadd.f32 %v3471_v26, %v3432_v63  ;;  %v3433_v8 = vsel %vm3369_vm1, %v3263_v55, 0.0  ;;  %vm3373_vm2 = vcmp.eq.s32.totalorder %v17902_v1, %v13340_v2  ;;  %vm17903_vm1 = vmmov %vm17897_vm4 }
 0x2e8   : > { %v3963_v42 = vadd.f32 %v3962_v23, %v3923_v46  ;;  %v3924_v10 = vsel %vm3860_vm9, %v3754_v34, 0.0  ;;  %v3509_v57 = vadd.f32 %v3508_v53, %v3433_v8  ;;  %v9848_v23 = vld [vmem:[%s17165_s3 + $0x68] sm:$0xff]  ;;  %vm3864_vm3 = vcmp.eq.s32.totalorder %v17902_v1, %v13375_v52  ;;  %v9849_v8 = vld [vmem:[%s17165_s3 + $0x70] sm:$0xff]  ;;  %vm17904_vm9 = vmmov %vm17903_vm1 }
 0x2e9   : > { %9387 = vmatmul.mubr.msk.f32.gmra.mrb[24].mxu0 %vm17897_vm4, %v9847_v41  ;;  %v4000_v9 = vadd.f32 %v3999_v16, %v3924_v10  ;;  %v3267_v21 = vpop.f32.mrb[176].mxu0  ;;  %v17905_v10 = vld [vmem:[#allocation87_spill] sm:$0xff] }
 0x2ea   : > { %9423 = vmatmul.mubr.msk.f32.gmra.mrb[24].mxu1 %vm17898_vm11, %v9847_v41  ;;  %5163 = vmatprep.mubr.f32.mxu0 %v17481_v45  ;;  %v3758_v49 = vpop.f32.mrb[176].mxu1  ;;  %v3434_v58 = vsel %vm3370_vm12, %v3267_v21, 0.0  ;;  %v3269_v50 = vpop.f32.mrb[177].mxu0  ;;  %vm3374_vm4 = vcmp.eq.s32.totalorder %v17905_v10, %v13336_v3  ;;  %vm3865_vm11 = vcmp.eq.s32.totalorder %v17905_v10, %v13371_v37  ;;  %vm3375_vm12 = vcmp.eq.s32.totalorder %v17905_v10, %v13340_v2 }
 0x2eb   : > { %5648 = vmatprep.mubr.f32.mxu1 %v17481_v45  ;;  %v3925_v54 = vsel %vm3861_vm15, %v3758_v49, 0.0  ;;  %v3760_v26 = vpop.f32.mrb[177].mxu1  ;;  %v3473_v0 = vadd.f32 %v3472_v18, %v3434_v58  ;;  %v3435_v16 = vsel %vm3371_vm7, %v3269_v50, 0.0  ;;  %vm3866_vm15 = vcmp.eq.s32.totalorder %v17905_v10, %v13375_v52  ;;  %vm17906_vm7 = vmmov %vm17903_vm1 }
 0x2ec   : > { %v3964_v53 = vadd.f32 %v3963_v42, %v3925_v54  ;;  %v3926_v25 = vsel %vm3862_vm13, %v3760_v26, 0.0  ;;  %v3510_v43 = vadd.f32 %v3509_v57, %v3435_v16  ;;  %vm17907_vm13 = vmmov %vm17903_vm1 }
 0x2ed   : > { %9388 = vmatmul.mubr.msk.f32.gmra.mrb[26].mxu0 %vm17900_vm5, %v9848_v23  ;;  %v4001_v63 = vadd.f32 %v4000_v9, %v3926_v25  ;;  %v9850_v25 = vld [vmem:[%s17165_s3 + $0x78] sm:$0xff] }
 0x2ee   : > { %9424 = vmatmul.mubr.msk.f32.gmra.mrb[26].mxu1 %vm17901_vm8, %v9848_v23  ;;  %5169 = vmatprep.mubr.f32.mxu0 %v17481_v45 }
 0x2ef   : > { %5654 = vmatprep.mubr.f32.mxu1 %v17481_v45  ;;  %v3273_v46 = vpop.f32.mrb[178].mxu0 }
 0x2f0   : > { %v3764_v55 = vpop.f32.mrb[178].mxu1  ;;  %v3436_v34 = vsel %vm3372_vm0, %v3273_v46, 0.0  ;;  %v3275_v18 = vpop.f32.mrb[179].mxu0 }
 0x2f1   : > { %v3927_v41 = vsel %vm3863_vm10, %v3764_v55, 0.0  ;;  %v3766_v42 = vpop.f32.mrb[179].mxu1  ;;  %9389 = vmatmul.mubr.msk.f32.gmra.mrb[28].mxu0 %vm17903_vm1, %v9849_v8  ;;  %v3474_v57 = vadd.f32 %v3473_v0, %v3436_v34  ;;  %v3437_v21 = vsel %vm3373_vm2, %v3275_v18, 0.0  ;;  %vm17909_vm2 = vmmov %vm17903_vm1 }
 0x2f2   : > { %9425 = vmatmul.mubr.msk.f32.gmra.mrb[28].mxu1 %vm17904_vm9, %v9849_v8  ;;  %v3965_v9 = vadd.f32 %v3964_v53, %v3927_v41  ;;  %v3928_v49 = vsel %vm3864_vm3, %v3766_v42, 0.0  ;;  %5175 = vmatprep.mubr.f32.mxu0 %v17481_v45  ;;  %v3511_v58 = vadd.f32 %v3510_v43, %v3437_v21  ;;  %v17908_v43 = vld [vmem:[#allocation88_spill] sm:$0xff]  ;;  %vm17910_vm3 = vmmov %vm17903_vm1 }
 0x2f3   : > { %5660 = vmatprep.mubr.f32.mxu1 %v17481_v45  ;;  %v4002_v54 = vadd.f32 %v4001_v63, %v3928_v49  ;;  %vm3376_vm5 = vcmp.eq.s32.totalorder %v17908_v43, %v13336_v3  ;;  %vm3867_vm8 = vcmp.eq.s32.totalorder %v17908_v43, %v13371_v37  ;;  %vm3377_vm0 = vcmp.eq.s32.totalorder %v17908_v43, %v13340_v2 }
 0x2f4   : > { %v3279_v50 = vpop.f32.mrb[180].mxu0  ;;  %vm3868_vm10 = vcmp.eq.s32.totalorder %v17908_v43, %v13375_v52 }
 0x2f5   : > { %v3770_v26 = vpop.f32.mrb[180].mxu1  ;;  %v3438_v23 = vsel %vm3374_vm4, %v3279_v50, 0.0  ;;  %v3281_v0 = vpop.f32.mrb[181].mxu0  ;;  %9390 = vmatmul.mubr.msk.f32.gmra.mrb[30].mxu0 %vm17906_vm7, %v9850_v25  ;;  %v9851_v50 = vld [vmem:[%s17165_s3 + $0x80] sm:$0xff] }
 0x2f6   : > { %v3929_v16 = vsel %vm3865_vm11, %v3770_v26, 0.0  ;;  %v3772_v53 = vpop.f32.mrb[181].mxu1  ;;  %9426 = vmatmul.mubr.msk.f32.gmra.mrb[30].mxu1 %vm17907_vm13, %v9850_v25  ;;  %v3475_v63 = vadd.f32 %v3474_v57, %v3438_v23  ;;  %v3439_v55 = vsel %vm3375_vm12, %v3281_v0, 0.0  ;;  %5181 = vmatprep.mubr.f32.mxu0 %v17481_v45  ;;  %vm17912_vm12 = vmmov %vm17909_vm2 }
 0x2f7   : > { %v3966_v46 = vadd.f32 %v3965_v9, %v3929_v16  ;;  %v3930_v34 = vsel %vm3866_vm15, %v3772_v53, 0.0  ;;  %5666 = vmatprep.mubr.f32.mxu1 %v17481_v45  ;;  %v3512_v41 = vadd.f32 %v3511_v58, %v3439_v55  ;;  %v17911_v58 = vld [vmem:[#allocation89_spill] sm:$0xff]  ;;  %vm17913_vm15 = vmmov %vm17909_vm2 }
 0x2f8   : > { %v4003_v18 = vadd.f32 %v4002_v54, %v3930_v34  ;;  %v3285_v42 = vpop.f32.mrb[182].mxu0  ;;  %vm3378_vm1 = vcmp.eq.s32.totalorder %v17911_v58, %v13336_v3  ;;  %vm3869_vm9 = vcmp.eq.s32.totalorder %v17911_v58, %v13371_v37  ;;  %vm3379_vm4 = vcmp.eq.s32.totalorder %v17911_v58, %v13340_v2 }
 0x2f9   : > { %v3776_v8 = vpop.f32.mrb[182].mxu1  ;;  %v3440_v21 = vsel %vm3376_vm5, %v3285_v42, 0.0  ;;  %v3287_v57 = vpop.f32.mrb[183].mxu0  ;;  %9391 = vmatmul.mubr.msk.f32.gmra.mrb[32].mxu0 %vm17909_vm2, %v9851_v50  ;;  %vm3870_vm11 = vcmp.eq.s32.totalorder %v17911_v58, %v13375_v52 }
 0x2fa   : > { %v3931_v49 = vsel %vm3867_vm8, %v3776_v8, 0.0  ;;  %v3778_v9 = vpop.f32.mrb[183].mxu1  ;;  %9427 = vmatmul.mubr.msk.f32.gmra.mrb[32].mxu1 %vm17910_vm3, %v9851_v50  ;;  %v3476_v54 = vadd.f32 %v3475_v63, %v3440_v21  ;;  %v3441_v23 = vsel %vm3377_vm0, %v3287_v57, 0.0  ;;  %5187 = vmatprep.mubr.f32.mxu0 %v17481_v45  ;;  %v9852_v8 = vld [vmem:[%s17165_s3 + $0x88] sm:$0xff]  ;;  %vm17918_vm0 = vmmov %vm17909_vm2 }
 0x2fb   : > { %v3967_v26 = vadd.f32 %v3966_v46, %v3931_v49  ;;  %v3932_v16 = vsel %vm3868_vm10, %v3778_v9, 0.0  ;;  %5672 = vmatprep.mubr.f32.mxu1 %v17481_v45  ;;  %v3513_v0 = vadd.f32 %v3512_v41, %v3441_v23  ;;  %v17914_v41 = vld [vmem:[#allocation90_spill] sm:$0xff]  ;;  %v17915_v23 = vld [vmem:[#allocation55_spill] sm:$0xff]  ;;  %vm17919_vm10 = vmmov %vm17918_vm0 }
 0x2fc   : > { %v4004_v53 = vadd.f32 %v4003_v18, %v3932_v16  ;;  %v3291_v25 = vpop.f32.mrb[184].mxu0  ;;  %vm3380_vm7 = vcmp.eq.s32.totalorder %v17914_v41, %v13336_v3  ;;  %vm3871_vm13 = vcmp.eq.s32.totalorder %v17914_v41, %v13371_v37  ;;  %vm3381_vm5 = vcmp.eq.s32.totalorder %v17914_v41, %v13340_v2  ;;  %v17916_v16 = vld [vmem:[#allocation57_spill] sm:$0xff] }
 0x2fd   : > { %v3782_v55 = vpop.f32.mrb[184].mxu1  ;;  %v3442_v34 = vsel %vm3378_vm1, %v3291_v25, 0.0  ;;  %v3293_v63 = vpop.f32.mrb[185].mxu0  ;;  %9392 = vmatmul.mubr.msk.f32.gmra.mrb[34].mxu0 %vm17912_vm12, %v9852_v8  ;;  %vm3872_vm8 = vcmp.eq.s32.totalorder %v17914_v41, %v13375_v52  ;;  %v14044_v25 = vrot.slane %v17916_v16, %v17915_v23  ;;  %vm17923_vm12 = vmmov %vm17918_vm0 }
 0x2fe   : > { %v3933_v42 = vsel %vm3869_vm9, %v3782_v55, 0.0  ;;  %v3784_v46 = vpop.f32.mrb[185].mxu1  ;;  %9428 = vmatmul.mubr.msk.f32.gmra.mrb[34].mxu1 %vm17913_vm15, %v9852_v8  ;;  %v3477_v18 = vadd.f32 %v3476_v54, %v3442_v34  ;;  %v3443_v49 = vsel %vm3379_vm4, %v3293_v63, 0.0  ;;  %5193 = vmatprep.mubr.f32.mxu0 %v17481_v45  ;;  %v17917_v54 = vld [vmem:[#allocation58_spill] sm:$0xff]  ;;  %v17920_v8 = vld [vmem:[#allocation91_spill] sm:$0xff]  ;;  %vm17924_vm15 = vmmov %vm17918_vm0 }
 0x2ff   : > { %v3968_v21 = vadd.f32 %v3967_v26, %v3933_v42  ;;  %v3934_v57 = vsel %vm3870_vm11, %v3784_v46, 0.0  ;;  %5678 = vmatprep.mubr.f32.mxu1 %v17481_v45  ;;  %v3514_v9 = vadd.f32 %v3513_v0, %v3443_v49  ;;  %v14048_v26 = vrot.slane %v17917_v54, %v17915_v23  ;;  %v9853_v46 = vld [vmem:[%s17165_s3 + $0x90] sm:$0xff] }
 0x300   : > { %v4005_v50 = vadd.f32 %v4004_v53, %v3934_v57  ;;  %v3297_v55 = vpop.f32.mrb[186].mxu0  ;;  %vm3382_vm2 = vcmp.eq.s32.totalorder %v17920_v8, %v13336_v3  ;;  %vm3873_vm3 = vcmp.eq.s32.totalorder %v17920_v8, %v13371_v37  ;;  %vm3383_vm1 = vcmp.eq.s32.totalorder %v17920_v8, %v13340_v2 }
 0x301   : > { %v3788_v34 = vpop.f32.mrb[186].mxu1  ;;  %v3444_v0 = vsel %vm3380_vm7, %v3297_v55, 0.0  ;;  %v3299_v42 = vpop.f32.mrb[187].mxu0  ;;  %9393 = vmatmul.mubr.msk.f32.gmra.mrb[36].mxu0 %vm17918_vm0, %v9853_v46  ;;  %vm3874_vm9 = vcmp.eq.s32.totalorder %v17920_v8, %v13375_v52 }
 0x302   : > { %v3935_v53 = vsel %vm3871_vm13, %v3788_v34, 0.0  ;;  %v3790_v63 = vpop.f32.mrb[187].mxu1  ;;  %9429 = vmatmul.mubr.msk.f32.gmra.mrb[36].mxu1 %vm17919_vm10, %v9853_v46  ;;  %v3478_v49 = vadd.f32 %v3477_v18, %v3444_v0  ;;  %v3445_v55 = vsel %vm3381_vm5, %v3299_v42, 0.0  ;;  %5199 = vmatprep.mubr.f32.mxu0 %v17481_v45  ;;  %v17921_v18 = vld [vmem:[#allocation56_spill] sm:$0xff]  ;;  %vm4304_vm5 = vcmp.eq.s32.totalorder %v10167_v7, %v14044_v25 }
 0x303   : > { %v3969_v57 = vadd.f32 %v3968_v21, %v3935_v53  ;;  %v3936_v34 = vsel %vm3872_vm8, %v3790_v63, 0.0  ;;  %5684 = vmatprep.mubr.f32.mxu1 %v17481_v45  ;;  %v3515_v46 = vadd.f32 %v3514_v9, %v3445_v55  ;;  %v14079_v21 = vrot.slane %v17916_v16, %v17921_v18  ;;  %v17922_v63 = vld [vmem:[#allocation92_spill] sm:$0xff] }
 0x304   : > { %v4006_v48 = vadd.f32 %v4005_v50, %v3936_v34  ;;  %v14083_v0 = vrot.slane %v17917_v54, %v17921_v18  ;;  %v3303_v53 = vpop.f32.mrb[188].mxu0  ;;  %vm3384_vm4 = vcmp.eq.s32.totalorder %v17922_v63, %v13336_v3  ;;  %vm3875_vm11 = vcmp.eq.s32.totalorder %v17922_v63, %v13371_v37  ;;  %v9854_v54 = vld [vmem:[%s17165_s3 + $0x98] sm:$0xff] }
 0x305   : > { %v3794_v42 = vpop.f32.mrb[188].mxu1  ;;  %v3446_v9 = vsel %vm3382_vm2, %v3303_v53, 0.0  ;;  %v3305_v16 = vpop.f32.mrb[189].mxu0  ;;  %9394 = vmatmul.mubr.msk.f32.gmra.mrb[38].mxu0 %vm17923_vm12, %v9854_v54  ;;  %vm3385_vm7 = vcmp.eq.s32.totalorder %v17922_v63, %v13340_v2  ;;  %vm3876_vm13 = vcmp.eq.s32.totalorder %v17922_v63, %v13375_v52  ;;  %vm4305_vm8 = vcmp.eq.s32.totalorder %v10167_v7, %v14048_v26 }
 0x306   : > { %v3937_v50 = vsel %vm3873_vm3, %v3794_v42, 0.0  ;;  %v3796_v55 = vpop.f32.mrb[189].mxu1  ;;  %9430 = vmatmul.mubr.msk.f32.gmra.mrb[38].mxu1 %vm17924_vm15, %v9854_v54  ;;  %v3479_v34 = vadd.f32 %v3478_v49, %v3446_v9  ;;  %v3447_v42 = vsel %vm3383_vm1, %v3305_v16, 0.0  ;;  %5205 = vmatprep.mubr.f32.mxu0 %v17481_v45  ;;  %vm4795_vm0 = vcmp.eq.s32.totalorder %v10167_v7, %v14079_v21  ;;  %v17925_v9 = vld [vmem:[#allocation59_spill] sm:$0xff]  ;;  %v9855_v16 = vld [vmem:[%s17165_s3 + $0xa0] sm:$0xff]  ;;  %vm17926_vm1 = vmmov %vm17923_vm12 }
 0x307   : > { %v3970_v53 = vadd.f32 %v3969_v57, %v3937_v50  ;;  %v3938_v14 = vsel %vm3874_vm9, %v3796_v55, 0.0  ;;  %5690 = vmatprep.mubr.f32.mxu1 %v17481_v45  ;;  %v3516_v54 = vadd.f32 %v3515_v46, %v3447_v42  ;;  %vm4796_vm10 = vcmp.eq.s32.totalorder %v10167_v7, %v14083_v0  ;;  %vm17927_vm9 = vmmov %vm17926_vm1 }
 0x308   : > { %v4007_v41 = vadd.f32 %v4006_v48, %v3938_v14  ;;  %v3309_v49 = vpop.f32.mrb[190].mxu0  ;;  %vm4306_vm2 = vcmp.eq.s32.totalorder %v17925_v9, %v14044_v25  ;;  %vm4797_vm3 = vcmp.eq.s32.totalorder %v17925_v9, %v14079_v21  ;;  %vm4307_vm12 = vcmp.eq.s32.totalorder %v17925_v9, %v14048_v26 }
 0x309   : > { %v3800_v57 = vpop.f32.mrb[190].mxu1  ;;  %v3448_v14 = vsel %vm3384_vm4, %v3309_v49, 0.0  ;;  %v3311_v46 = vpop.f32.mrb[191].mxu0  ;;  %9395 = vmatmul.mubr.msk.f32.gmra.mrb[40].mxu0 %vm17926_vm1, %v9855_v16  ;;  %vm4798_vm4 = vcmp.eq.s32.totalorder %v17925_v9, %v14083_v0  ;;  %vm4799_vm15 = vcmp.eq.s32.totalorder %v17718_v33, %v14079_v21 }
 0x30a   : > { %v3939_v48 = vsel %vm3875_vm11, %v3800_v57, 0.0  ;;  %v3802_v50 = vpop.f32.mrb[191].mxu1  ;;  %9431 = vmatmul.mubr.msk.f32.gmra.mrb[40].mxu1 %vm17927_vm9, %v9855_v16  ;;  %v3480_v3 = vadd.f32 %v3479_v34, %v3448_v14  ;;  %v3449_v37 = vsel %vm3385_vm7, %v3311_v46, 0.0  ;;  %5211 = vmatprep.mubr.f32.mxu0 %v17481_v45  ;;  %vm4308_vm11 = vcmp.eq.s32.totalorder %v17718_v33, %v14044_v25  ;;  %v9856_v46 = vld [vmem:[%s17165_s3 + $0xa8] sm:$0xff]  ;;  %vm17928_vm9 = vmmov %vm17926_vm1 }
 0x30b   : > { %v3971_v55 = vadd.f32 %v3970_v53, %v3939_v48  ;;  %v3940_v42 = vsel %vm3876_vm13, %v3802_v50, 0.0  ;;  %5696 = vmatprep.mubr.f32.mxu1 %v17481_v45  ;;  %v3517_v49 = vadd.f32 %v3516_v54, %v3449_v37  ;;  %vm4309_vm7 = vcmp.eq.s32.totalorder %v17718_v33, %v14048_v26 }
 0x30c   : > { %v4008_v57 = vadd.f32 %v4007_v41, %v3940_v42  ;;  %v3481_v34 = vrot.slane %v3480_v3, 4  ;;  %v4105_v2 = vpop.f32.mrb[192].mxu0  ;;  %vm4800_vm13 = vcmp.eq.s32.totalorder %v17718_v33, %v14083_v0 }
 0x30d   : > { %v3972_v53 = vrot.slane %v3971_v55, 4  ;;  %v4596_v14 = vpop.f32.mrb[192].mxu1  ;;  %v3518_v52 = vrot.slane %v3517_v49, 4  ;;  %v4368_v41 = vsel %vm4304_vm5, %v4105_v2, 0.0  ;;  %v4107_v54 = vpop.f32.mrb[193].mxu0  ;;  %9396 = vmatmul.mubr.msk.f32.gmra.mrb[42].mxu0 %vm17926_vm1, %v9856_v46  ;;  %vm4310_vm5 = vcmp.eq.s32.totalorder %v17725_v40, %v14044_v25 }
 0x30e   : > { %v4009_v48 = vrot.slane %v4008_v57, 4  ;;  %9432 = vmatmul.mubr.msk.f32.gmra.mrb[42].mxu1 %vm17928_vm9, %v9856_v46  ;;  %v4859_v50 = vsel %vm4795_vm0, %v4596_v14, 0.0  ;;  %v4598_v16 = vpop.f32.mrb[193].mxu1  ;;  %v3482_v37 = vadd.f32 %v3481_v34, %v3480_v3  ;;  %v4369_v2 = vsel %vm4305_vm8, %v4107_v54, 0.0  ;;  %5217 = vmatprep.mubr.f32.mxu0 %v17481_v45  ;;  %vm17929_vm9 = vmmov %vm17926_vm1 }
 0x30f   : > { %v3973_v42 = vadd.f32 %v3972_v53, %v3971_v55  ;;  %v4860_v63 = vsel %vm4796_vm10, %v4598_v16, 0.0  ;;  %5702 = vmatprep.mubr.f32.mxu1 %v17481_v45  ;;  %v3519_v46 = vadd.f32 %v3518_v52, %v3517_v49  ;;  %vm4801_vm0 = vcmp.eq.s32.totalorder %v17725_v40, %v14079_v21  ;;  %v9857_v16 = vld [vmem:[%s17165_s3 + $0xb0] sm:$0xff] }
 0x310   : > { %v4010_v8 = vadd.f32 %v4009_v48, %v4008_v57  ;;  %v3483_v3 = vrot.slane %v3482_v37, 2  ;;  %v4111_v34 = vpop.f32.mrb[194].mxu0  ;;  %vm4311_vm8 = vcmp.eq.s32.totalorder %v17725_v40, %v14048_v26  ;;  %vm4802_vm10 = vcmp.eq.s32.totalorder %v17725_v40, %v14083_v0 }
 0x311   : > { %v3974_v55 = vrot.slane %v3973_v42, 2  ;;  %v4602_v53 = vpop.f32.mrb[194].mxu1  ;;  %v3520_v14 = vrot.slane %v3519_v46, 2  ;;  %v4370_v49 = vsel %vm4306_vm2, %v4111_v34, 0.0  ;;  %v4113_v52 = vpop.f32.mrb[195].mxu0  ;;  %9397 = vmatmul.mubr.msk.f32.gmra.mrb[44].mxu0 %vm17926_vm1, %v9857_v16  ;;  %vm4312_vm2 = vcmp.eq.s32.totalorder %v17728_v59, %v14044_v25 }
 0x312   : > { %v4011_v54 = vrot.slane %v4010_v8, 2  ;;  %v4861_v57 = vsel %vm4797_vm3, %v4602_v53, 0.0  ;;  %v4604_v48 = vpop.f32.mrb[195].mxu1  ;;  %9433 = vmatmul.mubr.msk.f32.gmra.mrb[44].mxu1 %vm17929_vm9, %v9857_v16  ;;  %v3484_v58 = vadd.f32 %v3483_v3, %v3482_v37  ;;  %v4432_v10 = vadd.f32 %v4370_v49, %v4368_v41  ;;  %5223 = vmatprep.mubr.f32.mxu0 %v17481_v45 }
 0x313   : > { %v3975_v43 = vadd.f32 %v3974_v55, %v3973_v42  ;;  %v4923_v1 = vadd.f32 %v4861_v57, %v4859_v50  ;;  %vm4803_vm3 = vcmp.eq.s32.totalorder %v17728_v59, %v14079_v21  ;;  %v3521_v34 = vadd.f32 %v3520_v14, %v3519_v46  ;;  %5708 = vmatprep.mubr.f32.mxu1 %v17481_v45 }
 0x314   : > { %v4012_v53 = vadd.f32 %v4011_v54, %v4010_v8  ;;  %v4371_v31 = vsel %vm4307_vm12, %v4113_v52, 0.0  ;;  %v4862_v37 = vsel %vm4798_vm4, %v4604_v48, 0.0  ;;  %vm4313_vm1 = vcmp.eq.s32.totalorder %v17728_v59, %v14048_v26  ;;  %v4117_v55 = vpop.f32.mrb[196].mxu0 }
 0x315   : > { %v3485_v41 = vrot.slane %v3484_v58, 1  ;;  %v3976_v50 = vrot.slane %v3975_v43, 1  ;;  %v4469_v42 = vadd.f32 %v4371_v31, %v4369_v2  ;;  %v4960_v3 = vadd.f32 %v4862_v37, %v4860_v63  ;;  %v4608_v46 = vpop.f32.mrb[196].mxu1  ;;  %v4119_v57 = vpop.f32.mrb[197].mxu0  ;;  %v9858_v31 = vld [vmem:[%s17165_s3 + $0xb8] sm:$0xff] }
 0x316   : > { %vm4804_vm9 = vcmp.eq.s32.totalorder %v17728_v59, %v14083_v0  ;;  %v3522_v8 = vrot.slane %v3521_v34, 1  ;;  %v4013_v14 = vrot.slane %v4012_v53, 1  ;;  %v4372_v54 = vsel %vm4308_vm11, %v4117_v55, 0.0  ;;  %v4610_v52 = vpop.f32.mrb[197].mxu1 }
 0x317   : > { %v4863_v49 = vsel %vm4799_vm15, %v4608_v46, 0.0  ;;  %vm17930_vm12 = vcmask 64512   ;;  %v3486_v63 = vadd.f32 %v3485_v41, %v3484_v58  ;;  %v3977_v2 = vadd.f32 %v3976_v50, %v3975_v43 }
 0x318   : > { %9398 = vmatmul.mubr.msk.f32.gmra.mrb[46].mxu0 %vm17930_vm12, %v9858_v31  ;;  %vm17931_vm4 = vmmov %vm17930_vm12  ;;  %v4433_v48 = vadd.f32 %v4432_v10, %v4372_v54  ;;  %v4924_v16 = vadd.f32 %v4923_v1, %v4863_v49  ;;  %vm4314_vm11 = vcmp.eq.s32.totalorder %v17731_v19, %v14044_v25  ;;  %v3523_v37 = vadd.f32 %v3522_v8, %v3521_v34  ;;  %v4123_v41 = vpop.f32.mrb[198].mxu0 }
 0x319   : > { %9434 = vmatmul.mubr.msk.f32.gmra.mrb[46].mxu1 %vm17931_vm4, %v9858_v31  ;;  %5229 = vmatprep.mubr.f32.mxu0 %v17481_v45  ;;  %v4014_v55 = vadd.f32 %v4013_v14, %v4012_v53  ;;  %v4373_v46 = vsel %vm4309_vm7, %v4119_v57, 0.0  ;;  %v4864_v9 = vsel %vm4800_vm13, %v4610_v52, 0.0  ;;  %v3524_v10 = vmul.f32 %v3486_v63, %v12519_v20  ;;  %v4614_v50 = vpop.f32.mrb[198].mxu1  ;;  %v4125_v54 = vpop.f32.mrb[199].mxu0  ;;  %vm17932_vm15 = vmmov %vm17931_vm4 }
 0x31a   : > { %5714 = vmatprep.mubr.f32.mxu1 %v17481_v45  ;;  %v4015_v1 = vmul.f32 %v3977_v2, %v12519_v20  ;;  %v4470_v43 = vadd.f32 %v4469_v42, %v4373_v46  ;;  %v4961_v58 = vadd.f32 %v4960_v3, %v4864_v9  ;;  %v3525_v34 = vmul.f32 %v3523_v37, %v12524_v28  ;;  %v4616_v49 = vpop.f32.mrb[199].mxu1  ;;  %v9859_v9 = vld [vmem:[%s17165_s3 + $0xc0] sm:$0xff]  ;;  %vm17933_vm7 = vmmov %vm17931_vm4 }
 0x31b   : > { %v4016_v53 = vmul.f32 %v4014_v55, %v12524_v28  ;;  %v4374_v8 = vsel %vm4310_vm5, %v4123_v41, 0.0  ;;  %v4865_v14 = vsel %vm4801_vm0, %v4614_v50, 0.0  ;;  %v3528_v42 = vrot.slane %v3524_v10, 4  ;;  %vm17934_vm0 = vmmov %vm17931_vm4 }
 0x31c   : > { %9399 = vmatmul.mubr.msk.f32.gmra.mrb[48].mxu0 %vm17932_vm15, %v9859_v9  ;;  %v4434_v3 = vadd.f32 %v4433_v48, %v4374_v8  ;;  %v4925_v57 = vadd.f32 %v4924_v16, %v4865_v14  ;;  %vm4805_vm13 = vcmp.eq.s32.totalorder %v17731_v19, %v14079_v21  ;;  %v3529_v52 = vrot.slane %v3525_v34, 4  ;;  %v4129_v55 = vpop.f32.mrb[200].mxu0  ;;  %vm17939_vm15 = vmmov %vm17934_vm0 }
 0x31d   : > { %9435 = vmatmul.mubr.msk.f32.gmra.mrb[48].mxu1 %vm17933_vm7, %v9859_v9  ;;  %5235 = vmatprep.mubr.f32.mxu0 %v17481_v45  ;;  %v4375_v31 = vsel %vm4311_vm8, %v4125_v54, 0.0  ;;  %v4866_v63 = vsel %vm4802_vm10, %v4616_v49, 0.0  ;;  %vm4315_vm5 = vcmp.eq.s32.totalorder %v17731_v19, %v14048_v26  ;;  %v3532_v2 = vadd.f32 %v3528_v42, %v13562_v5  ;;  %v4620_v46 = vpop.f32.mrb[200].mxu1  ;;  %v4131_v8 = vpop.f32.mrb[201].mxu0  ;;  %v9860_v5 = vld [vmem:[%s17165_s3 + $0xc8] sm:$0xff]  ;;  %vm17935_vm8 = vmmov %vm17934_vm0 }
 0x31e   : > { %5720 = vmatprep.mubr.f32.mxu1 %v17481_v45  ;;  %v4019_v48 = vrot.slane %v4015_v1, 5  ;;  %v4471_v16 = vadd.f32 %v4470_v43, %v4375_v31  ;;  %v4962_v37 = vadd.f32 %v4961_v58, %v4866_v63  ;;  %v3533_v10 = vadd.f32 %v3529_v52, %v13569_v15  ;;  %v4622_v14 = vpop.f32.mrb[201].mxu1 }
 0x31f   : > { %v4020_v41 = vrot.slane %v4016_v53, 5  ;;  %v4376_v50 = vsel %vm4312_vm2, %v4129_v55, 0.0  ;;  %v4867_v34 = vsel %vm4803_vm3, %v4620_v46, 0.0  ;;  %v4377_v58 = vsel %vm4313_vm1, %v4131_v8, 0.0  ;;  %vm17936_vm2 = vmmov %vm17934_vm0 }
 0x320   : > { %9400 = vmatmul.mubr.msk.f32.gmra.mrb[50].mxu0 %vm17934_vm0, %v9860_v5  ;;  %v14270_v15 = vadd.f32 %v4019_v48, %v3532_v2  ;;  %v4435_v1 = vadd.f32 %v4434_v3, %v4376_v50  ;;  %v4926_v43 = vadd.f32 %v4925_v57, %v4867_v34  ;;  %v4472_v54 = vadd.f32 %v4471_v16, %v4377_v58  ;;  %v4135_v42 = vpop.f32.mrb[202].mxu0  ;;  %v9861_v2 = vld [vmem:[%s17165_s3 + $0xd0] sm:$0xff]  ;;  %vm17937_vm3 = vmmov %vm17934_vm0 }
 0x321   : > { %9436 = vmatmul.mubr.msk.f32.gmra.mrb[50].mxu1 %vm17935_vm8, %v9860_v5  ;;  %5241 = vmatprep.mubr.f32.mxu0 %v17481_v45  ;;  %v14277_v53 = vadd.f32 %v4020_v41, %v3533_v10  ;;  %v4868_v49 = vsel %vm4804_vm9, %v4622_v14, 0.0  ;;  %vm4806_vm10 = vcmp.eq.s32.totalorder %v17731_v19, %v14083_v0  ;;  %v4626_v3 = vpop.f32.mrb[202].mxu1  ;;  %v4378_v57 = vsel %vm4314_vm11, %v4135_v42, 0.0  ;;  %v4137_v31 = vpop.f32.mrb[203].mxu0  ;;  %vm17938_vm11 = vmmov %vm17934_vm0 }
 0x322   : > { %5726 = vmatprep.mubr.f32.mxu1 %v17481_v45  ;;  %v4963_v9 = vadd.f32 %v4962_v37, %v4868_v49  ;;  %v4869_v52 = vsel %vm4805_vm13, %v4626_v3, 0.0  ;;  %v4628_v63 = vpop.f32.mrb[203].mxu1  ;;  %vm4316_vm1 = vcmp.eq.s32.totalorder %v17766_v11, %v14044_v25  ;;  %vm4807_vm9 = vcmp.eq.s32.totalorder %v17766_v11, %v14079_v21  ;;  %vm17940_vm8 = vmmov %vm17936_vm2 }
 0x323   : > { %v4436_v48 = vadd.f32 %v4435_v1, %v4378_v57  ;;  %v4927_v16 = vadd.f32 %v4926_v43, %v4869_v52  ;;  %v4379_v37 = vsel %vm4315_vm5, %v4137_v31, 0.0  ;;  %v4870_v55 = vsel %vm4806_vm10, %v4628_v63, 0.0  ;;  %v9862_v1 = vld [vmem:[%s17165_s3 + $0xd8] sm:$0xff]  ;;  %vm17941_vm10 = vmmov %vm17936_vm2 }
 0x324   : > { %9401 = vmatmul.mubr.msk.f32.gmra.mrb[52].mxu0 %vm17936_vm2, %v9861_v2  ;;  %v4473_v46 = vadd.f32 %v4472_v54, %v4379_v37  ;;  %v4964_v10 = vadd.f32 %v4963_v9, %v4870_v55  ;;  %vm4317_vm12 = vcmp.eq.s32.totalorder %v17766_v11, %v14048_v26  ;;  %vm4808_vm4 = vcmp.eq.s32.totalorder %v17766_v11, %v14083_v0  ;;  %v4141_v41 = vpop.f32.mrb[204].mxu0 }
 0x325   : > { %9437 = vmatmul.mubr.msk.f32.gmra.mrb[52].mxu1 %vm17937_vm3, %v9861_v2  ;;  %5247 = vmatprep.mubr.f32.mxu0 %v17481_v45  ;;  %v4632_v50 = vpop.f32.mrb[204].mxu1  ;;  %v4380_v34 = vsel %vm4316_vm1, %v4141_v41, 0.0  ;;  %v4143_v14 = vpop.f32.mrb[205].mxu0  ;;  %vm4318_vm7 = vcmp.eq.s32.totalorder %v17773_v61, %v14044_v25  ;;  %vm4809_vm13 = vcmp.eq.s32.totalorder %v17773_v61, %v14079_v21  ;;  %vm4319_vm5 = vcmp.eq.s32.totalorder %v17773_v61, %v14048_v26 }
 0x326   : > { %5732 = vmatprep.mubr.f32.mxu1 %v17481_v45  ;;  %v4871_v8 = vsel %vm4807_vm9, %v4632_v50, 0.0  ;;  %v4634_v5 = vpop.f32.mrb[205].mxu1  ;;  %v4437_v43 = vadd.f32 %v4436_v48, %v4380_v34  ;;  %v4381_v54 = vsel %vm4317_vm12, %v4143_v14, 0.0  ;;  %vm4810_vm0 = vcmp.eq.s32.totalorder %v17773_v61, %v14083_v0  ;;  %v9863_v48 = vld [vmem:[%s17165_s3 + $0xe0] sm:$0xff]  ;;  %vm17942_vm12 = vmmov %vm17940_vm8 }
 0x327   : > { %v4928_v58 = vadd.f32 %v4927_v16, %v4871_v8  ;;  %v4872_v49 = vsel %vm4808_vm4, %v4634_v5, 0.0  ;;  %v4474_v9 = vadd.f32 %v4473_v46, %v4381_v54  ;;  %vm4320_vm2 = vcmp.eq.s32.totalorder %v11294_v56, %v14044_v25  ;;  %vm17943_vm4 = vmmov %vm17940_vm8 }
 0x328   : > { %9402 = vmatmul.mubr.msk.f32.gmra.mrb[54].mxu0 %vm17938_vm11, %v9862_v1  ;;  %v4965_v42 = vadd.f32 %v4964_v10, %v4872_v49  ;;  %v4147_v3 = vpop.f32.mrb[206].mxu0  ;;  %vm4811_vm3 = vcmp.eq.s32.totalorder %v11294_v56, %v14079_v21  ;;  %vm4321_vm1 = vcmp.eq.s32.totalorder %v11294_v56, %v14048_v26  ;;  %vm4812_vm9 = vcmp.eq.s32.totalorder %v11294_v56, %v14083_v0 }
 0x329   : > { %9438 = vmatmul.mubr.msk.f32.gmra.mrb[54].mxu1 %vm17939_vm15, %v9862_v1  ;;  %5253 = vmatprep.mubr.f32.mxu0 %v17481_v45  ;;  %v4638_v57 = vpop.f32.mrb[206].mxu1  ;;  %v4382_v52 = vsel %vm4318_vm7, %v4147_v3, 0.0  ;;  %v4149_v63 = vpop.f32.mrb[207].mxu0  ;;  %vm4322_vm11 = vcmp.eq.s32.totalorder %v17779_v39, %v14044_v25  ;;  %vm4813_vm15 = vcmp.eq.s32.totalorder %v17779_v39, %v14079_v21  ;;  %vm4323_vm7 = vcmp.eq.s32.totalorder %v17779_v39, %v14048_v26 }
 0x32a   : > { %5738 = vmatprep.mubr.f32.mxu1 %v17481_v45  ;;  %v4873_v31 = vsel %vm4809_vm13, %v4638_v57, 0.0  ;;  %v4640_v2 = vpop.f32.mrb[207].mxu1  ;;  %v4438_v16 = vadd.f32 %v4437_v43, %v4382_v52  ;;  %v4383_v55 = vsel %vm4319_vm5, %v4149_v63, 0.0  ;;  %v9864_v43 = vld [vmem:[%s17165_s3 + $0xe8] sm:$0xff]  ;;  %vm4814_vm13 = vcmp.eq.s32.totalorder %v17779_v39, %v14083_v0 }
 0x32b   : > { %v4929_v37 = vadd.f32 %v4928_v58, %v4873_v31  ;;  %v4874_v46 = vsel %vm4810_vm0, %v4640_v2, 0.0  ;;  %v4475_v10 = vadd.f32 %v4474_v9, %v4383_v55  ;;  %vm4324_vm5 = vcmp.eq.s32.totalorder %v17782_v24, %v14044_v25  ;;  %vm17944_vm0 = vmmov %vm17943_vm4 }
 0x32c   : > { %9403 = vmatmul.mubr.msk.f32.gmra.mrb[56].mxu0 %vm17940_vm8, %v9863_v48  ;;  %v4966_v41 = vadd.f32 %v4965_v42, %v4874_v46  ;;  %v4153_v50 = vpop.f32.mrb[208].mxu0  ;;  %vm17945_vm8 = vmmov %vm17944_vm0 }
 0x32d   : > { %9439 = vmatmul.mubr.msk.f32.gmra.mrb[56].mxu1 %vm17941_vm10, %v9863_v48  ;;  %5259 = vmatprep.mubr.f32.mxu0 %v17481_v45  ;;  %v4644_v34 = vpop.f32.mrb[208].mxu1  ;;  %v4384_v8 = vsel %vm4320_vm2, %v4153_v50, 0.0  ;;  %v4155_v5 = vpop.f32.mrb[209].mxu0  ;;  %vm4815_vm10 = vcmp.eq.s32.totalorder %v17782_v24, %v14079_v21  ;;  %vm4325_vm2 = vcmp.eq.s32.totalorder %v17782_v24, %v14048_v26 }
 0x32e   : > { %5744 = vmatprep.mubr.f32.mxu1 %v17481_v45  ;;  %v4875_v14 = vsel %vm4811_vm3, %v4644_v34, 0.0  ;;  %v4646_v1 = vpop.f32.mrb[209].mxu1  ;;  %v4439_v58 = vadd.f32 %v4438_v16, %v4384_v8  ;;  %v4385_v49 = vsel %vm4321_vm1, %v4155_v5, 0.0  ;;  %v9865_v16 = vld [vmem:[%s17165_s3 + $0xf0] sm:$0xff]  ;;  %vm4816_vm3 = vcmp.eq.s32.totalorder %v17782_v24, %v14083_v0 }
 0x32f   : > { %v4930_v54 = vadd.f32 %v4929_v37, %v4875_v14  ;;  %v4876_v9 = vsel %vm4812_vm9, %v4646_v1, 0.0  ;;  %v4476_v42 = vadd.f32 %v4475_v10, %v4385_v49  ;;  %v6968_v34 = vrot.slane %v12923_v22, %v17840_v29  ;;  %v9866_v49 = vld [vmem:[%s17165_s3 + $0xf8] sm:$0xff]  ;;  %vm17946_vm9 = vmmov %vm17944_vm0 }
 0x330   : > { %9404 = vmatmul.mubr.msk.f32.gmra.mrb[58].mxu0 %vm17942_vm12, %v9864_v43  ;;  %v4967_v3 = vadd.f32 %v4966_v41, %v4876_v9  ;;  %v4159_v57 = vpop.f32.mrb[210].mxu0  ;;  %vm4326_vm1 = vcmp.eq.s32.totalorder %v17785_v44, %v14044_v25  ;;  %v7459_v5 = vrot.slane %v12923_v22, %v17845_v35  ;;  %vm17947_vm12 = vmmov %vm17944_vm0 }
 0x331   : > { %9440 = vmatmul.mubr.msk.f32.gmra.mrb[58].mxu1 %vm17943_vm4, %v9864_v43  ;;  %5265 = vmatprep.mubr.f32.mxu0 %v17481_v45  ;;  %v4650_v52 = vpop.f32.mrb[210].mxu1  ;;  %v4386_v31 = vsel %vm4322_vm11, %v4159_v57, 0.0  ;;  %v4161_v2 = vpop.f32.mrb[211].mxu0  ;;  %vm4817_vm4 = vcmp.eq.s32.totalorder %v17785_v44, %v14079_v21  ;;  %vm4327_vm11 = vcmp.eq.s32.totalorder %v17785_v44, %v14048_v26 }
 0x332   : > { %5750 = vmatprep.mubr.f32.mxu1 %v17481_v45  ;;  %v4877_v63 = vsel %vm4813_vm15, %v4650_v52, 0.0  ;;  %v4652_v48 = vpop.f32.mrb[211].mxu1  ;;  %v4440_v37 = vadd.f32 %v4439_v58, %v4386_v31  ;;  %v4387_v46 = vsel %vm4323_vm7, %v4161_v2, 0.0  ;;  %vm4818_vm15 = vcmp.eq.s32.totalorder %v17785_v44, %v14083_v0 }
 0x333   : > { %v4931_v55 = vadd.f32 %v4930_v54, %v4877_v63  ;;  %v4878_v10 = vsel %vm4814_vm13, %v4652_v48, 0.0  ;;  %v4477_v41 = vadd.f32 %v4476_v42, %v4387_v46  ;;  %vm14409_vm7 = vcmp.eq.s32.totalorder %v10167_v7, %v6968_v34 }
 0x334   : > { %9405 = vmatmul.mubr.msk.f32.gmra.mrb[60].mxu0 %vm17944_vm0, %v9865_v16  ;;  %v4968_v50 = vadd.f32 %v4967_v3, %v4878_v10  ;;  %v4165_v8 = vpop.f32.mrb[212].mxu0  ;;  %vm4328_vm13 = vcmp.eq.s32.totalorder %v17790_v51, %v14044_v25 }
 0x335   : > { %9441 = vmatmul.mubr.msk.f32.gmra.mrb[60].mxu1 %vm17945_vm8, %v9865_v16  ;;  %5271 = vmatprep.mubr.f32.mxu0 %v17481_v45  ;;  %v4656_v14 = vpop.f32.mrb[212].mxu1  ;;  %v4388_v1 = vsel %vm4324_vm5, %v4165_v8, 0.0  ;;  %v4167_v58 = vpop.f32.mrb[213].mxu0  ;;  %vm14416_vm5 = vcmp.eq.s32.totalorder %v10167_v7, %v7459_v5  ;;  %vm17952_vm8 = vmmov %vm17944_vm0 }
 0x336   : > { %5756 = vmatprep.mubr.f32.mxu1 %v17481_v45  ;;  %v4879_v43 = vsel %vm4815_vm10, %v4656_v14, 0.0  ;;  %v4658_v54 = vpop.f32.mrb[213].mxu1  ;;  %v4441_v9 = vadd.f32 %v4440_v37, %v4388_v1  ;;  %v4389_v3 = vsel %vm4325_vm2, %v4167_v58, 0.0  ;;  %vm4819_vm10 = vcmp.eq.s32.totalorder %v17790_v51, %v14079_v21 }
 0x337   : > { %v4932_v42 = vadd.f32 %v4931_v55, %v4879_v43  ;;  %v4880_v57 = vsel %vm4816_vm3, %v4658_v54, 0.0  ;;  %v4478_v52 = vadd.f32 %v4477_v41, %v4389_v3  ;;  %v9867_v41 = vld [vmem:[%s17165_s3] sm:$0xff]  ;;  %vm4329_vm2 = vcmp.eq.s32.totalorder %v17790_v51, %v14048_v26 }
 0x338   : > { %9406 = vmatmul.mubr.msk.f32.gmra.mrb[62].mxu0 %vm17946_vm9, %v9866_v49  ;;  %v4969_v31 = vadd.f32 %v4968_v50, %v4880_v57  ;;  %v4171_v2 = vpop.f32.mrb[214].mxu0  ;;  %vm4820_vm3 = vcmp.eq.s32.totalorder %v17790_v51, %v14083_v0  ;;  %v7954_v54 = vrot.slane %v12224_v38, %v17915_v23  ;;  %vm17953_vm9 = vmmov %vm17944_vm0 }
 0x339   : > { %9442 = vmatmul.mubr.msk.f32.gmra.mrb[62].mxu1 %vm17947_vm12, %v9866_v49  ;;  %6061 = vmatprep.mubr.f32.mxu0 %v17481_v45  ;;  %v4662_v48 = vpop.f32.mrb[214].mxu1  ;;  %v4390_v37 = vsel %vm4326_vm1, %v4171_v2, 0.0  ;;  %v4173_v46 = vpop.f32.mrb[215].mxu0  ;;  %vm4330_vm1 = vcmp.eq.s32.totalorder %v17797_v32, %v14044_v25  ;;  %v8445_v49 = vrot.slane %v12224_v38, %v17921_v18  ;;  %vm17954_vm12 = vmmov %vm17944_vm0 }
 0x33a   : > { %6552 = vmatprep.mubr.f32.mxu1 %v17481_v45  ;;  %v4881_v55 = vsel %vm4817_vm4, %v4662_v48, 0.0  ;;  %v4664_v10 = vpop.f32.mrb[215].mxu1  ;;  %v4442_v50 = vadd.f32 %v4441_v9, %v4390_v37  ;;  %v4391_v8 = vsel %vm4327_vm11, %v4173_v46, 0.0  ;;  %vm4821_vm4 = vcmp.eq.s32.totalorder %v17797_v32, %v14079_v21 }
 0x33b   : > { %v4933_v34 = vadd.f32 %v4932_v42, %v4881_v55  ;;  %v4882_v14 = vsel %vm4818_vm15, %v4664_v10, 0.0  ;;  %v4479_v5 = vadd.f32 %v4478_v52, %v4391_v8  ;;  %v9868_v52 = vld [vmem:[%s17165_s3 + $0x8] sm:$0xff]  ;;  %vm4331_vm11 = vcmp.eq.s32.totalorder %v17797_v32, %v14048_v26  ;;  %v9869_v8 = vld [vmem:[%s17165_s3 + $0x10] sm:$0xff] }
 0x33c   : > { %9447 = vmatmul.mubr.msk.f32.vlgmr.msra.gmra.mrb[64].mxu0 %vm17944_vm0, %v9867_v41  ;;  %v4970_v1 = vadd.f32 %v4969_v31, %v4882_v14  ;;  %v4177_v43 = vpop.f32.mrb[216].mxu0  ;;  %vm4822_vm15 = vcmp.eq.s32.totalorder %v17797_v32, %v14083_v0 }
 0x33d   : > { %9483 = vmatmul.mubr.msk.f32.vlgmr.msra.gmra.mrb[64].mxu1 %vm17952_vm8, %v9867_v41  ;;  %9518 = vmatpush1.msk.msra.mxu0 %vm14409_vm7, %v17478_v27  ;;  %v4668_v58 = vpop.f32.mrb[216].mxu1  ;;  %v4392_v9 = vsel %vm4328_vm13, %v4177_v43, 0.0  ;;  %v4179_v3 = vpop.f32.mrb[217].mxu0  ;;  %vm7956_vm7 = vcmp.eq.s32.totalorder %v10167_v7, %v7954_v54  ;;  %vm14485_vm13 = vcmp.eq.s32.totalorder %v10167_v7, %v8445_v49  ;;  %vm4332_vm8 = vcmp.eq.s32.totalorder %v17800_v4, %v14044_v25 }
 0x33e   : > { %6067 = vmatprep.mubr.f32.mxu0 %v17481_v45  ;;  %6558 = vmatprep.mubr.f32.mxu1 %v17481_v45  ;;  %v4883_v42 = vsel %vm4819_vm10, %v4668_v58, 0.0  ;;  %v4670_v57 = vpop.f32.mrb[217].mxu1  ;;  %v4443_v38 = vadd.f32 %v4442_v50, %v4392_v9  ;;  %v4393_v63 = vsel %vm4329_vm2, %v4179_v3, 0.0  ;;  %vm4823_vm10 = vcmp.eq.s32.totalorder %v17800_v4, %v14079_v21 }
 0x33f   : > { %9554 = vmatpush1.msk.msra.mxu1 %vm14416_vm5, %v17478_v27  ;;  %v4934_v31 = vadd.f32 %v4933_v34, %v4883_v42  ;;  %v4884_v2 = vsel %vm4820_vm3, %v4670_v57, 0.0  ;;  %v4480_v48 = vadd.f32 %v4479_v5, %v4393_v63  ;;  %9589 = vmatprep.subr.msk.mxu0 %vm7956_vm7, %v17478_v27  ;;  %vm17957_vm5 = vmmov %vm17944_vm0  ;;  %vm4333_vm2 = vcmp.eq.s32.totalorder %v17800_v4, %v14048_v26 }
 0x340   : > { %9448 = vmatmul.mubr.msk.f32.gmra.mrb[66].mxu0 %vm17953_vm9, %v9868_v52  ;;  %v4971_v16 = vadd.f32 %v4970_v1, %v4884_v2  ;;  %v4183_v37 = vpop.f32.mrb[218].mxu0  ;;  %vm4824_vm3 = vcmp.eq.s32.totalorder %v17800_v4, %v14083_v0  ;;  %9625 = vmatprep.subr.msk.mxu1 %vm14485_vm13, %v17478_v27  ;;  %vm17959_vm9 = vmmov %vm17944_vm0 }
 0x341   : > { %9484 = vmatmul.mubr.msk.f32.gmra.mrb[66].mxu1 %vm17954_vm12, %v9868_v52  ;;  %6073 = vmatprep.mubr.f32.mxu0 %v17481_v45  ;;  %v4674_v55 = vpop.f32.mrb[218].mxu1  ;;  %v4394_v10 = vsel %vm4330_vm1, %v4183_v37, 0.0  ;;  %v4185_v50 = vpop.f32.mrb[219].mxu0  ;;  %vm17958_vm1 = vmmov %vm17944_vm0  ;;  %vm4334_vm12 = vcmp.eq.s32.totalorder %v17803_v36, %v14044_v25 }
 0x342   : > { %6564 = vmatprep.mubr.f32.mxu1 %v17481_v45  ;;  %v4885_v41 = vsel %vm4821_vm4, %v4674_v55, 0.0  ;;  %v4676_v34 = vpop.f32.mrb[219].mxu1  ;;  %v4444_v14 = vadd.f32 %v4443_v38, %v4394_v10  ;;  %v4395_v1 = vsel %vm4331_vm11, %v4185_v50, 0.0  ;;  %v9870_v38 = vld [vmem:[%s17165_s3 + $0x18] sm:$0xff]  ;;  %vm4825_vm4 = vcmp.eq.s32.totalorder %v17803_v36, %v14079_v21  ;;  %vm17960_vm7 = vmmov %vm17944_vm0 }
 0x343   : > { %v4935_v5 = vadd.f32 %v4934_v31, %v4885_v41  ;;  %v4886_v43 = vsel %vm4822_vm15, %v4676_v34, 0.0  ;;  %v4481_v58 = vadd.f32 %v4480_v48, %v4395_v1  ;;  %vm4335_vm11 = vcmp.eq.s32.totalorder %v17803_v36, %v14048_v26  ;;  %vm17961_vm13 = vmmov %vm17944_vm0 }
 0x344   : > { %9449 = vmatmul.mubr.msk.f32.gmra.mrb[68].mxu0 %vm17957_vm5, %v9869_v8  ;;  %v4972_v54 = vadd.f32 %v4971_v16, %v4886_v43  ;;  %v4189_v49 = vpop.f32.mrb[220].mxu0  ;;  %vm4826_vm15 = vcmp.eq.s32.totalorder %v17803_v36, %v14083_v0  ;;  %vm4336_vm5 = vcmp.eq.s32.totalorder %v17806_v13, %v14044_v25 }
 0x345   : > { %9485 = vmatmul.mubr.msk.f32.gmra.mrb[68].mxu1 %vm17944_vm0, %v9869_v8  ;;  %6079 = vmatprep.mubr.f32.mxu0 %v17481_v45  ;;  %v4680_v9 = vpop.f32.mrb[220].mxu1  ;;  %v4396_v42 = vsel %vm4332_vm8, %v4189_v49, 0.0  ;;  %v4191_v57 = vpop.f32.mrb[221].mxu0  ;;  %v9871_v8 = vld [vmem:[%s17165_s3 + $0x20] sm:$0xff]  ;;  %vm4827_vm0 = vcmp.eq.s32.totalorder %v17806_v13, %v14079_v21  ;;  %vm4337_vm8 = vcmp.eq.s32.totalorder %v17806_v13, %v14048_v26 }
 0x346   : > { %6570 = vmatprep.mubr.f32.mxu1 %v17481_v45  ;;  %v4887_v3 = vsel %vm4823_vm10, %v4680_v9, 0.0  ;;  %v4682_v52 = vpop.f32.mrb[221].mxu1  ;;  %v4445_v31 = vadd.f32 %v4444_v14, %v4396_v42  ;;  %v4397_v2 = vsel %vm4333_vm2, %v4191_v57, 0.0  ;;  %vm4828_vm10 = vcmp.eq.s32.totalorder %v17806_v13, %v14083_v0  ;;  %vm17962_vm2 = vmmov %vm17958_vm1 }
 0x347   : > { %v4936_v63 = vadd.f32 %v4935_v5, %v4887_v3  ;;  %v4888_v48 = vsel %vm4824_vm3, %v4682_v52, 0.0  ;;  %v4482_v16 = vadd.f32 %v4481_v58, %v4397_v2  ;;  %vm17963_vm3 = vmmov %vm17958_vm1 }
 0x348   : > { %9450 = vmatmul.mubr.msk.f32.gmra.mrb[70].mxu0 %vm17958_vm1, %v9870_v38  ;;  %v4973_v37 = vadd.f32 %v4972_v54, %v4888_v48  ;;  %v4195_v55 = vpop.f32.mrb[222].mxu0  ;;  %vm4338_vm1 = vcmp.eq.s32.totalorder %v17809_v17, %v14044_v25 }
 0x349   : > { %9486 = vmatmul.mubr.msk.f32.gmra.mrb[70].mxu1 %vm17959_vm9, %v9870_v38  ;;  %6085 = vmatprep.mubr.f32.mxu0 %v17481_v45  ;;  %v4686_v46 = vpop.f32.mrb[222].mxu1  ;;  %v4398_v10 = vsel %vm4334_vm12, %v4195_v55, 0.0  ;;  %v4197_v50 = vpop.f32.mrb[223].mxu0  ;;  %v9872_v38 = vld [vmem:[%s17165_s3 + $0x28] sm:$0xff]  ;;  %vm4829_vm9 = vcmp.eq.s32.totalorder %v17809_v17, %v14079_v21  ;;  %vm4339_vm12 = vcmp.eq.s32.totalorder %v17809_v17, %v14048_v26 }
 0x34a   : > { %6576 = vmatprep.mubr.f32.mxu1 %v17481_v45  ;;  %v4889_v41 = vsel %vm4825_vm4, %v4686_v46, 0.0  ;;  %v4688_v34 = vpop.f32.mrb[223].mxu1  ;;  %v4446_v14 = vadd.f32 %v4445_v31, %v4398_v10  ;;  %v4399_v1 = vsel %vm4335_vm11, %v4197_v50, 0.0  ;;  %vm4830_vm4 = vcmp.eq.s32.totalorder %v17809_v17, %v14083_v0  ;;  %vm17964_vm11 = vmmov %vm17962_vm2 }
 0x34b   : > { %v4937_v5 = vadd.f32 %v4936_v63, %v4889_v41  ;;  %v4890_v43 = vsel %vm4826_vm15, %v4688_v34, 0.0  ;;  %v4483_v58 = vadd.f32 %v4482_v16, %v4399_v1  ;;  %vm17965_vm15 = vmmov %vm17962_vm2 }
 0x34c   : > { %9451 = vmatmul.mubr.msk.f32.gmra.mrb[72].mxu0 %vm17960_vm7, %v9871_v8  ;;  %v4974_v54 = vadd.f32 %v4973_v37, %v4890_v43  ;;  %v4201_v49 = vpop.f32.mrb[224].mxu0  ;;  %vm4340_vm7 = vcmp.eq.s32.totalorder %v17812_v6, %v14044_v25 }
 0x34d   : > { %9487 = vmatmul.mubr.msk.f32.gmra.mrb[72].mxu1 %vm17961_vm13, %v9871_v8  ;;  %6091 = vmatprep.mubr.f32.mxu0 %v17481_v45  ;;  %v4692_v9 = vpop.f32.mrb[224].mxu1  ;;  %v4400_v42 = vsel %vm4336_vm5, %v4201_v49, 0.0  ;;  %v4203_v57 = vpop.f32.mrb[225].mxu0  ;;  %v9873_v8 = vld [vmem:[%s17165_s3 + $0x30] sm:$0xff]  ;;  %vm4831_vm13 = vcmp.eq.s32.totalorder %v17812_v6, %v14079_v21  ;;  %vm4341_vm5 = vcmp.eq.s32.totalorder %v17812_v6, %v14048_v26 }
 0x34e   : > { %6582 = vmatprep.mubr.f32.mxu1 %v17481_v45  ;;  %v4891_v3 = vsel %vm4827_vm0, %v4692_v9, 0.0  ;;  %v4694_v52 = vpop.f32.mrb[225].mxu1  ;;  %v4447_v31 = vadd.f32 %v4446_v14, %v4400_v42  ;;  %v4401_v2 = vsel %vm4337_vm8, %v4203_v57, 0.0  ;;  %vm4832_vm0 = vcmp.eq.s32.totalorder %v17812_v6, %v14083_v0  ;;  %vm17966_vm8 = vmmov %vm17962_vm2 }
 0x34f   : > { %v4938_v63 = vadd.f32 %v4937_v5, %v4891_v3  ;;  %v4892_v48 = vsel %vm4828_vm10, %v4694_v52, 0.0  ;;  %v4484_v16 = vadd.f32 %v4483_v58, %v4401_v2  ;;  %vm17967_vm10 = vmmov %vm17962_vm2 }
 0x350   : > { %9452 = vmatmul.mubr.msk.f32.gmra.mrb[74].mxu0 %vm17962_vm2, %v9872_v38  ;;  %v4975_v37 = vadd.f32 %v4974_v54, %v4892_v48  ;;  %v4207_v55 = vpop.f32.mrb[226].mxu0  ;;  %vm4342_vm2 = vcmp.eq.s32.totalorder %v17815_v62, %v14044_v25 }
 0x351   : > { %9488 = vmatmul.mubr.msk.f32.gmra.mrb[74].mxu1 %vm17963_vm3, %v9872_v38  ;;  %6097 = vmatprep.mubr.f32.mxu0 %v17481_v45  ;;  %v4698_v46 = vpop.f32.mrb[226].mxu1  ;;  %v4402_v10 = vsel %vm4338_vm1, %v4207_v55, 0.0  ;;  %v4209_v50 = vpop.f32.mrb[227].mxu0  ;;  %v9874_v38 = vld [vmem:[%s17165_s3 + $0x38] sm:$0xff]  ;;  %vm4833_vm3 = vcmp.eq.s32.totalorder %v17815_v62, %v14079_v21  ;;  %vm4343_vm1 = vcmp.eq.s32.totalorder %v17815_v62, %v14048_v26 }
 0x352   : > { %6588 = vmatprep.mubr.f32.mxu1 %v17481_v45  ;;  %v4893_v41 = vsel %vm4829_vm9, %v4698_v46, 0.0  ;;  %v4700_v34 = vpop.f32.mrb[227].mxu1  ;;  %v4448_v14 = vadd.f32 %v4447_v31, %v4402_v10  ;;  %v4403_v1 = vsel %vm4339_vm12, %v4209_v50, 0.0  ;;  %vm4834_vm9 = vcmp.eq.s32.totalorder %v17815_v62, %v14083_v0  ;;  %vm17968_vm12 = vmmov %vm17966_vm8 }
 0x353   : > { %v4939_v5 = vadd.f32 %v4938_v63, %v4893_v41  ;;  %v4894_v43 = vsel %vm4830_vm4, %v4700_v34, 0.0  ;;  %v4485_v58 = vadd.f32 %v4484_v16, %v4403_v1  ;;  %vm17969_vm4 = vmmov %vm17966_vm8 }
 0x354   : > { %9453 = vmatmul.mubr.msk.f32.gmra.mrb[76].mxu0 %vm17964_vm11, %v9873_v8  ;;  %v4976_v54 = vadd.f32 %v4975_v37, %v4894_v43  ;;  %v4213_v49 = vpop.f32.mrb[228].mxu0  ;;  %vm4344_vm11 = vcmp.eq.s32.totalorder %v17575_v12, %v14044_v25 }
 0x355   : > { %9489 = vmatmul.mubr.msk.f32.gmra.mrb[76].mxu1 %vm17965_vm15, %v9873_v8  ;;  %6103 = vmatprep.mubr.f32.mxu0 %v17481_v45  ;;  %v4704_v9 = vpop.f32.mrb[228].mxu1  ;;  %v4404_v42 = vsel %vm4340_vm7, %v4213_v49, 0.0  ;;  %v4215_v57 = vpop.f32.mrb[229].mxu0  ;;  %v9875_v8 = vld [vmem:[%s17165_s3 + $0x40] sm:$0xff]  ;;  %vm4835_vm15 = vcmp.eq.s32.totalorder %v17575_v12, %v14079_v21  ;;  %vm4345_vm7 = vcmp.eq.s32.totalorder %v17575_v12, %v14048_v26 }
 0x356   : > { %6594 = vmatprep.mubr.f32.mxu1 %v17481_v45  ;;  %v4895_v3 = vsel %vm4831_vm13, %v4704_v9, 0.0  ;;  %v4706_v52 = vpop.f32.mrb[229].mxu1  ;;  %v4449_v31 = vadd.f32 %v4448_v14, %v4404_v42  ;;  %v4405_v2 = vsel %vm4341_vm5, %v4215_v57, 0.0  ;;  %vm4836_vm13 = vcmp.eq.s32.totalorder %v17575_v12, %v14083_v0  ;;  %vm17970_vm5 = vmmov %vm17969_vm4 }
 0x357   : > { %v4940_v63 = vadd.f32 %v4939_v5, %v4895_v3  ;;  %v4896_v48 = vsel %vm4832_vm0, %v4706_v52, 0.0  ;;  %v4486_v16 = vadd.f32 %v4485_v58, %v4405_v2  ;;  %vm17971_vm0 = vmmov %vm17969_vm4 }
 0x358   : > { %9454 = vmatmul.mubr.msk.f32.gmra.mrb[78].mxu0 %vm17966_vm8, %v9874_v38  ;;  %v4977_v37 = vadd.f32 %v4976_v54, %v4896_v48  ;;  %v4219_v55 = vpop.f32.mrb[230].mxu0  ;;  %vm4346_vm8 = vcmp.eq.s32.totalorder %v17586_v47, %v14044_v25 }
 0x359   : > { %9490 = vmatmul.mubr.msk.f32.gmra.mrb[78].mxu1 %vm17967_vm10, %v9874_v38  ;;  %6109 = vmatprep.mubr.f32.mxu0 %v17481_v45  ;;  %v4710_v46 = vpop.f32.mrb[230].mxu1  ;;  %v4406_v10 = vsel %vm4342_vm2, %v4219_v55, 0.0  ;;  %v4221_v50 = vpop.f32.mrb[231].mxu0  ;;  %v9876_v38 = vld [vmem:[%s17165_s3 + $0x48] sm:$0xff]  ;;  %vm4837_vm10 = vcmp.eq.s32.totalorder %v17586_v47, %v14079_v21  ;;  %vm4347_vm2 = vcmp.eq.s32.totalorder %v17586_v47, %v14048_v26 }
 0x35a   : > { %6600 = vmatprep.mubr.f32.mxu1 %v17481_v45  ;;  %v4897_v41 = vsel %vm4833_vm3, %v4710_v46, 0.0  ;;  %v4712_v34 = vpop.f32.mrb[231].mxu1  ;;  %v4450_v14 = vadd.f32 %v4449_v31, %v4406_v10  ;;  %v4407_v1 = vsel %vm4343_vm1, %v4221_v50, 0.0  ;;  %vm4838_vm3 = vcmp.eq.s32.totalorder %v17586_v47, %v14083_v0  ;;  %vm17972_vm1 = vmmov %vm17971_vm0 }
 0x35b   : > { %v4941_v5 = vadd.f32 %v4940_v63, %v4897_v41  ;;  %v4898_v43 = vsel %vm4834_vm9, %v4712_v34, 0.0  ;;  %v4487_v58 = vadd.f32 %v4486_v16, %v4407_v1  ;;  %vm17973_vm9 = vmmov %vm17971_vm0 }
 0x35c   : > { %9455 = vmatmul.mubr.msk.f32.gmra.mrb[80].mxu0 %vm17968_vm12, %v9875_v8  ;;  %v4978_v54 = vadd.f32 %v4977_v37, %v4898_v43  ;;  %v4225_v49 = vpop.f32.mrb[232].mxu0  ;;  %vm4348_vm12 = vcmp.eq.s32.totalorder %v17594_v30, %v14044_v25 }
 0x35d   : > { %9491 = vmatmul.mubr.msk.f32.gmra.mrb[80].mxu1 %vm17969_vm4, %v9875_v8  ;;  %6115 = vmatprep.mubr.f32.mxu0 %v17481_v45  ;;  %v4716_v9 = vpop.f32.mrb[232].mxu1  ;;  %v4408_v42 = vsel %vm4344_vm11, %v4225_v49, 0.0  ;;  %v4227_v57 = vpop.f32.mrb[233].mxu0  ;;  %v9877_v8 = vld [vmem:[%s17165_s3 + $0x50] sm:$0xff]  ;;  %vm4839_vm4 = vcmp.eq.s32.totalorder %v17594_v30, %v14079_v21  ;;  %vm4349_vm11 = vcmp.eq.s32.totalorder %v17594_v30, %v14048_v26 }
 0x35e   : > { %6606 = vmatprep.mubr.f32.mxu1 %v17481_v45  ;;  %v4899_v3 = vsel %vm4835_vm15, %v4716_v9, 0.0  ;;  %v4718_v52 = vpop.f32.mrb[233].mxu1  ;;  %v4451_v31 = vadd.f32 %v4450_v14, %v4408_v42  ;;  %v4409_v2 = vsel %vm4345_vm7, %v4227_v57, 0.0  ;;  %vm4840_vm15 = vcmp.eq.s32.totalorder %v17594_v30, %v14083_v0  ;;  %vm17974_vm7 = vmmov %vm17971_vm0 }
 0x35f   : > { %v4942_v63 = vadd.f32 %v4941_v5, %v4899_v3  ;;  %v4900_v48 = vsel %vm4836_vm13, %v4718_v52, 0.0  ;;  %v4488_v16 = vadd.f32 %v4487_v58, %v4409_v2  ;;  %vm17975_vm13 = vmmov %vm17971_vm0 }
 0x360   : > { %9456 = vmatmul.mubr.msk.f32.gmra.mrb[82].mxu0 %vm17970_vm5, %v9876_v38  ;;  %v4979_v37 = vadd.f32 %v4978_v54, %v4900_v48  ;;  %v4231_v55 = vpop.f32.mrb[234].mxu0  ;;  %vm4350_vm5 = vcmp.eq.s32.totalorder %v17608_v60, %v14044_v25 }
 0x361   : > { %9492 = vmatmul.mubr.msk.f32.gmra.mrb[82].mxu1 %vm17971_vm0, %v9876_v38  ;;  %6121 = vmatprep.mubr.f32.mxu0 %v17481_v45  ;;  %v4722_v46 = vpop.f32.mrb[234].mxu1  ;;  %v4410_v10 = vsel %vm4346_vm8, %v4231_v55, 0.0  ;;  %v4233_v50 = vpop.f32.mrb[235].mxu0  ;;  %v9878_v38 = vld [vmem:[%s17165_s3 + $0x58] sm:$0xff]  ;;  %vm4841_vm0 = vcmp.eq.s32.totalorder %v17608_v60, %v14079_v21  ;;  %vm4351_vm8 = vcmp.eq.s32.totalorder %v17608_v60, %v14048_v26 }
 0x362   : > { %6612 = vmatprep.mubr.f32.mxu1 %v17481_v45  ;;  %v4901_v41 = vsel %vm4837_vm10, %v4722_v46, 0.0  ;;  %v4724_v34 = vpop.f32.mrb[235].mxu1  ;;  %v4452_v14 = vadd.f32 %v4451_v31, %v4410_v10  ;;  %v4411_v1 = vsel %vm4347_vm2, %v4233_v50, 0.0  ;;  %vm4842_vm10 = vcmp.eq.s32.totalorder %v17608_v60, %v14083_v0  ;;  %vm17976_vm2 = vmmov %vm17972_vm1 }
 0x363   : > { %v4943_v5 = vadd.f32 %v4942_v63, %v4901_v41  ;;  %v4902_v43 = vsel %vm4838_vm3, %v4724_v34, 0.0  ;;  %v4489_v58 = vadd.f32 %v4488_v16, %v4411_v1  ;;  %vm17977_vm3 = vmmov %vm17972_vm1 }
 0x364   : > { %9457 = vmatmul.mubr.msk.f32.gmra.mrb[84].mxu0 %vm17972_vm1, %v9877_v8  ;;  %v4980_v54 = vadd.f32 %v4979_v37, %v4902_v43  ;;  %v4237_v49 = vpop.f32.mrb[236].mxu0 }
 0x365   : > { %9493 = vmatmul.mubr.msk.f32.gmra.mrb[84].mxu1 %vm17973_vm9, %v9877_v8  ;;  %6127 = vmatprep.mubr.f32.mxu0 %v17481_v45  ;;  %v4728_v9 = vpop.f32.mrb[236].mxu1  ;;  %v4412_v42 = vsel %vm4348_vm12, %v4237_v49, 0.0  ;;  %v4239_v57 = vpop.f32.mrb[237].mxu0  ;;  %v9879_v8 = vld [vmem:[%s17165_s3 + $0x60] sm:$0xff] }
 0x366   : > { %6618 = vmatprep.mubr.f32.mxu1 %v17481_v45  ;;  %v4903_v3 = vsel %vm4839_vm4, %v4728_v9, 0.0  ;;  %v4730_v52 = vpop.f32.mrb[237].mxu1  ;;  %v4453_v31 = vadd.f32 %v4452_v14, %v4412_v42  ;;  %v4413_v2 = vsel %vm4349_vm11, %v4239_v57, 0.0  ;;  %v17978_v14 = vld [vmem:[#allocation85_spill] sm:$0xff]  ;;  %vm17979_vm11 = vmmov %vm17976_vm2 }
 0x367   : > { %v4944_v63 = vadd.f32 %v4943_v5, %v4903_v3  ;;  %v4904_v48 = vsel %vm4840_vm15, %v4730_v52, 0.0  ;;  %v4490_v16 = vadd.f32 %v4489_v58, %v4413_v2  ;;  %vm4352_vm1 = vcmp.eq.s32.totalorder %v17978_v14, %v14044_v25  ;;  %vm17980_vm15 = vmmov %vm17976_vm2 }
 0x368   : > { %9458 = vmatmul.mubr.msk.f32.gmra.mrb[86].mxu0 %vm17974_vm7, %v9878_v38  ;;  %v4981_v37 = vadd.f32 %v4980_v54, %v4904_v48  ;;  %v4243_v55 = vpop.f32.mrb[238].mxu0  ;;  %vm4843_vm9 = vcmp.eq.s32.totalorder %v17978_v14, %v14079_v21  ;;  %vm4353_vm12 = vcmp.eq.s32.totalorder %v17978_v14, %v14048_v26  ;;  %vm4844_vm4 = vcmp.eq.s32.totalorder %v17978_v14, %v14083_v0 }
 0x369   : > { %9494 = vmatmul.mubr.msk.f32.gmra.mrb[86].mxu1 %vm17975_vm13, %v9878_v38  ;;  %6133 = vmatprep.mubr.f32.mxu0 %v17481_v45  ;;  %v4734_v46 = vpop.f32.mrb[238].mxu1  ;;  %v4414_v10 = vsel %vm4350_vm5, %v4243_v55, 0.0  ;;  %v4245_v50 = vpop.f32.mrb[239].mxu0 }
 0x36a   : > { %6624 = vmatprep.mubr.f32.mxu1 %v17481_v45  ;;  %v4905_v41 = vsel %vm4841_vm0, %v4734_v46, 0.0  ;;  %v4736_v34 = vpop.f32.mrb[239].mxu1  ;;  %v4454_v5 = vadd.f32 %v4453_v31, %v4414_v10  ;;  %v4415_v43 = vsel %vm4351_vm8, %v4245_v50, 0.0  ;;  %v9880_v31 = vld [vmem:[%s17165_s3 + $0x68] sm:$0xff]  ;;  %vm17982_vm8 = vmmov %vm17976_vm2 }
 0x36b   : > { %v4945_v1 = vadd.f32 %v4944_v63, %v4905_v41  ;;  %v4906_v58 = vsel %vm4842_vm10, %v4736_v34, 0.0  ;;  %v4491_v54 = vadd.f32 %v4490_v16, %v4415_v43  ;;  %v17981_v63 = vld [vmem:[#allocation86_spill] sm:$0xff]  ;;  %vm17983_vm10 = vmmov %vm17976_vm2  ;;  %v17984_v43 = vld [vmem:[#allocation87_spill] sm:$0xff] }
 0x36c   : > { %9459 = vmatmul.mubr.msk.f32.gmra.mrb[88].mxu0 %vm17976_vm2, %v9879_v8  ;;  %v4982_v49 = vadd.f32 %v4981_v37, %v4906_v58  ;;  %v4249_v9 = vpop.f32.mrb[240].mxu0  ;;  %vm4354_vm7 = vcmp.eq.s32.totalorder %v17981_v63, %v14044_v25  ;;  %vm4845_vm13 = vcmp.eq.s32.totalorder %v17981_v63, %v14079_v21  ;;  %vm4355_vm5 = vcmp.eq.s32.totalorder %v17981_v63, %v14048_v26 }
 0x36d   : > { %9495 = vmatmul.mubr.msk.f32.gmra.mrb[88].mxu1 %vm17977_vm3, %v9879_v8  ;;  %6139 = vmatprep.mubr.f32.mxu0 %v17481_v45  ;;  %v4740_v42 = vpop.f32.mrb[240].mxu1  ;;  %v4416_v3 = vsel %vm4352_vm1, %v4249_v9, 0.0  ;;  %v4251_v52 = vpop.f32.mrb[241].mxu0  ;;  %vm4846_vm0 = vcmp.eq.s32.totalorder %v17981_v63, %v14083_v0  ;;  %vm4356_vm2 = vcmp.eq.s32.totalorder %v17984_v43, %v14044_v25  ;;  %vm4847_vm3 = vcmp.eq.s32.totalorder %v17984_v43, %v14079_v21 }
 0x36e   : > { %6630 = vmatprep.mubr.f32.mxu1 %v17481_v45  ;;  %v4907_v57 = vsel %vm4843_vm9, %v4740_v42, 0.0  ;;  %v4742_v38 = vpop.f32.mrb[241].mxu1  ;;  %v4455_v2 = vadd.f32 %v4454_v5, %v4416_v3  ;;  %v4417_v16 = vsel %vm4353_vm12, %v4251_v52, 0.0  ;;  %vm4357_vm1 = vcmp.eq.s32.totalorder %v17984_v43, %v14048_v26  ;;  %vm17985_vm12 = vmmov %vm17982_vm8 }
 0x36f   : > { %v4946_v48 = vadd.f32 %v4945_v1, %v4907_v57  ;;  %v4908_v37 = vsel %vm4844_vm4, %v4742_v38, 0.0  ;;  %v4492_v55 = vadd.f32 %v4491_v54, %v4417_v16  ;;  %v9881_v1 = vld [vmem:[%s17165_s3 + $0x70] sm:$0xff]  ;;  %vm4848_vm9 = vcmp.eq.s32.totalorder %v17984_v43, %v14083_v0  ;;  %v9882_v16 = vld [vmem:[%s17165_s3 + $0x78] sm:$0xff]  ;;  %vm17986_vm4 = vmmov %vm17982_vm8 }
 0x370   : > { %9460 = vmatmul.mubr.msk.f32.gmra.mrb[90].mxu0 %vm17979_vm11, %v9880_v31  ;;  %v4983_v46 = vadd.f32 %v4982_v49, %v4908_v37  ;;  %v4255_v10 = vpop.f32.mrb[242].mxu0  ;;  %v17987_v37 = vld [vmem:[#allocation88_spill] sm:$0xff] }
 0x371   : > { %9496 = vmatmul.mubr.msk.f32.gmra.mrb[90].mxu1 %vm17980_vm15, %v9880_v31  ;;  %6145 = vmatprep.mubr.f32.mxu0 %v17481_v45  ;;  %v4746_v41 = vpop.f32.mrb[242].mxu1  ;;  %v4418_v50 = vsel %vm4354_vm7, %v4255_v10, 0.0  ;;  %v4257_v8 = vpop.f32.mrb[243].mxu0  ;;  %vm4358_vm11 = vcmp.eq.s32.totalorder %v17987_v37, %v14044_v25  ;;  %vm4849_vm15 = vcmp.eq.s32.totalorder %v17987_v37, %v14079_v21  ;;  %vm4359_vm7 = vcmp.eq.s32.totalorder %v17987_v37, %v14048_v26 }
 0x372   : > { %6636 = vmatprep.mubr.f32.mxu1 %v17481_v45  ;;  %v4909_v34 = vsel %vm4845_vm13, %v4746_v41, 0.0  ;;  %v4748_v5 = vpop.f32.mrb[243].mxu1  ;;  %v4456_v58 = vadd.f32 %v4455_v2, %v4418_v50  ;;  %v4419_v49 = vsel %vm4355_vm5, %v4257_v8, 0.0  ;;  %vm4850_vm13 = vcmp.eq.s32.totalorder %v17987_v37, %v14083_v0  ;;  %vm17988_vm5 = vmmov %vm17986_vm4 }
 0x373   : > { %v4947_v54 = vadd.f32 %v4946_v48, %v4909_v34  ;;  %v4910_v9 = vsel %vm4846_vm0, %v4748_v5, 0.0  ;;  %v4493_v42 = vadd.f32 %v4492_v55, %v4419_v49  ;;  %vm17989_vm0 = vmmov %vm17986_vm4 }
 0x374   : > { %9461 = vmatmul.mubr.msk.f32.gmra.mrb[92].mxu0 %vm17982_vm8, %v9881_v1  ;;  %v4984_v3 = vadd.f32 %v4983_v46, %v4910_v9  ;;  %v4261_v57 = vpop.f32.mrb[244].mxu0  ;;  %v9883_v9 = vld [vmem:[%s17165_s3 + $0x80] sm:$0xff] }
 0x375   : > { %9497 = vmatmul.mubr.msk.f32.gmra.mrb[92].mxu1 %vm17983_vm10, %v9881_v1  ;;  %6151 = vmatprep.mubr.f32.mxu0 %v17481_v45  ;;  %v4752_v52 = vpop.f32.mrb[244].mxu1  ;;  %v4420_v38 = vsel %vm4356_vm2, %v4261_v57, 0.0  ;;  %v4263_v2 = vpop.f32.mrb[245].mxu0 }
 0x376   : > { %6642 = vmatprep.mubr.f32.mxu1 %v17481_v45  ;;  %v4911_v31 = vsel %vm4847_vm3, %v4752_v52, 0.0  ;;  %v4754_v48 = vpop.f32.mrb[245].mxu1  ;;  %v4457_v55 = vadd.f32 %v4456_v58, %v4420_v38  ;;  %v4421_v10 = vsel %vm4357_vm1, %v4263_v2, 0.0  ;;  %vm17995_vm1 = vmmov %vm17989_vm0 }
 0x377   : > { %v4948_v46 = vadd.f32 %v4947_v54, %v4911_v31  ;;  %v4912_v41 = vsel %vm4848_vm9, %v4754_v48, 0.0  ;;  %v4494_v50 = vadd.f32 %v4493_v42, %v4421_v10  ;;  %v17990_v42 = vld [vmem:[#allocation89_spill] sm:$0xff]  ;;  %v17991_v48 = vld [vmem:[#allocation14_spill] sm:$0xff]  ;;  %vm17996_vm9 = vmmov %vm17989_vm0 }
 0x378   : > { %9462 = vmatmul.mubr.msk.f32.gmra.mrb[94].mxu0 %vm17985_vm12, %v9882_v16  ;;  %v4985_v34 = vadd.f32 %v4984_v3, %v4912_v41  ;;  %v4267_v8 = vpop.f32.mrb[246].mxu0  ;;  %vm4360_vm8 = vcmp.eq.s32.totalorder %v17990_v42, %v14044_v25  ;;  %vm4851_vm10 = vcmp.eq.s32.totalorder %v17990_v42, %v14079_v21  ;;  %vm4361_vm2 = vcmp.eq.s32.totalorder %v17990_v42, %v14048_v26  ;;  %v17993_v10 = vld [vmem:[#allocation26_spill] sm:$0xff] }
 0x379   : > { %9498 = vmatmul.mubr.msk.f32.gmra.mrb[94].mxu1 %vm17986_vm4, %v9882_v16  ;;  %6157 = vmatprep.mubr.f32.mxu0 %v17481_v45  ;;  %v4758_v5 = vpop.f32.mrb[246].mxu1  ;;  %v4422_v1 = vsel %vm4358_vm11, %v4267_v8, 0.0  ;;  %v4269_v58 = vpop.f32.mrb[247].mxu0  ;;  %vm4852_vm3 = vcmp.eq.s32.totalorder %v17990_v42, %v14083_v0  ;;  %v14736_v16 = vand.u32 255, %v17991_v48 }
 0x37a   : > { %6648 = vmatprep.mubr.f32.mxu1 %v17481_v45  ;;  %v4913_v49 = vsel %vm4849_vm15, %v4758_v5, 0.0  ;;  %v4760_v54 = vpop.f32.mrb[247].mxu1  ;;  %v4458_v3 = vadd.f32 %v4457_v55, %v4422_v1  ;;  %v4423_v52 = vsel %vm4359_vm7, %v4269_v58, 0.0  ;;  %v14739_v55 = vand.u32 255, %v17993_v10  ;;  %v9884_v1 = vld [vmem:[%s17165_s3 + $0x88] sm:$0xff]  ;;  %vm17999_vm7 = vmmov %vm17989_vm0 }
 0x37b   : > { %v4949_v57 = vadd.f32 %v4948_v46, %v4913_v49  ;;  %v4914_v38 = vsel %vm4850_vm13, %v4760_v54, 0.0  ;;  %v4495_v31 = vadd.f32 %v4494_v50, %v4423_v52  ;;  %17992 = vst [vmem:[#allocation28_spill] sm:$0xff] %v14736_v16  ;;  %v17997_v49 = vld [vmem:[#allocation90_spill] sm:$0xff]  ;;  %vm18000_vm13 = vmmov %vm17989_vm0 }
 0x37c   : > { %9463 = vmatmul.mubr.msk.f32.gmra.mrb[96].mxu0 %vm17988_vm5, %v9883_v9  ;;  %v4986_v2 = vadd.f32 %v4985_v34, %v4914_v38  ;;  %17994 = vst [vmem:[#allocation82_spill] sm:$0xff] %v14739_v55  ;;  %v4273_v46 = vpop.f32.mrb[248].mxu0  ;;  %vm4362_vm12 = vcmp.eq.s32.totalorder %v17997_v49, %v14044_v25  ;;  %vm4853_vm4 = vcmp.eq.s32.totalorder %v17997_v49, %v14079_v21 }
 0x37d   : > { %9499 = vmatmul.mubr.msk.f32.gmra.mrb[96].mxu1 %vm17989_vm0, %v9883_v9  ;;  %6163 = vmatprep.mubr.f32.mxu0 %v17481_v45  ;;  %v4764_v41 = vpop.f32.mrb[248].mxu1  ;;  %v4424_v8 = vsel %vm4360_vm8, %v4273_v46, 0.0  ;;  %v4275_v34 = vpop.f32.mrb[249].mxu0  ;;  %vm4363_vm11 = vcmp.eq.s32.totalorder %v17997_v49, %v14048_v26  ;;  %vm4854_vm15 = vcmp.eq.s32.totalorder %v17997_v49, %v14083_v0 }
 0x37e   : > { %6654 = vmatprep.mubr.f32.mxu1 %v17481_v45  ;;  %v4915_v50 = vsel %vm4851_vm10, %v4764_v41, 0.0  ;;  %v4766_v5 = vpop.f32.mrb[249].mxu1  ;;  %v4459_v58 = vadd.f32 %v4458_v3, %v4424_v8  ;;  %v4425_v9 = vsel %vm4361_vm2, %v4275_v34, 0.0  ;;  %v17998_v3 = vld [vmem:[#allocation11_spill] sm:$0xff] }
 0x37f   : > { %v4950_v54 = vadd.f32 %v4949_v57, %v4915_v50  ;;  %v4916_v52 = vsel %vm4852_vm3, %v4766_v5, 0.0  ;;  %v4496_v38 = vadd.f32 %v4495_v31, %v4425_v9  ;;  %v14770_v57 = vrot.slane %v14736_v16, %v17998_v3  ;;  %v9885_v34 = vld [vmem:[%s17165_s3 + $0x90] sm:$0xff] }
 0x380   : > { %9464 = vmatmul.mubr.msk.f32.gmra.mrb[98].mxu0 %vm17995_vm1, %v9884_v1  ;;  %v4987_v48 = vadd.f32 %v4986_v2, %v4916_v52  ;;  %v14774_v10 = vrot.slane %v14739_v55, %v17998_v3  ;;  %v4279_v46 = vpop.f32.mrb[250].mxu0  ;;  %v18001_v5 = vld [vmem:[#allocation91_spill] sm:$0xff] }
 0x381   : > { %9500 = vmatmul.mubr.msk.f32.gmra.mrb[98].mxu1 %vm17996_vm9, %v9884_v1  ;;  %6169 = vmatprep.mubr.f32.mxu0 %v17481_v45  ;;  %v4770_v41 = vpop.f32.mrb[250].mxu1  ;;  %v4426_v31 = vsel %vm4362_vm12, %v4279_v46, 0.0  ;;  %v4281_v8 = vpop.f32.mrb[251].mxu0  ;;  %vm4364_vm5 = vcmp.eq.s32.totalorder %v18001_v5, %v14044_v25  ;;  %vm4855_vm0 = vcmp.eq.s32.totalorder %v18001_v5, %v14079_v21  ;;  %vm4365_vm8 = vcmp.eq.s32.totalorder %v18001_v5, %v14048_v26  ;;  %vm18004_vm9 = vmmov %vm17995_vm1 }
 0x382   : > { %6660 = vmatprep.mubr.f32.mxu1 %v17481_v45  ;;  %v4917_v2 = vsel %vm4853_vm4, %v4770_v41, 0.0  ;;  %v4772_v50 = vpop.f32.mrb[251].mxu1  ;;  %v4460_v1 = vadd.f32 %v4459_v58, %v4426_v31  ;;  %v4427_v52 = vsel %vm4363_vm11, %v4281_v8, 0.0  ;;  %vm4856_vm10 = vcmp.eq.s32.totalorder %v18001_v5, %v14083_v0  ;;  %v18002_v58 = vld [vmem:[#allocation10_spill] sm:$0xff] }
 0x383   : > { %v4951_v9 = vadd.f32 %v4950_v54, %v4917_v2  ;;  %v4918_v3 = vsel %vm4854_vm15, %v4772_v50, 0.0  ;;  %v4497_v46 = vadd.f32 %v4496_v38, %v4427_v52  ;;  %v14805_v54 = vrot.slane %v14736_v16, %v18002_v58  ;;  %v18003_v50 = vld [vmem:[#allocation92_spill] sm:$0xff] }
 0x384   : > { %9465 = vmatmul.mubr.msk.f32.gmra.mrb[100].mxu0 %vm17999_vm7, %v9885_v34  ;;  %v4988_v41 = vadd.f32 %v4987_v48, %v4918_v3  ;;  %v14809_v31 = vrot.slane %v14739_v55, %v18002_v58  ;;  %v4285_v2 = vpop.f32.mrb[252].mxu0  ;;  %vm4366_vm2 = vcmp.eq.s32.totalorder %v18003_v50, %v14044_v25  ;;  %vm4857_vm3 = vcmp.eq.s32.totalorder %v18003_v50, %v14079_v21  ;;  %v9886_v3 = vld [vmem:[%s17165_s3 + $0x98] sm:$0xff] }
 0x385   : > { %9501 = vmatmul.mubr.msk.f32.gmra.mrb[100].mxu1 %vm18000_vm13, %v9885_v34  ;;  %6175 = vmatprep.mubr.f32.mxu0 %v17481_v45  ;;  %v4776_v8 = vpop.f32.mrb[252].mxu1  ;;  %v4428_v38 = vsel %vm4364_vm5, %v4285_v2, 0.0  ;;  %v4287_v34 = vpop.f32.mrb[253].mxu0  ;;  %vm4367_vm12 = vcmp.eq.s32.totalorder %v18003_v50, %v14048_v26  ;;  %vm4858_vm4 = vcmp.eq.s32.totalorder %v18003_v50, %v14083_v0  ;;  %vm5286_vm11 = vcmp.eq.s32.totalorder %v10167_v7, %v14774_v10 }
 0x386   : > { %6666 = vmatprep.mubr.f32.mxu1 %v17481_v45  ;;  %v4919_v48 = vsel %vm4855_vm0, %v4776_v8, 0.0  ;;  %v4778_v52 = vpop.f32.mrb[253].mxu1  ;;  %v4461_v58 = vadd.f32 %v4460_v1, %v4428_v38  ;;  %v4429_v8 = vsel %vm4365_vm8, %v4287_v34, 0.0  ;;  %vm5287_vm15 = vcmp.eq.s32.totalorder %v10167_v7, %v14770_v57  ;;  %v18005_v38 = vld [vmem:[#allocation59_spill] sm:$0xff]  ;;  %v9887_v34 = vld [vmem:[%s17165_s3 + $0xa0] sm:$0xff]  ;;  %vm18006_vm8 = vmmov %vm17995_vm1 }
 0x387   : > { %v4952_v2 = vadd.f32 %v4951_v9, %v4919_v48  ;;  %v4920_v35 = vsel %vm4856_vm10, %v4778_v52, 0.0  ;;  %vm5771_vm7 = vcmp.eq.s32.totalorder %v10167_v7, %v14809_v31  ;;  %vm5772_vm13 = vcmp.eq.s32.totalorder %v10167_v7, %v14805_v54  ;;  %vm18007_vm10 = vmmov %vm17995_vm1 }
 0x388   : > { %9466 = vmatmul.mubr.msk.f32.gmra.mrb[102].mxu0 %vm17995_vm1, %v9886_v3  ;;  %v4989_v29 = vadd.f32 %v4988_v41, %v4920_v35  ;;  %v4291_v1 = vpop.f32.mrb[254].mxu0  ;;  %vm5288_vm5 = vcmp.eq.s32.totalorder %v18005_v38, %v14774_v10  ;;  %vm5773_vm0 = vcmp.eq.s32.totalorder %v18005_v38, %v14809_v31  ;;  %vm5289_vm1 = vcmp.eq.s32.totalorder %v18005_v38, %v14770_v57 }
 0x389   : > { %9502 = vmatmul.mubr.msk.f32.gmra.mrb[102].mxu1 %vm18004_vm9, %v9886_v3  ;;  %6181 = vmatprep.mubr.f32.mxu0 %v17481_v45  ;;  %v4498_v3 = vadd.f32 %v4497_v46, %v4429_v8  ;;  %v4782_v9 = vpop.f32.mrb[254].mxu1  ;;  %v4430_v35 = vsel %vm4366_vm2, %v4291_v1, 0.0  ;;  %v4293_v41 = vpop.f32.mrb[255].mxu0  ;;  %vm5774_vm2 = vcmp.eq.s32.totalorder %v18005_v38, %v14805_v54  ;;  %vm5775_vm9 = vcmp.eq.s32.totalorder %v17718_v33, %v14809_v31 }
 0x38a   : > { %6672 = vmatprep.mubr.f32.mxu1 %v17481_v45  ;;  %v4921_v46 = vsel %vm4857_vm3, %v4782_v9, 0.0  ;;  %v4784_v48 = vpop.f32.mrb[255].mxu1  ;;  %v4462_v25 = vadd.f32 %v4461_v58, %v4430_v35  ;;  %v4431_v21 = vsel %vm4367_vm12, %v4293_v41, 0.0  ;;  %vm5290_vm3 = vcmp.eq.s32.totalorder %v17718_v33, %v14774_v10  ;;  %v9888_v41 = vld [vmem:[%s17165_s3 + $0xa8] sm:$0xff] }
 0x38b   : > { %v4953_v52 = vadd.f32 %v4952_v2, %v4921_v46  ;;  %v4922_v8 = vsel %vm4858_vm4, %v4784_v48, 0.0  ;;  %v4499_v1 = vadd.f32 %v4498_v3, %v4431_v21  ;;  %vm5291_vm12 = vcmp.eq.s32.totalorder %v17718_v33, %v14770_v57 }
 0x38c   : > { %9467 = vmatmul.mubr.msk.f32.gmra.mrb[104].mxu0 %vm18006_vm8, %v9887_v34  ;;  %v4990_v9 = vadd.f32 %v4989_v29, %v4922_v8  ;;  %v4463_v58 = vrot.slane %v4462_v25, 4  ;;  %v5087_v26 = vpop.f32.mrb[0].mxu0  ;;  %vm5776_vm4 = vcmp.eq.s32.totalorder %v17718_v33, %v14805_v54 }
 0x38d   : > { %9503 = vmatmul.mubr.msk.f32.gmra.mrb[104].mxu1 %vm18007_vm10, %v9887_v34  ;;  %6187 = vmatprep.mubr.f32.mxu0 %v17481_v45  ;;  %v4954_v2 = vrot.slane %v4953_v52, 4  ;;  %v5572_v35 = vpop.f32.mrb[0].mxu1  ;;  %v4500_v0 = vrot.slane %v4499_v1, 4  ;;  %v5350_v29 = vsel %vm5286_vm11, %v5087_v26, 0.0  ;;  %v5089_v3 = vpop.f32.mrb[1].mxu0  ;;  %vm18008_vm10 = vmmov %vm18006_vm8  ;;  %vm5292_vm11 = vcmp.eq.s32.totalorder %v17725_v40, %v14774_v10 }
 0x38e   : > { %6678 = vmatprep.mubr.f32.mxu1 %v17481_v45  ;;  %v4991_v46 = vrot.slane %v4990_v9, 4  ;;  %v5835_v48 = vsel %vm5771_vm7, %v5572_v35, 0.0  ;;  %v5574_v34 = vpop.f32.mrb[1].mxu1  ;;  %v4464_v21 = vadd.f32 %v4463_v58, %v4462_v25  ;;  %v5351_v26 = vsel %vm5287_vm15, %v5089_v3, 0.0 }
 0x38f   : > { %v4955_v8 = vadd.f32 %v4954_v2, %v4953_v52  ;;  %v5836_v50 = vsel %vm5772_vm13, %v5574_v34, 0.0  ;;  %vm5777_vm7 = vcmp.eq.s32.totalorder %v17725_v40, %v14809_v31  ;;  %vm5293_vm15 = vcmp.eq.s32.totalorder %v17725_v40, %v14770_v57  ;;  %v9889_v34 = vld [vmem:[%s17165_s3 + $0xb0] sm:$0xff] }
 0x390   : > { %9468 = vmatmul.mubr.msk.f32.gmra.mrb[106].mxu0 %vm18006_vm8, %v9888_v41  ;;  %v4992_v5 = vadd.f32 %v4991_v46, %v4990_v9  ;;  %v4465_v25 = vrot.slane %v4464_v21, 2  ;;  %v5093_v58 = vpop.f32.mrb[2].mxu0  ;;  %vm5778_vm13 = vcmp.eq.s32.totalorder %v17725_v40, %v14805_v54 }
 0x391   : > { %9504 = vmatmul.mubr.msk.f32.gmra.mrb[106].mxu1 %vm18008_vm10, %v9888_v41  ;;  %6193 = vmatprep.mubr.f32.mxu0 %v17481_v45  ;;  %v4501_v41 = vadd.f32 %v4500_v0, %v4499_v1  ;;  %v4956_v52 = vrot.slane %v4955_v8, 2  ;;  %v5578_v2 = vpop.f32.mrb[2].mxu1  ;;  %v5352_v1 = vsel %vm5288_vm5, %v5093_v58, 0.0  ;;  %v5095_v0 = vpop.f32.mrb[3].mxu0  ;;  %vm18009_vm10 = vmmov %vm18006_vm8  ;;  %vm5294_vm5 = vcmp.eq.s32.totalorder %v17728_v59, %v14774_v10 }
 0x392   : > { %6684 = vmatprep.mubr.f32.mxu1 %v17481_v45  ;;  %v4993_v3 = vrot.slane %v4992_v5, 2  ;;  %v5837_v9 = vsel %vm5773_vm0, %v5578_v2, 0.0  ;;  %v5580_v46 = vpop.f32.mrb[3].mxu1  ;;  %v4466_v49 = vadd.f32 %v4465_v25, %v4464_v21  ;;  %v5414_v55 = vadd.f32 %v5352_v1, %v5350_v29 }
 0x393   : > { %v4502_v35 = vrot.slane %v4501_v41, 2  ;;  %v4957_v42 = vadd.f32 %v4956_v52, %v4955_v8  ;;  %v5899_v37 = vadd.f32 %v5837_v9, %v5835_v48  ;;  %vm5779_vm0 = vcmp.eq.s32.totalorder %v17728_v59, %v14809_v31 }
 0x394   : > { %9469 = vmatmul.mubr.msk.f32.gmra.mrb[108].mxu0 %vm18006_vm8, %v9889_v34  ;;  %v4994_v2 = vadd.f32 %v4993_v3, %v4992_v5  ;;  %v5353_v16 = vsel %vm5289_vm1, %v5095_v0, 0.0  ;;  %v5838_v21 = vsel %vm5774_vm2, %v5580_v46, 0.0  ;;  %vm5295_vm8 = vcmp.eq.s32.totalorder %v17728_v59, %v14770_v57  ;;  %v9890_v46 = vld [vmem:[%s17165_s3 + $0xb8] sm:$0xff] }
 0x395   : > { %9505 = vmatmul.mubr.msk.f32.gmra.mrb[108].mxu1 %vm18009_vm10, %v9889_v34  ;;  %6199 = vmatprep.mubr.f32.mxu0 %v17481_v45  ;;  %v4503_v58 = vadd.f32 %v4502_v35, %v4501_v41  ;;  %vm5780_vm10 = vcmp.eq.s32.totalorder %v17728_v59, %v14805_v54  ;;  %v4467_v29 = vrot.slane %v4466_v49, 1  ;;  %v4958_v48 = vrot.slane %v4957_v42, 1  ;;  %v5099_v41 = vpop.f32.mrb[4].mxu0  ;;  %v5584_v25 = vpop.f32.mrb[4].mxu1 }
 0x396   : > { %6690 = vmatprep.mubr.f32.mxu1 %v17481_v45  ;;  %v5451_v8 = vadd.f32 %v5353_v16, %v5351_v26  ;;  %v5936_v5 = vadd.f32 %v5838_v21, %v5836_v50  ;;  %v4995_v35 = vrot.slane %v4994_v2, 1  ;;  %v5354_v3 = vsel %vm5290_vm3, %v5099_v41, 0.0  ;;  %v5101_v9 = vpop.f32.mrb[5].mxu0  ;;  %v5586_v0 = vpop.f32.mrb[5].mxu1 }
 0x397   : > { %v4504_v52 = vrot.slane %v4503_v58, 1  ;;  %v5839_v1 = vsel %vm5775_vm9, %v5584_v25, 0.0  ;;  %vm18010_vm1 = vcmask 64512   ;;  %v4468_v16 = vadd.f32 %v4467_v29, %v4466_v49 }
 0x398   : > { %9470 = vmatmul.mubr.msk.f32.gmra.mrb[110].mxu0 %vm18010_vm1, %v9890_v46  ;;  %vm18011_vm2 = vmmov %vm18010_vm1  ;;  %v4959_v50 = vadd.f32 %v4958_v48, %v4957_v42  ;;  %v5415_v26 = vadd.f32 %v5414_v55, %v5354_v3  ;;  %v5900_v34 = vadd.f32 %v5899_v37, %v5839_v1  ;;  %vm5296_vm3 = vcmp.eq.s32.totalorder %v17731_v19, %v14774_v10  ;;  %v5105_v29 = vpop.f32.mrb[6].mxu0 }
 0x399   : > { %9506 = vmatmul.mubr.msk.f32.gmra.mrb[110].mxu1 %vm18011_vm2, %v9890_v46  ;;  %6205 = vmatprep.mubr.f32.mxu0 %v17481_v45  ;;  %v4505_v21 = vadd.f32 %v4504_v52, %v4503_v58  ;;  %v4996_v41 = vadd.f32 %v4995_v35, %v4994_v2  ;;  %v5355_v25 = vsel %vm5291_vm12, %v5101_v9, 0.0  ;;  %v5840_v38 = vsel %vm5776_vm4, %v5586_v0, 0.0  ;;  %v5590_v48 = vpop.f32.mrb[6].mxu1  ;;  %v5107_v3 = vpop.f32.mrb[7].mxu0  ;;  %vm18012_vm9 = vmmov %vm18010_vm1 }
 0x39a   : > { %6696 = vmatprep.mubr.f32.mxu1 %v17481_v45  ;;  %v4506_v42 = vmul.f32 %v4468_v16, %v12519_v20  ;;  %v4997_v37 = vmul.f32 %v4959_v50, %v12519_v20  ;;  %v5452_v55 = vadd.f32 %v5451_v8, %v5355_v25  ;;  %v5937_v49 = vadd.f32 %v5936_v5, %v5840_v38  ;;  %v5592_v1 = vpop.f32.mrb[7].mxu1  ;;  %v9891_v20 = vld [vmem:[%s17165_s3 + $0xc0] sm:$0xff]  ;;  %vm18013_vm12 = vmmov %vm18010_vm1 }
 0x39b   : > { %v4507_v58 = vmul.f32 %v4505_v21, %v12524_v28  ;;  %v4998_v2 = vmul.f32 %v4996_v41, %v12524_v28  ;;  %v5356_v52 = vsel %vm5292_vm11, %v5105_v29, 0.0  ;;  %v5841_v35 = vsel %vm5777_vm7, %v5590_v48, 0.0  ;;  %vm18014_vm7 = vmmov %vm18010_vm1 }
 0x39c   : > { %9471 = vmatmul.mubr.msk.f32.gmra.mrb[112].mxu0 %vm18012_vm9, %v9891_v20  ;;  %v4510_v38 = vrot.slane %v4506_v42, 6  ;;  %v5416_v28 = vadd.f32 %v5415_v26, %v5356_v52  ;;  %v5901_v8 = vadd.f32 %v5900_v34, %v5841_v35  ;;  %vm5781_vm4 = vcmp.eq.s32.totalorder %v17731_v19, %v14809_v31  ;;  %v5111_v34 = vpop.f32.mrb[8].mxu0 }
 0x39d   : > { %9507 = vmatmul.mubr.msk.f32.gmra.mrb[112].mxu1 %vm18013_vm12, %v9891_v20  ;;  %6211 = vmatprep.mubr.f32.mxu0 %v17481_v45  ;;  %v4511_v5 = vrot.slane %v4507_v58, 6  ;;  %v5357_v9 = vsel %vm5293_vm15, %v5107_v3, 0.0  ;;  %v5842_v0 = vsel %vm5778_vm13, %v5592_v1, 0.0  ;;  %vm5297_vm11 = vcmp.eq.s32.totalorder %v17731_v19, %v14770_v57  ;;  %v5596_v21 = vpop.f32.mrb[8].mxu1  ;;  %v5113_v48 = vpop.f32.mrb[9].mxu0  ;;  %vm18015_vm15 = vmmov %vm18010_vm1 }
 0x39e   : > { %6702 = vmatprep.mubr.f32.mxu1 %v17481_v45  ;;  %v4514_v46 = vadd.f32 %v4510_v38, %v14270_v15  ;;  %v5001_v16 = vrot.slane %v4997_v37, 7  ;;  %v5453_v50 = vadd.f32 %v5452_v55, %v5357_v9  ;;  %v5938_v26 = vadd.f32 %v5937_v49, %v5842_v0  ;;  %v5598_v58 = vpop.f32.mrb[9].mxu1  ;;  %v9892_v15 = vld [vmem:[%s17165_s3 + $0xc8] sm:$0xff]  ;;  %v9893_v9 = vld [vmem:[%s17165_s3 + $0xd0] sm:$0xff] }
 0x39f   : > { %v4515_v41 = vadd.f32 %v4511_v5, %v14277_v53  ;;  %v5002_v25 = vrot.slane %v4998_v2, 7  ;;  %v5358_v42 = vsel %vm5294_vm5, %v5111_v34, 0.0  ;;  %v5843_v29 = vsel %vm5779_vm0, %v5596_v21, 0.0  ;;  %vm18016_vm5 = vmmov %vm18010_vm1 }
 0x3a0   : > { %9472 = vmatmul.mubr.msk.f32.gmra.mrb[114].mxu0 %vm18014_vm7, %v9892_v15  ;;  %v5417_v53 = vadd.f32 %v5416_v28, %v5358_v42  ;;  %v5902_v37 = vadd.f32 %v5901_v8, %v5843_v29  ;;  %v5359_v55 = vsel %vm5295_vm8, %v5113_v48, 0.0  ;;  %v5844_v49 = vsel %vm5780_vm10, %v5598_v58, 0.0  ;;  %v5117_v3 = vpop.f32.mrb[10].mxu0  ;;  %vm18017_vm0 = vmmov %vm18010_vm1  ;;  %v9894_v58 = vld [vmem:[%s17165_s3 + $0xd8] sm:$0xff] }
 0x3a1   : > { %9508 = vmatmul.mubr.msk.f32.gmra.mrb[114].mxu1 %vm18015_vm15, %v9892_v15  ;;  %6217 = vmatprep.mubr.f32.mxu0 %v17481_v45  ;;  %v5454_v2 = vadd.f32 %v5453_v50, %v5359_v55  ;;  %v5939_v52 = vadd.f32 %v5938_v26, %v5844_v49  ;;  %vm5782_vm13 = vcmp.eq.s32.totalorder %v17731_v19, %v14805_v54  ;;  %v5602_v1 = vpop.f32.mrb[10].mxu1  ;;  %v5360_v38 = vsel %vm5296_vm3, %v5117_v3, 0.0  ;;  %v5119_v8 = vpop.f32.mrb[11].mxu0  ;;  %vm18018_vm3 = vmmov %vm18017_vm0 }
 0x3a2   : > { %6708 = vmatprep.mubr.f32.mxu1 %v17481_v45  ;;  %v15006_v35 = vadd.f32 %v5001_v16, %v4514_v46  ;;  %v15008_v20 = vadd.f32 %v5002_v25, %v4515_v41  ;;  %v5845_v28 = vsel %vm5781_vm4, %v5602_v1, 0.0  ;;  %v5604_v5 = vpop.f32.mrb[11].mxu1  ;;  %vm5298_vm8 = vcmp.eq.s32.totalorder %v17766_v11, %v14774_v10  ;;  %vm18019_vm9 = vmmov %vm18017_vm0 }
 0x3a3   : > { %vm5783_vm10 = vcmp.eq.s32.totalorder %v17766_v11, %v14809_v31  ;;  %v5418_v0 = vadd.f32 %v5417_v53, %v5360_v38  ;;  %v5903_v46 = vadd.f32 %v5902_v37, %v5845_v28  ;;  %v5361_v16 = vsel %vm5297_vm11, %v5119_v8, 0.0  ;;  %vm18020_vm15 = vmmov %vm18017_vm0 }
 0x3a4   : > { %9473 = vmatmul.mubr.msk.f32.gmra.mrb[116].mxu0 %vm18016_vm5, %v9893_v9  ;;  %v5846_v50 = vsel %vm5782_vm13, %v5604_v5, 0.0  ;;  %v5455_v26 = vadd.f32 %v5454_v2, %v5361_v16  ;;  %vm5299_vm1 = vcmp.eq.s32.totalorder %v17766_v11, %v14770_v57  ;;  %vm5784_vm2 = vcmp.eq.s32.totalorder %v17766_v11, %v14805_v54  ;;  %v5123_v21 = vpop.f32.mrb[12].mxu0  ;;  %v9895_v5 = vld [vmem:[%s17165_s3 + $0xe0] sm:$0xff]  ;;  %vm18021_vm13 = vmmov %vm18017_vm0 }
 0x3a5   : > { %9509 = vmatmul.mubr.msk.f32.gmra.mrb[116].mxu1 %vm18017_vm0, %v9893_v9  ;;  %6223 = vmatprep.mubr.f32.mxu0 %v17481_v45  ;;  %v5940_v34 = vadd.f32 %v5939_v52, %v5846_v50  ;;  %v5608_v41 = vpop.f32.mrb[12].mxu1  ;;  %v5362_v25 = vsel %vm5298_vm8, %v5123_v21, 0.0  ;;  %v5125_v29 = vpop.f32.mrb[13].mxu0  ;;  %vm5300_vm12 = vcmp.eq.s32.totalorder %v17773_v61, %v14774_v10  ;;  %vm5785_vm4 = vcmp.eq.s32.totalorder %v17773_v61, %v14809_v31 }
 0x3a6   : > { %6714 = vmatprep.mubr.f32.mxu1 %v17481_v45  ;;  %v5847_v42 = vsel %vm5783_vm10, %v5608_v41, 0.0  ;;  %v5610_v48 = vpop.f32.mrb[13].mxu1  ;;  %v5419_v15 = vadd.f32 %v5418_v0, %v5362_v25  ;;  %v5363_v37 = vsel %vm5299_vm1, %v5125_v29, 0.0  ;;  %vm5301_vm11 = vcmp.eq.s32.totalorder %v17773_v61, %v14770_v57  ;;  %vm18022_vm1 = vmmov %vm18018_vm3 }
 0x3a7   : > { %v5904_v53 = vadd.f32 %v5903_v46, %v5847_v42  ;;  %v5848_v55 = vsel %vm5784_vm2, %v5610_v48, 0.0  ;;  %v5456_v49 = vadd.f32 %v5455_v26, %v5363_v37  ;;  %vm5786_vm7 = vcmp.eq.s32.totalorder %v17773_v61, %v14805_v54  ;;  %v9896_v48 = vld [vmem:[%s17165_s3 + $0xe8] sm:$0xff]  ;;  %vm18023_vm2 = vmmov %vm18022_vm1 }
 0x3a8   : > { %9474 = vmatmul.mubr.msk.f32.gmra.mrb[118].mxu0 %vm18018_vm3, %v9894_v58  ;;  %v5941_v2 = vadd.f32 %v5940_v34, %v5848_v55  ;;  %v5129_v52 = vpop.f32.mrb[14].mxu0  ;;  %vm5302_vm5 = vcmp.eq.s32.totalorder %v11294_v56, %v14774_v10  ;;  %vm5787_vm0 = vcmp.eq.s32.totalorder %v11294_v56, %v14809_v31  ;;  %vm5303_vm8 = vcmp.eq.s32.totalorder %v11294_v56, %v14770_v57 }
 0x3a9   : > { %9510 = vmatmul.mubr.msk.f32.gmra.mrb[118].mxu1 %vm18019_vm9, %v9894_v58  ;;  %6229 = vmatprep.mubr.f32.mxu0 %v17481_v45  ;;  %v5614_v3 = vpop.f32.mrb[14].mxu1  ;;  %v5364_v1 = vsel %vm5300_vm12, %v5129_v52, 0.0  ;;  %v5131_v28 = vpop.f32.mrb[15].mxu0  ;;  %vm5788_vm10 = vcmp.eq.s32.totalorder %v11294_v56, %v14805_v54  ;;  %vm5304_vm3 = vcmp.eq.s32.totalorder %v17779_v39, %v14774_v10  ;;  %vm5789_vm9 = vcmp.eq.s32.totalorder %v17779_v39, %v14809_v31 }
 0x3aa   : > { %6720 = vmatprep.mubr.f32.mxu1 %v17481_v45  ;;  %v5849_v38 = vsel %vm5785_vm4, %v5614_v3, 0.0  ;;  %v5616_v8 = vpop.f32.mrb[15].mxu1  ;;  %v5420_v9 = vadd.f32 %v5419_v15, %v5364_v1  ;;  %v5365_v46 = vsel %vm5301_vm11, %v5131_v28, 0.0  ;;  %vm5305_vm12 = vcmp.eq.s32.totalorder %v17779_v39, %v14770_v57 }
 0x3ab   : > { %v5905_v0 = vadd.f32 %v5904_v53, %v5849_v38  ;;  %v5850_v16 = vsel %vm5786_vm7, %v5616_v8, 0.0  ;;  %v5457_v50 = vadd.f32 %v5456_v49, %v5365_v46  ;;  %vm5790_vm4 = vcmp.eq.s32.totalorder %v17779_v39, %v14805_v54  ;;  %v9897_v8 = vld [vmem:[%s17165_s3 + $0xf0] sm:$0xff]  ;;  %vm18024_vm7 = vmmov %vm18022_vm1 }
 0x3ac   : > { %9475 = vmatmul.mubr.msk.f32.gmra.mrb[120].mxu0 %vm18020_vm15, %v9895_v5  ;;  %v5942_v26 = vadd.f32 %v5941_v2, %v5850_v16  ;;  %v5135_v34 = vpop.f32.mrb[16].mxu0  ;;  %vm5306_vm11 = vcmp.eq.s32.totalorder %v17782_v24, %v14774_v10  ;;  %vm18025_vm15 = vmmov %vm18022_vm1 }
 0x3ad   : > { %9511 = vmatmul.mubr.msk.f32.gmra.mrb[120].mxu1 %vm18021_vm13, %v9895_v5  ;;  %6235 = vmatprep.mubr.f32.mxu0 %v17481_v45  ;;  %v5620_v21 = vpop.f32.mrb[16].mxu1  ;;  %v5366_v41 = vsel %vm5302_vm5, %v5135_v34, 0.0  ;;  %v5137_v42 = vpop.f32.mrb[17].mxu0  ;;  %vm5791_vm13 = vcmp.eq.s32.totalorder %v17782_v24, %v14809_v31  ;;  %vm5307_vm5 = vcmp.eq.s32.totalorder %v17782_v24, %v14770_v57 }
 0x3ae   : > { %6726 = vmatprep.mubr.f32.mxu1 %v17481_v45  ;;  %v5851_v25 = vsel %vm5787_vm0, %v5620_v21, 0.0  ;;  %v5622_v29 = vpop.f32.mrb[17].mxu1  ;;  %v5421_v58 = vadd.f32 %v5420_v9, %v5366_v41  ;;  %v5367_v53 = vsel %vm5303_vm8, %v5137_v42, 0.0  ;;  %vm5792_vm0 = vcmp.eq.s32.totalorder %v17782_v24, %v14805_v54 }
 0x3af   : > { %v5906_v15 = vadd.f32 %v5905_v0, %v5851_v25  ;;  %v5852_v37 = vsel %vm5788_vm10, %v5622_v29, 0.0  ;;  %v5458_v55 = vadd.f32 %v5457_v50, %v5367_v53  ;;  %vm5308_vm8 = vcmp.eq.s32.totalorder %v17785_v44, %v14774_v10  ;;  %vm18026_vm10 = vmmov %vm18022_vm1 }
 0x3b0   : > { %9476 = vmatmul.mubr.msk.f32.gmra.mrb[122].mxu0 %vm18022_vm1, %v9896_v48  ;;  %v5943_v49 = vadd.f32 %v5942_v26, %v5852_v37  ;;  %v5141_v2 = vpop.f32.mrb[18].mxu0  ;;  %v7950_v26 = vrot.slane %v12923_v22, %v17915_v23  ;;  %v8441_v41 = vrot.slane %v12923_v22, %v17921_v18 }
 0x3b1   : > { %9512 = vmatmul.mubr.msk.f32.gmra.mrb[122].mxu1 %vm18023_vm2, %v9896_v48  ;;  %6241 = vmatprep.mubr.f32.mxu0 %v17481_v45  ;;  %v5626_v52 = vpop.f32.mrb[18].mxu1  ;;  %v5368_v3 = vsel %vm5304_vm3, %v5141_v2, 0.0  ;;  %v5143_v38 = vpop.f32.mrb[19].mxu0  ;;  %vm5793_vm2 = vcmp.eq.s32.totalorder %v17785_v44, %v14809_v31  ;;  %vm5309_vm3 = vcmp.eq.s32.totalorder %v17785_v44, %v14770_v57 }
 0x3b2   : > { %6732 = vmatprep.mubr.f32.mxu1 %v17481_v45  ;;  %v5853_v1 = vsel %vm5789_vm9, %v5626_v52, 0.0  ;;  %v5628_v28 = vpop.f32.mrb[19].mxu1  ;;  %v5422_v5 = vadd.f32 %v5421_v58, %v5368_v3  ;;  %v5369_v0 = vsel %vm5305_vm12, %v5143_v38, 0.0  ;;  %v9898_v58 = vld [vmem:[%s17165_s3 + $0xf8] sm:$0xff]  ;;  %vm5794_vm9 = vcmp.eq.s32.totalorder %v17785_v44, %v14805_v54 }
 0x3b3   : > { %v5907_v9 = vadd.f32 %v5906_v15, %v5853_v1  ;;  %v5854_v46 = vsel %vm5790_vm4, %v5628_v28, 0.0  ;;  %v5459_v16 = vadd.f32 %v5458_v55, %v5369_v0  ;;  %vm15135_vm12 = vcmp.eq.s32.totalorder %v10167_v7, %v7950_v26 }
 0x3b4   : > { %9477 = vmatmul.mubr.msk.f32.gmra.mrb[124].mxu0 %vm18024_vm7, %v9897_v8  ;;  %v5944_v50 = vadd.f32 %v5943_v49, %v5854_v46  ;;  %v5147_v34 = vpop.f32.mrb[20].mxu0  ;;  %vm5310_vm4 = vcmp.eq.s32.totalorder %v17790_v51, %v14774_v10  ;;  %vm18031_vm7 = vmmov %vm18022_vm1 }
 0x3b5   : > { %9513 = vmatmul.mubr.msk.f32.gmra.mrb[124].mxu1 %vm18025_vm15, %v9897_v8  ;;  %6247 = vmatprep.mubr.f32.mxu0 %v17481_v45  ;;  %v5632_v21 = vpop.f32.mrb[20].mxu1  ;;  %v5370_v25 = vsel %vm5306_vm11, %v5147_v34, 0.0  ;;  %v5149_v29 = vpop.f32.mrb[21].mxu0  ;;  %vm15142_vm11 = vcmp.eq.s32.totalorder %v10167_v7, %v8441_v41  ;;  %vm18032_vm15 = vmmov %vm18022_vm1 }
 0x3b6   : > { %6738 = vmatprep.mubr.f32.mxu1 %v17481_v45  ;;  %v5855_v42 = vsel %vm5791_vm13, %v5632_v21, 0.0  ;;  %v5634_v48 = vpop.f32.mrb[21].mxu1  ;;  %v5423_v22 = vadd.f32 %v5422_v5, %v5370_v25  ;;  %v5371_v53 = vsel %vm5307_vm5, %v5149_v29, 0.0  ;;  %vm5795_vm13 = vcmp.eq.s32.totalorder %v17790_v51, %v14809_v31 }
 0x3b7   : > { %v5908_v15 = vadd.f32 %v5907_v9, %v5855_v42  ;;  %v5856_v37 = vsel %vm5792_vm0, %v5634_v48, 0.0  ;;  %v5460_v55 = vadd.f32 %v5459_v16, %v5371_v53  ;;  %v9899_v9 = vld [vmem:[%s17165_s3] sm:$0xff]  ;;  %vm5311_vm5 = vcmp.eq.s32.totalorder %v17790_v51, %v14770_v57 }
 0x3b8   : > { %9478 = vmatmul.mubr.msk.f32.gmra.mrb[126].mxu0 %vm18026_vm10, %v9898_v58  ;;  %v5945_v49 = vadd.f32 %v5944_v50, %v5856_v37  ;;  %v5153_v52 = vpop.f32.mrb[22].mxu0  ;;  %vm5796_vm0 = vcmp.eq.s32.totalorder %v17790_v51, %v14805_v54  ;;  %vm18034_vm10 = vmmov %vm18022_vm1 }
 0x3b9   : > { %9514 = vmatmul.mubr.msk.f32.gmra.mrb[126].mxu1 %vm18022_vm1, %v9898_v58  ;;  %7043 = vmatprep.mubr.f32.mxu0 %v17481_v45  ;;  %v5638_v3 = vpop.f32.mrb[22].mxu1  ;;  %v5372_v38 = vsel %vm5308_vm8, %v5153_v52, 0.0  ;;  %v5155_v8 = vpop.f32.mrb[23].mxu0  ;;  %v9900_v58 = vld [vmem:[%s17165_s3 + $0x8] sm:$0xff]  ;;  %vm18033_vm8 = vmmov %vm18022_vm1  ;;  %vm5312_vm1 = vcmp.eq.s32.totalorder %v17797_v32, %v14774_v10 }
 0x3ba   : > { %7534 = vmatprep.mubr.f32.mxu1 %v17481_v45  ;;  %v5857_v28 = vsel %vm5793_vm2, %v5638_v3, 0.0  ;;  %v5640_v5 = vpop.f32.mrb[23].mxu1  ;;  %v5424_v0 = vadd.f32 %v5423_v22, %v5372_v38  ;;  %v5373_v16 = vsel %vm5309_vm3, %v5155_v8, 0.0  ;;  %vm5797_vm2 = vcmp.eq.s32.totalorder %v17797_v32, %v14809_v31 }
 0x3bb   : > { %v5909_v46 = vadd.f32 %v5908_v15, %v5857_v28  ;;  %v5858_v50 = vsel %vm5794_vm9, %v5640_v5, 0.0  ;;  %v5461_v26 = vadd.f32 %v5460_v55, %v5373_v16  ;;  %vm5313_vm3 = vcmp.eq.s32.totalorder %v17797_v32, %v14770_v57  ;;  %v9901_v28 = vld [vmem:[%s17165_s3 + $0x10] sm:$0xff] }
 0x3bc   : > { %9519 = vmatmul.mubr.msk.f32.vlgmr.msra.gmra.mrb[128].mxu0 %vm18031_vm7, %v9899_v9  ;;  %v5946_v34 = vadd.f32 %v5945_v49, %v5858_v50  ;;  %v5159_v21 = vpop.f32.mrb[24].mxu0  ;;  %vm5798_vm9 = vcmp.eq.s32.totalorder %v17797_v32, %v14805_v54 }
 0x3bd   : > { %9555 = vmatmul.mubr.msk.f32.vlgmr.msra.gmra.mrb[128].mxu1 %vm18032_vm15, %v9899_v9  ;;  %9590 = vmatpush1.msk.msra.mxu0 %vm15135_vm12, %v17478_v27  ;;  %v5644_v41 = vpop.f32.mrb[24].mxu1  ;;  %v5374_v25 = vsel %vm5310_vm4, %v5159_v21, 0.0  ;;  %v5161_v29 = vpop.f32.mrb[25].mxu0  ;;  %vm18035_vm12 = vmmov %vm18031_vm7  ;;  %vm5315_vm15 = vcmp.eq.s32.totalorder %v17800_v4, %v14770_v57 }
 0x3be   : > { %7049 = vmatprep.mubr.f32.mxu0 %v17481_v45  ;;  %7540 = vmatprep.mubr.f32.mxu1 %v17481_v45  ;;  %v5859_v42 = vsel %vm5795_vm13, %v5644_v41, 0.0  ;;  %v5646_v48 = vpop.f32.mrb[25].mxu1  ;;  %v5375_v15 = vsel %vm5311_vm5, %v5161_v29, 0.0  ;;  %vm18036_vm4 = vmmov %vm18031_vm7  ;;  %vm5799_vm7 = vcmp.eq.s32.totalorder %v17800_v4, %v14809_v31  ;;  %vm5800_vm13 = vcmp.eq.s32.totalorder %v17800_v4, %v14805_v54 }
 0x3bf   : > { %9626 = vmatpush1.msk.msra.mxu1 %vm15142_vm11, %v17478_v27  ;;  %v5425_v27 = vadd.f32 %v5424_v0, %v5374_v25  ;;  %v5910_v22 = vadd.f32 %v5909_v46, %v5859_v42  ;;  %v5860_v53 = vsel %vm5796_vm0, %v5646_v48, 0.0  ;;  %v5462_v37 = vadd.f32 %v5461_v26, %v5375_v15  ;;  %v9902_v42 = vld [vmem:[%s17165_s3 + $0x18] sm:$0xff]  ;;  %vm18037_vm5 = vmmov %vm18036_vm4 }
 0x3c0   : > { %9520 = vmatmul.mubr.msk.f32.gmra.mrb[130].mxu0 %vm18033_vm8, %v9900_v58  ;;  %v5947_v55 = vadd.f32 %v5946_v34, %v5860_v53  ;;  %v5165_v49 = vpop.f32.mrb[26].mxu0  ;;  %vm5314_vm11 = vcmp.eq.s32.totalorder %v17800_v4, %v14774_v10  ;;  %vm18038_vm0 = vmmov %vm18036_vm4  ;;  %vm5316_vm8 = vcmp.eq.s32.totalorder %v17803_v36, %v14774_v10 }
 0x3c1   : > { %9556 = vmatmul.mubr.msk.f32.gmra.mrb[130].mxu1 %vm18034_vm10, %v9900_v58  ;;  %7055 = vmatprep.mubr.f32.mxu0 %v17481_v45  ;;  %v5650_v2 = vpop.f32.mrb[26].mxu1  ;;  %v5376_v52 = vsel %vm5312_vm1, %v5165_v49, 0.0  ;;  %v5167_v1 = vpop.f32.mrb[27].mxu0  ;;  %vm5801_vm10 = vcmp.eq.s32.totalorder %v17803_v36, %v14809_v31  ;;  %vm5317_vm1 = vcmp.eq.s32.totalorder %v17803_v36, %v14770_v57 }
 0x3c2   : > { %7546 = vmatprep.mubr.f32.mxu1 %v17481_v45  ;;  %v5861_v3 = vsel %vm5797_vm2, %v5650_v2, 0.0  ;;  %v5652_v38 = vpop.f32.mrb[27].mxu1  ;;  %v5426_v8 = vadd.f32 %v5425_v27, %v5376_v52  ;;  %v5377_v9 = vsel %vm5313_vm3, %v5167_v1, 0.0  ;;  %vm5802_vm2 = vcmp.eq.s32.totalorder %v17803_v36, %v14805_v54  ;;  %vm18039_vm3 = vmmov %vm18038_vm0 }
 0x3c3   : > { %v5911_v5 = vadd.f32 %v5910_v22, %v5861_v3  ;;  %v5862_v0 = vsel %vm5798_vm9, %v5652_v38, 0.0  ;;  %v5463_v46 = vadd.f32 %v5462_v37, %v5377_v9  ;;  %v9903_v3 = vld [vmem:[%s17165_s3 + $0x20] sm:$0xff]  ;;  %vm18040_vm9 = vmmov %vm18038_vm0 }
 0x3c4   : > { %9521 = vmatmul.mubr.msk.f32.gmra.mrb[132].mxu0 %vm18035_vm12, %v9901_v28  ;;  %v5948_v16 = vadd.f32 %v5947_v55, %v5862_v0  ;;  %v5171_v50 = vpop.f32.mrb[28].mxu0  ;;  %vm5318_vm12 = vcmp.eq.s32.totalorder %v17806_v13, %v14774_v10 }
 0x3c5   : > { %9557 = vmatmul.mubr.msk.f32.gmra.mrb[132].mxu1 %vm18036_vm4, %v9901_v28  ;;  %7061 = vmatprep.mubr.f32.mxu0 %v17481_v45  ;;  %v5656_v26 = vpop.f32.mrb[28].mxu1  ;;  %v5378_v34 = vsel %vm5314_vm11, %v5171_v50, 0.0  ;;  %v5173_v41 = vpop.f32.mrb[29].mxu0  ;;  %vm5803_vm4 = vcmp.eq.s32.totalorder %v17806_v13, %v14809_v31  ;;  %vm5319_vm11 = vcmp.eq.s32.totalorder %v17806_v13, %v14770_v57 }
 0x3c6   : > { %7552 = vmatprep.mubr.f32.mxu1 %v17481_v45  ;;  %v5863_v21 = vsel %vm5799_vm7, %v5656_v26, 0.0  ;;  %v5658_v25 = vpop.f32.mrb[29].mxu1  ;;  %v5427_v29 = vadd.f32 %v5426_v8, %v5378_v34  ;;  %v5379_v58 = vsel %vm5315_vm15, %v5173_v41, 0.0  ;;  %vm5804_vm7 = vcmp.eq.s32.totalorder %v17806_v13, %v14805_v54  ;;  %vm18041_vm15 = vmmov %vm18038_vm0 }
 0x3c7   : > { %v5912_v48 = vadd.f32 %v5911_v5, %v5863_v21  ;;  %v5864_v27 = vsel %vm5800_vm13, %v5658_v25, 0.0  ;;  %v5464_v22 = vadd.f32 %v5463_v46, %v5379_v58  ;;  %v9904_v21 = vld [vmem:[%s17165_s3 + $0x28] sm:$0xff]  ;;  %vm18042_vm13 = vmmov %vm18038_vm0 }
 0x3c8   : > { %9522 = vmatmul.mubr.msk.f32.gmra.mrb[134].mxu0 %vm18037_vm5, %v9902_v42  ;;  %v5949_v15 = vadd.f32 %v5948_v16, %v5864_v27  ;;  %v5177_v53 = vpop.f32.mrb[30].mxu0  ;;  %vm5320_vm5 = vcmp.eq.s32.totalorder %v17809_v17, %v14774_v10 }
 0x3c9   : > { %9558 = vmatmul.mubr.msk.f32.gmra.mrb[134].mxu1 %vm18038_vm0, %v9902_v42  ;;  %7067 = vmatprep.mubr.f32.mxu0 %v17481_v45  ;;  %v5662_v37 = vpop.f32.mrb[30].mxu1  ;;  %v5380_v55 = vsel %vm5316_vm8, %v5177_v53, 0.0  ;;  %v5179_v2 = vpop.f32.mrb[31].mxu0  ;;  %vm5805_vm0 = vcmp.eq.s32.totalorder %v17809_v17, %v14809_v31  ;;  %vm5321_vm8 = vcmp.eq.s32.totalorder %v17809_v17, %v14770_v57 }
 0x3ca   : > { %7558 = vmatprep.mubr.f32.mxu1 %v17481_v45  ;;  %v5865_v49 = vsel %vm5801_vm10, %v5662_v37, 0.0  ;;  %v5664_v52 = vpop.f32.mrb[31].mxu1  ;;  %v5428_v1 = vadd.f32 %v5427_v29, %v5380_v55  ;;  %v5381_v28 = vsel %vm5317_vm1, %v5179_v2, 0.0  ;;  %vm5806_vm10 = vcmp.eq.s32.totalorder %v17809_v17, %v14805_v54  ;;  %vm18043_vm1 = vmmov %vm18039_vm3 }
 0x3cb   : > { %v5913_v38 = vadd.f32 %v5912_v48, %v5865_v49  ;;  %v5866_v8 = vsel %vm5802_vm2, %v5664_v52, 0.0  ;;  %v5465_v5 = vadd.f32 %v5464_v22, %v5381_v28  ;;  %v9905_v49 = vld [vmem:[%s17165_s3 + $0x30] sm:$0xff]  ;;  %vm18044_vm2 = vmmov %vm18043_vm1 }
 0x3cc   : > { %9523 = vmatmul.mubr.msk.f32.gmra.mrb[136].mxu0 %vm18039_vm3, %v9903_v3  ;;  %v5950_v9 = vadd.f32 %v5949_v15, %v5866_v8  ;;  %v5183_v0 = vpop.f32.mrb[32].mxu0  ;;  %vm5322_vm3 = vcmp.eq.s32.totalorder %v17812_v6, %v14774_v10 }
 0x3cd   : > { %9559 = vmatmul.mubr.msk.f32.gmra.mrb[136].mxu1 %vm18040_vm9, %v9903_v3  ;;  %7073 = vmatprep.mubr.f32.mxu0 %v17481_v45  ;;  %v5668_v46 = vpop.f32.mrb[32].mxu1  ;;  %v5382_v16 = vsel %vm5318_vm12, %v5183_v0, 0.0  ;;  %v5185_v26 = vpop.f32.mrb[33].mxu0  ;;  %vm5807_vm9 = vcmp.eq.s32.totalorder %v17812_v6, %v14809_v31  ;;  %vm5323_vm12 = vcmp.eq.s32.totalorder %v17812_v6, %v14770_v57 }
 0x3ce   : > { %7564 = vmatprep.mubr.f32.mxu1 %v17481_v45  ;;  %v5867_v50 = vsel %vm5803_vm4, %v5668_v46, 0.0  ;;  %v5670_v34 = vpop.f32.mrb[33].mxu1  ;;  %v5429_v41 = vadd.f32 %v5428_v1, %v5382_v16  ;;  %v5383_v42 = vsel %vm5319_vm11, %v5185_v26, 0.0  ;;  %vm5808_vm4 = vcmp.eq.s32.totalorder %v17812_v6, %v14805_v54  ;;  %v18047_v46 = vld [vmem:[#allocation12_spill] sm:$0xff]  ;;  %vm18051_vm11 = vmmov %vm18043_vm1 }
 0x3cf   : > { %v5914_v25 = vadd.f32 %v5913_v38, %v5867_v50  ;;  %v5868_v29 = vsel %vm5804_vm7, %v5670_v34, 0.0  ;;  %v5466_v48 = vadd.f32 %v5465_v5, %v5383_v42  ;;  %v18048_v50 = vld [vmem:[#allocation42_spill] sm:$0xff]  ;;  %v18050_v34 = vld [vmem:[#allocation13_spill] sm:$0xff]  ;;  %vm18052_vm7 = vmmov %vm18043_vm1 }
 0x3d0   : > { %9524 = vmatmul.mubr.msk.f32.gmra.mrb[138].mxu0 %vm18041_vm15, %v9904_v21  ;;  %v5951_v58 = vadd.f32 %v5950_v9, %v5868_v29  ;;  %v5189_v27 = vpop.f32.mrb[34].mxu0  ;;  %v18045_v9 = vld [vmem:[#allocation38_spill] sm:$0xff]  ;;  %v18049_v26 = vrot.slane %v18048_v50, 7  ;;  %vm5324_vm15 = vcmp.eq.s32.totalorder %v17815_v62, %v14774_v10 }
 0x3d1   : > { %9560 = vmatmul.mubr.msk.f32.gmra.mrb[138].mxu1 %vm18042_vm13, %v9904_v21  ;;  %7079 = vmatprep.mubr.f32.mxu0 %v17481_v45  ;;  %v5674_v22 = vpop.f32.mrb[34].mxu1  ;;  %v5384_v15 = vsel %vm5320_vm5, %v5189_v27, 0.0  ;;  %v5191_v37 = vpop.f32.mrb[35].mxu0  ;;  %v18046_v0 = vrot.slane %v18045_v9, 7  ;;  %vm5809_vm13 = vcmp.eq.s32.totalorder %v17815_v62, %v14809_v31  ;;  %vm5325_vm5 = vcmp.eq.s32.totalorder %v17815_v62, %v14770_v57 }
 0x3d2   : > { %7570 = vmatprep.mubr.f32.mxu1 %v17481_v45  ;;  %v5869_v53 = vsel %vm5805_vm0, %v5674_v22, 0.0  ;;  %v5676_v55 = vpop.f32.mrb[35].mxu1  ;;  %v5430_v2 = vadd.f32 %v5429_v41, %v5384_v15  ;;  %v5385_v3 = vsel %vm5321_vm8, %v5191_v37, 0.0  ;;  %v519_v21 = vsub.f32 %v18050_v34, %v18049_v26  ;;  %vm18056_vm8 = vmmov %vm18043_vm1 }
 0x3d3   : > { %v5915_v52 = vadd.f32 %v5914_v25, %v5869_v53  ;;  %v5870_v1 = vsel %vm5806_vm10, %v5676_v55, 0.0  ;;  %v5467_v38 = vadd.f32 %v5466_v48, %v5385_v3  ;;  %v365_v16 = vsub.f32 %v18047_v46, %v18046_v0  ;;  %v9906_v48 = vld [vmem:[%s17165_s3 + $0x38] sm:$0xff]  ;;  %v18053_v3 = vld [vmem:[#allocation46_spill] sm:$0xff]  ;;  %v9907_v46 = vld [vmem:[%s17165_s3 + $0x40] sm:$0xff] }
 0x3d4   : > { %9525 = vmatmul.mubr.msk.f32.gmra.mrb[140].mxu0 %vm18043_vm1, %v9905_v49  ;;  %v5952_v28 = vadd.f32 %v5951_v58, %v5870_v1  ;;  %v5195_v8 = vpop.f32.mrb[36].mxu0  ;;  %vm5810_vm0 = vcmp.eq.s32.totalorder %v17815_v62, %v14805_v54  ;;  %v18054_v1 = vrot.slane %v18053_v3, 7  ;;  %vm18057_vm10 = vmmov %vm18043_vm1  ;;  %vm5326_vm1 = vcmp.eq.s32.totalorder %v17575_v12, %v14774_v10 }
 0x3d5   : > { %9561 = vmatmul.mubr.msk.f32.gmra.mrb[140].mxu1 %vm18044_vm2, %v9905_v49  ;;  %7085 = vmatprep.mubr.f32.mxu0 %v17481_v45  ;;  %v5680_v5 = vpop.f32.mrb[36].mxu1  ;;  %v5386_v41 = vsel %vm5322_vm3, %v5195_v8, 0.0  ;;  %v5197_v42 = vpop.f32.mrb[37].mxu0  ;;  %v18055_v8 = vld [vmem:[#allocation25_spill] sm:$0xff]  ;;  %vm5811_vm2 = vcmp.eq.s32.totalorder %v17575_v12, %v14809_v31  ;;  %vm5327_vm3 = vcmp.eq.s32.totalorder %v17575_v12, %v14770_v57 }
 0x3d6   : > { %7576 = vmatprep.mubr.f32.mxu1 %v17481_v45  ;;  %v5871_v25 = vsel %vm5807_vm9, %v5680_v5, 0.0  ;;  %v5682_v29 = vpop.f32.mrb[37].mxu1  ;;  %v5431_v58 = vadd.f32 %v5430_v2, %v5386_v41  ;;  %v5387_v22 = vsel %vm5323_vm12, %v5197_v42, 0.0  ;;  %v371_v2 = vmul.f32 %v365_v16, %v365_v16  ;;  %vm18058_vm12 = vmmov %vm18052_vm7 }
 0x3d7   : > { %v5916_v27 = vadd.f32 %v5915_v52, %v5871_v25  ;;  %v5872_v15 = vsel %vm5808_vm4, %v5682_v29, 0.0  ;;  %v5468_v53 = vadd.f32 %v5467_v38, %v5387_v22  ;;  %v525_v52 = vmul.f32 %v519_v21, %v519_v21  ;;  %vm18059_vm4 = vmmov %vm18052_vm7 }
 0x3d8   : > { %9526 = vmatmul.mubr.msk.f32.gmra.mrb[142].mxu0 %vm18051_vm11, %v9906_v48  ;;  %v5953_v37 = vadd.f32 %v5952_v28, %v5872_v15  ;;  %v5201_v55 = vpop.f32.mrb[38].mxu0  ;;  %v691_v5 = vsub.f32 %v18055_v8, %v18054_v1  ;;  %vm5812_vm9 = vcmp.eq.s32.totalorder %v17575_v12, %v14805_v54  ;;  %vm5328_vm11 = vcmp.eq.s32.totalorder %v17586_v47, %v14774_v10 }
 0x3d9   : > { %9562 = vmatmul.mubr.msk.f32.gmra.mrb[142].mxu1 %vm18052_vm7, %v9906_v48  ;;  %7091 = vmatprep.mubr.f32.mxu0 %v17481_v45  ;;  %v5686_v49 = vpop.f32.mrb[38].mxu1  ;;  %v5388_v9 = vsel %vm5324_vm15, %v5201_v55, 0.0  ;;  %v5203_v28 = vpop.f32.mrb[39].mxu0  ;;  %v531_v29 = vadd.f32 %v525_v52, %v371_v2  ;;  %vm5813_vm7 = vcmp.eq.s32.totalorder %v17586_v47, %v14809_v31  ;;  %vm5329_vm15 = vcmp.eq.s32.totalorder %v17586_v47, %v14770_v57 }
 0x3da   : > { %7582 = vmatprep.mubr.f32.mxu1 %v17481_v45  ;;  %v5873_v38 = vsel %vm5809_vm13, %v5686_v49, 0.0  ;;  %v5688_v0 = vpop.f32.mrb[39].mxu1  ;;  %v5432_v16 = vadd.f32 %v5431_v58, %v5388_v9  ;;  %v5389_v26 = vsel %vm5325_vm5, %v5203_v28, 0.0  ;;  %v697_v48 = vmul.f32 %v691_v5, %v691_v5  ;;  %v18060_v9 = vld [vmem:[#allocation16_spill] sm:$0xff]  ;;  %v18062_v28 = vld [vmem:[#allocation93_spill] sm:$0xff]  ;;  %vm18066_vm5 = vmmov %vm18059_vm4 }
 0x3db   : > { %v5917_v50 = vadd.f32 %v5916_v27, %v5873_v38  ;;  %v5874_v34 = vsel %vm5810_vm0, %v5688_v0, 0.0  ;;  %v5469_v21 = vadd.f32 %v5468_v53, %v5389_v26  ;;  %v9908_v53 = vld [vmem:[%s17165_s3 + $0x48] sm:$0xff]  ;;  %vm5814_vm13 = vcmp.eq.s32.totalorder %v17586_v47, %v14805_v54  ;;  %vm18067_vm0 = vmmov %vm18059_vm4 }
 0x3dc   : > { %9527 = vmatmul.mubr.msk.f32.gmra.mrb[144].mxu0 %vm18056_vm8, %v9907_v46  ;;  %v5954_v41 = vadd.f32 %v5953_v37, %v5874_v34  ;;  %v5207_v25 = vpop.f32.mrb[40].mxu0  ;;  %v15366_v5 = vadd.f32 %v697_v48, %v531_v29  ;;  %v18061_v38 = vrot.slane %v18060_v9, 7  ;;  %vm5330_vm8 = vcmp.eq.s32.totalorder %v17594_v30, %v14774_v10 }
 0x3dd   : > { %9563 = vmatmul.mubr.msk.f32.gmra.mrb[144].mxu1 %vm18057_vm10, %v9907_v46  ;;  %7097 = vmatprep.mubr.f32.mxu0 %v17481_v45  ;;  %v5692_v42 = vpop.f32.mrb[40].mxu1  ;;  %v5390_v58 = vsel %vm5326_vm1, %v5207_v25, 0.0  ;;  %v5209_v22 = vpop.f32.mrb[41].mxu0  ;;  %v18063_v46 = vld [vmem:[#allocation19_spill] sm:$0xff]  ;;  %vm5815_vm10 = vcmp.eq.s32.totalorder %v17594_v30, %v14809_v31  ;;  %vm5331_vm1 = vcmp.eq.s32.totalorder %v17594_v30, %v14770_v57 }
 0x3de   : > { %7588 = vmatprep.mubr.f32.mxu1 %v17481_v45  ;;  %v5875_v27 = vsel %vm5811_vm2, %v5692_v42, 0.0  ;;  %v5694_v15 = vpop.f32.mrb[41].mxu1  ;;  %v5433_v37 = vadd.f32 %v5432_v16, %v5390_v58  ;;  %v5391_v49 = vsel %vm5327_vm3, %v5209_v22, 0.0  ;;  %v366_v0 = vsub.f32 %v18062_v28, %v18061_v38  ;;  %v9909_v42 = vld [vmem:[%s17165_s3 + $0x50] sm:$0xff]  ;;  %vm18071_vm3 = vmmov %vm18067_vm0 }
 0x3df   : > { %v5918_v55 = vadd.f32 %v5917_v50, %v5875_v27  ;;  %v5876_v2 = vsel %vm5812_vm9, %v5694_v15, 0.0  ;;  %v5470_v52 = vadd.f32 %v5469_v21, %v5391_v49  ;;  %v18064_v16 = vrot.slane %v18063_v46, 7  ;;  %v18065_v50 = vld [vmem:[#allocation94_spill] sm:$0xff]  ;;  %v9910_v46 = vld [vmem:[%s17165_s3 + $0x58] sm:$0xff]  ;;  %vm18072_vm9 = vmmov %vm18067_vm0 }
 0x3e0   : > { %9528 = vmatmul.mubr.msk.f32.gmra.mrb[146].mxu0 %vm18058_vm12, %v9908_v53  ;;  %v5955_v3 = vadd.f32 %v5954_v41, %v5876_v2  ;;  %v5213_v1 = vpop.f32.mrb[42].mxu0  ;;  %vm5816_vm2 = vcmp.eq.s32.totalorder %v17594_v30, %v14805_v54  ;;  %9767 = vrsqrt.f32 %v15366_v5  ;;  %v18068_v2 = vld [vmem:[#allocation27_spill] sm:$0xff]  ;;  %vm5332_vm12 = vcmp.eq.s32.totalorder %v17608_v60, %v14774_v10 }
 0x3e1   : > { %9564 = vmatmul.mubr.msk.f32.gmra.mrb[146].mxu1 %vm18059_vm4, %v9908_v53  ;;  %7103 = vmatprep.mubr.f32.mxu0 %v17481_v45  ;;  %v5698_v8 = vpop.f32.mrb[42].mxu1  ;;  %v520_v26 = vsub.f32 %v18065_v50, %v18064_v16  ;;  %v5392_v34 = vsel %vm5328_vm11, %v5213_v1, 0.0  ;;  %v5215_v41 = vpop.f32.mrb[43].mxu0  ;;  %v18069_v1 = vrot.slane %v18068_v2, 7  ;;  %vm5817_vm4 = vcmp.eq.s32.totalorder %v17608_v60, %v14809_v31 }
 0x3e2   : > { %7594 = vmatprep.mubr.f32.mxu1 %v17481_v45  ;;  %v5877_v21 = vsel %vm5813_vm7, %v5698_v8, 0.0  ;;  %v5700_v25 = vpop.f32.mrb[43].mxu1  ;;  %v5434_v29 = vadd.f32 %v5433_v37, %v5392_v34  ;;  %v5393_v58 = vsel %vm5329_vm15, %v5215_v41, 0.0  ;;  %v18070_v8 = vld [vmem:[#allocation20_spill] sm:$0xff]  ;;  %vm5333_vm11 = vcmp.eq.s32.totalorder %v17608_v60, %v14770_v57  ;;  %vm18073_vm15 = vmmov %vm18067_vm0 }
 0x3e3   : > { %v5919_v48 = vadd.f32 %v5918_v55, %v5877_v21  ;;  %v5878_v27 = vsel %vm5814_vm13, %v5700_v25, 0.0  ;;  %v5471_v22 = vadd.f32 %v5470_v52, %v5393_v58  ;;  %v372_v55 = vmul.f32 %v366_v0, %v366_v0  ;;  %vm18074_vm13 = vmmov %vm18067_vm0 }
 0x3e4   : > { %9529 = vmatmul.mubr.msk.f32.gmra.mrb[148].mxu0 %vm18066_vm5, %v9909_v42  ;;  %v5956_v15 = vadd.f32 %v5955_v3, %v5878_v27  ;;  %v5219_v53 = vpop.f32.mrb[44].mxu0  ;;  %v526_v49 = vmul.f32 %v520_v26, %v520_v26  ;;  %v692_v9 = vsub.f32 %v18070_v8, %v18069_v1  ;;  %vm5818_vm7 = vcmp.eq.s32.totalorder %v17608_v60, %v14805_v54 }
 0x3e5   : > { %9565 = vmatmul.mubr.msk.f32.gmra.mrb[148].mxu1 %vm18067_vm0, %v9909_v42  ;;  %7109 = vmatprep.mubr.f32.mxu0 %v17481_v45  ;;  %v5704_v37 = vpop.f32.mrb[44].mxu1  ;;  %v5394_v52 = vsel %vm5330_vm8, %v5219_v53, 0.0  ;;  %v5221_v38 = vpop.f32.mrb[45].mxu0  ;;  %vm5334_vm5 = vcmp.eq.s32.totalorder %v17978_v14, %v14774_v10  ;;  %vm5819_vm0 = vcmp.eq.s32.totalorder %v17978_v14, %v14809_v31  ;;  %vm5335_vm8 = vcmp.eq.s32.totalorder %v17978_v14, %v14770_v57 }
 0x3e6   : > { %7600 = vmatprep.mubr.f32.mxu1 %v17481_v45  ;;  %v5879_v3 = vsel %vm5815_vm10, %v5704_v37, 0.0  ;;  %v5706_v28 = vpop.f32.mrb[45].mxu1  ;;  %v5435_v0 = vadd.f32 %v5434_v29, %v5394_v52  ;;  %v5395_v50 = vsel %vm5331_vm1, %v5221_v38, 0.0  ;;  %v532_v42 = vadd.f32 %v526_v49, %v372_v55  ;;  %vm18075_vm1 = vmmov %vm18071_vm3 }
 0x3e7   : > { %v5920_v16 = vadd.f32 %v5919_v48, %v5879_v3  ;;  %v5880_v26 = vsel %vm5816_vm2, %v5706_v28, 0.0  ;;  %v5472_v34 = vadd.f32 %v5471_v22, %v5395_v50  ;;  %v698_v29 = vmul.f32 %v692_v9, %v692_v9  ;;  %vm18076_vm2 = vmmov %vm18075_vm1 }
 0x3e8   : > { %9530 = vmatmul.mubr.msk.f32.gmra.mrb[150].mxu0 %vm18071_vm3, %v9910_v46  ;;  %v5957_v21 = vadd.f32 %v5956_v15, %v5880_v26  ;;  %v9911_v15 = vld [vmem:[%s17165_s3 + $0x60] sm:$0xff]  ;;  %vm5820_vm10 = vcmp.eq.s32.totalorder %v17978_v14, %v14805_v54  ;;  %vm5336_vm3 = vcmp.eq.s32.totalorder %v17981_v63, %v14774_v10 }
 0x3e9   : > { %9566 = vmatmul.mubr.msk.f32.gmra.mrb[150].mxu1 %vm18072_vm9, %v9910_v46  ;;  %7115 = vmatprep.mubr.f32.mxu0 %v17481_v45  ;;  %v15459_v52 = vadd.f32 %v698_v29, %v532_v42  ;;  %vm5821_vm9 = vcmp.eq.s32.totalorder %v17981_v63, %v14809_v31 }
 0x3ea   : > { %7606 = vmatprep.mubr.f32.mxu1 %v17481_v45 }
 0x3eb   : > { %v5225_v41 = vpop.f32.mrb[46].mxu0  ;;  %9769 = vrsqrt.f32 %v15459_v52 }
 0x3ec   : > { %v5710_v25 = vpop.f32.mrb[46].mxu1  ;;  %v5396_v48 = vsel %vm5332_vm12, %v5225_v41, 0.0  ;;  %v5227_v27 = vpop.f32.mrb[47].mxu0  ;;  %9531 = vmatmul.mubr.msk.f32.gmra.mrb[152].mxu0 %vm18073_vm15, %v9911_v15  ;;  %vm5337_vm12 = vcmp.eq.s32.totalorder %v17981_v63, %v14770_v57  ;;  %vm18077_vm15 = vmmov %vm18075_vm1 }
 0x3ed   : > { %v5881_v58 = vsel %vm5817_vm4, %v5710_v25, 0.0  ;;  %v5712_v22 = vpop.f32.mrb[47].mxu1  ;;  %9567 = vmatmul.mubr.msk.f32.gmra.mrb[152].mxu1 %vm18074_vm13, %v9911_v15  ;;  %v5436_v53 = vadd.f32 %v5435_v0, %v5396_v48  ;;  %v5397_v55 = vsel %vm5333_vm11, %v5227_v27, 0.0  ;;  %7121 = vmatprep.mubr.f32.mxu0 %v17481_v45  ;;  %v9912_v0 = vld [vmem:[%s17165_s3 + $0x68] sm:$0xff]  ;;  %vm5822_vm4 = vcmp.eq.s32.totalorder %v17981_v63, %v14805_v54  ;;  %v9913_v15 = vld [vmem:[%s17165_s3 + $0x70] sm:$0xff]  ;;  %vm18078_vm13 = vmmov %vm18075_vm1 }
 0x3ee   : > { %v5921_v37 = vadd.f32 %v5920_v16, %v5881_v58  ;;  %v5882_v49 = vsel %vm5818_vm7, %v5712_v22, 0.0  ;;  %7612 = vmatprep.mubr.f32.mxu1 %v17481_v45  ;;  %v5473_v2 = vadd.f32 %v5472_v34, %v5397_v55  ;;  %v9768_v16 = vpop.eup %9767  ;;  %vm5338_vm11 = vcmp.eq.s32.totalorder %v17984_v43, %v14774_v10 }
 0x3ef   : > { %v5958_v1 = vadd.f32 %v5957_v21, %v5882_v49  ;;  %v5231_v8 = vpop.f32.mrb[48].mxu0  ;;  %vm5823_vm7 = vcmp.eq.s32.totalorder %v17984_v43, %v14809_v31 }
 0x3f0   : > { %v5716_v9 = vpop.f32.mrb[48].mxu1  ;;  %v5398_v3 = vsel %vm5334_vm5, %v5231_v8, 0.0  ;;  %v5233_v28 = vpop.f32.mrb[49].mxu0  ;;  %9532 = vmatmul.mubr.msk.f32.gmra.mrb[154].mxu0 %vm18075_vm1, %v9912_v0  ;;  %vm795_vm5 = vcmp.eq.f32.partialorder %v15366_v5, inf }
 0x3f1   : > { %v5883_v38 = vsel %vm5819_vm0, %v5716_v9, 0.0  ;;  %v5718_v46 = vpop.f32.mrb[49].mxu1  ;;  %9568 = vmatmul.mubr.msk.f32.gmra.mrb[154].mxu1 %vm18076_vm2, %v9912_v0  ;;  %v5437_v50 = vadd.f32 %v5436_v53, %v5398_v3  ;;  %v5399_v34 = vsel %vm5335_vm8, %v5233_v28, 0.0  ;;  %7127 = vmatprep.mubr.f32.mxu0 %v17481_v45  ;;  %v794_v53 = vmul.f32 %v9768_v16, %v15366_v5  ;;  %v18079_v9 = vld [vmem:[#allocation50_spill] sm:$0xff]  ;;  %v18080_v3 = vld [vmem:[#allocation28_spill] sm:$0xff] }
 0x3f2   : > { %v5922_v26 = vadd.f32 %v5921_v37, %v5883_v38  ;;  %v5884_v21 = vsel %vm5820_vm10, %v5718_v46, 0.0  ;;  %7618 = vmatprep.mubr.f32.mxu1 %v17481_v45  ;;  %v5474_v41 = vadd.f32 %v5473_v2, %v5399_v34  ;;  %vm5339_vm0 = vcmp.eq.s32.totalorder %v17984_v43, %v14770_v57  ;;  %v18081_v0 = vld [vmem:[#allocation88_spill] sm:$0xff] }
 0x3f3   : > { %v5959_v25 = vadd.f32 %v5958_v1, %v5884_v21  ;;  %v5237_v42 = vpop.f32.mrb[50].mxu0  ;;  %vm5824_vm8 = vcmp.eq.s32.totalorder %v17984_v43, %v14805_v54  ;;  %v15514_v38 = vrot.slane %v18080_v3, %v18079_v9  ;;  %vm5340_vm10 = vcmp.eq.s32.totalorder %v18081_v0, %v14774_v10  ;;  %v9914_v21 = vld [vmem:[%s17165_s3 + $0x78] sm:$0xff] }
 0x3f4   : > { %v5722_v29 = vpop.f32.mrb[50].mxu1  ;;  %v5400_v48 = vsel %vm5336_vm3, %v5237_v42, 0.0  ;;  %v5239_v27 = vpop.f32.mrb[51].mxu0  ;;  %9533 = vmatmul.mubr.msk.f32.gmra.mrb[156].mxu0 %vm18077_vm15, %v9913_v15  ;;  %vm5825_vm1 = vcmp.eq.s32.totalorder %v18081_v0, %v14809_v31  ;;  %vm797_vm2 = vcmp.eq.f32.partialorder %v15366_v5, 0.0  ;;  %vm18082_vm3 = vmmov %vm18078_vm13 }
 0x3f5   : > { %v5885_v58 = vsel %vm5821_vm9, %v5722_v29, 0.0  ;;  %v5724_v22 = vpop.f32.mrb[51].mxu1  ;;  %9569 = vmatmul.mubr.msk.f32.gmra.mrb[156].mxu1 %vm18078_vm13, %v9913_v15  ;;  %v5438_v37 = vadd.f32 %v5437_v50, %v5400_v48  ;;  %v5401_v49 = vsel %vm5337_vm12, %v5239_v27, 0.0  ;;  %7133 = vmatprep.mubr.f32.mxu0 %v17481_v45  ;;  %vm18083_vm9 = vmmov %vm18082_vm3  ;;  %vm5341_vm12 = vcmp.eq.s32.totalorder %v18081_v0, %v14770_v57  ;;  %v18084_v15 = vld [vmem:[#allocation51_spill] sm:$0xff] }
 0x3f6   : > { %v5923_v55 = vadd.f32 %v5922_v26, %v5885_v58  ;;  %v5886_v2 = vsel %vm5822_vm4, %v5724_v22, 0.0  ;;  %7624 = vmatprep.mubr.f32.mxu1 %v17481_v45  ;;  %v5475_v1 = vadd.f32 %v5474_v41, %v5401_v49  ;;  %v796_v41 = vsel %vm795_vm5, %v15366_v5, %v794_v53  ;;  %vm18088_vm15 = vmmov %vm18082_vm3 }
 0x3f7   : > { %v5960_v8 = vadd.f32 %v5959_v25, %v5886_v2  ;;  %v5243_v28 = vpop.f32.mrb[52].mxu0  ;;  %v798_v25 = vand.u32 2147483648, %v15366_v5  ;;  %vm5826_vm4 = vcmp.eq.s32.totalorder %v18081_v0, %v14805_v54  ;;  %v15550_v53 = vrot.slane %v18080_v3, %v18084_v15 }
 0x3f8   : > { %v5728_v46 = vpop.f32.mrb[52].mxu1  ;;  %v5402_v16 = vsel %vm5338_vm11, %v5243_v28, 0.0  ;;  %v5245_v26 = vpop.f32.mrb[53].mxu0  ;;  %9534 = vmatmul.mubr.msk.f32.gmra.mrb[158].mxu0 %vm18082_vm3, %v9914_v21 }
 0x3f9   : > { %v5887_v50 = vsel %vm5823_vm7, %v5728_v46, 0.0  ;;  %v5730_v34 = vpop.f32.mrb[53].mxu1  ;;  %9570 = vmatmul.mubr.msk.f32.gmra.mrb[158].mxu1 %vm18083_vm9, %v9914_v21  ;;  %v5439_v42 = vadd.f32 %v5438_v37, %v5402_v16  ;;  %v5403_v48 = vsel %vm5339_vm0, %v5245_v26, 0.0  ;;  %7139 = vmatprep.mubr.f32.mxu0 %v17481_v45  ;;  %v18085_v37 = vld [vmem:[#allocation82_spill] sm:$0xff]  ;;  %vm18087_vm7 = vmmov %vm18082_vm3  ;;  %v799_v26 = vsel %vm797_vm2, %v798_v25, %v796_v41 }
 0x3fa   : > { %v5924_v29 = vadd.f32 %v5923_v55, %v5887_v50  ;;  %v5888_v58 = vsel %vm5824_vm8, %v5730_v34, 0.0  ;;  %7630 = vmatprep.mubr.f32.mxu1 %v17481_v45  ;;  %v5476_v27 = vadd.f32 %v5475_v1, %v5403_v48  ;;  %v15554_v55 = vrot.slane %v18085_v37, %v18079_v9  ;;  %v9915_v50 = vld [vmem:[%s17165_s3 + $0x80] sm:$0xff]  ;;  %v9770_v34 = vpop.eup %9769  ;;  %v18089_v25 = vld [vmem:[#allocation90_spill] sm:$0xff]  ;;  %vm18090_vm2 = vmmov %vm18082_vm3 }
 0x3fb   : > { %v5961_v22 = vadd.f32 %v5960_v8, %v5888_v58  ;;  %v15558_v49 = vrot.slane %v18085_v37, %v18084_v15  ;;  %v5249_v2 = vpop.f32.mrb[54].mxu0  ;;  %v18086_v8 = vld [vmem:[#allocation89_spill] sm:$0xff]  ;;  %vm5344_vm8 = vcmp.eq.s32.totalorder %v18089_v25, %v14774_v10  ;;  %vm18091_vm3 = vmmov %vm18090_vm2  ;;  %vm802_vm9 = vcmp.eq.f32.partialorder %v15459_v52, inf }
 0x3fc   : > { %v5734_v1 = vpop.f32.mrb[54].mxu1  ;;  %vm5342_vm11 = vcmp.eq.s32.totalorder %v18086_v8, %v14774_v10  ;;  %v5404_v28 = vsel %vm5340_vm10, %v5249_v2, 0.0  ;;  %v5251_v16 = vpop.f32.mrb[55].mxu0  ;;  %9535 = vmatmul.mubr.msk.f32.gmra.mrb[160].mxu0 %vm18087_vm7, %v9915_v50  ;;  %vm5827_vm13 = vcmp.eq.s32.totalorder %v18086_v8, %v14809_v31  ;;  %vm5343_vm5 = vcmp.eq.s32.totalorder %v18086_v8, %v14770_v57 }
 0x3fd   : > { %v5889_v46 = vsel %vm5825_vm1, %v5734_v1, 0.0  ;;  %v5736_v9 = vpop.f32.mrb[55].mxu1  ;;  %9571 = vmatmul.mubr.msk.f32.gmra.mrb[160].mxu1 %vm18088_vm15, %v9915_v50  ;;  %v5440_v21 = vadd.f32 %v5439_v42, %v5404_v28  ;;  %v5405_v58 = vsel %vm5341_vm12, %v5251_v16, 0.0  ;;  %7145 = vmatprep.mubr.f32.mxu0 %v17481_v45  ;;  %vm5828_vm0 = vcmp.eq.s32.totalorder %v18086_v8, %v14805_v54 }
 0x3fe   : > { %v5925_v48 = vadd.f32 %v5924_v29, %v5889_v46  ;;  %v5890_v15 = vsel %vm5826_vm4, %v5736_v9, 0.0  ;;  %7636 = vmatprep.mubr.f32.mxu1 %v17481_v45  ;;  %v5477_v2 = vadd.f32 %v5476_v27, %v5405_v58  ;;  %vm5829_vm10 = vcmp.eq.s32.totalorder %v18089_v25, %v14809_v31  ;;  %v9916_v46 = vld [vmem:[%s17165_s3 + $0x88] sm:$0xff] }
 0x3ff   : > { %v5962_v1 = vadd.f32 %v5961_v22, %v5890_v15  ;;  %v5255_v5 = vpop.f32.mrb[56].mxu0  ;;  %vm5345_vm1 = vcmp.eq.s32.totalorder %v18089_v25, %v14770_v57  ;;  %v911_v42 = vrot.slane %v799_v26, 1  ;;  %v801_v16 = vmul.f32 %v9770_v34, %v15459_v52  ;;  %v18092_v34 = vld [vmem:[#allocation91_spill] sm:$0xff] }
 0x400   : > { %v5740_v41 = vpop.f32.mrb[56].mxu1  ;;  %v5406_v29 = vsel %vm5342_vm11, %v5255_v5, 0.0  ;;  %v5257_v22 = vpop.f32.mrb[57].mxu0  ;;  %9536 = vmatmul.mubr.msk.f32.gmra.mrb[162].mxu0 %vm18090_vm2, %v9916_v46  ;;  %vm5830_vm12 = vcmp.eq.s32.totalorder %v18089_v25, %v14805_v54  ;;  %vm5346_vm4 = vcmp.eq.s32.totalorder %v18092_v34, %v14774_v10  ;;  %vm5831_vm11 = vcmp.eq.s32.totalorder %v18092_v34, %v14809_v31 }
 0x401   : > { %v5891_v27 = vsel %vm5827_vm13, %v5740_v41, 0.0  ;;  %v5742_v28 = vpop.f32.mrb[57].mxu1  ;;  %9572 = vmatmul.mubr.msk.f32.gmra.mrb[162].mxu1 %vm18091_vm3, %v9916_v46  ;;  %v5441_v9 = vadd.f32 %v5440_v21, %v5406_v29  ;;  %v5407_v26 = vsel %vm5343_vm5, %v5257_v22, 0.0  ;;  %7151 = vmatprep.mubr.f32.mxu0 %v17481_v45  ;;  %vm5347_vm7 = vcmp.eq.s32.totalorder %v18092_v34, %v14770_v57  ;;  %v18093_v41 = vld [vmem:[#allocation22_spill] sm:$0xff]  ;;  %vm18096_vm5 = vmmov %vm18090_vm2 }
 0x402   : > { %v5926_v50 = vadd.f32 %v5925_v48, %v5891_v27  ;;  %v5892_v58 = vsel %vm5828_vm0, %v5742_v28, 0.0  ;;  %7642 = vmatprep.mubr.f32.mxu1 %v17481_v45  ;;  %v5478_v15 = vadd.f32 %v5477_v2, %v5407_v26  ;;  %v18094_v29 = vrot.slane %v18093_v41, 1  ;;  %v9917_v46 = vld [vmem:[%s17165_s3 + $0x90] sm:$0xff]  ;;  %vm18097_vm0 = vmmov %vm18090_vm2 }
 0x403   : > { %v5963_v5 = vadd.f32 %v5962_v1, %v5892_v58  ;;  %v5261_v21 = vpop.f32.mrb[58].mxu0  ;;  %vm18095_vm15 = vcmask 1046528   ;;  %vm804_vm13 = vcmp.eq.f32.partialorder %v15459_v52, 0.0  ;;  %v805_v26 = vand.u32 2147483648, %v15459_v52 }
 0x404   : > { %v5746_v48 = vpop.f32.mrb[58].mxu1  ;;  %v912_v27 = vsel %vm18095_vm15, %v18094_v29, %v911_v42  ;;  %v5408_v2 = vsel %vm5344_vm8, %v5261_v21, 0.0  ;;  %v5263_v22 = vpop.f32.mrb[59].mxu0  ;;  %9537 = vmatmul.mubr.msk.f32.gmra.mrb[164].mxu0 %vm18096_vm5, %v9917_v46  ;;  %v803_v42 = vsel %vm802_vm9, %v15459_v52, %v801_v16  ;;  %vm5832_vm8 = vcmp.eq.s32.totalorder %v18092_v34, %v14805_v54  ;;  %v18098_v16 = vld [vmem:[#allocation92_spill] sm:$0xff]  ;;  %vm18100_vm15 = vmmov %vm18097_vm0 }
 0x405   : > { %v5893_v1 = vsel %vm5829_vm10, %v5746_v48, 0.0  ;;  %v5748_v28 = vpop.f32.mrb[59].mxu1  ;;  %9573 = vmatmul.mubr.msk.f32.gmra.mrb[164].mxu1 %vm18097_vm0, %v9917_v46  ;;  %v5442_v58 = vadd.f32 %v5441_v9, %v5408_v2  ;;  %v5409_v48 = vsel %vm5345_vm1, %v5263_v22, 0.0  ;;  %7157 = vmatprep.mubr.f32.mxu0 %v17481_v45  ;;  %vm5348_vm10 = vcmp.eq.s32.totalorder %v18098_v16, %v14774_v10  ;;  %v9918_v22 = vld [vmem:[%s17165_s3 + $0x98] sm:$0xff]  ;;  %vm18103_vm5 = vmmov %vm18097_vm0 }
 0x406   : > { %v5927_v21 = vadd.f32 %v5926_v50, %v5893_v1  ;;  %v5894_v41 = vsel %vm5830_vm12, %v5748_v28, 0.0  ;;  %7648 = vmatprep.mubr.f32.mxu1 %v17481_v45  ;;  %v5479_v29 = vadd.f32 %v5478_v15, %v5409_v48  ;;  %vm5833_vm1 = vcmp.eq.s32.totalorder %v18098_v16, %v14809_v31  ;;  %vm18099_vm12 = vmmov %vm18097_vm0 }
 0x407   : > { %v5964_v46 = vadd.f32 %v5963_v5, %v5894_v41  ;;  %v5267_v9 = vpop.f32.mrb[60].mxu0  ;;  %vm5349_vm2 = vcmp.eq.s32.totalorder %v18098_v16, %v14770_v57  ;;  %vm5834_vm3 = vcmp.eq.s32.totalorder %v18098_v16, %v14805_v54  ;;  %vm6262_vm9 = vcmp.eq.s32.totalorder %v10167_v7, %v15554_v55  ;;  %v18104_v57 = vld [vmem:[#allocation17_spill] sm:$0xff] }
 0x408   : > { %v5752_v50 = vpop.f32.mrb[60].mxu1  ;;  %v5410_v15 = vsel %vm5346_vm4, %v5267_v9, 0.0  ;;  %v5269_v2 = vpop.f32.mrb[61].mxu0  ;;  %9538 = vmatmul.mubr.msk.f32.gmra.mrb[166].mxu0 %vm18099_vm12, %v9918_v22  ;;  %v15676_v48 = vsel %vm12875_vm6, %v912_v27, 0.0  ;;  %v806_v41 = vsel %vm804_vm13, %v805_v26, %v803_v42  ;;  %vm6263_vm6 = vcmp.eq.s32.totalorder %v10167_v7, %v15514_v38 }
 0x409   : > { %v5895_v5 = vsel %vm5831_vm11, %v5752_v50, 0.0  ;;  %v5754_v1 = vpop.f32.mrb[61].mxu1  ;;  %9574 = vmatmul.mubr.msk.f32.gmra.mrb[166].mxu1 %vm18100_vm15, %v9918_v22  ;;  %v5443_v9 = vadd.f32 %v5442_v58, %v5410_v15  ;;  %v5411_v50 = vsel %vm5347_vm7, %v5269_v2, 0.0  ;;  %7163 = vmatprep.mubr.f32.mxu0 %v17481_v45  ;;  %vm6753_vm4 = vcmp.eq.s32.totalorder %v10167_v7, %v15558_v49  ;;  %v18102_v58 = vld [vmem:[#allocation59_spill] sm:$0xff]  ;;  %v9919_v15 = vld [vmem:[%s17165_s3 + $0xa0] sm:$0xff] }
 0x40a   : > { %v5928_v18 = vadd.f32 %v5927_v21, %v5895_v5  ;;  %v5896_v23 = vsel %vm5832_vm8, %v5754_v1, 0.0  ;;  %7654 = vmatprep.mubr.f32.mxu1 %v17481_v45  ;;  %v5480_v22 = vadd.f32 %v5479_v29, %v5411_v50  ;;  %v913_v26 = vrot.slane %v806_v41, 1 }
 0x40b   : > { %v5965_v27 = vadd.f32 %v5964_v46, %v5896_v23  ;;  %v5273_v52 = vpop.f32.mrb[62].mxu0  ;;  %vm6754_vm11 = vcmp.eq.s32.totalorder %v10167_v7, %v15550_v53  ;;  %vm6264_vm7 = vcmp.eq.s32.totalorder %v18102_v58, %v15554_v55  ;;  %vm6755_vm13 = vcmp.eq.s32.totalorder %v18102_v58, %v15558_v49 }
 0x40c   : > { %v5758_v42 = vpop.f32.mrb[62].mxu1  ;;  %v5412_v23 = vsel %vm5348_vm10, %v5273_v52, 0.0  ;;  %v5275_v29 = vpop.f32.mrb[63].mxu0  ;;  %9539 = vmatmul.mubr.msk.f32.gmra.mrb[168].mxu0 %vm18103_vm5, %v9919_v15  ;;  %vm6265_vm8 = vcmp.eq.s32.totalorder %v18102_v58, %v15514_v38  ;;  %vm6756_vm10 = vcmp.eq.s32.totalorder %v18102_v58, %v15550_v53  ;;  %vm6757_vm12 = vcmp.eq.s32.totalorder %v17718_v33, %v15558_v49  ;;  %vm18107_vm5 = vmmov %vm18097_vm0 }
 0x40d   : > { %v5897_v21 = vsel %vm5833_vm1, %v5758_v42, 0.0  ;;  %v5760_v46 = vpop.f32.mrb[63].mxu1  ;;  %9575 = vmatmul.mubr.msk.f32.gmra.mrb[168].mxu1 %vm18097_vm0, %v9919_v15  ;;  %v5444_v10 = vadd.f32 %v5443_v9, %v5412_v23  ;;  %v5413_v31 = vsel %vm5349_vm2, %v5275_v29, 0.0  ;;  %7169 = vmatprep.mubr.f32.mxu0 %v17481_v45  ;;  %vm6266_vm1 = vcmp.eq.s32.totalorder %v17718_v33, %v15554_v55 }
 0x40e   : > { %v5929_v5 = vadd.f32 %v5928_v18, %v5897_v21  ;;  %v5898_v2 = vsel %vm5834_vm3, %v5760_v46, 0.0  ;;  %7660 = vmatprep.mubr.f32.mxu1 %v17481_v45  ;;  %v5481_v1 = vadd.f32 %v5480_v22, %v5413_v31  ;;  %v18105_v9 = vrot.slane %v18104_v57, 1  ;;  %v9920_v21 = vld [vmem:[%s17165_s3 + $0xa8] sm:$0xff] }
 0x40f   : > { %v5966_v28 = vadd.f32 %v5965_v27, %v5898_v2  ;;  %v5445_v18 = vrot.slane %v5444_v10, 4  ;;  %vm18106_vm2 = vcmask 1046528   ;;  %v6063_v54 = vpop.f32.mrb[64].mxu0  ;;  %vm6267_vm3 = vcmp.eq.s32.totalorder %v17718_v33, %v15514_v38 }
 0x410   : > { %v5930_v41 = vrot.slane %v5929_v5, 4  ;;  %v914_v50 = vsel %vm18106_vm2, %v18105_v9, %v913_v26  ;;  %v6554_v52 = vpop.f32.mrb[64].mxu1  ;;  %vm6758_vm15 = vcmp.eq.s32.totalorder %v17718_v33, %v15550_v53  ;;  %v5482_v22 = vrot.slane %v5481_v1, 4  ;;  %v6065_v23 = vpop.f32.mrb[65].mxu0  ;;  %9540 = vmatmul.mubr.msk.f32.gmra.mrb[170].mxu0 %vm18107_vm5, %v9920_v21  ;;  %vm18110_vm2 = vmmov %vm18097_vm0 }
 0x411   : > { %v5967_v27 = vrot.slane %v5966_v28, 4  ;;  %v6326_v42 = vsel %vm6262_vm9, %v6063_v54, 0.0  ;;  %9576 = vmatmul.mubr.msk.f32.gmra.mrb[170].mxu1 %vm18097_vm0, %v9920_v21  ;;  %v6817_v26 = vsel %vm6753_vm4, %v6554_v52, 0.0  ;;  %v6556_v29 = vpop.f32.mrb[65].mxu1  ;;  %v5446_v46 = vadd.f32 %v5445_v18, %v5444_v10  ;;  %7175 = vmatprep.mubr.f32.mxu0 %v17481_v45  ;;  %v9921_v21 = vld [vmem:[%s17165_s3 + $0xb0] sm:$0xff] }
 0x412   : > { %v5931_v15 = vadd.f32 %v5930_v41, %v5929_v5  ;;  %v6327_v31 = vsel %vm6263_vm6, %v6065_v23, 0.0  ;;  %v6818_v2 = vsel %vm6754_vm11, %v6556_v29, 0.0  ;;  %7666 = vmatprep.mubr.f32.mxu1 %v17481_v45  ;;  %v5483_v57 = vadd.f32 %v5482_v22, %v5481_v1 }
 0x413   : > { %v5968_v9 = vadd.f32 %v5967_v27, %v5966_v28  ;;  %vm6268_vm9 = vcmp.eq.s32.totalorder %v17725_v40, %v15554_v55  ;;  %vm6759_vm4 = vcmp.eq.s32.totalorder %v17725_v40, %v15558_v49  ;;  %v5447_v10 = vrot.slane %v5446_v46, 2  ;;  %v6069_v54 = vpop.f32.mrb[66].mxu0 }
 0x414   : > { %v5932_v5 = vrot.slane %v5931_v15, 2  ;;  %v15757_v41 = vsel %vm12209_vm14, %v914_v50, 0.0  ;;  %v6560_v52 = vpop.f32.mrb[66].mxu1  ;;  %vm6269_vm6 = vcmp.eq.s32.totalorder %v17725_v40, %v15514_v38  ;;  %vm6760_vm11 = vcmp.eq.s32.totalorder %v17725_v40, %v15550_v53  ;;  %v6071_v50 = vpop.f32.mrb[67].mxu0  ;;  %vm18109_vm14 = vmmov %vm18097_vm0 }
 0x415   : > { %v5484_v1 = vrot.slane %v5483_v57, 2  ;;  %v5969_v28 = vrot.slane %v5968_v9, 2  ;;  %v6328_v22 = vsel %vm6264_vm7, %v6069_v54, 0.0  ;;  %v6819_v27 = vsel %vm6755_vm13, %v6560_v52, 0.0  ;;  %v6562_v23 = vpop.f32.mrb[67].mxu1  ;;  %9541 = vmatmul.mubr.msk.f32.gmra.mrb[172].mxu0 %vm18109_vm14, %v9921_v21  ;;  %9577 = vmatmul.mubr.msk.f32.gmra.mrb[172].mxu1 %vm18110_vm2, %v9921_v21 }
 0x416   : > { %v5448_v29 = vadd.f32 %v5447_v10, %v5446_v46  ;;  %v5933_v18 = vadd.f32 %v5932_v5, %v5931_v15  ;;  %v6390_v7 = vadd.f32 %v6328_v22, %v6326_v42  ;;  %v6881_v16 = vadd.f32 %v6819_v27, %v6817_v26  ;;  %7181 = vmatprep.mubr.f32.mxu0 %v17481_v45 }
 0x417   : > { %vm6270_vm7 = vcmp.eq.s32.totalorder %v17728_v59, %v15554_v55  ;;  %vm6761_vm13 = vcmp.eq.s32.totalorder %v17728_v59, %v15558_v49  ;;  %v5485_v54 = vadd.f32 %v5484_v1, %v5483_v57  ;;  %v5970_v52 = vadd.f32 %v5969_v28, %v5968_v9  ;;  %7672 = vmatprep.mubr.f32.mxu1 %v17481_v45  ;;  %v6075_v9 = vpop.f32.mrb[68].mxu0 }
 0x418   : > { %v6329_v34 = vsel %vm6265_vm8, %v6071_v50, 0.0  ;;  %v6820_v46 = vsel %vm6756_vm10, %v6562_v23, 0.0  ;;  %vm6271_vm5 = vcmp.eq.s32.totalorder %v17728_v59, %v15514_v38  ;;  %vm6762_vm0 = vcmp.eq.s32.totalorder %v17728_v59, %v15550_v53  ;;  %v6566_v10 = vpop.f32.mrb[68].mxu1  ;;  %v6077_v27 = vpop.f32.mrb[69].mxu0  ;;  %v9922_v23 = vld [vmem:[%s17165_s3 + $0xb8] sm:$0xff]  ;;  %vm18111_vm8 = vmmov %vm18110_vm2 }
 0x419   : > { %v5449_v42 = vrot.slane %v5448_v29, 1  ;;  %v5934_v26 = vrot.slane %v5933_v18, 1  ;;  %v6427_v15 = vadd.f32 %v6329_v34, %v6327_v31  ;;  %v6918_v57 = vadd.f32 %v6820_v46, %v6818_v2  ;;  %v6568_v50 = vpop.f32.mrb[69].mxu1  ;;  %9542 = vmatmul.mubr.msk.f32.gmra.mrb[174].mxu0 %vm18111_vm8, %v9922_v23  ;;  %vm18112_vm10 = vmmov %vm18110_vm2 }
 0x41a   : > { %v5486_v5 = vrot.slane %v5485_v54, 1  ;;  %v5971_v1 = vrot.slane %v5970_v52, 1  ;;  %v6330_v28 = vsel %vm6266_vm1, %v6075_v9, 0.0  ;;  %v6821_v22 = vsel %vm6757_vm12, %v6566_v10, 0.0  ;;  %9578 = vmatmul.mubr.msk.f32.gmra.mrb[174].mxu1 %vm18112_vm10, %v9922_v23  ;;  %7187 = vmatprep.mubr.f32.mxu0 %v17481_v45  ;;  %vm18113_vm1 = vmmov %vm18110_vm2 }
 0x41b   : > { %v5450_v34 = vadd.f32 %v5449_v42, %v5448_v29  ;;  %v5935_v31 = vadd.f32 %v5934_v26, %v5933_v18  ;;  %v6391_v2 = vadd.f32 %v6390_v7, %v6330_v28  ;;  %v6882_v21 = vadd.f32 %v6881_v16, %v6821_v22  ;;  %7678 = vmatprep.mubr.f32.mxu1 %v17481_v45  ;;  %v6081_v18 = vpop.f32.mrb[70].mxu0  ;;  %vm18114_vm12 = vmmov %vm18113_vm1 }
 0x41c   : > { %v5487_v46 = vadd.f32 %v5486_v5, %v5485_v54  ;;  %v5972_v9 = vadd.f32 %v5971_v1, %v5970_v52  ;;  %v6331_v10 = vsel %vm6267_vm3, %v6077_v27, 0.0  ;;  %v6822_v58 = vsel %vm6758_vm15, %v6568_v50, 0.0  ;;  %v6572_v42 = vpop.f32.mrb[70].mxu1  ;;  %v6083_v1 = vpop.f32.mrb[71].mxu0  ;;  %vm18115_vm15 = vmmov %vm18113_vm1 }
 0x41d   : > { %v5488_v23 = vmul.f32 %v5450_v34, %v15676_v48  ;;  %v5973_v29 = vmul.f32 %v5935_v31, %v15676_v48  ;;  %v6428_v7 = vadd.f32 %v6427_v15, %v6331_v10  ;;  %v6919_v16 = vadd.f32 %v6918_v57, %v6822_v58  ;;  %v6574_v28 = vpop.f32.mrb[71].mxu1  ;;  %v9923_v58 = vld [vmem:[%s17165_s3 + $0xc0] sm:$0xff]  ;;  %vm18117_vm14 = vmmov %vm18113_vm1 }
 0x41e   : > { %v5489_v54 = vmul.f32 %v5487_v46, %v15757_v41  ;;  %v5974_v52 = vmul.f32 %v5972_v9, %v15757_v41  ;;  %v6332_v26 = vsel %vm6268_vm9, %v6081_v18, 0.0  ;;  %v6823_v5 = vsel %vm6759_vm4, %v6572_v42, 0.0  ;;  %9543 = vmatmul.mubr.msk.f32.gmra.mrb[176].mxu0 %vm18113_vm1, %v9923_v58  ;;  %9579 = vmatmul.mubr.msk.f32.gmra.mrb[176].mxu1 %vm18114_vm12, %v9923_v58  ;;  %vm18116_vm9 = vmmov %vm18113_vm1 }
 0x41f   : > { %v5490_v15 = vadd.f32 %v5488_v23, %v15006_v35  ;;  %v5977_v57 = vrot.slane %v5973_v29, 1  ;;  %v6392_v22 = vadd.f32 %v6391_v2, %v6332_v26  ;;  %v6883_v27 = vadd.f32 %v6882_v21, %v6823_v5  ;;  %7193 = vmatprep.mubr.f32.mxu0 %v17481_v45  ;;  %7684 = vmatprep.mubr.f32.mxu1 %v17481_v45  ;;  %v6087_v21 = vpop.f32.mrb[72].mxu0  ;;  %vm18118_vm2 = vmmov %vm18113_vm1 }
 0x420   : > { %v5491_v50 = vadd.f32 %v5489_v54, %v15008_v20  ;;  %v5978_v34 = vrot.slane %v5974_v52, 1  ;;  %v6333_v31 = vsel %vm6269_vm6, %v6083_v1, 0.0  ;;  %v6824_v46 = vsel %vm6760_vm11, %v6574_v28, 0.0  ;;  %v6578_v10 = vpop.f32.mrb[72].mxu1  ;;  %v6089_v18 = vpop.f32.mrb[73].mxu0  ;;  %vm18119_vm8 = vmmov %vm18113_vm1 }
 0x421   : > { %v15834_v9 = vadd.f32 %v5977_v57, %v5490_v15  ;;  %v6429_v35 = vadd.f32 %v6428_v7, %v6333_v31  ;;  %v6920_v2 = vadd.f32 %v6919_v16, %v6824_v46  ;;  %vm6272_vm3 = vcmp.eq.s32.totalorder %v17731_v19, %v15554_v55  ;;  %v6580_v42 = vpop.f32.mrb[73].mxu1  ;;  %v9924_v7 = vld [vmem:[%s17165_s3 + $0xc8] sm:$0xff]  ;;  %vm18120_vm10 = vmmov %vm18113_vm1 }
 0x422   : > { %v15838_v23 = vadd.f32 %v5978_v34, %v5491_v50  ;;  %v6334_v20 = vsel %vm6270_vm7, %v6087_v21, 0.0  ;;  %v6825_v29 = vsel %vm6761_vm13, %v6578_v10, 0.0  ;;  %9544 = vmatmul.mubr.msk.f32.gmra.mrb[178].mxu0 %vm18115_vm15, %v9924_v7  ;;  %9580 = vmatmul.mubr.msk.f32.gmra.mrb[178].mxu1 %vm18116_vm9, %v9924_v7  ;;  %vm6763_vm4 = vcmp.eq.s32.totalorder %v17731_v19, %v15558_v49  ;;  %v9925_v50 = vld [vmem:[%s17165_s3 + $0xd0] sm:$0xff]  ;;  %vm18121_vm9 = vmmov %vm18118_vm2 }
 0x423   : > { %v6393_v16 = vadd.f32 %v6392_v22, %v6334_v20  ;;  %v6884_v54 = vadd.f32 %v6883_v27, %v6825_v29  ;;  %v6335_v52 = vsel %vm6271_vm5, %v6089_v18, 0.0  ;;  %v6826_v26 = vsel %vm6762_vm0, %v6580_v42, 0.0  ;;  %7199 = vmatprep.mubr.f32.mxu0 %v17481_v45  ;;  %7690 = vmatprep.mubr.f32.mxu1 %v17481_v45  ;;  %v6093_v28 = vpop.f32.mrb[74].mxu0 }
 0x424   : > { %v6430_v5 = vadd.f32 %v6429_v35, %v6335_v52  ;;  %v6921_v1 = vadd.f32 %v6920_v2, %v6826_v26  ;;  %vm6273_vm6 = vcmp.eq.s32.totalorder %v17731_v19, %v15514_v38  ;;  %vm6764_vm11 = vcmp.eq.s32.totalorder %v17731_v19, %v15550_v53  ;;  %v6584_v58 = vpop.f32.mrb[74].mxu1  ;;  %v6095_v22 = vpop.f32.mrb[75].mxu0 }
 0x425   : > { %v6336_v15 = vsel %vm6272_vm3, %v6093_v28, 0.0  ;;  %v6827_v57 = vsel %vm6763_vm4, %v6584_v58, 0.0  ;;  %v6586_v27 = vpop.f32.mrb[75].mxu1  ;;  %vm6274_vm7 = vcmp.eq.s32.totalorder %v17766_v11, %v15554_v55  ;;  %vm6765_vm13 = vcmp.eq.s32.totalorder %v17766_v11, %v15558_v49  ;;  %vm18122_vm4 = vmmov %vm18118_vm2 }
 0x426   : > { %9545 = vmatmul.mubr.msk.f32.gmra.mrb[180].mxu0 %vm18117_vm14, %v9925_v50  ;;  %9581 = vmatmul.mubr.msk.f32.gmra.mrb[180].mxu1 %vm18118_vm2, %v9925_v50  ;;  %v6394_v34 = vadd.f32 %v6393_v16, %v6336_v15  ;;  %v6885_v31 = vadd.f32 %v6884_v54, %v6827_v57  ;;  %v6337_v46 = vsel %vm6273_vm6, %v6095_v22, 0.0  ;;  %v6828_v35 = vsel %vm6764_vm11, %v6586_v27, 0.0  ;;  %v9926_v16 = vld [vmem:[%s17165_s3 + $0xd8] sm:$0xff] }
 0x427   : > { %7205 = vmatprep.mubr.f32.mxu0 %v17481_v45  ;;  %7696 = vmatprep.mubr.f32.mxu1 %v17481_v45  ;;  %v6431_v2 = vadd.f32 %v6430_v5, %v6337_v46  ;;  %v6922_v21 = vadd.f32 %v6921_v1, %v6828_v35  ;;  %vm6275_vm5 = vcmp.eq.s32.totalorder %v17766_v11, %v15514_v38  ;;  %v6099_v10 = vpop.f32.mrb[76].mxu0 }
 0x428   : > { %vm6766_vm0 = vcmp.eq.s32.totalorder %v17766_v11, %v15550_v53  ;;  %v6590_v20 = vpop.f32.mrb[76].mxu1  ;;  %v6338_v29 = vsel %vm6274_vm7, %v6099_v10, 0.0  ;;  %v6101_v42 = vpop.f32.mrb[77].mxu0  ;;  %vm6276_vm1 = vcmp.eq.s32.totalorder %v17773_v61, %v15554_v55  ;;  %vm6767_vm12 = vcmp.eq.s32.totalorder %v17773_v61, %v15558_v49  ;;  %vm18123_vm7 = vmmov %vm18122_vm4 }
 0x429   : > { %v6829_v18 = vsel %vm6765_vm13, %v6590_v20, 0.0  ;;  %v6592_v7 = vpop.f32.mrb[77].mxu1  ;;  %v6395_v54 = vadd.f32 %v6394_v34, %v6338_v29  ;;  %v6339_v26 = vsel %vm6275_vm5, %v6101_v42, 0.0  ;;  %vm6277_vm3 = vcmp.eq.s32.totalorder %v17773_v61, %v15514_v38  ;;  %v9927_v34 = vld [vmem:[%s17165_s3 + $0xe0] sm:$0xff]  ;;  %vm18124_vm13 = vmmov %vm18122_vm4 }
 0x42a   : > { %9546 = vmatmul.mubr.msk.f32.gmra.mrb[182].mxu0 %vm18119_vm8, %v9926_v16  ;;  %9582 = vmatmul.mubr.msk.f32.gmra.mrb[182].mxu1 %vm18120_vm10, %v9926_v16  ;;  %v6886_v52 = vadd.f32 %v6885_v31, %v6829_v18  ;;  %v6830_v5 = vsel %vm6766_vm0, %v6592_v7, 0.0  ;;  %v6432_v1 = vadd.f32 %v6431_v2, %v6339_v26  ;;  %vm6768_vm15 = vcmp.eq.s32.totalorder %v17773_v61, %v15550_v53 }
 0x42b   : > { %7211 = vmatprep.mubr.f32.mxu0 %v17481_v45  ;;  %7702 = vmatprep.mubr.f32.mxu1 %v17481_v45  ;;  %v6923_v28 = vadd.f32 %v6922_v21, %v6830_v5  ;;  %v6105_v58 = vpop.f32.mrb[78].mxu0  ;;  %vm6278_vm6 = vcmp.eq.s32.totalorder %v11294_v56, %v15554_v55  ;;  %vm6769_vm11 = vcmp.eq.s32.totalorder %v11294_v56, %v15558_v49 }
 0x42c   : > { %v6596_v15 = vpop.f32.mrb[78].mxu1  ;;  %v6340_v57 = vsel %vm6276_vm1, %v6105_v58, 0.0  ;;  %v6107_v27 = vpop.f32.mrb[79].mxu0  ;;  %vm6279_vm14 = vcmp.eq.s32.totalorder %v11294_v56, %v15514_v38  ;;  %vm6770_vm2 = vcmp.eq.s32.totalorder %v11294_v56, %v15550_v53  ;;  %vm6280_vm5 = vcmp.eq.s32.totalorder %v17779_v39, %v15554_v55  ;;  %vm18125_vm1 = vmmov %vm18122_vm4 }
 0x42d   : > { %v6831_v22 = vsel %vm6767_vm12, %v6596_v15, 0.0  ;;  %v6598_v50 = vpop.f32.mrb[79].mxu1  ;;  %v6396_v31 = vadd.f32 %v6395_v54, %v6340_v57  ;;  %v6341_v35 = vsel %vm6277_vm3, %v6107_v27, 0.0  ;;  %v9928_v54 = vld [vmem:[%s17165_s3 + $0xe8] sm:$0xff]  ;;  %vm6771_vm0 = vcmp.eq.s32.totalorder %v17779_v39, %v15558_v49  ;;  %vm18126_vm12 = vmmov %vm18125_vm1 }
 0x42e   : > { %9547 = vmatmul.mubr.msk.f32.gmra.mrb[184].mxu0 %vm18121_vm9, %v9927_v34  ;;  %9583 = vmatmul.mubr.msk.f32.gmra.mrb[184].mxu1 %vm18122_vm4, %v9927_v34  ;;  %v6887_v46 = vadd.f32 %v6886_v52, %v6831_v22  ;;  %v6832_v2 = vsel %vm6768_vm15, %v6598_v50, 0.0  ;;  %v6433_v21 = vadd.f32 %v6432_v1, %v6341_v35  ;;  %vm6281_vm8 = vcmp.eq.s32.totalorder %v17779_v39, %v15514_v38 }
 0x42f   : > { %7217 = vmatprep.mubr.f32.mxu0 %v17481_v45  ;;  %7708 = vmatprep.mubr.f32.mxu1 %v17481_v45  ;;  %v6924_v10 = vadd.f32 %v6923_v28, %v6832_v2  ;;  %v6111_v20 = vpop.f32.mrb[80].mxu0  ;;  %vm6772_vm10 = vcmp.eq.s32.totalorder %v17779_v39, %v15550_v53  ;;  %vm6282_vm3 = vcmp.eq.s32.totalorder %v17782_v24, %v15554_v55 }
 0x430   : > { %v6602_v29 = vpop.f32.mrb[80].mxu1  ;;  %v6342_v18 = vsel %vm6278_vm6, %v6111_v20, 0.0  ;;  %v6113_v7 = vpop.f32.mrb[81].mxu0  ;;  %vm6773_vm15 = vcmp.eq.s32.totalorder %v17782_v24, %v15558_v49  ;;  %vm6283_vm9 = vcmp.eq.s32.totalorder %v17782_v24, %v15514_v38  ;;  %vm6774_vm4 = vcmp.eq.s32.totalorder %v17782_v24, %v15550_v53  ;;  %vm18127_vm6 = vmmov %vm18125_vm1 }
 0x431   : > { %v6833_v42 = vsel %vm6769_vm11, %v6602_v29, 0.0  ;;  %v6604_v16 = vpop.f32.mrb[81].mxu1  ;;  %v6397_v52 = vadd.f32 %v6396_v31, %v6342_v18  ;;  %v6343_v5 = vsel %vm6279_vm14, %v6113_v7, 0.0  ;;  %v9929_v31 = vld [vmem:[%s17165_s3 + $0xf0] sm:$0xff]  ;;  %vm18128_vm11 = vmmov %vm18125_vm1  ;;  %vm6284_vm14 = vcmp.eq.s32.totalorder %v17785_v44, %v15554_v55 }
 0x432   : > { %9548 = vmatmul.mubr.msk.f32.gmra.mrb[186].mxu0 %vm18123_vm7, %v9928_v54  ;;  %9584 = vmatmul.mubr.msk.f32.gmra.mrb[186].mxu1 %vm18124_vm13, %v9928_v54  ;;  %v6888_v26 = vadd.f32 %v6887_v46, %v6833_v42  ;;  %v6834_v1 = vsel %vm6770_vm2, %v6604_v16, 0.0  ;;  %v6434_v28 = vadd.f32 %v6433_v21, %v6343_v5  ;;  %vm6775_vm2 = vcmp.eq.s32.totalorder %v17785_v44, %v15558_v49 }
 0x433   : > { %7223 = vmatprep.mubr.f32.mxu0 %v17481_v45  ;;  %7714 = vmatprep.mubr.f32.mxu1 %v17481_v45  ;;  %v6925_v58 = vadd.f32 %v6924_v10, %v6834_v1  ;;  %v6117_v15 = vpop.f32.mrb[82].mxu0  ;;  %vm6285_vm7 = vcmp.eq.s32.totalorder %v17785_v44, %v15514_v38  ;;  %vm6776_vm13 = vcmp.eq.s32.totalorder %v17785_v44, %v15550_v53 }
 0x434   : > { %v6608_v57 = vpop.f32.mrb[82].mxu1  ;;  %v6344_v22 = vsel %vm6280_vm5, %v6117_v15, 0.0  ;;  %v6119_v50 = vpop.f32.mrb[83].mxu0  ;;  %vm18129_vm5 = vmmov %vm18125_vm1 }
 0x435   : > { %v6835_v27 = vsel %vm6771_vm0, %v6608_v57, 0.0  ;;  %v6610_v34 = vpop.f32.mrb[83].mxu1  ;;  %v6398_v46 = vadd.f32 %v6397_v52, %v6344_v22  ;;  %v6345_v2 = vsel %vm6281_vm8, %v6119_v50, 0.0  ;;  %v9930_v52 = vld [vmem:[%s17165_s3 + $0xf8] sm:$0xff]  ;;  %vm18130_vm0 = vmmov %vm18125_vm1  ;;  %vm6286_vm8 = vcmp.eq.s32.totalorder %v17790_v51, %v15554_v55 }
 0x436   : > { %9549 = vmatmul.mubr.msk.f32.gmra.mrb[188].mxu0 %vm18125_vm1, %v9929_v31  ;;  %9585 = vmatmul.mubr.msk.f32.gmra.mrb[188].mxu1 %vm18126_vm12, %v9929_v31  ;;  %v6889_v35 = vadd.f32 %v6888_v26, %v6835_v27  ;;  %v6836_v21 = vsel %vm6772_vm10, %v6610_v34, 0.0  ;;  %v6435_v10 = vadd.f32 %v6434_v28, %v6345_v2  ;;  %vm6777_vm10 = vcmp.eq.s32.totalorder %v17790_v51, %v15558_v49 }
 0x437   : > { %7229 = vmatprep.mubr.f32.mxu0 %v17481_v45  ;;  %7720 = vmatprep.mubr.f32.mxu1 %v17481_v45  ;;  %v6926_v20 = vadd.f32 %v6925_v58, %v6836_v21  ;;  %v6123_v29 = vpop.f32.mrb[84].mxu0  ;;  %vm6287_vm1 = vcmp.eq.s32.totalorder %v17790_v51, %v15514_v38  ;;  %vm6778_vm12 = vcmp.eq.s32.totalorder %v17790_v51, %v15550_v53 }
 0x438   : > { %v6614_v18 = vpop.f32.mrb[84].mxu1  ;;  %v6346_v42 = vsel %vm6282_vm3, %v6123_v29, 0.0  ;;  %v6125_v16 = vpop.f32.mrb[85].mxu0  ;;  %vm18131_vm3 = vmmov %vm18130_vm0 }
 0x439   : > { %v6837_v7 = vsel %vm6773_vm15, %v6614_v18, 0.0  ;;  %v6616_v54 = vpop.f32.mrb[85].mxu1  ;;  %v6399_v26 = vadd.f32 %v6398_v46, %v6346_v42  ;;  %v6347_v1 = vsel %vm6283_vm9, %v6125_v16, 0.0  ;;  %v9931_v46 = vld [vmem:[%s17165_s3] sm:$0xff]  ;;  %vm18132_vm15 = vmmov %vm18130_vm0  ;;  %vm6288_vm9 = vcmp.eq.s32.totalorder %v17797_v32, %v15554_v55 }
 0x43a   : > { %9550 = vmatmul.mubr.msk.f32.gmra.mrb[190].mxu0 %vm18127_vm6, %v9930_v52  ;;  %9586 = vmatmul.mubr.msk.f32.gmra.mrb[190].mxu1 %vm18128_vm11, %v9930_v52  ;;  %v6890_v5 = vadd.f32 %v6889_v35, %v6837_v7  ;;  %v6838_v28 = vsel %vm6774_vm4, %v6616_v54, 0.0  ;;  %v6436_v58 = vadd.f32 %v6435_v10, %v6347_v1  ;;  %vm6779_vm4 = vcmp.eq.s32.totalorder %v17797_v32, %v15558_v49 }
 0x43b   : > { %8025 = vmatprep.mubr.f32.mxu0 %v17481_v45  ;;  %8516 = vmatprep.mubr.f32.mxu1 %v17481_v45  ;;  %v6927_v15 = vadd.f32 %v6926_v20, %v6838_v28  ;;  %v6129_v57 = vpop.f32.mrb[86].mxu0  ;;  %vm6289_vm6 = vcmp.eq.s32.totalorder %v17797_v32, %v15514_v38  ;;  %vm6780_vm11 = vcmp.eq.s32.totalorder %v17797_v32, %v15550_v53 }
 0x43c   : > { %v6620_v22 = vpop.f32.mrb[86].mxu1  ;;  %v6348_v27 = vsel %vm6284_vm14, %v6129_v57, 0.0  ;;  %v6131_v34 = vpop.f32.mrb[87].mxu0  ;;  %vm18133_vm14 = vmmov %vm18130_vm0 }
 0x43d   : > { %v6839_v50 = vsel %vm6775_vm2, %v6620_v22, 0.0  ;;  %v6622_v31 = vpop.f32.mrb[87].mxu1  ;;  %v6400_v35 = vadd.f32 %v6399_v26, %v6348_v27  ;;  %v6349_v21 = vsel %vm6285_vm7, %v6131_v34, 0.0  ;;  %v9932_v26 = vld [vmem:[%s17165_s3 + $0x8] sm:$0xff]  ;;  %vm18134_vm2 = vmmov %vm18130_vm0  ;;  %vm6290_vm7 = vcmp.eq.s32.totalorder %v17800_v4, %v15554_v55 }
 0x43e   : > { %9591 = vmatmul.mubr.msk.f32.vlgmr.msra.gmra.mrb[192].mxu0 %vm18129_vm5, %v9931_v46  ;;  %9627 = vmatmul.mubr.msk.f32.vlgmr.msra.gmra.mrb[192].mxu1 %vm18130_vm0, %v9931_v46  ;;  %v6891_v2 = vadd.f32 %v6890_v5, %v6839_v50  ;;  %v6840_v10 = vsel %vm6776_vm13, %v6622_v31, 0.0  ;;  %v6437_v20 = vadd.f32 %v6436_v58, %v6349_v21  ;;  %vm6781_vm13 = vcmp.eq.s32.totalorder %v17800_v4, %v15558_v49 }
 0x43f   : > { %8031 = vmatprep.mubr.f32.mxu0 %v17481_v45  ;;  %8522 = vmatprep.mubr.f32.mxu1 %v17481_v45  ;;  %v6928_v29 = vadd.f32 %v6927_v15, %v6840_v10  ;;  %v6135_v18 = vpop.f32.mrb[88].mxu0  ;;  %vm6291_vm5 = vcmp.eq.s32.totalorder %v17800_v4, %v15514_v38  ;;  %vm6782_vm0 = vcmp.eq.s32.totalorder %v17800_v4, %v15550_v53 }
 0x440   : > { %v6626_v42 = vpop.f32.mrb[88].mxu1  ;;  %v6350_v7 = vsel %vm6286_vm8, %v6135_v18, 0.0  ;;  %v6137_v54 = vpop.f32.mrb[89].mxu0  ;;  %vm18135_vm8 = vmmov %vm18134_vm2 }
 0x441   : > { %v6841_v16 = vsel %vm6777_vm10, %v6626_v42, 0.0  ;;  %v6628_v52 = vpop.f32.mrb[89].mxu1  ;;  %v6401_v5 = vadd.f32 %v6400_v35, %v6350_v7  ;;  %v6351_v28 = vsel %vm6287_vm1, %v6137_v54, 0.0  ;;  %v9933_v35 = vld [vmem:[%s17165_s3 + $0x10] sm:$0xff]  ;;  %vm18136_vm10 = vmmov %vm18134_vm2  ;;  %vm6292_vm1 = vcmp.eq.s32.totalorder %v17803_v36, %v15554_v55 }
 0x442   : > { %9592 = vmatmul.mubr.msk.f32.gmra.mrb[194].mxu0 %vm18131_vm3, %v9932_v26  ;;  %9628 = vmatmul.mubr.msk.f32.gmra.mrb[194].mxu1 %vm18132_vm15, %v9932_v26  ;;  %v6892_v1 = vadd.f32 %v6891_v2, %v6841_v16  ;;  %v6842_v58 = vsel %vm6778_vm12, %v6628_v52, 0.0  ;;  %v6438_v15 = vadd.f32 %v6437_v20, %v6351_v28  ;;  %vm6783_vm12 = vcmp.eq.s32.totalorder %v17803_v36, %v15558_v49 }
 0x443   : > { %8037 = vmatprep.mubr.f32.mxu0 %v17481_v45  ;;  %8528 = vmatprep.mubr.f32.mxu1 %v17481_v45  ;;  %v6929_v57 = vadd.f32 %v6928_v29, %v6842_v58  ;;  %v6141_v22 = vpop.f32.mrb[90].mxu0  ;;  %vm6293_vm3 = vcmp.eq.s32.totalorder %v17803_v36, %v15514_v38  ;;  %vm6784_vm15 = vcmp.eq.s32.totalorder %v17803_v36, %v15550_v53 }
 0x444   : > { %v6632_v27 = vpop.f32.mrb[90].mxu1  ;;  %v6352_v50 = vsel %vm6288_vm9, %v6141_v22, 0.0  ;;  %v6143_v31 = vpop.f32.mrb[91].mxu0  ;;  %vm18137_vm9 = vmmov %vm18134_vm2 }
 0x445   : > { %v6843_v34 = vsel %vm6779_vm4, %v6632_v27, 0.0  ;;  %v6634_v46 = vpop.f32.mrb[91].mxu1  ;;  %v6402_v2 = vadd.f32 %v6401_v5, %v6352_v50  ;;  %v6353_v10 = vsel %vm6289_vm6, %v6143_v31, 0.0  ;;  %v9934_v5 = vld [vmem:[%s17165_s3 + $0x18] sm:$0xff]  ;;  %vm18138_vm4 = vmmov %vm18134_vm2  ;;  %vm6294_vm6 = vcmp.eq.s32.totalorder %v17806_v13, %v15554_v55 }
 0x446   : > { %9593 = vmatmul.mubr.msk.f32.gmra.mrb[196].mxu0 %vm18133_vm14, %v9933_v35  ;;  %9629 = vmatmul.mubr.msk.f32.gmra.mrb[196].mxu1 %vm18134_vm2, %v9933_v35  ;;  %v6893_v21 = vadd.f32 %v6892_v1, %v6843_v34  ;;  %v6844_v20 = vsel %vm6780_vm11, %v6634_v46, 0.0  ;;  %v6439_v29 = vadd.f32 %v6438_v15, %v6353_v10  ;;  %vm6785_vm11 = vcmp.eq.s32.totalorder %v17806_v13, %v15558_v49 }
 0x447   : > { %8043 = vmatprep.mubr.f32.mxu0 %v17481_v45  ;;  %8534 = vmatprep.mubr.f32.mxu1 %v17481_v45  ;;  %v6930_v18 = vadd.f32 %v6929_v57, %v6844_v20  ;;  %v6147_v42 = vpop.f32.mrb[92].mxu0  ;;  %vm6295_vm14 = vcmp.eq.s32.totalorder %v17806_v13, %v15514_v38  ;;  %vm6786_vm2 = vcmp.eq.s32.totalorder %v17806_v13, %v15550_v53 }
 0x448   : > { %v6638_v7 = vpop.f32.mrb[92].mxu1  ;;  %v6354_v16 = vsel %vm6290_vm7, %v6147_v42, 0.0  ;;  %v6149_v52 = vpop.f32.mrb[93].mxu0  ;;  %vm18139_vm7 = vmmov %vm18138_vm4 }
 0x449   : > { %v6845_v54 = vsel %vm6781_vm13, %v6638_v7, 0.0  ;;  %v6640_v26 = vpop.f32.mrb[93].mxu1  ;;  %v6403_v1 = vadd.f32 %v6402_v2, %v6354_v16  ;;  %v6355_v58 = vsel %vm6291_vm5, %v6149_v52, 0.0  ;;  %v9935_v2 = vld [vmem:[%s17165_s3 + $0x20] sm:$0xff]  ;;  %vm18140_vm13 = vmmov %vm18138_vm4  ;;  %vm6296_vm5 = vcmp.eq.s32.totalorder %v17809_v17, %v15554_v55 }
 0x44a   : > { %9594 = vmatmul.mubr.msk.f32.gmra.mrb[198].mxu0 %vm18135_vm8, %v9934_v5  ;;  %9630 = vmatmul.mubr.msk.f32.gmra.mrb[198].mxu1 %vm18136_vm10, %v9934_v5  ;;  %v6894_v28 = vadd.f32 %v6893_v21, %v6845_v54  ;;  %v6846_v15 = vsel %vm6782_vm0, %v6640_v26, 0.0  ;;  %v6440_v57 = vadd.f32 %v6439_v29, %v6355_v58  ;;  %vm6787_vm0 = vcmp.eq.s32.totalorder %v17809_v17, %v15558_v49 }
 0x44b   : > { %8049 = vmatprep.mubr.f32.mxu0 %v17481_v45  ;;  %8540 = vmatprep.mubr.f32.mxu1 %v17481_v45  ;;  %v6931_v22 = vadd.f32 %v6930_v18, %v6846_v15  ;;  %v6153_v27 = vpop.f32.mrb[94].mxu0  ;;  %vm6297_vm8 = vcmp.eq.s32.totalorder %v17809_v17, %v15514_v38  ;;  %vm6788_vm10 = vcmp.eq.s32.totalorder %v17809_v17, %v15550_v53 }
 0x44c   : > { %v6644_v50 = vpop.f32.mrb[94].mxu1  ;;  %v6356_v34 = vsel %vm6292_vm1, %v6153_v27, 0.0  ;;  %v6155_v46 = vpop.f32.mrb[95].mxu0  ;;  %vm18141_vm1 = vmmov %vm18138_vm4 }
 0x44d   : > { %v6847_v31 = vsel %vm6783_vm12, %v6644_v50, 0.0  ;;  %v6646_v35 = vpop.f32.mrb[95].mxu1  ;;  %v6404_v21 = vadd.f32 %v6403_v1, %v6356_v34  ;;  %v6357_v20 = vsel %vm6293_vm3, %v6155_v46, 0.0  ;;  %v9936_v1 = vld [vmem:[%s17165_s3 + $0x28] sm:$0xff]  ;;  %vm18142_vm12 = vmmov %vm18141_vm1  ;;  %vm6298_vm3 = vcmp.eq.s32.totalorder %v17812_v6, %v15554_v55 }
 0x44e   : > { %9595 = vmatmul.mubr.msk.f32.gmra.mrb[200].mxu0 %vm18137_vm9, %v9935_v2  ;;  %9631 = vmatmul.mubr.msk.f32.gmra.mrb[200].mxu1 %vm18138_vm4, %v9935_v2  ;;  %v6895_v10 = vadd.f32 %v6894_v28, %v6847_v31  ;;  %v6848_v29 = vsel %vm6784_vm15, %v6646_v35, 0.0  ;;  %v6441_v18 = vadd.f32 %v6440_v57, %v6357_v20  ;;  %vm6789_vm15 = vcmp.eq.s32.totalorder %v17812_v6, %v15558_v49 }
 0x44f   : > { %8055 = vmatprep.mubr.f32.mxu0 %v17481_v45  ;;  %8546 = vmatprep.mubr.f32.mxu1 %v17481_v45  ;;  %v6932_v42 = vadd.f32 %v6931_v22, %v6848_v29  ;;  %v6159_v7 = vpop.f32.mrb[96].mxu0  ;;  %vm6299_vm9 = vcmp.eq.s32.totalorder %v17812_v6, %v15514_v38  ;;  %vm6790_vm4 = vcmp.eq.s32.totalorder %v17812_v6, %v15550_v53 }
 0x450   : > { %v6650_v16 = vpop.f32.mrb[96].mxu1  ;;  %v6358_v54 = vsel %vm6294_vm6, %v6159_v7, 0.0  ;;  %v6161_v26 = vpop.f32.mrb[97].mxu0  ;;  %vm18143_vm6 = vmmov %vm18141_vm1 }
 0x451   : > { %v6849_v52 = vsel %vm6785_vm11, %v6650_v16, 0.0  ;;  %v6652_v5 = vpop.f32.mrb[97].mxu1  ;;  %v6405_v28 = vadd.f32 %v6404_v21, %v6358_v54  ;;  %v6359_v15 = vsel %vm6295_vm14, %v6161_v26, 0.0  ;;  %v9937_v21 = vld [vmem:[%s17165_s3 + $0x30] sm:$0xff]  ;;  %vm18144_vm11 = vmmov %vm18141_vm1  ;;  %vm6300_vm14 = vcmp.eq.s32.totalorder %v17815_v62, %v15554_v55 }
 0x452   : > { %9596 = vmatmul.mubr.msk.f32.gmra.mrb[202].mxu0 %vm18139_vm7, %v9936_v1  ;;  %9632 = vmatmul.mubr.msk.f32.gmra.mrb[202].mxu1 %vm18140_vm13, %v9936_v1  ;;  %v6896_v58 = vadd.f32 %v6895_v10, %v6849_v52  ;;  %v6850_v57 = vsel %vm6786_vm2, %v6652_v5, 0.0  ;;  %v6442_v22 = vadd.f32 %v6441_v18, %v6359_v15  ;;  %vm6791_vm2 = vcmp.eq.s32.totalorder %v17815_v62, %v15558_v49 }
 0x453   : > { %8061 = vmatprep.mubr.f32.mxu0 %v17481_v45  ;;  %8552 = vmatprep.mubr.f32.mxu1 %v17481_v45  ;;  %v6933_v27 = vadd.f32 %v6932_v42, %v6850_v57  ;;  %v6165_v50 = vpop.f32.mrb[98].mxu0  ;;  %vm6301_vm7 = vcmp.eq.s32.totalorder %v17815_v62, %v15514_v38  ;;  %vm6792_vm13 = vcmp.eq.s32.totalorder %v17815_v62, %v15550_v53 }
 0x454   : > { %v6656_v34 = vpop.f32.mrb[98].mxu1  ;;  %v6360_v31 = vsel %vm6296_vm5, %v6165_v50, 0.0  ;;  %v6167_v35 = vpop.f32.mrb[99].mxu0  ;;  %vm18145_vm5 = vmmov %vm18141_vm1 }
 0x455   : > { %v6851_v46 = vsel %vm6787_vm0, %v6656_v34, 0.0  ;;  %v6658_v2 = vpop.f32.mrb[99].mxu1  ;;  %v6406_v10 = vadd.f32 %v6405_v28, %v6360_v31  ;;  %v6361_v29 = vsel %vm6297_vm8, %v6167_v35, 0.0  ;;  %v9938_v28 = vld [vmem:[%s17165_s3 + $0x38] sm:$0xff]  ;;  %vm18146_vm0 = vmmov %vm18141_vm1  ;;  %vm6302_vm8 = vcmp.eq.s32.totalorder %v17575_v12, %v15554_v55 }
 0x456   : > { %9597 = vmatmul.mubr.msk.f32.gmra.mrb[204].mxu0 %vm18141_vm1, %v9937_v21  ;;  %9633 = vmatmul.mubr.msk.f32.gmra.mrb[204].mxu1 %vm18142_vm12, %v9937_v21  ;;  %v6897_v20 = vadd.f32 %v6896_v58, %v6851_v46  ;;  %v6852_v18 = vsel %vm6788_vm10, %v6658_v2, 0.0  ;;  %v6443_v42 = vadd.f32 %v6442_v22, %v6361_v29  ;;  %vm6793_vm10 = vcmp.eq.s32.totalorder %v17575_v12, %v15558_v49 }
 0x457   : > { %8067 = vmatprep.mubr.f32.mxu0 %v17481_v45  ;;  %8558 = vmatprep.mubr.f32.mxu1 %v17481_v45  ;;  %v6934_v7 = vadd.f32 %v6933_v27, %v6852_v18  ;;  %v6171_v16 = vpop.f32.mrb[100].mxu0  ;;  %vm6303_vm1 = vcmp.eq.s32.totalorder %v17575_v12, %v15514_v38  ;;  %vm6794_vm12 = vcmp.eq.s32.totalorder %v17575_v12, %v15550_v53 }
 0x458   : > { %v6662_v54 = vpop.f32.mrb[100].mxu1  ;;  %v6362_v52 = vsel %vm6298_vm3, %v6171_v16, 0.0  ;;  %v6173_v5 = vpop.f32.mrb[101].mxu0  ;;  %vm18147_vm3 = vmmov %vm18146_vm0 }
 0x459   : > { %v6853_v26 = vsel %vm6789_vm15, %v6662_v54, 0.0  ;;  %v6664_v1 = vpop.f32.mrb[101].mxu1  ;;  %v6407_v58 = vadd.f32 %v6406_v10, %v6362_v52  ;;  %v6363_v57 = vsel %vm6299_vm9, %v6173_v5, 0.0  ;;  %v9939_v10 = vld [vmem:[%s17165_s3 + $0x40] sm:$0xff]  ;;  %vm18148_vm15 = vmmov %vm18146_vm0  ;;  %vm6304_vm9 = vcmp.eq.s32.totalorder %v17586_v47, %v15554_v55 }
 0x45a   : > { %9598 = vmatmul.mubr.msk.f32.gmra.mrb[206].mxu0 %vm18143_vm6, %v9938_v28  ;;  %9634 = vmatmul.mubr.msk.f32.gmra.mrb[206].mxu1 %vm18144_vm11, %v9938_v28  ;;  %v6898_v15 = vadd.f32 %v6897_v20, %v6853_v26  ;;  %v6854_v22 = vsel %vm6790_vm4, %v6664_v1, 0.0  ;;  %v6444_v27 = vadd.f32 %v6443_v42, %v6363_v57  ;;  %vm6795_vm4 = vcmp.eq.s32.totalorder %v17586_v47, %v15558_v49 }
 0x45b   : > { %8073 = vmatprep.mubr.f32.mxu0 %v17481_v45  ;;  %8564 = vmatprep.mubr.f32.mxu1 %v17481_v45  ;;  %v6935_v50 = vadd.f32 %v6934_v7, %v6854_v22  ;;  %v6177_v34 = vpop.f32.mrb[102].mxu0  ;;  %vm6305_vm6 = vcmp.eq.s32.totalorder %v17586_v47, %v15514_v38  ;;  %vm6796_vm11 = vcmp.eq.s32.totalorder %v17586_v47, %v15550_v53 }
 0x45c   : > { %v6668_v31 = vpop.f32.mrb[102].mxu1  ;;  %v6364_v46 = vsel %vm6300_vm14, %v6177_v34, 0.0  ;;  %v6179_v2 = vpop.f32.mrb[103].mxu0  ;;  %vm18149_vm14 = vmmov %vm18146_vm0 }
 0x45d   : > { %v6855_v35 = vsel %vm6791_vm2, %v6668_v31, 0.0  ;;  %v6670_v21 = vpop.f32.mrb[103].mxu1  ;;  %v6408_v20 = vadd.f32 %v6407_v58, %v6364_v46  ;;  %v6365_v18 = vsel %vm6301_vm7, %v6179_v2, 0.0  ;;  %v9940_v58 = vld [vmem:[%s17165_s3 + $0x48] sm:$0xff]  ;;  %vm18150_vm2 = vmmov %vm18146_vm0  ;;  %vm6306_vm7 = vcmp.eq.s32.totalorder %v17594_v30, %v15554_v55 }
 0x45e   : > { %9599 = vmatmul.mubr.msk.f32.gmra.mrb[208].mxu0 %vm18145_vm5, %v9939_v10  ;;  %9635 = vmatmul.mubr.msk.f32.gmra.mrb[208].mxu1 %vm18146_vm0, %v9939_v10  ;;  %v6899_v29 = vadd.f32 %v6898_v15, %v6855_v35  ;;  %v6856_v42 = vsel %vm6792_vm13, %v6670_v21, 0.0  ;;  %v6445_v7 = vadd.f32 %v6444_v27, %v6365_v18  ;;  %vm6797_vm13 = vcmp.eq.s32.totalorder %v17594_v30, %v15558_v49 }
 0x45f   : > { %8079 = vmatprep.mubr.f32.mxu0 %v17481_v45  ;;  %8570 = vmatprep.mubr.f32.mxu1 %v17481_v45  ;;  %v6936_v16 = vadd.f32 %v6935_v50, %v6856_v42  ;;  %v6183_v54 = vpop.f32.mrb[104].mxu0  ;;  %vm6307_vm5 = vcmp.eq.s32.totalorder %v17594_v30, %v15514_v38  ;;  %vm6798_vm0 = vcmp.eq.s32.totalorder %v17594_v30, %v15550_v53 }
 0x460   : > { %v6674_v52 = vpop.f32.mrb[104].mxu1  ;;  %v6366_v26 = vsel %vm6302_vm8, %v6183_v54, 0.0  ;;  %v6185_v1 = vpop.f32.mrb[105].mxu0  ;;  %vm18151_vm8 = vmmov %vm18150_vm2 }
 0x461   : > { %v6857_v5 = vsel %vm6793_vm10, %v6674_v52, 0.0  ;;  %v6676_v28 = vpop.f32.mrb[105].mxu1  ;;  %v6409_v15 = vadd.f32 %v6408_v20, %v6366_v26  ;;  %v6367_v22 = vsel %vm6303_vm1, %v6185_v1, 0.0  ;;  %v9941_v20 = vld [vmem:[%s17165_s3 + $0x50] sm:$0xff]  ;;  %vm18152_vm10 = vmmov %vm18150_vm2  ;;  %vm6308_vm1 = vcmp.eq.s32.totalorder %v17608_v60, %v15554_v55 }
 0x462   : > { %9600 = vmatmul.mubr.msk.f32.gmra.mrb[210].mxu0 %vm18147_vm3, %v9940_v58  ;;  %9636 = vmatmul.mubr.msk.f32.gmra.mrb[210].mxu1 %vm18148_vm15, %v9940_v58  ;;  %v6900_v57 = vadd.f32 %v6899_v29, %v6857_v5  ;;  %v6858_v27 = vsel %vm6794_vm12, %v6676_v28, 0.0  ;;  %v6446_v50 = vadd.f32 %v6445_v7, %v6367_v22  ;;  %vm6799_vm12 = vcmp.eq.s32.totalorder %v17608_v60, %v15558_v49 }
 0x463   : > { %8085 = vmatprep.mubr.f32.mxu0 %v17481_v45  ;;  %8576 = vmatprep.mubr.f32.mxu1 %v17481_v45  ;;  %v6937_v34 = vadd.f32 %v6936_v16, %v6858_v27  ;;  %v6189_v31 = vpop.f32.mrb[106].mxu0  ;;  %vm6309_vm3 = vcmp.eq.s32.totalorder %v17608_v60, %v15514_v38  ;;  %vm6800_vm15 = vcmp.eq.s32.totalorder %v17608_v60, %v15550_v53 }
 0x464   : > { %v6680_v46 = vpop.f32.mrb[106].mxu1  ;;  %v6368_v35 = vsel %vm6304_vm9, %v6189_v31, 0.0  ;;  %v6191_v21 = vpop.f32.mrb[107].mxu0  ;;  %vm18153_vm9 = vmmov %vm18150_vm2 }
 0x465   : > { %v6859_v2 = vsel %vm6795_vm4, %v6680_v46, 0.0  ;;  %v6682_v10 = vpop.f32.mrb[107].mxu1  ;;  %v6410_v29 = vadd.f32 %v6409_v15, %v6368_v35  ;;  %v6369_v42 = vsel %vm6305_vm6, %v6191_v21, 0.0  ;;  %v9942_v15 = vld [vmem:[%s17165_s3 + $0x58] sm:$0xff]  ;;  %vm18154_vm4 = vmmov %vm18150_vm2  ;;  %vm6310_vm6 = vcmp.eq.s32.totalorder %v17978_v14, %v15554_v55 }
 0x466   : > { %9601 = vmatmul.mubr.msk.f32.gmra.mrb[212].mxu0 %vm18149_vm14, %v9941_v20  ;;  %9637 = vmatmul.mubr.msk.f32.gmra.mrb[212].mxu1 %vm18150_vm2, %v9941_v20  ;;  %v6901_v18 = vadd.f32 %v6900_v57, %v6859_v2  ;;  %v6860_v7 = vsel %vm6796_vm11, %v6682_v10, 0.0  ;;  %v6447_v16 = vadd.f32 %v6446_v50, %v6369_v42  ;;  %vm6801_vm11 = vcmp.eq.s32.totalorder %v17978_v14, %v15558_v49 }
 0x467   : > { %8091 = vmatprep.mubr.f32.mxu0 %v17481_v45  ;;  %8582 = vmatprep.mubr.f32.mxu1 %v17481_v45  ;;  %v6938_v54 = vadd.f32 %v6937_v34, %v6860_v7  ;;  %v6195_v52 = vpop.f32.mrb[108].mxu0  ;;  %vm6311_vm14 = vcmp.eq.s32.totalorder %v17978_v14, %v15514_v38  ;;  %vm6802_vm2 = vcmp.eq.s32.totalorder %v17978_v14, %v15550_v53 }
 0x468   : > { %v6686_v26 = vpop.f32.mrb[108].mxu1  ;;  %v6370_v5 = vsel %vm6306_vm7, %v6195_v52, 0.0  ;;  %v6197_v28 = vpop.f32.mrb[109].mxu0  ;;  %vm18155_vm7 = vmmov %vm18154_vm4 }
 0x469   : > { %v6861_v1 = vsel %vm6797_vm13, %v6686_v26, 0.0  ;;  %v6688_v58 = vpop.f32.mrb[109].mxu1  ;;  %v6411_v57 = vadd.f32 %v6410_v29, %v6370_v5  ;;  %v6371_v27 = vsel %vm6307_vm5, %v6197_v28, 0.0  ;;  %v9943_v29 = vld [vmem:[%s17165_s3 + $0x60] sm:$0xff]  ;;  %vm18156_vm13 = vmmov %vm18154_vm4  ;;  %vm6312_vm5 = vcmp.eq.s32.totalorder %v17981_v63, %v15554_v55 }
 0x46a   : > { %9602 = vmatmul.mubr.msk.f32.gmra.mrb[214].mxu0 %vm18151_vm8, %v9942_v15  ;;  %9638 = vmatmul.mubr.msk.f32.gmra.mrb[214].mxu1 %vm18152_vm10, %v9942_v15  ;;  %v6902_v22 = vadd.f32 %v6901_v18, %v6861_v1  ;;  %v6862_v50 = vsel %vm6798_vm0, %v6688_v58, 0.0  ;;  %v6448_v34 = vadd.f32 %v6447_v16, %v6371_v27  ;;  %vm6803_vm0 = vcmp.eq.s32.totalorder %v17981_v63, %v15558_v49 }
 0x46b   : > { %8097 = vmatprep.mubr.f32.mxu0 %v17481_v45  ;;  %8588 = vmatprep.mubr.f32.mxu1 %v17481_v45  ;;  %v6939_v31 = vadd.f32 %v6938_v54, %v6862_v50  ;;  %v6201_v46 = vpop.f32.mrb[110].mxu0  ;;  %vm6313_vm8 = vcmp.eq.s32.totalorder %v17981_v63, %v15514_v38  ;;  %vm6804_vm10 = vcmp.eq.s32.totalorder %v17981_v63, %v15550_v53 }
 0x46c   : > { %v6692_v35 = vpop.f32.mrb[110].mxu1  ;;  %v6372_v2 = vsel %vm6308_vm1, %v6201_v46, 0.0  ;;  %v6203_v10 = vpop.f32.mrb[111].mxu0  ;;  %vm18157_vm1 = vmmov %vm18154_vm4 }
 0x46d   : > { %v6863_v21 = vsel %vm6799_vm12, %v6692_v35, 0.0  ;;  %v6694_v20 = vpop.f32.mrb[111].mxu1  ;;  %v6412_v18 = vadd.f32 %v6411_v57, %v6372_v2  ;;  %v6373_v7 = vsel %vm6309_vm3, %v6203_v10, 0.0  ;;  %v9944_v57 = vld [vmem:[%s17165_s3 + $0x68] sm:$0xff]  ;;  %vm18158_vm12 = vmmov %vm18157_vm1  ;;  %vm6314_vm3 = vcmp.eq.s32.totalorder %v17984_v43, %v15554_v55 }
 0x46e   : > { %9603 = vmatmul.mubr.msk.f32.gmra.mrb[216].mxu0 %vm18153_vm9, %v9943_v29  ;;  %9639 = vmatmul.mubr.msk.f32.gmra.mrb[216].mxu1 %vm18154_vm4, %v9943_v29  ;;  %v6903_v42 = vadd.f32 %v6902_v22, %v6863_v21  ;;  %v6864_v16 = vsel %vm6800_vm15, %v6694_v20, 0.0  ;;  %v6449_v54 = vadd.f32 %v6448_v34, %v6373_v7  ;;  %vm6805_vm15 = vcmp.eq.s32.totalorder %v17984_v43, %v15558_v49 }
 0x46f   : > { %8103 = vmatprep.mubr.f32.mxu0 %v17481_v45  ;;  %8594 = vmatprep.mubr.f32.mxu1 %v17481_v45  ;;  %v6940_v52 = vadd.f32 %v6939_v31, %v6864_v16  ;;  %v6207_v26 = vpop.f32.mrb[112].mxu0  ;;  %vm6315_vm9 = vcmp.eq.s32.totalorder %v17984_v43, %v15514_v38  ;;  %vm6806_vm4 = vcmp.eq.s32.totalorder %v17984_v43, %v15550_v53 }
 0x470   : > { %v6698_v5 = vpop.f32.mrb[112].mxu1  ;;  %v6374_v1 = vsel %vm6310_vm6, %v6207_v26, 0.0  ;;  %v6209_v58 = vpop.f32.mrb[113].mxu0  ;;  %vm18159_vm6 = vmmov %vm18157_vm1 }
 0x471   : > { %v6865_v28 = vsel %vm6801_vm11, %v6698_v5, 0.0  ;;  %v6700_v15 = vpop.f32.mrb[113].mxu1  ;;  %v6413_v22 = vadd.f32 %v6412_v18, %v6374_v1  ;;  %v6375_v50 = vsel %vm6311_vm14, %v6209_v58, 0.0  ;;  %v9945_v18 = vld [vmem:[%s17165_s3 + $0x70] sm:$0xff]  ;;  %vm18160_vm11 = vmmov %vm18157_vm1  ;;  %vm6316_vm14 = vcmp.eq.s32.totalorder %v18081_v0, %v15554_v55 }
 0x472   : > { %9604 = vmatmul.mubr.msk.f32.gmra.mrb[218].mxu0 %vm18155_vm7, %v9944_v57  ;;  %9640 = vmatmul.mubr.msk.f32.gmra.mrb[218].mxu1 %vm18156_vm13, %v9944_v57  ;;  %v6904_v27 = vadd.f32 %v6903_v42, %v6865_v28  ;;  %v6866_v34 = vsel %vm6802_vm2, %v6700_v15, 0.0  ;;  %v6450_v31 = vadd.f32 %v6449_v54, %v6375_v50  ;;  %vm6807_vm2 = vcmp.eq.s32.totalorder %v18081_v0, %v15558_v49 }
 0x473   : > { %8109 = vmatprep.mubr.f32.mxu0 %v17481_v45  ;;  %8600 = vmatprep.mubr.f32.mxu1 %v17481_v45  ;;  %v6941_v46 = vadd.f32 %v6940_v52, %v6866_v34  ;;  %v6213_v35 = vpop.f32.mrb[114].mxu0  ;;  %vm6317_vm7 = vcmp.eq.s32.totalorder %v18081_v0, %v15514_v38  ;;  %vm6808_vm13 = vcmp.eq.s32.totalorder %v18081_v0, %v15550_v53 }
 0x474   : > { %v6704_v2 = vpop.f32.mrb[114].mxu1  ;;  %v6376_v21 = vsel %vm6312_vm5, %v6213_v35, 0.0  ;;  %v6215_v20 = vpop.f32.mrb[115].mxu0  ;;  %vm18161_vm5 = vmmov %vm18157_vm1 }
 0x475   : > { %v6867_v10 = vsel %vm6803_vm0, %v6704_v2, 0.0  ;;  %v6706_v29 = vpop.f32.mrb[115].mxu1  ;;  %v6414_v42 = vadd.f32 %v6413_v22, %v6376_v21  ;;  %v6377_v16 = vsel %vm6313_vm8, %v6215_v20, 0.0  ;;  %v9946_v22 = vld [vmem:[%s17165_s3 + $0x78] sm:$0xff]  ;;  %vm18162_vm0 = vmmov %vm18157_vm1  ;;  %vm6318_vm8 = vcmp.eq.s32.totalorder %v18086_v8, %v15554_v55 }
 0x476   : > { %9605 = vmatmul.mubr.msk.f32.gmra.mrb[220].mxu0 %vm18157_vm1, %v9945_v18  ;;  %9641 = vmatmul.mubr.msk.f32.gmra.mrb[220].mxu1 %vm18158_vm12, %v9945_v18  ;;  %v6905_v7 = vadd.f32 %v6904_v27, %v6867_v10  ;;  %v6868_v54 = vsel %vm6804_vm10, %v6706_v29, 0.0  ;;  %v6451_v52 = vadd.f32 %v6450_v31, %v6377_v16  ;;  %vm6809_vm10 = vcmp.eq.s32.totalorder %v18086_v8, %v15558_v49 }
 0x477   : > { %8115 = vmatprep.mubr.f32.mxu0 %v17481_v45  ;;  %8606 = vmatprep.mubr.f32.mxu1 %v17481_v45  ;;  %v6942_v26 = vadd.f32 %v6941_v46, %v6868_v54  ;;  %v6219_v5 = vpop.f32.mrb[116].mxu0  ;;  %vm6319_vm1 = vcmp.eq.s32.totalorder %v18086_v8, %v15514_v38  ;;  %vm6810_vm12 = vcmp.eq.s32.totalorder %v18086_v8, %v15550_v53 }
 0x478   : > { %v6710_v1 = vpop.f32.mrb[116].mxu1  ;;  %v6378_v28 = vsel %vm6314_vm3, %v6219_v5, 0.0  ;;  %v6221_v15 = vpop.f32.mrb[117].mxu0  ;;  %vm18163_vm3 = vmmov %vm18162_vm0 }
 0x479   : > { %v6869_v58 = vsel %vm6805_vm15, %v6710_v1, 0.0  ;;  %v6712_v57 = vpop.f32.mrb[117].mxu1  ;;  %v6415_v27 = vadd.f32 %v6414_v42, %v6378_v28  ;;  %v6379_v34 = vsel %vm6315_vm9, %v6221_v15, 0.0  ;;  %v9947_v42 = vld [vmem:[%s17165_s3 + $0x80] sm:$0xff]  ;;  %vm18164_vm15 = vmmov %vm18162_vm0  ;;  %vm6320_vm9 = vcmp.eq.s32.totalorder %v18089_v25, %v15554_v55 }
 0x47a   : > { %9606 = vmatmul.mubr.msk.f32.gmra.mrb[222].mxu0 %vm18159_vm6, %v9946_v22  ;;  %9642 = vmatmul.mubr.msk.f32.gmra.mrb[222].mxu1 %vm18160_vm11, %v9946_v22  ;;  %v6906_v50 = vadd.f32 %v6905_v7, %v6869_v58  ;;  %v6870_v31 = vsel %vm6806_vm4, %v6712_v57, 0.0  ;;  %v6452_v46 = vadd.f32 %v6451_v52, %v6379_v34  ;;  %vm6811_vm4 = vcmp.eq.s32.totalorder %v18089_v25, %v15558_v49 }
 0x47b   : > { %8121 = vmatprep.mubr.f32.mxu0 %v17481_v45  ;;  %8612 = vmatprep.mubr.f32.mxu1 %v17481_v45  ;;  %v6943_v35 = vadd.f32 %v6942_v26, %v6870_v31  ;;  %v6225_v2 = vpop.f32.mrb[118].mxu0  ;;  %vm6321_vm6 = vcmp.eq.s32.totalorder %v18089_v25, %v15514_v38  ;;  %vm6812_vm11 = vcmp.eq.s32.totalorder %v18089_v25, %v15550_v53 }
 0x47c   : > { %v6716_v21 = vpop.f32.mrb[118].mxu1  ;;  %v6380_v10 = vsel %vm6316_vm14, %v6225_v2, 0.0  ;;  %v6227_v29 = vpop.f32.mrb[119].mxu0  ;;  %vm18166_vm14 = vmmov %vm18162_vm0 }
 0x47d   : > { %v6871_v20 = vsel %vm6807_vm2, %v6716_v21, 0.0  ;;  %v6718_v18 = vpop.f32.mrb[119].mxu1  ;;  %v6416_v7 = vadd.f32 %v6415_v27, %v6380_v10  ;;  %v6381_v54 = vsel %vm6317_vm7, %v6227_v29, 0.0  ;;  %v9948_v27 = vld [vmem:[%s17165_s3 + $0x88] sm:$0xff]  ;;  %vm18167_vm2 = vmmov %vm18162_vm0 }
 0x47e   : > { %9607 = vmatmul.mubr.msk.f32.gmra.mrb[224].mxu0 %vm18161_vm5, %v9947_v42  ;;  %9643 = vmatmul.mubr.msk.f32.gmra.mrb[224].mxu1 %vm18162_vm0, %v9947_v42  ;;  %v6907_v16 = vadd.f32 %v6906_v50, %v6871_v20  ;;  %v6872_v52 = vsel %vm6808_vm13, %v6718_v18, 0.0  ;;  %v6453_v26 = vadd.f32 %v6452_v46, %v6381_v54  ;;  %v18165_v21 = vld [vmem:[#allocation53_spill] sm:$0xff] }
 0x47f   : > { %8127 = vmatprep.mubr.f32.mxu0 %v17481_v45  ;;  %8618 = vmatprep.mubr.f32.mxu1 %v17481_v45  ;;  %v6944_v5 = vadd.f32 %v6943_v35, %v6872_v52  ;;  %v6231_v1 = vpop.f32.mrb[120].mxu0  ;;  %v16230_v10 = vrot.slane %v18080_v3, %v18165_v21  ;;  %v16234_v20 = vrot.slane %v18085_v37, %v18165_v21  ;;  %v9949_v52 = vld [vmem:[%s17165_s3 + $0x90] sm:$0xff] }
 0x480   : > { %v6722_v28 = vpop.f32.mrb[120].mxu1  ;;  %v6382_v58 = vsel %vm6318_vm8, %v6231_v1, 0.0  ;;  %v6233_v57 = vpop.f32.mrb[121].mxu0 }
 0x481   : > { %v6873_v15 = vsel %vm6809_vm10, %v6722_v28, 0.0  ;;  %v6724_v22 = vpop.f32.mrb[121].mxu1  ;;  %v6417_v50 = vadd.f32 %v6416_v7, %v6382_v58  ;;  %v6383_v31 = vsel %vm6319_vm1, %v6233_v57, 0.0  ;;  %vm18171_vm1 = vmmov %vm18167_vm2 }
 0x482   : > { %9608 = vmatmul.mubr.msk.f32.gmra.mrb[226].mxu0 %vm18163_vm3, %v9948_v27  ;;  %9644 = vmatmul.mubr.msk.f32.gmra.mrb[226].mxu1 %vm18164_vm15, %v9948_v27  ;;  %v6908_v34 = vadd.f32 %v6907_v16, %v6873_v15  ;;  %v6874_v46 = vsel %vm6810_vm12, %v6724_v22, 0.0  ;;  %v6454_v35 = vadd.f32 %v6453_v26, %v6383_v31  ;;  %v18168_v26 = vld [vmem:[#allocation91_spill] sm:$0xff]  ;;  %v18169_v22 = vld [vmem:[#allocation54_spill] sm:$0xff]  ;;  %vm18172_vm12 = vmmov %vm18171_vm1 }
 0x483   : > { %8133 = vmatprep.mubr.f32.mxu0 %v17481_v45  ;;  %8624 = vmatprep.mubr.f32.mxu1 %v17481_v45  ;;  %v6945_v2 = vadd.f32 %v6944_v5, %v6874_v46  ;;  %v6237_v29 = vpop.f32.mrb[122].mxu0  ;;  %vm6322_vm7 = vcmp.eq.s32.totalorder %v18168_v26, %v15554_v55  ;;  %vm6813_vm13 = vcmp.eq.s32.totalorder %v18168_v26, %v15558_v49  ;;  %v18170_v46 = vld [vmem:[#allocation92_spill] sm:$0xff] }
 0x484   : > { %v6728_v18 = vpop.f32.mrb[122].mxu1  ;;  %v6384_v42 = vsel %vm6320_vm9, %v6237_v29, 0.0  ;;  %v6239_v16 = vpop.f32.mrb[123].mxu0  ;;  %vm6323_vm5 = vcmp.eq.s32.totalorder %v18168_v26, %v15514_v38  ;;  %vm6814_vm0 = vcmp.eq.s32.totalorder %v18168_v26, %v15550_v53  ;;  %v16265_v27 = vrot.slane %v18080_v3, %v18169_v22 }
 0x485   : > { %v6875_v7 = vsel %vm6811_vm4, %v6728_v18, 0.0  ;;  %v6730_v54 = vpop.f32.mrb[123].mxu1  ;;  %v6418_v5 = vadd.f32 %v6417_v50, %v6384_v42  ;;  %v6385_v28 = vsel %vm6321_vm6, %v6239_v16, 0.0  ;;  %v16269_v50 = vrot.slane %v18085_v37, %v18169_v22  ;;  %v9950_v18 = vld [vmem:[%s17165_s3 + $0x98] sm:$0xff] }
 0x486   : > { %9609 = vmatmul.mubr.msk.f32.gmra.mrb[228].mxu0 %vm18166_vm14, %v9949_v52  ;;  %9645 = vmatmul.mubr.msk.f32.gmra.mrb[228].mxu1 %vm18167_vm2, %v9949_v52  ;;  %v6909_v1 = vadd.f32 %v6908_v34, %v6875_v7  ;;  %v6876_v58 = vsel %vm6812_vm11, %v6730_v54, 0.0  ;;  %v6455_v15 = vadd.f32 %v6454_v35, %v6385_v28  ;;  %vm6324_vm8 = vcmp.eq.s32.totalorder %v18170_v46, %v15554_v55  ;;  %v18174_v22 = vld [vmem:[#allocation59_spill] sm:$0xff] }
 0x487   : > { %8139 = vmatprep.mubr.f32.mxu0 %v17481_v45  ;;  %8630 = vmatprep.mubr.f32.mxu1 %v17481_v45  ;;  %v6946_v57 = vadd.f32 %v6945_v2, %v6876_v58  ;;  %v6243_v34 = vpop.f32.mrb[124].mxu0  ;;  %vm6815_vm10 = vcmp.eq.s32.totalorder %v18170_v46, %v15558_v49  ;;  %vm6325_vm3 = vcmp.eq.s32.totalorder %v18170_v46, %v15514_v38  ;;  %v18173_v58 = vld [vmem:[#allocation9_spill] sm:$0xff] }
 0x488   : > { %v6734_v31 = vpop.f32.mrb[124].mxu1  ;;  %v6386_v35 = vsel %vm6322_vm7, %v6243_v34, 0.0  ;;  %v6245_v21 = vpop.f32.mrb[125].mxu0  ;;  %vm6816_vm15 = vcmp.eq.s32.totalorder %v18170_v46, %v15550_v53  ;;  %vm7244_vm9 = vcmp.eq.s32.totalorder %v18173_v58, %v16234_v20  ;;  %vm7245_vm4 = vcmp.eq.s32.totalorder %v18173_v58, %v16230_v10  ;;  %vm18175_vm7 = vmmov %vm18171_vm1 }
 0x489   : > { %v6877_v2 = vsel %vm6813_vm13, %v6734_v31, 0.0  ;;  %v6736_v29 = vpop.f32.mrb[125].mxu1  ;;  %v6419_v42 = vadd.f32 %v6418_v5, %v6386_v35  ;;  %v6387_v16 = vsel %vm6323_vm5, %v6245_v21, 0.0  ;;  %vm7735_vm6 = vcmp.eq.s32.totalorder %v18173_v58, %v16269_v50  ;;  %v9951_v35 = vld [vmem:[%s17165_s3 + $0xa0] sm:$0xff]  ;;  %vm18176_vm13 = vmmov %vm18171_vm1 }
 0x48a   : > { %9610 = vmatmul.mubr.msk.f32.gmra.mrb[230].mxu0 %vm18171_vm1, %v9950_v18  ;;  %9646 = vmatmul.mubr.msk.f32.gmra.mrb[230].mxu1 %vm18172_vm12, %v9950_v18  ;;  %v6910_v7 = vadd.f32 %v6909_v1, %v6877_v2  ;;  %v6878_v54 = vsel %vm6814_vm0, %v6736_v29, 0.0  ;;  %v6456_v52 = vadd.f32 %v6455_v15, %v6387_v16  ;;  %vm7736_vm11 = vcmp.eq.s32.totalorder %v18173_v58, %v16265_v27 }
 0x48b   : > { %8145 = vmatprep.mubr.f32.mxu0 %v17481_v45  ;;  %8636 = vmatprep.mubr.f32.mxu1 %v17481_v45  ;;  %v6947_v28 = vadd.f32 %v6946_v57, %v6878_v54  ;;  %v6249_v5 = vpop.f32.mrb[126].mxu0  ;;  %vm7246_vm14 = vcmp.eq.s32.totalorder %v18174_v22, %v16234_v20  ;;  %vm7737_vm2 = vcmp.eq.s32.totalorder %v18174_v22, %v16269_v50 }
 0x48c   : > { %v6740_v1 = vpop.f32.mrb[126].mxu1  ;;  %v6388_v15 = vsel %vm6324_vm8, %v6249_v5, 0.0  ;;  %v6251_v34 = vpop.f32.mrb[127].mxu0  ;;  %vm7247_vm5 = vcmp.eq.s32.totalorder %v18174_v22, %v16230_v10  ;;  %vm7738_vm0 = vcmp.eq.s32.totalorder %v18174_v22, %v16265_v27  ;;  %vm7248_vm8 = vcmp.eq.s32.totalorder %v17718_v33, %v16234_v20  ;;  %v9952_v5 = vld [vmem:[%s17165_s3 + $0xa8] sm:$0xff] }
 0x48d   : > { %v6879_v57 = vsel %vm6815_vm10, %v6740_v1, 0.0  ;;  %v6742_v31 = vpop.f32.mrb[127].mxu1  ;;  %v6420_v55 = vadd.f32 %v6419_v42, %v6388_v15  ;;  %v6389_v49 = vsel %vm6325_vm3, %v6251_v34, 0.0  ;;  %vm7739_vm10 = vcmp.eq.s32.totalorder %v17718_v33, %v16269_v50  ;;  %vm18177_vm3 = vmmov %vm18175_vm7 }
 0x48e   : > { %9611 = vmatmul.mubr.msk.f32.gmra.mrb[232].mxu0 %vm18175_vm7, %v9951_v35  ;;  %9647 = vmatmul.mubr.msk.f32.gmra.mrb[232].mxu1 %vm18176_vm13, %v9951_v35  ;;  %v6911_v2 = vadd.f32 %v6910_v7, %v6879_v57  ;;  %v6880_v21 = vsel %vm6816_vm15, %v6742_v31, 0.0  ;;  %v6457_v29 = vadd.f32 %v6456_v52, %v6389_v49  ;;  %vm7249_vm1 = vcmp.eq.s32.totalorder %v17718_v33, %v16230_v10  ;;  %vm18178_vm15 = vmmov %vm18177_vm3 }
 0x48f   : > { %8151 = vmatprep.mubr.f32.mxu0 %v17481_v45  ;;  %8642 = vmatprep.mubr.f32.mxu1 %v17481_v45  ;;  %v6948_v18 = vadd.f32 %v6947_v28, %v6880_v21  ;;  %v6421_v42 = vrot.slane %v6420_v55, 4  ;;  %v7045_v38 = vpop.f32.mrb[128].mxu0  ;;  %vm7740_vm12 = vcmp.eq.s32.totalorder %v17718_v33, %v16265_v27  ;;  %vm18179_vm7 = vmmov %vm18177_vm3 }
 0x490   : > { %v6912_v7 = vrot.slane %v6911_v2, 4  ;;  %v7536_v16 = vpop.f32.mrb[128].mxu1  ;;  %v6458_v53 = vrot.slane %v6457_v29, 4  ;;  %v7308_v52 = vsel %vm7244_vm9, %v7045_v38, 0.0  ;;  %v7047_v28 = vpop.f32.mrb[129].mxu0  ;;  %vm7250_vm9 = vcmp.eq.s32.totalorder %v17725_v40, %v16234_v20  ;;  %vm18180_vm13 = vmmov %vm18177_vm3 }
 0x491   : > { %v6949_v54 = vrot.slane %v6948_v18, 4  ;;  %v7799_v1 = vsel %vm7735_vm6, %v7536_v16, 0.0  ;;  %v7538_v15 = vpop.f32.mrb[129].mxu1  ;;  %v6422_v57 = vadd.f32 %v6421_v42, %v6420_v55  ;;  %v7309_v31 = vsel %vm7245_vm4, %v7047_v28, 0.0  ;;  %v9953_v28 = vld [vmem:[%s17165_s3 + $0xb0] sm:$0xff] }
 0x492   : > { %9612 = vmatmul.mubr.msk.f32.gmra.mrb[234].mxu0 %vm18177_vm3, %v9952_v5  ;;  %9648 = vmatmul.mubr.msk.f32.gmra.mrb[234].mxu1 %vm18178_vm15, %v9952_v5  ;;  %v6913_v34 = vadd.f32 %v6912_v7, %v6911_v2  ;;  %v7800_v35 = vsel %vm7736_vm11, %v7538_v15, 0.0  ;;  %v6459_v49 = vadd.f32 %v6458_v53, %v6457_v29  ;;  %vm7741_vm6 = vcmp.eq.s32.totalorder %v17725_v40, %v16269_v50 }
 0x493   : > { %8157 = vmatprep.mubr.f32.mxu0 %v17481_v45  ;;  %8648 = vmatprep.mubr.f32.mxu1 %v17481_v45  ;;  %v6950_v21 = vadd.f32 %v6949_v54, %v6948_v18  ;;  %v6423_v55 = vrot.slane %v6422_v57, 2  ;;  %v7051_v42 = vpop.f32.mrb[130].mxu0  ;;  %vm7251_vm4 = vcmp.eq.s32.totalorder %v17725_v40, %v16230_v10  ;;  %vm7742_vm11 = vcmp.eq.s32.totalorder %v17725_v40, %v16265_v27 }
 0x494   : > { %v6914_v2 = vrot.slane %v6913_v34, 2  ;;  %v7542_v7 = vpop.f32.mrb[130].mxu1  ;;  %v6460_v38 = vrot.slane %v6459_v49, 2  ;;  %v7310_v29 = vsel %vm7246_vm14, %v7051_v42, 0.0  ;;  %v7053_v53 = vpop.f32.mrb[131].mxu0  ;;  %vm7252_vm14 = vcmp.eq.s32.totalorder %v17728_v59, %v16234_v20 }
 0x495   : > { %v6951_v16 = vrot.slane %v6950_v21, 2  ;;  %v7801_v18 = vsel %vm7737_vm2, %v7542_v7, 0.0  ;;  %v7544_v54 = vpop.f32.mrb[131].mxu1  ;;  %v6424_v5 = vadd.f32 %v6423_v55, %v6422_v57  ;;  %v7372_v58 = vadd.f32 %v7310_v29, %v7308_v52 }
 0x496   : > { %9613 = vmatmul.mubr.msk.f32.gmra.mrb[236].mxu0 %vm18179_vm7, %v9953_v28  ;;  %9649 = vmatmul.mubr.msk.f32.gmra.mrb[236].mxu1 %vm18180_vm13, %v9953_v28  ;;  %v6915_v15 = vadd.f32 %v6914_v2, %v6913_v34  ;;  %v7863_v46 = vadd.f32 %v7801_v18, %v7799_v1  ;;  %vm7743_vm2 = vcmp.eq.s32.totalorder %v17728_v59, %v16269_v50  ;;  %v7311_v26 = vsel %vm7247_vm5, %v7053_v53, 0.0  ;;  %vm18181_vm5 = vmmov %vm18179_vm7 }
 0x497   : > { %8163 = vmatprep.mubr.f32.mxu0 %v17481_v45  ;;  %v6461_v42 = vadd.f32 %v6460_v38, %v6459_v49  ;;  %v6952_v7 = vadd.f32 %v6951_v16, %v6950_v21  ;;  %v7802_v57 = vsel %vm7738_vm0, %v7544_v54, 0.0  ;;  %8654 = vmatprep.mubr.f32.mxu1 %v17481_v45  ;;  %vm7253_vm3 = vcmp.eq.s32.totalorder %v17728_v59, %v16230_v10  ;;  %v7057_v2 = vpop.f32.mrb[132].mxu0  ;;  %vm18182_vm0 = vmmov %vm18181_vm5 }
 0x498   : > { %v6425_v52 = vrot.slane %v6424_v5, 1  ;;  %v6916_v1 = vrot.slane %v6915_v15, 1  ;;  %v7409_v34 = vadd.f32 %v7311_v26, %v7309_v31  ;;  %v7900_v55 = vadd.f32 %v7802_v57, %v7800_v35  ;;  %v7548_v49 = vpop.f32.mrb[132].mxu1  ;;  %v7059_v18 = vpop.f32.mrb[133].mxu0  ;;  %v9954_v26 = vld [vmem:[%s17165_s3 + $0xb8] sm:$0xff]  ;;  %vm18187_vm7 = vmmov %vm18182_vm0 }
 0x499   : > { %vm7744_vm15 = vcmp.eq.s32.totalorder %v17728_v59, %v16265_v27  ;;  %v6462_v21 = vrot.slane %v6461_v42, 1  ;;  %v6953_v38 = vrot.slane %v6952_v7, 1  ;;  %v7312_v16 = vsel %vm7248_vm8, %v7057_v2, 0.0  ;;  %v7550_v53 = vpop.f32.mrb[133].mxu1  ;;  %vm18188_vm13 = vmmov %vm18182_vm0 }
 0x49a   : > { %v7803_v29 = vsel %vm7739_vm10, %v7548_v49, 0.0  ;;  %9614 = vmatmul.mubr.msk.f32.gmra.mrb[238].mxu0 %vm18181_vm5, %v9954_v26  ;;  %9650 = vmatmul.mubr.msk.f32.gmra.mrb[238].mxu1 %vm18182_vm0, %v9954_v26  ;;  %v6426_v31 = vadd.f32 %v6425_v52, %v6424_v5  ;;  %v6917_v35 = vadd.f32 %v6916_v1, %v6915_v15  ;;  %v7373_v54 = vadd.f32 %v7372_v58, %v7312_v16  ;;  %vm18183_vm10 = vmmov %vm18182_vm0 }
 0x49b   : > { %v7864_v28 = vadd.f32 %v7863_v46, %v7803_v29  ;;  %8169 = vmatprep.mubr.f32.mxu0 %v17481_v45  ;;  %vm7254_vm8 = vcmp.eq.s32.totalorder %v17731_v19, %v16234_v20  ;;  %v6463_v57 = vadd.f32 %v6462_v21, %v6461_v42  ;;  %v6954_v2 = vadd.f32 %v6953_v38, %v6952_v7  ;;  %v7063_v52 = vpop.f32.mrb[134].mxu0  ;;  %vm18189_vm5 = vmmov %vm18182_vm0 }
 0x49c   : > { %v7313_v49 = vsel %vm7249_vm1, %v7059_v18, 0.0  ;;  %v7804_v22 = vsel %vm7740_vm12, %v7550_v53, 0.0  ;;  %8660 = vmatprep.mubr.f32.mxu1 %v17481_v45  ;;  %v6464_v58 = vmul.f32 %v6426_v31, %v15676_v48  ;;  %v6955_v46 = vmul.f32 %v6917_v35, %v15676_v48  ;;  %v7554_v1 = vpop.f32.mrb[134].mxu1  ;;  %v7065_v16 = vpop.f32.mrb[135].mxu0  ;;  %vm18184_vm1 = vmmov %vm18182_vm0 }
 0x49d   : > { %v7410_v5 = vadd.f32 %v7409_v34, %v7313_v49  ;;  %v7901_v15 = vadd.f32 %v7900_v55, %v7804_v22  ;;  %v6465_v42 = vmul.f32 %v6463_v57, %v15757_v41  ;;  %v6956_v7 = vmul.f32 %v6954_v2, %v15757_v41  ;;  %v7556_v29 = vpop.f32.mrb[135].mxu1  ;;  %v9955_v22 = vld [vmem:[%s17165_s3 + $0xc0] sm:$0xff] }
 0x49e   : > { %v7314_v21 = vsel %vm7250_vm9, %v7063_v52, 0.0  ;;  %v7805_v38 = vsel %vm7741_vm6, %v7554_v1, 0.0  ;;  %9615 = vmatmul.mubr.msk.f32.gmra.mrb[240].mxu0 %vm18183_vm10, %v9955_v22  ;;  %9651 = vmatmul.mubr.msk.f32.gmra.mrb[240].mxu1 %vm18184_vm1, %v9955_v22  ;;  %v6468_v34 = vrot.slane %v6464_v58, 2  ;;  %vm7745_vm12 = vcmp.eq.s32.totalorder %v17731_v19, %v16269_v50  ;;  %vm18185_vm6 = vmmov %vm18182_vm0 }
 0x49f   : > { %v7374_v55 = vadd.f32 %v7373_v54, %v7314_v21  ;;  %v7865_v18 = vadd.f32 %v7864_v28, %v7805_v38  ;;  %8175 = vmatprep.mubr.f32.mxu0 %v17481_v45  ;;  %8666 = vmatprep.mubr.f32.mxu1 %v17481_v45  ;;  %v6469_v53 = vrot.slane %v6465_v42, 2  ;;  %v7315_v26 = vsel %vm7251_vm4, %v7065_v16, 0.0  ;;  %v7069_v2 = vpop.f32.mrb[136].mxu0  ;;  %vm18186_vm4 = vmmov %vm18182_vm0 }
 0x4a0   : > { %v7806_v31 = vsel %vm7742_vm11, %v7556_v29, 0.0  ;;  %vm7255_vm9 = vcmp.eq.s32.totalorder %v17731_v19, %v16230_v10  ;;  %v6472_v35 = vadd.f32 %v6468_v34, %v15834_v9  ;;  %v6959_v54 = vrot.slane %v6955_v46, 3  ;;  %v7560_v49 = vpop.f32.mrb[136].mxu1  ;;  %v7071_v21 = vpop.f32.mrb[137].mxu0  ;;  %v9956_v9 = vld [vmem:[%s17165_s3 + $0xc8] sm:$0xff] }
 0x4a1   : > { %v7411_v28 = vadd.f32 %v7410_v5, %v7315_v26  ;;  %v7902_v57 = vadd.f32 %v7901_v15, %v7806_v31  ;;  %v6473_v58 = vadd.f32 %v6469_v53, %v15838_v23  ;;  %v6960_v52 = vrot.slane %v6956_v7, 3  ;;  %v7562_v38 = vpop.f32.mrb[137].mxu1 }
 0x4a2   : > { %v7316_v1 = vsel %vm7252_vm14, %v7069_v2, 0.0  ;;  %v7807_v42 = vsel %vm7743_vm2, %v7560_v49, 0.0  ;;  %9616 = vmatmul.mubr.msk.f32.gmra.mrb[242].mxu0 %vm18185_vm6, %v9956_v9  ;;  %9652 = vmatmul.mubr.msk.f32.gmra.mrb[242].mxu1 %vm18186_vm4, %v9956_v9  ;;  %v16456_v23 = vadd.f32 %v6959_v54, %v6472_v35  ;;  %v7317_v15 = vsel %vm7253_vm3, %v7071_v21, 0.0  ;;  %v9957_v35 = vld [vmem:[%s17165_s3 + $0xd0] sm:$0xff]  ;;  %vm18191_vm6 = vmmov %vm18182_vm0 }
 0x4a3   : > { %v7375_v46 = vadd.f32 %v7374_v55, %v7316_v1  ;;  %v7866_v5 = vadd.f32 %v7865_v18, %v7807_v42  ;;  %8181 = vmatprep.mubr.f32.mxu0 %v17481_v45  ;;  %8672 = vmatprep.mubr.f32.mxu1 %v17481_v45  ;;  %v16463_v7 = vadd.f32 %v6960_v52, %v6473_v58  ;;  %v7808_v29 = vsel %vm7744_vm15, %v7562_v38, 0.0  ;;  %v7075_v34 = vpop.f32.mrb[138].mxu0 }
 0x4a4   : > { %v7412_v16 = vadd.f32 %v7411_v28, %v7317_v15  ;;  %vm7746_vm11 = vcmp.eq.s32.totalorder %v17731_v19, %v16265_v27  ;;  %v7903_v22 = vadd.f32 %v7902_v57, %v7808_v29  ;;  %v7566_v55 = vpop.f32.mrb[138].mxu1  ;;  %v7318_v18 = vsel %vm7254_vm8, %v7075_v34, 0.0  ;;  %v7077_v26 = vpop.f32.mrb[139].mxu0 }
 0x4a5   : > { %v7809_v53 = vsel %vm7745_vm12, %v7566_v55, 0.0  ;;  %v7568_v31 = vpop.f32.mrb[139].mxu1  ;;  %vm7256_vm14 = vcmp.eq.s32.totalorder %v17766_v11, %v16234_v20  ;;  %vm7747_vm2 = vcmp.eq.s32.totalorder %v17766_v11, %v16269_v50  ;;  %v7376_v54 = vadd.f32 %v7375_v46, %v7318_v18  ;;  %v9958_v46 = vld [vmem:[%s17165_s3 + $0xd8] sm:$0xff] }
 0x4a6   : > { %9617 = vmatmul.mubr.msk.f32.gmra.mrb[244].mxu0 %vm18187_vm7, %v9957_v35  ;;  %9653 = vmatmul.mubr.msk.f32.gmra.mrb[244].mxu1 %vm18188_vm13, %v9957_v35  ;;  %v7867_v28 = vadd.f32 %v7866_v5, %v7809_v53  ;;  %v7319_v57 = vsel %vm7255_vm9, %v7077_v26, 0.0  ;;  %v7810_v2 = vsel %vm7746_vm11, %v7568_v31, 0.0  ;;  %vm7257_vm3 = vcmp.eq.s32.totalorder %v17766_v11, %v16230_v10  ;;  %vm18190_vm9 = vmmov %vm18182_vm0 }
 0x4a7   : > { %8187 = vmatprep.mubr.f32.mxu0 %v17481_v45  ;;  %8678 = vmatprep.mubr.f32.mxu1 %v17481_v45  ;;  %v7413_v49 = vadd.f32 %v7412_v16, %v7319_v57  ;;  %v7904_v58 = vadd.f32 %v7903_v22, %v7810_v2  ;;  %vm7748_vm15 = vcmp.eq.s32.totalorder %v17766_v11, %v16265_v27  ;;  %v7081_v52 = vpop.f32.mrb[140].mxu0 }
 0x4a8   : > { %v7572_v1 = vpop.f32.mrb[140].mxu1  ;;  %v7320_v42 = vsel %vm7256_vm14, %v7081_v52, 0.0  ;;  %v7083_v38 = vpop.f32.mrb[141].mxu0  ;;  %vm7258_vm8 = vcmp.eq.s32.totalorder %v17773_v61, %v16234_v20  ;;  %vm7749_vm10 = vcmp.eq.s32.totalorder %v17773_v61, %v16269_v50  ;;  %vm7259_vm1 = vcmp.eq.s32.totalorder %v17773_v61, %v16230_v10  ;;  %vm18192_vm14 = vmmov %vm18182_vm0 }
 0x4a9   : > { %v7811_v21 = vsel %vm7747_vm2, %v7572_v1, 0.0  ;;  %v7574_v9 = vpop.f32.mrb[141].mxu1  ;;  %v7377_v5 = vadd.f32 %v7376_v54, %v7320_v42  ;;  %v7321_v16 = vsel %vm7257_vm3, %v7083_v38, 0.0  ;;  %vm7750_vm12 = vcmp.eq.s32.totalorder %v17773_v61, %v16265_v27  ;;  %v9959_v54 = vld [vmem:[%s17165_s3 + $0xe0] sm:$0xff]  ;;  %vm18193_vm2 = vmmov %vm18182_vm0 }
 0x4aa   : > { %9618 = vmatmul.mubr.msk.f32.gmra.mrb[246].mxu0 %vm18189_vm5, %v9958_v46  ;;  %9654 = vmatmul.mubr.msk.f32.gmra.mrb[246].mxu1 %vm18182_vm0, %v9958_v46  ;;  %v7868_v15 = vadd.f32 %v7867_v28, %v7811_v21  ;;  %v7812_v29 = vsel %vm7748_vm15, %v7574_v9, 0.0  ;;  %v7414_v22 = vadd.f32 %v7413_v49, %v7321_v16  ;;  %vm7260_vm4 = vcmp.eq.s32.totalorder %v11294_v56, %v16234_v20 }
 0x4ab   : > { %8193 = vmatprep.mubr.f32.mxu0 %v17481_v45  ;;  %8684 = vmatprep.mubr.f32.mxu1 %v17481_v45  ;;  %v7905_v34 = vadd.f32 %v7904_v58, %v7812_v29  ;;  %v7087_v55 = vpop.f32.mrb[142].mxu0  ;;  %vm7751_vm11 = vcmp.eq.s32.totalorder %v11294_v56, %v16269_v50  ;;  %vm7261_vm7 = vcmp.eq.s32.totalorder %v11294_v56, %v16230_v10 }
 0x4ac   : > { %v7578_v18 = vpop.f32.mrb[142].mxu1  ;;  %v7322_v53 = vsel %vm7258_vm8, %v7087_v55, 0.0  ;;  %v7089_v31 = vpop.f32.mrb[143].mxu0  ;;  %vm7752_vm13 = vcmp.eq.s32.totalorder %v11294_v56, %v16265_v27  ;;  %vm7262_vm3 = vcmp.eq.s32.totalorder %v17779_v39, %v16234_v20  ;;  %vm7753_vm15 = vcmp.eq.s32.totalorder %v17779_v39, %v16269_v50  ;;  %vm18194_vm8 = vmmov %vm18193_vm2 }
 0x4ad   : > { %v7813_v26 = vsel %vm7749_vm10, %v7578_v18, 0.0  ;;  %v7580_v35 = vpop.f32.mrb[143].mxu1  ;;  %v7378_v28 = vadd.f32 %v7377_v5, %v7322_v53  ;;  %v7323_v2 = vsel %vm7259_vm1, %v7089_v31, 0.0  ;;  %v9960_v5 = vld [vmem:[%s17165_s3 + $0xe8] sm:$0xff]  ;;  %vm7263_vm5 = vcmp.eq.s32.totalorder %v17779_v39, %v16230_v10  ;;  %vm18195_vm10 = vmmov %vm18193_vm2 }
 0x4ae   : > { %9619 = vmatmul.mubr.msk.f32.gmra.mrb[248].mxu0 %vm18190_vm9, %v9959_v54  ;;  %9655 = vmatmul.mubr.msk.f32.gmra.mrb[248].mxu1 %vm18191_vm6, %v9959_v54  ;;  %v7869_v57 = vadd.f32 %v7868_v15, %v7813_v26  ;;  %v7814_v49 = vsel %vm7750_vm12, %v7580_v35, 0.0  ;;  %v7415_v58 = vadd.f32 %v7414_v22, %v7323_v2  ;;  %vm7754_vm0 = vcmp.eq.s32.totalorder %v17779_v39, %v16265_v27 }
 0x4af   : > { %8199 = vmatprep.mubr.f32.mxu0 %v17481_v45  ;;  %8690 = vmatprep.mubr.f32.mxu1 %v17481_v45  ;;  %v7906_v52 = vadd.f32 %v7905_v34, %v7814_v49  ;;  %v7093_v1 = vpop.f32.mrb[144].mxu0  ;;  %vm7264_vm1 = vcmp.eq.s32.totalorder %v17782_v24, %v16234_v20  ;;  %vm7755_vm12 = vcmp.eq.s32.totalorder %v17782_v24, %v16269_v50 }
 0x4b0   : > { %v7584_v42 = vpop.f32.mrb[144].mxu1  ;;  %v7324_v21 = vsel %vm7260_vm4, %v7093_v1, 0.0  ;;  %v7095_v9 = vpop.f32.mrb[145].mxu0  ;;  %vm7265_vm9 = vcmp.eq.s32.totalorder %v17782_v24, %v16230_v10  ;;  %vm7756_vm6 = vcmp.eq.s32.totalorder %v17782_v24, %v16265_v27  ;;  %vm18196_vm4 = vmmov %vm18193_vm2 }
 0x4b1   : > { %v7815_v38 = vsel %vm7751_vm11, %v7584_v42, 0.0  ;;  %v7586_v46 = vpop.f32.mrb[145].mxu1  ;;  %v7379_v15 = vadd.f32 %v7378_v28, %v7324_v21  ;;  %v7325_v29 = vsel %vm7261_vm7, %v7095_v9, 0.0  ;;  %v9961_v28 = vld [vmem:[%s17165_s3 + $0xf0] sm:$0xff]  ;;  %vm18197_vm11 = vmmov %vm18193_vm2  ;;  %vm7266_vm7 = vcmp.eq.s32.totalorder %v17785_v44, %v16234_v20 }
 0x4b2   : > { %9620 = vmatmul.mubr.msk.f32.gmra.mrb[250].mxu0 %vm18192_vm14, %v9960_v5  ;;  %9656 = vmatmul.mubr.msk.f32.gmra.mrb[250].mxu1 %vm18193_vm2, %v9960_v5  ;;  %v7870_v16 = vadd.f32 %v7869_v57, %v7815_v38  ;;  %v7816_v22 = vsel %vm7752_vm13, %v7586_v46, 0.0  ;;  %v7416_v34 = vadd.f32 %v7415_v58, %v7325_v29  ;;  %vm7757_vm13 = vcmp.eq.s32.totalorder %v17785_v44, %v16269_v50 }
 0x4b3   : > { %8205 = vmatprep.mubr.f32.mxu0 %v17481_v45  ;;  %8696 = vmatprep.mubr.f32.mxu1 %v17481_v45  ;;  %v7907_v55 = vadd.f32 %v7906_v52, %v7816_v22  ;;  %v7099_v18 = vpop.f32.mrb[146].mxu0  ;;  %vm7267_vm14 = vcmp.eq.s32.totalorder %v17785_v44, %v16230_v10  ;;  %vm7758_vm2 = vcmp.eq.s32.totalorder %v17785_v44, %v16265_v27 }
 0x4b4   : > { %v7590_v53 = vpop.f32.mrb[146].mxu1  ;;  %v7326_v26 = vsel %vm7262_vm3, %v7099_v18, 0.0  ;;  %v7101_v35 = vpop.f32.mrb[147].mxu0  ;;  %vm7268_vm3 = vcmp.eq.s32.totalorder %v17790_v51, %v16234_v20 }
 0x4b5   : > { %v7817_v31 = vsel %vm7753_vm15, %v7590_v53, 0.0  ;;  %v7592_v54 = vpop.f32.mrb[147].mxu1  ;;  %v7380_v57 = vadd.f32 %v7379_v15, %v7326_v26  ;;  %v7327_v49 = vsel %vm7263_vm5, %v7101_v35, 0.0  ;;  %v9962_v15 = vld [vmem:[%s17165_s3 + $0xf8] sm:$0xff]  ;;  %vm7759_vm15 = vcmp.eq.s32.totalorder %v17790_v51, %v16269_v50 }
 0x4b6   : > { %9621 = vmatmul.mubr.msk.f32.gmra.mrb[252].mxu0 %vm18194_vm8, %v9961_v28  ;;  %9657 = vmatmul.mubr.msk.f32.gmra.mrb[252].mxu1 %vm18195_vm10, %v9961_v28  ;;  %v7871_v2 = vadd.f32 %v7870_v16, %v7817_v31  ;;  %v7818_v58 = vsel %vm7754_vm0, %v7592_v54, 0.0  ;;  %v7417_v52 = vadd.f32 %v7416_v34, %v7327_v49  ;;  %vm7269_vm5 = vcmp.eq.s32.totalorder %v17790_v51, %v16230_v10 }
 0x4b7   : > { %8211 = vmatprep.mubr.f32.mxu0 %v17481_v45  ;;  %8702 = vmatprep.mubr.f32.mxu1 %v17481_v45  ;;  %v7908_v1 = vadd.f32 %v7907_v55, %v7818_v58  ;;  %v7105_v42 = vpop.f32.mrb[148].mxu0  ;;  %vm7760_vm0 = vcmp.eq.s32.totalorder %v17790_v51, %v16265_v27  ;;  %vm7270_vm8 = vcmp.eq.s32.totalorder %v17797_v32, %v16234_v20 }
 0x4b8   : > { %v7596_v21 = vpop.f32.mrb[148].mxu1  ;;  %v7328_v38 = vsel %vm7264_vm1, %v7105_v42, 0.0  ;;  %v7107_v46 = vpop.f32.mrb[149].mxu0  ;;  %vm7761_vm10 = vcmp.eq.s32.totalorder %v17797_v32, %v16269_v50  ;;  %vm7271_vm1 = vcmp.eq.s32.totalorder %v17797_v32, %v16230_v10 }
 0x4b9   : > { %v7819_v9 = vsel %vm7755_vm12, %v7596_v21, 0.0  ;;  %v7598_v5 = vpop.f32.mrb[149].mxu1  ;;  %v7381_v45 = vadd.f32 %v7380_v57, %v7328_v38  ;;  %v7329_v29 = vsel %vm7265_vm9, %v7107_v46, 0.0  ;;  %vm7762_vm12 = vcmp.eq.s32.totalorder %v17797_v32, %v16265_v27 }
 0x4ba   : > { %9622 = vmatmul.mubr.msk.f32.gmra.mrb[254].mxu0 %vm18196_vm4, %v9962_v15  ;;  %9658 = vmatmul.mubr.msk.f32.gmra.mrb[254].mxu1 %vm18197_vm11, %v9962_v15  ;;  %v7872_v16 = vadd.f32 %v7871_v2, %v7819_v9  ;;  %v7820_v22 = vsel %vm7756_vm6, %v7598_v5, 0.0  ;;  %v7418_v34 = vadd.f32 %v7417_v52, %v7329_v29  ;;  %vm7272_vm9 = vcmp.eq.s32.totalorder %v17800_v4, %v16234_v20 }
 0x4bb   : > { %v7909_v55 = vadd.f32 %v7908_v1, %v7820_v22  ;;  %v7111_v18 = vpop.f32.mrb[150].mxu0  ;;  %vm7763_vm6 = vcmp.eq.s32.totalorder %v17800_v4, %v16269_v50  ;;  %vm7273_vm4 = vcmp.eq.s32.totalorder %v17800_v4, %v16230_v10  ;;  %vm7764_vm11 = vcmp.eq.s32.totalorder %v17800_v4, %v16265_v27 }
 0x4bc   : > { %v7602_v53 = vpop.f32.mrb[150].mxu1  ;;  %v7330_v26 = vsel %vm7266_vm7, %v7111_v18, 0.0  ;;  %v7113_v35 = vpop.f32.mrb[151].mxu0  ;;  %vm7274_vm7 = vcmp.eq.s32.totalorder %v17803_v36, %v16234_v20 }
 0x4bd   : > { %v7821_v31 = vsel %vm7757_vm13, %v7602_v53, 0.0  ;;  %v7604_v54 = vpop.f32.mrb[151].mxu1  ;;  %v7382_v28 = vadd.f32 %v7381_v45, %v7330_v26  ;;  %v7331_v2 = vsel %vm7267_vm14, %v7113_v35, 0.0  ;;  %vm7765_vm13 = vcmp.eq.s32.totalorder %v17803_v36, %v16269_v50 }
 0x4be   : > { %v7873_v57 = vadd.f32 %v7872_v16, %v7821_v31  ;;  %v7822_v49 = vsel %vm7758_vm2, %v7604_v54, 0.0  ;;  %v7419_v58 = vadd.f32 %v7418_v34, %v7331_v2  ;;  %vm7275_vm14 = vcmp.eq.s32.totalorder %v17803_v36, %v16230_v10 }
 0x4bf   : > { %v7910_v52 = vadd.f32 %v7909_v55, %v7822_v49  ;;  %v7117_v1 = vpop.f32.mrb[152].mxu0  ;;  %vm7766_vm2 = vcmp.eq.s32.totalorder %v17803_v36, %v16265_v27 }
 0x4c0   : > { %v7608_v42 = vpop.f32.mrb[152].mxu1  ;;  %v7332_v21 = vsel %vm7268_vm3, %v7117_v1, 0.0  ;;  %v7119_v9 = vpop.f32.mrb[153].mxu0  ;;  %vm7276_vm3 = vcmp.eq.s32.totalorder %v17806_v13, %v16234_v20 }
 0x4c1   : > { %v7823_v38 = vsel %vm7759_vm15, %v7608_v42, 0.0  ;;  %v7610_v46 = vpop.f32.mrb[153].mxu1  ;;  %v7383_v5 = vadd.f32 %v7382_v28, %v7332_v21  ;;  %v7333_v45 = vsel %vm7269_vm5, %v7119_v9, 0.0  ;;  %vm7767_vm15 = vcmp.eq.s32.totalorder %v17806_v13, %v16269_v50 }
 0x4c2   : > { %v7874_v15 = vadd.f32 %v7873_v57, %v7823_v38  ;;  %v7824_v16 = vsel %vm7760_vm0, %v7610_v46, 0.0  ;;  %v7420_v29 = vadd.f32 %v7419_v58, %v7333_v45  ;;  %vm7277_vm5 = vcmp.eq.s32.totalorder %v17806_v13, %v16230_v10 }
 0x4c3   : > { %v7911_v22 = vadd.f32 %v7910_v52, %v7824_v16  ;;  %v7123_v34 = vpop.f32.mrb[154].mxu0  ;;  %vm7768_vm0 = vcmp.eq.s32.totalorder %v17806_v13, %v16265_v27 }
 0x4c4   : > { %v7614_v55 = vpop.f32.mrb[154].mxu1  ;;  %v7334_v18 = vsel %vm7270_vm8, %v7123_v34, 0.0  ;;  %v7125_v26 = vpop.f32.mrb[155].mxu0  ;;  %vm7278_vm8 = vcmp.eq.s32.totalorder %v17809_v17, %v16234_v20 }
 0x4c5   : > { %v7825_v53 = vsel %vm7761_vm10, %v7614_v55, 0.0  ;;  %v7616_v31 = vpop.f32.mrb[155].mxu1  ;;  %v7384_v35 = vadd.f32 %v7383_v5, %v7334_v18  ;;  %v7335_v28 = vsel %vm7271_vm1, %v7125_v26, 0.0  ;;  %vm7769_vm10 = vcmp.eq.s32.totalorder %v17809_v17, %v16269_v50 }
 0x4c6   : > { %v7875_v54 = vadd.f32 %v7874_v15, %v7825_v53  ;;  %v7826_v57 = vsel %vm7762_vm12, %v7616_v31, 0.0  ;;  %v7421_v2 = vadd.f32 %v7420_v29, %v7335_v28  ;;  %vm7279_vm1 = vcmp.eq.s32.totalorder %v17809_v17, %v16230_v10 }
 0x4c7   : > { %v7912_v49 = vadd.f32 %v7911_v22, %v7826_v57  ;;  %v7129_v58 = vpop.f32.mrb[156].mxu0  ;;  %vm7770_vm12 = vcmp.eq.s32.totalorder %v17809_v17, %v16265_v27 }
 0x4c8   : > { %v7620_v52 = vpop.f32.mrb[156].mxu1  ;;  %v7336_v1 = vsel %vm7272_vm9, %v7129_v58, 0.0  ;;  %v7131_v21 = vpop.f32.mrb[157].mxu0  ;;  %vm7280_vm9 = vcmp.eq.s32.totalorder %v17812_v6, %v16234_v20 }
 0x4c9   : > { %v7827_v42 = vsel %vm7763_vm6, %v7620_v52, 0.0  ;;  %v7622_v38 = vpop.f32.mrb[157].mxu1  ;;  %v7385_v9 = vadd.f32 %v7384_v35, %v7336_v1  ;;  %v7337_v5 = vsel %vm7273_vm4, %v7131_v21, 0.0  ;;  %vm7771_vm6 = vcmp.eq.s32.totalorder %v17812_v6, %v16269_v50 }
 0x4ca   : > { %v7876_v46 = vadd.f32 %v7875_v54, %v7827_v42  ;;  %v7828_v15 = vsel %vm7764_vm11, %v7622_v38, 0.0  ;;  %v7422_v45 = vadd.f32 %v7421_v2, %v7337_v5  ;;  %vm7281_vm4 = vcmp.eq.s32.totalorder %v17812_v6, %v16230_v10 }
 0x4cb   : > { %v7913_v16 = vadd.f32 %v7912_v49, %v7828_v15  ;;  %v7135_v29 = vpop.f32.mrb[158].mxu0  ;;  %vm7772_vm11 = vcmp.eq.s32.totalorder %v17812_v6, %v16265_v27 }
 0x4cc   : > { %v7626_v22 = vpop.f32.mrb[158].mxu1  ;;  %v7338_v34 = vsel %vm7274_vm7, %v7135_v29, 0.0  ;;  %v7137_v18 = vpop.f32.mrb[159].mxu0  ;;  %vm7282_vm7 = vcmp.eq.s32.totalorder %v17815_v62, %v16234_v20 }
 0x4cd   : > { %v7829_v55 = vsel %vm7765_vm13, %v7626_v22, 0.0  ;;  %v7628_v53 = vpop.f32.mrb[159].mxu1  ;;  %v7386_v26 = vadd.f32 %v7385_v9, %v7338_v34  ;;  %v7339_v35 = vsel %vm7275_vm14, %v7137_v18, 0.0  ;;  %vm7773_vm13 = vcmp.eq.s32.totalorder %v17815_v62, %v16269_v50 }
 0x4ce   : > { %v7877_v31 = vadd.f32 %v7876_v46, %v7829_v55  ;;  %v7830_v54 = vsel %vm7766_vm2, %v7628_v53, 0.0  ;;  %v7423_v28 = vadd.f32 %v7422_v45, %v7339_v35  ;;  %vm7283_vm14 = vcmp.eq.s32.totalorder %v17815_v62, %v16230_v10 }
 0x4cf   : > { %v7914_v57 = vadd.f32 %v7913_v16, %v7830_v54  ;;  %v7141_v2 = vpop.f32.mrb[160].mxu0  ;;  %vm7774_vm2 = vcmp.eq.s32.totalorder %v17815_v62, %v16265_v27 }
 0x4d0   : > { %v7632_v49 = vpop.f32.mrb[160].mxu1  ;;  %v7340_v58 = vsel %vm7276_vm3, %v7141_v2, 0.0  ;;  %v7143_v1 = vpop.f32.mrb[161].mxu0  ;;  %vm7284_vm3 = vcmp.eq.s32.totalorder %v17575_v12, %v16234_v20 }
 0x4d1   : > { %v7831_v52 = vsel %vm7767_vm15, %v7632_v49, 0.0  ;;  %v7634_v42 = vpop.f32.mrb[161].mxu1  ;;  %v7387_v21 = vadd.f32 %v7386_v26, %v7340_v58  ;;  %v7341_v9 = vsel %vm7277_vm5, %v7143_v1, 0.0  ;;  %vm7775_vm15 = vcmp.eq.s32.totalorder %v17575_v12, %v16269_v50 }
 0x4d2   : > { %v7878_v38 = vadd.f32 %v7877_v31, %v7831_v52  ;;  %v7832_v46 = vsel %vm7768_vm0, %v7634_v42, 0.0  ;;  %v7424_v5 = vadd.f32 %v7423_v28, %v7341_v9  ;;  %vm7285_vm5 = vcmp.eq.s32.totalorder %v17575_v12, %v16230_v10 }
 0x4d3   : > { %v7915_v15 = vadd.f32 %v7914_v57, %v7832_v46  ;;  %v7147_v45 = vpop.f32.mrb[162].mxu0  ;;  %vm7776_vm0 = vcmp.eq.s32.totalorder %v17575_v12, %v16265_v27 }
 0x4d4   : > { %v7638_v16 = vpop.f32.mrb[162].mxu1  ;;  %v7342_v29 = vsel %vm7278_vm8, %v7147_v45, 0.0  ;;  %v7149_v34 = vpop.f32.mrb[163].mxu0  ;;  %vm7286_vm8 = vcmp.eq.s32.totalorder %v17586_v47, %v16234_v20 }
 0x4d5   : > { %v7833_v22 = vsel %vm7769_vm10, %v7638_v16, 0.0  ;;  %v7640_v55 = vpop.f32.mrb[163].mxu1  ;;  %v7388_v18 = vadd.f32 %v7387_v21, %v7342_v29  ;;  %v7343_v26 = vsel %vm7279_vm1, %v7149_v34, 0.0  ;;  %vm7777_vm10 = vcmp.eq.s32.totalorder %v17586_v47, %v16269_v50 }
 0x4d6   : > { %v7879_v53 = vadd.f32 %v7878_v38, %v7833_v22  ;;  %v7834_v31 = vsel %vm7770_vm12, %v7640_v55, 0.0  ;;  %v7425_v35 = vadd.f32 %v7424_v5, %v7343_v26  ;;  %vm7287_vm1 = vcmp.eq.s32.totalorder %v17586_v47, %v16230_v10 }
 0x4d7   : > { %v7916_v54 = vadd.f32 %v7915_v15, %v7834_v31  ;;  %v7153_v28 = vpop.f32.mrb[164].mxu0  ;;  %vm7778_vm12 = vcmp.eq.s32.totalorder %v17586_v47, %v16265_v27 }
 0x4d8   : > { %v7644_v57 = vpop.f32.mrb[164].mxu1  ;;  %v7344_v2 = vsel %vm7280_vm9, %v7153_v28, 0.0  ;;  %v7155_v58 = vpop.f32.mrb[165].mxu0  ;;  %vm7288_vm9 = vcmp.eq.s32.totalorder %v17594_v30, %v16234_v20 }
 0x4d9   : > { %v7835_v49 = vsel %vm7771_vm6, %v7644_v57, 0.0  ;;  %v7646_v52 = vpop.f32.mrb[165].mxu1  ;;  %v7389_v1 = vadd.f32 %v7388_v18, %v7344_v2  ;;  %v7345_v21 = vsel %vm7281_vm4, %v7155_v58, 0.0  ;;  %vm7779_vm6 = vcmp.eq.s32.totalorder %v17594_v30, %v16269_v50 }
 0x4da   : > { %v7880_v42 = vadd.f32 %v7879_v53, %v7835_v49  ;;  %v7836_v38 = vsel %vm7772_vm11, %v7646_v52, 0.0  ;;  %v7426_v9 = vadd.f32 %v7425_v35, %v7345_v21  ;;  %vm7289_vm4 = vcmp.eq.s32.totalorder %v17594_v30, %v16230_v10 }
 0x4db   : > { %v7917_v46 = vadd.f32 %v7916_v54, %v7836_v38  ;;  %v7159_v5 = vpop.f32.mrb[166].mxu0  ;;  %vm7780_vm11 = vcmp.eq.s32.totalorder %v17594_v30, %v16265_v27 }
 0x4dc   : > { %v7650_v15 = vpop.f32.mrb[166].mxu1  ;;  %v7346_v45 = vsel %vm7282_vm7, %v7159_v5, 0.0  ;;  %v7161_v29 = vpop.f32.mrb[167].mxu0  ;;  %vm7290_vm7 = vcmp.eq.s32.totalorder %v17608_v60, %v16234_v20 }
 0x4dd   : > { %v7837_v16 = vsel %vm7773_vm13, %v7650_v15, 0.0  ;;  %v7652_v22 = vpop.f32.mrb[167].mxu1  ;;  %v7390_v34 = vadd.f32 %v7389_v1, %v7346_v45  ;;  %v7347_v18 = vsel %vm7283_vm14, %v7161_v29, 0.0  ;;  %vm7781_vm13 = vcmp.eq.s32.totalorder %v17608_v60, %v16269_v50 }
 0x4de   : > { %v7881_v55 = vadd.f32 %v7880_v42, %v7837_v16  ;;  %v7838_v53 = vsel %vm7774_vm2, %v7652_v22, 0.0  ;;  %v7427_v26 = vadd.f32 %v7426_v9, %v7347_v18  ;;  %vm7291_vm14 = vcmp.eq.s32.totalorder %v17608_v60, %v16230_v10 }
 0x4df   : > { %v7918_v31 = vadd.f32 %v7917_v46, %v7838_v53  ;;  %v7165_v35 = vpop.f32.mrb[168].mxu0  ;;  %vm7782_vm2 = vcmp.eq.s32.totalorder %v17608_v60, %v16265_v27 }
 0x4e0   : > { %v7656_v54 = vpop.f32.mrb[168].mxu1  ;;  %v7348_v28 = vsel %vm7284_vm3, %v7165_v35, 0.0  ;;  %v7167_v2 = vpop.f32.mrb[169].mxu0  ;;  %vm7292_vm3 = vcmp.eq.s32.totalorder %v17978_v14, %v16234_v20 }
 0x4e1   : > { %v7839_v57 = vsel %vm7775_vm15, %v7656_v54, 0.0  ;;  %v7658_v49 = vpop.f32.mrb[169].mxu1  ;;  %v7391_v58 = vadd.f32 %v7390_v34, %v7348_v28  ;;  %v7349_v1 = vsel %vm7285_vm5, %v7167_v2, 0.0  ;;  %vm7783_vm15 = vcmp.eq.s32.totalorder %v17978_v14, %v16269_v50 }
 0x4e2   : > { %v7882_v52 = vadd.f32 %v7881_v55, %v7839_v57  ;;  %v7840_v42 = vsel %vm7776_vm0, %v7658_v49, 0.0  ;;  %v7428_v21 = vadd.f32 %v7427_v26, %v7349_v1  ;;  %vm7293_vm5 = vcmp.eq.s32.totalorder %v17978_v14, %v16230_v10 }
 0x4e3   : > { %v7919_v38 = vadd.f32 %v7918_v31, %v7840_v42  ;;  %v7171_v9 = vpop.f32.mrb[170].mxu0  ;;  %vm7784_vm0 = vcmp.eq.s32.totalorder %v17978_v14, %v16265_v27 }
 0x4e4   : > { %v7662_v46 = vpop.f32.mrb[170].mxu1  ;;  %v7350_v5 = vsel %vm7286_vm8, %v7171_v9, 0.0  ;;  %v7173_v45 = vpop.f32.mrb[171].mxu0  ;;  %vm7294_vm8 = vcmp.eq.s32.totalorder %v17981_v63, %v16234_v20 }
 0x4e5   : > { %v7841_v15 = vsel %vm7777_vm10, %v7662_v46, 0.0  ;;  %v7664_v16 = vpop.f32.mrb[171].mxu1  ;;  %v7392_v29 = vadd.f32 %v7391_v58, %v7350_v5  ;;  %v7351_v34 = vsel %vm7287_vm1, %v7173_v45, 0.0  ;;  %vm7785_vm10 = vcmp.eq.s32.totalorder %v17981_v63, %v16269_v50 }
 0x4e6   : > { %v7883_v22 = vadd.f32 %v7882_v52, %v7841_v15  ;;  %v7842_v55 = vsel %vm7778_vm12, %v7664_v16, 0.0  ;;  %v7429_v18 = vadd.f32 %v7428_v21, %v7351_v34  ;;  %vm7295_vm1 = vcmp.eq.s32.totalorder %v17981_v63, %v16230_v10 }
 0x4e7   : > { %v7920_v53 = vadd.f32 %v7919_v38, %v7842_v55  ;;  %vm7786_vm12 = vcmp.eq.s32.totalorder %v17981_v63, %v16265_v27 }
 0x4e8   : > { %v7177_v26 = vpop.f32.mrb[172].mxu0  ;;  %v7668_v31 = vpop.f32.mrb[172].mxu1 }
 0x4e9   : > { %v7352_v35 = vsel %vm7288_vm9, %v7177_v26, 0.0  ;;  %v7843_v54 = vsel %vm7779_vm6, %v7668_v31, 0.0  ;;  %v7179_v28 = vpop.f32.mrb[173].mxu0  ;;  %v7670_v57 = vpop.f32.mrb[173].mxu1  ;;  %vm7296_vm9 = vcmp.eq.s32.totalorder %v17984_v43, %v16234_v20  ;;  %vm7787_vm6 = vcmp.eq.s32.totalorder %v17984_v43, %v16269_v50 }
 0x4ea   : > { %v7393_v2 = vadd.f32 %v7392_v29, %v7352_v35  ;;  %v7884_v49 = vadd.f32 %v7883_v22, %v7843_v54  ;;  %v7353_v58 = vsel %vm7289_vm4, %v7179_v28, 0.0  ;;  %v7844_v52 = vsel %vm7780_vm11, %v7670_v57, 0.0 }
 0x4eb   : > { %v7430_v1 = vadd.f32 %v7429_v18, %v7353_v58  ;;  %v7921_v42 = vadd.f32 %v7920_v53, %v7844_v52  ;;  %vm7297_vm4 = vcmp.eq.s32.totalorder %v17984_v43, %v16230_v10  ;;  %vm7788_vm11 = vcmp.eq.s32.totalorder %v17984_v43, %v16265_v27 }
 0x4ec   : > { %v7183_v21 = vpop.f32.mrb[174].mxu0 }
 0x4ed   : > { %v7674_v38 = vpop.f32.mrb[174].mxu1  ;;  %v7354_v9 = vsel %vm7290_vm7, %v7183_v21, 0.0  ;;  %v7185_v5 = vpop.f32.mrb[175].mxu0  ;;  %vm7298_vm7 = vcmp.eq.s32.totalorder %v18081_v0, %v16234_v20 }
 0x4ee   : > { %v7845_v46 = vsel %vm7781_vm13, %v7674_v38, 0.0  ;;  %v7676_v15 = vpop.f32.mrb[175].mxu1  ;;  %v7394_v45 = vadd.f32 %v7393_v2, %v7354_v9  ;;  %v7355_v29 = vsel %vm7291_vm14, %v7185_v5, 0.0  ;;  %vm7789_vm13 = vcmp.eq.s32.totalorder %v18081_v0, %v16269_v50 }
 0x4ef   : > { %v7885_v16 = vadd.f32 %v7884_v49, %v7845_v46  ;;  %v7846_v22 = vsel %vm7782_vm2, %v7676_v15, 0.0  ;;  %v7431_v34 = vadd.f32 %v7430_v1, %v7355_v29  ;;  %vm7299_vm14 = vcmp.eq.s32.totalorder %v18081_v0, %v16230_v10 }
 0x4f0   : > { %v7922_v55 = vadd.f32 %v7921_v42, %v7846_v22  ;;  %vm7790_vm2 = vcmp.eq.s32.totalorder %v18081_v0, %v16265_v27 }
 0x4f1   : > { %v7189_v18 = vpop.f32.mrb[176].mxu0  ;;  %v7680_v53 = vpop.f32.mrb[176].mxu1 }
 0x4f2   : > { %v7356_v26 = vsel %vm7292_vm3, %v7189_v18, 0.0  ;;  %v7847_v31 = vsel %vm7783_vm15, %v7680_v53, 0.0  ;;  %v7191_v35 = vpop.f32.mrb[177].mxu0  ;;  %v7682_v54 = vpop.f32.mrb[177].mxu1  ;;  %vm7300_vm3 = vcmp.eq.s32.totalorder %v18086_v8, %v16234_v20  ;;  %vm7791_vm15 = vcmp.eq.s32.totalorder %v18086_v8, %v16269_v50 }
 0x4f3   : > { %v7395_v28 = vadd.f32 %v7394_v45, %v7356_v26  ;;  %v7886_v57 = vadd.f32 %v7885_v16, %v7847_v31  ;;  %v7357_v2 = vsel %vm7293_vm5, %v7191_v35, 0.0  ;;  %v7848_v49 = vsel %vm7784_vm0, %v7682_v54, 0.0 }
 0x4f4   : > { %v7432_v58 = vadd.f32 %v7431_v34, %v7357_v2  ;;  %v7923_v52 = vadd.f32 %v7922_v55, %v7848_v49  ;;  %vm7301_vm5 = vcmp.eq.s32.totalorder %v18086_v8, %v16230_v10  ;;  %vm7792_vm0 = vcmp.eq.s32.totalorder %v18086_v8, %v16265_v27 }
 0x4f5   : > { %v7195_v1 = vpop.f32.mrb[178].mxu0  ;;  %v7686_v42 = vpop.f32.mrb[178].mxu1 }
 0x4f6   : > { %v7358_v21 = vsel %vm7294_vm8, %v7195_v1, 0.0  ;;  %v7849_v38 = vsel %vm7785_vm10, %v7686_v42, 0.0  ;;  %v7197_v9 = vpop.f32.mrb[179].mxu0  ;;  %v7688_v46 = vpop.f32.mrb[179].mxu1  ;;  %vm7302_vm8 = vcmp.eq.s32.totalorder %v18089_v25, %v16234_v20  ;;  %vm7793_vm10 = vcmp.eq.s32.totalorder %v18089_v25, %v16269_v50 }
 0x4f7   : > { %v7396_v5 = vadd.f32 %v7395_v28, %v7358_v21  ;;  %v7887_v15 = vadd.f32 %v7886_v57, %v7849_v38  ;;  %v7359_v45 = vsel %vm7295_vm1, %v7197_v9, 0.0  ;;  %v7850_v16 = vsel %vm7786_vm12, %v7688_v46, 0.0 }
 0x4f8   : > { %v7433_v29 = vadd.f32 %v7432_v58, %v7359_v45  ;;  %v7924_v22 = vadd.f32 %v7923_v52, %v7850_v16  ;;  %vm7303_vm1 = vcmp.eq.s32.totalorder %v18089_v25, %v16230_v10  ;;  %vm7794_vm12 = vcmp.eq.s32.totalorder %v18089_v25, %v16265_v27 }
 0x4f9   : > { %v7201_v34 = vpop.f32.mrb[180].mxu0  ;;  %v7692_v55 = vpop.f32.mrb[180].mxu1 }
 0x4fa   : > { %v7360_v18 = vsel %vm7296_vm9, %v7201_v34, 0.0  ;;  %v7851_v53 = vsel %vm7787_vm6, %v7692_v55, 0.0  ;;  %v7203_v26 = vpop.f32.mrb[181].mxu0  ;;  %v7694_v31 = vpop.f32.mrb[181].mxu1 }
 0x4fb   : > { %v7397_v35 = vadd.f32 %v7396_v5, %v7360_v18  ;;  %v7888_v54 = vadd.f32 %v7887_v15, %v7851_v53  ;;  %v7361_v28 = vsel %vm7297_vm4, %v7203_v26, 0.0  ;;  %v7852_v57 = vsel %vm7788_vm11, %v7694_v31, 0.0 }
 0x4fc   : > { %v7434_v2 = vadd.f32 %v7433_v29, %v7361_v28  ;;  %v7925_v49 = vadd.f32 %v7924_v22, %v7852_v57 }
 0x4fd   : > { %v7207_v58 = vpop.f32.mrb[182].mxu0  ;;  %v7698_v52 = vpop.f32.mrb[182].mxu1 }
 0x4fe   : > { %v7362_v1 = vsel %vm7298_vm7, %v7207_v58, 0.0  ;;  %v7853_v42 = vsel %vm7789_vm13, %v7698_v52, 0.0  ;;  %v7209_v21 = vpop.f32.mrb[183].mxu0  ;;  %v7700_v38 = vpop.f32.mrb[183].mxu1 }
 0x4ff   : > { %v7398_v9 = vadd.f32 %v7397_v35, %v7362_v1  ;;  %v7889_v46 = vadd.f32 %v7888_v54, %v7853_v42  ;;  %v7363_v5 = vsel %vm7299_vm14, %v7209_v21, 0.0  ;;  %v7854_v15 = vsel %vm7790_vm2, %v7700_v38, 0.0 }
 0x500   : > { %v7435_v45 = vadd.f32 %v7434_v2, %v7363_v5  ;;  %v7926_v16 = vadd.f32 %v7925_v49, %v7854_v15  ;;  %v18198_v2 = vld [vmem:[#allocation55_spill] sm:$0xff] }
 0x501   : > { %v7213_v29 = vpop.f32.mrb[184].mxu0  ;;  %v7704_v22 = vpop.f32.mrb[184].mxu1  ;;  %v16716_v49 = vrot.slane %v18080_v3, %v18198_v2  ;;  %v16720_v58 = vrot.slane %v18085_v37, %v18198_v2 }
 0x502   : > { %v7364_v34 = vsel %vm7300_vm3, %v7213_v29, 0.0  ;;  %v7855_v55 = vsel %vm7791_vm15, %v7704_v22, 0.0  ;;  %v7215_v18 = vpop.f32.mrb[185].mxu0  ;;  %v7706_v53 = vpop.f32.mrb[185].mxu1 }
 0x503   : > { %v7399_v26 = vadd.f32 %v7398_v9, %v7364_v34  ;;  %v7890_v31 = vadd.f32 %v7889_v46, %v7855_v55  ;;  %v7365_v35 = vsel %vm7301_vm5, %v7215_v18, 0.0  ;;  %v7856_v54 = vsel %vm7792_vm0, %v7706_v53, 0.0  ;;  %v18199_v46 = vld [vmem:[#allocation91_spill] sm:$0xff]  ;;  %v18200_v34 = vld [vmem:[#allocation56_spill] sm:$0xff] }
 0x504   : > { %v7436_v28 = vadd.f32 %v7435_v45, %v7365_v35  ;;  %v7927_v57 = vadd.f32 %v7926_v16, %v7856_v54  ;;  %vm7304_vm9 = vcmp.eq.s32.totalorder %v18199_v46, %v16234_v20  ;;  %vm7795_vm6 = vcmp.eq.s32.totalorder %v18199_v46, %v16269_v50 }
 0x505   : > { %v7219_v52 = vpop.f32.mrb[186].mxu0  ;;  %v7710_v1 = vpop.f32.mrb[186].mxu1  ;;  %vm7305_vm4 = vcmp.eq.s32.totalorder %v18199_v46, %v16230_v10  ;;  %vm7796_vm11 = vcmp.eq.s32.totalorder %v18199_v46, %v16265_v27  ;;  %v16732_v55 = vrot.slane %v18080_v3, %v18200_v34  ;;  %v16736_v18 = vrot.slane %v18085_v37, %v18200_v34 }
 0x506   : > { %v7366_v42 = vsel %vm7302_vm8, %v7219_v52, 0.0  ;;  %v7857_v21 = vsel %vm7793_vm10, %v7710_v1, 0.0  ;;  %v7221_v38 = vpop.f32.mrb[187].mxu0  ;;  %v7712_v9 = vpop.f32.mrb[187].mxu1 }
 0x507   : > { %v7400_v5 = vadd.f32 %v7399_v26, %v7366_v42  ;;  %v7891_v15 = vadd.f32 %v7890_v31, %v7857_v21  ;;  %v7367_v45 = vsel %vm7303_vm1, %v7221_v38, 0.0  ;;  %v7858_v16 = vsel %vm7794_vm12, %v7712_v9, 0.0  ;;  %v18201_v31 = vld [vmem:[#allocation92_spill] sm:$0xff]  ;;  %v18202_v21 = vld [vmem:[#allocation9_spill] sm:$0xff] }
 0x508   : > { %v7437_v29 = vadd.f32 %v7436_v28, %v7367_v45  ;;  %v7928_v22 = vadd.f32 %v7927_v57, %v7858_v16  ;;  %vm7306_vm7 = vcmp.eq.s32.totalorder %v18201_v31, %v16234_v20  ;;  %vm7797_vm13 = vcmp.eq.s32.totalorder %v18201_v31, %v16269_v50 }
 0x509   : > { %v7225_v53 = vpop.f32.mrb[188].mxu0  ;;  %v7716_v26 = vpop.f32.mrb[188].mxu1  ;;  %vm7307_vm14 = vcmp.eq.s32.totalorder %v18201_v31, %v16230_v10  ;;  %vm7798_vm2 = vcmp.eq.s32.totalorder %v18201_v31, %v16265_v27  ;;  %vm8226_vm3 = vcmp.eq.s32.totalorder %v18202_v21, %v16720_v58  ;;  %vm8227_vm15 = vcmp.eq.s32.totalorder %v18202_v21, %v16716_v49 }
 0x50a   : > { %v7368_v35 = vsel %vm7304_vm9, %v7225_v53, 0.0  ;;  %v7859_v3 = vsel %vm7795_vm6, %v7716_v26, 0.0  ;;  %v7227_v54 = vpop.f32.mrb[189].mxu0  ;;  %v7718_v28 = vpop.f32.mrb[189].mxu1  ;;  %vm8717_vm5 = vcmp.eq.s32.totalorder %v18202_v21, %v16736_v18  ;;  %vm8718_vm0 = vcmp.eq.s32.totalorder %v18202_v21, %v16732_v55 }
 0x50b   : > { %v7401_v37 = vadd.f32 %v7400_v5, %v7368_v35  ;;  %v7892_v57 = vadd.f32 %v7891_v15, %v7859_v3  ;;  %v7369_v2 = vsel %vm7305_vm4, %v7227_v54, 0.0  ;;  %v7860_v52 = vsel %vm7796_vm11, %v7718_v28, 0.0  ;;  %v18203_v5 = vld [vmem:[#allocation59_spill] sm:$0xff] }
 0x50c   : > { %v7438_v1 = vadd.f32 %v7437_v29, %v7369_v2  ;;  %v7929_v42 = vadd.f32 %v7928_v22, %v7860_v52  ;;  %vm8228_vm8 = vcmp.eq.s32.totalorder %v18203_v5, %v16720_v58  ;;  %vm8719_vm10 = vcmp.eq.s32.totalorder %v18203_v5, %v16736_v18 }
 0x50d   : > { %v7231_v38 = vpop.f32.mrb[190].mxu0  ;;  %v7722_v9 = vpop.f32.mrb[190].mxu1  ;;  %vm8229_vm1 = vcmp.eq.s32.totalorder %v18203_v5, %v16716_v49  ;;  %vm8720_vm12 = vcmp.eq.s32.totalorder %v18203_v5, %v16732_v55  ;;  %vm8230_vm9 = vcmp.eq.s32.totalorder %v17718_v33, %v16720_v58  ;;  %vm8721_vm6 = vcmp.eq.s32.totalorder %v17718_v33, %v16736_v18 }
 0x50e   : > { %v7370_v15 = vsel %vm7306_vm7, %v7231_v38, 0.0  ;;  %v7861_v45 = vsel %vm7797_vm13, %v7722_v9, 0.0  ;;  %v7233_v16 = vpop.f32.mrb[191].mxu0  ;;  %v7724_v29 = vpop.f32.mrb[191].mxu1  ;;  %vm8231_vm4 = vcmp.eq.s32.totalorder %v17718_v33, %v16716_v49  ;;  %vm8722_vm11 = vcmp.eq.s32.totalorder %v17718_v33, %v16732_v55 }
 0x50f   : > { %v7402_v22 = vadd.f32 %v7401_v37, %v7370_v15  ;;  %v7893_v34 = vadd.f32 %v7892_v57, %v7861_v45  ;;  %v7371_v53 = vsel %vm7307_vm14, %v7233_v16, 0.0  ;;  %v7862_v20 = vsel %vm7798_vm2, %v7724_v29, 0.0 }
 0x510   : > { %v7439_v50 = vadd.f32 %v7438_v1, %v7371_v53  ;;  %v7930_v26 = vadd.f32 %v7929_v42, %v7862_v20  ;;  %vm8232_vm7 = vcmp.eq.s32.totalorder %v17725_v40, %v16720_v58  ;;  %vm8723_vm13 = vcmp.eq.s32.totalorder %v17725_v40, %v16736_v18 }
 0x511   : > { %v7403_v35 = vrot.slane %v7402_v22, 4  ;;  %v7894_v3 = vrot.slane %v7893_v34, 4  ;;  %v8027_v54 = vpop.f32.mrb[192].mxu0  ;;  %v8518_v28 = vpop.f32.mrb[192].mxu1  ;;  %vm8233_vm14 = vcmp.eq.s32.totalorder %v17725_v40, %v16716_v49  ;;  %vm8724_vm2 = vcmp.eq.s32.totalorder %v17725_v40, %v16732_v55 }
 0x512   : > { %v7440_v10 = vrot.slane %v7439_v50, 4  ;;  %v7931_v27 = vrot.slane %v7930_v26, 4  ;;  %v8290_v37 = vsel %vm8226_vm3, %v8027_v54, 0.0  ;;  %v8029_v57 = vpop.f32.mrb[193].mxu0  ;;  %v8781_v2 = vsel %vm8717_vm5, %v8518_v28, 0.0  ;;  %v8520_v52 = vpop.f32.mrb[193].mxu1 }
 0x513   : > { %v7404_v1 = vadd.f32 %v7403_v35, %v7402_v22  ;;  %v7895_v42 = vadd.f32 %v7894_v3, %v7893_v34  ;;  %v8291_v38 = vsel %vm8227_vm15, %v8029_v57, 0.0  ;;  %v8782_v9 = vsel %vm8718_vm0, %v8520_v52, 0.0 }
 0x514   : > { %v7441_v15 = vadd.f32 %v7440_v10, %v7439_v50  ;;  %v7932_v45 = vadd.f32 %v7931_v27, %v7930_v26  ;;  %vm8234_vm3 = vcmp.eq.s32.totalorder %v17728_v59, %v16720_v58  ;;  %vm8725_vm15 = vcmp.eq.s32.totalorder %v17728_v59, %v16736_v18 }
 0x515   : > { %v7405_v16 = vrot.slane %v7404_v1, 2  ;;  %v7896_v29 = vrot.slane %v7895_v42, 2  ;;  %v8033_v22 = vpop.f32.mrb[194].mxu0  ;;  %v8524_v34 = vpop.f32.mrb[194].mxu1  ;;  %vm8235_vm5 = vcmp.eq.s32.totalorder %v17728_v59, %v16716_v49  ;;  %vm8726_vm0 = vcmp.eq.s32.totalorder %v17728_v59, %v16732_v55 }
 0x516   : > { %v7442_v53 = vrot.slane %v7441_v15, 2  ;;  %v7933_v20 = vrot.slane %v7932_v45, 2  ;;  %v8292_v50 = vsel %vm8228_vm8, %v8033_v22, 0.0  ;;  %v8783_v26 = vsel %vm8719_vm10, %v8524_v34, 0.0  ;;  %v8035_v35 = vpop.f32.mrb[195].mxu0  ;;  %v8526_v3 = vpop.f32.mrb[195].mxu1 }
 0x517   : > { %v7406_v54 = vadd.f32 %v7405_v16, %v7404_v1  ;;  %v7897_v28 = vadd.f32 %v7896_v29, %v7895_v42  ;;  %v8354_v10 = vadd.f32 %v8292_v50, %v8290_v37  ;;  %v8845_v27 = vadd.f32 %v8783_v26, %v8781_v2 }
 0x518   : > { %v7443_v57 = vadd.f32 %v7442_v53, %v7441_v15  ;;  %v7934_v52 = vadd.f32 %v7933_v20, %v7932_v45  ;;  %v8293_v22 = vsel %vm8229_vm1, %v8035_v35, 0.0  ;;  %v8784_v34 = vsel %vm8720_vm12, %v8526_v3, 0.0 }
 0x519   : > { %v7407_v37 = vrot.slane %v7406_v54, 1  ;;  %v7898_v2 = vrot.slane %v7897_v28, 1  ;;  %v8391_v1 = vadd.f32 %v8293_v22, %v8291_v38  ;;  %v8882_v42 = vadd.f32 %v8784_v34, %v8782_v9  ;;  %v8039_v16 = vpop.f32.mrb[196].mxu0  ;;  %v8530_v29 = vpop.f32.mrb[196].mxu1 }
 0x51a   : > { %v7444_v15 = vrot.slane %v7443_v57, 1  ;;  %v7935_v45 = vrot.slane %v7934_v52, 1  ;;  %v8294_v53 = vsel %vm8230_vm9, %v8039_v16, 0.0  ;;  %v8785_v5 = vsel %vm8721_vm6, %v8530_v29, 0.0  ;;  %v8041_v20 = vpop.f32.mrb[197].mxu0  ;;  %v8532_v50 = vpop.f32.mrb[197].mxu1 }
 0x51b   : > { %v7408_v26 = vadd.f32 %v7407_v37, %v7406_v54  ;;  %v7899_v38 = vadd.f32 %v7898_v2, %v7897_v28  ;;  %v8355_v9 = vadd.f32 %v8354_v10, %v8294_v53  ;;  %v8846_v35 = vadd.f32 %v8845_v27, %v8785_v5 }
 0x51c   : > { %vm8236_vm8 = vcmp.eq.s32.totalorder %v17731_v19, %v16720_v58  ;;  %v7445_v3 = vadd.f32 %v7444_v15, %v7443_v57  ;;  %v7936_v22 = vadd.f32 %v7935_v45, %v7934_v52  ;;  %v8295_v34 = vsel %vm8231_vm4, %v8041_v20, 0.0 }
 0x51d   : > { %v8786_v16 = vsel %vm8722_vm11, %v8532_v50, 0.0  ;;  %v7446_v29 = vmul.f32 %v7408_v26, %v15676_v48  ;;  %v7937_v54 = vmul.f32 %v7899_v38, %v15676_v48  ;;  %v8392_v28 = vadd.f32 %v8391_v1, %v8295_v34  ;;  %v8045_v27 = vpop.f32.mrb[198].mxu0  ;;  %v8536_v37 = vpop.f32.mrb[198].mxu1 }
 0x51e   : > { %v8883_v10 = vadd.f32 %v8882_v42, %v8786_v16  ;;  %v7447_v2 = vmul.f32 %v7445_v3, %v15757_v41  ;;  %v7938_v57 = vmul.f32 %v7936_v22, %v15757_v41  ;;  %v8296_v52 = vsel %vm8232_vm7, %v8045_v27, 0.0  ;;  %v8047_v15 = vpop.f32.mrb[199].mxu0  ;;  %v8538_v45 = vpop.f32.mrb[199].mxu1 }
 0x51f   : > { %v8787_v33 = vsel %vm8723_vm13, %v8536_v37, 0.0  ;;  %v7450_v53 = vrot.slane %v7446_v29, 4  ;;  %v8356_v5 = vadd.f32 %v8355_v9, %v8296_v52  ;;  %vm8727_vm10 = vcmp.eq.s32.totalorder %v17731_v19, %v16736_v18 }
 0x520   : > { %v8847_v1 = vadd.f32 %v8846_v35, %v8787_v33  ;;  %v7451_v42 = vrot.slane %v7447_v2, 4  ;;  %v8297_v20 = vsel %vm8233_vm14, %v8047_v15, 0.0  ;;  %v8788_v50 = vsel %vm8724_vm2, %v8538_v45, 0.0 }
 0x521   : > { %vm8237_vm1 = vcmp.eq.s32.totalorder %v17731_v19, %v16716_v49  ;;  %v7454_v26 = vadd.f32 %v7450_v53, %v16456_v23  ;;  %v7941_v38 = vrot.slane %v7937_v54, 5  ;;  %v8393_v9 = vadd.f32 %v8392_v28, %v8297_v20  ;;  %v8051_v3 = vpop.f32.mrb[200].mxu0  ;;  %v8542_v22 = vpop.f32.mrb[200].mxu1 }
 0x522   : > { %v8884_v35 = vadd.f32 %v8883_v10, %v8788_v50  ;;  %v7455_v34 = vadd.f32 %v7451_v42, %v16463_v7  ;;  %v7942_v16 = vrot.slane %v7938_v57, 5  ;;  %v8298_v29 = vsel %vm8234_vm3, %v8051_v3, 0.0  ;;  %v8053_v27 = vpop.f32.mrb[201].mxu0  ;;  %v8544_v37 = vpop.f32.mrb[201].mxu1 }
 0x523   : > { %v8789_v40 = vsel %vm8725_vm15, %v8542_v22, 0.0  ;;  %v16876_v2 = vadd.f32 %v7941_v38, %v7454_v26  ;;  %v8357_v23 = vadd.f32 %v8356_v5, %v8298_v29  ;;  %v8299_v28 = vsel %vm8235_vm5, %v8053_v27, 0.0 }
 0x524   : > { %v8848_v54 = vadd.f32 %v8847_v1, %v8789_v40  ;;  %v16881_v7 = vadd.f32 %v7942_v16, %v7455_v34  ;;  %v8394_v10 = vadd.f32 %v8393_v9, %v8299_v28  ;;  %v8790_v57 = vsel %vm8726_vm0, %v8544_v37, 0.0 }
 0x525   : > { %vm8728_vm12 = vcmp.eq.s32.totalorder %v17731_v19, %v16732_v55  ;;  %v8885_v52 = vadd.f32 %v8884_v35, %v8790_v57  ;;  %v8057_v33 = vpop.f32.mrb[202].mxu0  ;;  %v8548_v15 = vpop.f32.mrb[202].mxu1  ;;  %vm8238_vm9 = vcmp.eq.s32.totalorder %v17766_v11, %v16720_v58  ;;  %vm8729_vm6 = vcmp.eq.s32.totalorder %v17766_v11, %v16736_v18 }
 0x526   : > { %v8300_v45 = vsel %vm8236_vm8, %v8057_v33, 0.0  ;;  %v8791_v53 = vsel %vm8727_vm10, %v8548_v15, 0.0  ;;  %v8059_v5 = vpop.f32.mrb[203].mxu0  ;;  %v8550_v1 = vpop.f32.mrb[203].mxu1  ;;  %vm8239_vm4 = vcmp.eq.s32.totalorder %v17766_v11, %v16716_v49  ;;  %vm8730_vm11 = vcmp.eq.s32.totalorder %v17766_v11, %v16732_v55 }
 0x527   : > { %v8358_v59 = vadd.f32 %v8357_v23, %v8300_v45  ;;  %v8849_v42 = vadd.f32 %v8848_v54, %v8791_v53  ;;  %v8301_v20 = vsel %vm8237_vm1, %v8059_v5, 0.0  ;;  %v8792_v50 = vsel %vm8728_vm12, %v8550_v1, 0.0 }
 0x528   : > { %v8395_v26 = vadd.f32 %v8394_v10, %v8301_v20  ;;  %v8886_v38 = vadd.f32 %v8885_v52, %v8792_v50  ;;  %vm8240_vm7 = vcmp.eq.s32.totalorder %v17773_v61, %v16720_v58  ;;  %vm8731_vm13 = vcmp.eq.s32.totalorder %v17773_v61, %v16736_v18 }
 0x529   : > { %v8063_v9 = vpop.f32.mrb[204].mxu0  ;;  %v8554_v35 = vpop.f32.mrb[204].mxu1  ;;  %vm8241_vm14 = vcmp.eq.s32.totalorder %v17773_v61, %v16716_v49  ;;  %vm8732_vm2 = vcmp.eq.s32.totalorder %v17773_v61, %v16732_v55  ;;  %vm8242_vm3 = vcmp.eq.s32.totalorder %v11294_v56, %v16720_v58  ;;  %vm8733_vm15 = vcmp.eq.s32.totalorder %v11294_v56, %v16736_v18 }
 0x52a   : > { %v8302_v3 = vsel %vm8238_vm9, %v8063_v9, 0.0  ;;  %v8793_v22 = vsel %vm8729_vm6, %v8554_v35, 0.0  ;;  %v8065_v34 = vpop.f32.mrb[205].mxu0  ;;  %v8556_v16 = vpop.f32.mrb[205].mxu1  ;;  %vm8243_vm5 = vcmp.eq.s32.totalorder %v11294_v56, %v16716_v49  ;;  %vm8734_vm0 = vcmp.eq.s32.totalorder %v11294_v56, %v16732_v55 }
 0x52b   : > { %v8359_v19 = vadd.f32 %v8358_v59, %v8302_v3  ;;  %v8850_v29 = vadd.f32 %v8849_v42, %v8793_v22  ;;  %v8303_v40 = vsel %vm8239_vm4, %v8065_v34, 0.0  ;;  %v8794_v27 = vsel %vm8730_vm11, %v8556_v16, 0.0 }
 0x52c   : > { %v8396_v37 = vadd.f32 %v8395_v26, %v8303_v40  ;;  %v8887_v23 = vadd.f32 %v8886_v38, %v8794_v27  ;;  %vm8244_vm8 = vcmp.eq.s32.totalorder %v17779_v39, %v16720_v58  ;;  %vm8735_vm10 = vcmp.eq.s32.totalorder %v17779_v39, %v16736_v18 }
 0x52d   : > { %v8069_v11 = vpop.f32.mrb[206].mxu0  ;;  %v8560_v54 = vpop.f32.mrb[206].mxu1  ;;  %vm8245_vm1 = vcmp.eq.s32.totalorder %v17779_v39, %v16716_v49  ;;  %vm8736_vm12 = vcmp.eq.s32.totalorder %v17779_v39, %v16732_v55  ;;  %vm8246_vm9 = vcmp.eq.s32.totalorder %v17782_v24, %v16720_v58  ;;  %vm8737_vm6 = vcmp.eq.s32.totalorder %v17782_v24, %v16736_v18 }
 0x52e   : > { %v8304_v28 = vsel %vm8240_vm7, %v8069_v11, 0.0  ;;  %v8795_v10 = vsel %vm8731_vm13, %v8560_v54, 0.0  ;;  %v8071_v57 = vpop.f32.mrb[207].mxu0  ;;  %v8562_v52 = vpop.f32.mrb[207].mxu1  ;;  %vm8247_vm4 = vcmp.eq.s32.totalorder %v17782_v24, %v16716_v49  ;;  %vm8738_vm11 = vcmp.eq.s32.totalorder %v17782_v24, %v16732_v55 }
 0x52f   : > { %v8360_v33 = vadd.f32 %v8359_v19, %v8304_v28  ;;  %v8851_v15 = vadd.f32 %v8850_v29, %v8795_v10  ;;  %v8305_v45 = vsel %vm8241_vm14, %v8071_v57, 0.0  ;;  %v8796_v53 = vsel %vm8732_vm2, %v8562_v52, 0.0 }
 0x530   : > { %v8397_v5 = vadd.f32 %v8396_v37, %v8305_v45  ;;  %v8888_v1 = vadd.f32 %v8887_v23, %v8796_v53  ;;  %vm8248_vm7 = vcmp.eq.s32.totalorder %v17785_v44, %v16720_v58  ;;  %vm8739_vm13 = vcmp.eq.s32.totalorder %v17785_v44, %v16736_v18 }
 0x531   : > { %v8075_v61 = vpop.f32.mrb[208].mxu0  ;;  %v8566_v59 = vpop.f32.mrb[208].mxu1  ;;  %vm8249_vm14 = vcmp.eq.s32.totalorder %v17785_v44, %v16716_v49  ;;  %vm8740_vm2 = vcmp.eq.s32.totalorder %v17785_v44, %v16732_v55 }
 0x532   : > { %v8306_v42 = vsel %vm8242_vm3, %v8075_v61, 0.0  ;;  %v8797_v20 = vsel %vm8733_vm15, %v8566_v59, 0.0  ;;  %v8077_v50 = vpop.f32.mrb[209].mxu0  ;;  %v8568_v26 = vpop.f32.mrb[209].mxu1  ;;  %vm8250_vm3 = vcmp.eq.s32.totalorder %v17790_v51, %v16720_v58  ;;  %vm8741_vm15 = vcmp.eq.s32.totalorder %v17790_v51, %v16736_v18 }
 0x533   : > { %v8361_v38 = vadd.f32 %v8360_v33, %v8306_v42  ;;  %v8852_v9 = vadd.f32 %v8851_v15, %v8797_v20  ;;  %v8307_v35 = vsel %vm8243_vm5, %v8077_v50, 0.0  ;;  %v8798_v3 = vsel %vm8734_vm0, %v8568_v26, 0.0 }
 0x534   : > { %v8398_v22 = vadd.f32 %v8397_v5, %v8307_v35  ;;  %v8889_v34 = vadd.f32 %v8888_v1, %v8798_v3  ;;  %vm8251_vm5 = vcmp.eq.s32.totalorder %v17790_v51, %v16716_v49  ;;  %vm8742_vm0 = vcmp.eq.s32.totalorder %v17790_v51, %v16732_v55 }
 0x535   : > { %v8081_v56 = vpop.f32.mrb[210].mxu0  ;;  %v8572_v16 = vpop.f32.mrb[210].mxu1 }
 0x536   : > { %v8308_v19 = vsel %vm8244_vm8, %v8081_v56, 0.0  ;;  %v8799_v29 = vsel %vm8735_vm10, %v8572_v16, 0.0  ;;  %v8083_v40 = vpop.f32.mrb[211].mxu0  ;;  %v8574_v27 = vpop.f32.mrb[211].mxu1  ;;  %vm8252_vm8 = vcmp.eq.s32.totalorder %v17797_v32, %v16720_v58  ;;  %vm8743_vm10 = vcmp.eq.s32.totalorder %v17797_v32, %v16736_v18 }
 0x537   : > { %v8362_v37 = vadd.f32 %v8361_v38, %v8308_v19  ;;  %v8853_v23 = vadd.f32 %v8852_v9, %v8799_v29  ;;  %v8309_v11 = vsel %vm8245_vm1, %v8083_v40, 0.0  ;;  %v8800_v54 = vsel %vm8736_vm12, %v8574_v27, 0.0 }
 0x538   : > { %v8399_v28 = vadd.f32 %v8398_v22, %v8309_v11  ;;  %v8890_v10 = vadd.f32 %v8889_v34, %v8800_v54  ;;  %vm8253_vm1 = vcmp.eq.s32.totalorder %v17797_v32, %v16716_v49  ;;  %vm8744_vm12 = vcmp.eq.s32.totalorder %v17797_v32, %v16732_v55 }
 0x539   : > { %v8087_v39 = vpop.f32.mrb[212].mxu0  ;;  %v8578_v57 = vpop.f32.mrb[212].mxu1 }
 0x53a   : > { %v8310_v52 = vsel %vm8246_vm9, %v8087_v39, 0.0  ;;  %v8801_v33 = vsel %vm8737_vm6, %v8578_v57, 0.0  ;;  %v8089_v15 = vpop.f32.mrb[213].mxu0  ;;  %v8580_v45 = vpop.f32.mrb[213].mxu1  ;;  %vm8254_vm9 = vcmp.eq.s32.totalorder %v17800_v4, %v16720_v58  ;;  %vm8745_vm6 = vcmp.eq.s32.totalorder %v17800_v4, %v16736_v18 }
 0x53b   : > { %v8363_v53 = vadd.f32 %v8362_v37, %v8310_v52  ;;  %v8854_v5 = vadd.f32 %v8853_v23, %v8801_v33  ;;  %v8311_v1 = vsel %vm8247_vm4, %v8089_v15, 0.0  ;;  %v8802_v61 = vsel %vm8738_vm11, %v8580_v45, 0.0 }
 0x53c   : > { %v8400_v59 = vadd.f32 %v8399_v28, %v8311_v1  ;;  %v8891_v42 = vadd.f32 %v8890_v10, %v8802_v61  ;;  %vm8255_vm4 = vcmp.eq.s32.totalorder %v17800_v4, %v16716_v49  ;;  %vm8746_vm11 = vcmp.eq.s32.totalorder %v17800_v4, %v16732_v55 }
 0x53d   : > { %v8093_v24 = vpop.f32.mrb[214].mxu0  ;;  %v8584_v20 = vpop.f32.mrb[214].mxu1 }
 0x53e   : > { %v8312_v50 = vsel %vm8248_vm7, %v8093_v24, 0.0  ;;  %v8803_v26 = vsel %vm8739_vm13, %v8584_v20, 0.0  ;;  %v8095_v38 = vpop.f32.mrb[215].mxu0  ;;  %v8586_v9 = vpop.f32.mrb[215].mxu1  ;;  %vm8256_vm7 = vcmp.eq.s32.totalorder %v17803_v36, %v16720_v58  ;;  %vm8747_vm13 = vcmp.eq.s32.totalorder %v17803_v36, %v16736_v18 }
 0x53f   : > { %v8364_v35 = vadd.f32 %v8363_v53, %v8312_v50  ;;  %v8855_v3 = vadd.f32 %v8854_v5, %v8803_v26  ;;  %v8313_v22 = vsel %vm8249_vm14, %v8095_v38, 0.0  ;;  %v8804_v34 = vsel %vm8740_vm2, %v8586_v9, 0.0 }
 0x540   : > { %v8401_v56 = vadd.f32 %v8400_v59, %v8313_v22  ;;  %v8892_v16 = vadd.f32 %v8891_v42, %v8804_v34  ;;  %vm8257_vm14 = vcmp.eq.s32.totalorder %v17803_v36, %v16716_v49  ;;  %vm8748_vm2 = vcmp.eq.s32.totalorder %v17803_v36, %v16732_v55 }
 0x541   : > { %v8099_v44 = vpop.f32.mrb[216].mxu0  ;;  %v8590_v19 = vpop.f32.mrb[216].mxu1 }
 0x542   : > { %v8314_v29 = vsel %vm8250_vm3, %v8099_v44, 0.0  ;;  %v8805_v40 = vsel %vm8741_vm15, %v8590_v19, 0.0  ;;  %v8101_v27 = vpop.f32.mrb[217].mxu0  ;;  %v8592_v37 = vpop.f32.mrb[217].mxu1  ;;  %vm8258_vm3 = vcmp.eq.s32.totalorder %v17806_v13, %v16720_v58  ;;  %vm8749_vm15 = vcmp.eq.s32.totalorder %v17806_v13, %v16736_v18 }
 0x543   : > { %v8365_v23 = vadd.f32 %v8364_v35, %v8314_v29  ;;  %v8856_v11 = vadd.f32 %v8855_v3, %v8805_v40  ;;  %v8315_v54 = vsel %vm8251_vm5, %v8101_v27, 0.0  ;;  %v8806_v28 = vsel %vm8742_vm0, %v8592_v37, 0.0 }
 0x544   : > { %v8402_v10 = vadd.f32 %v8401_v56, %v8315_v54  ;;  %v8893_v39 = vadd.f32 %v8892_v16, %v8806_v28  ;;  %vm8259_vm5 = vcmp.eq.s32.totalorder %v17806_v13, %v16716_v49  ;;  %vm8750_vm0 = vcmp.eq.s32.totalorder %v17806_v13, %v16732_v55 }
 0x545   : > { %v8105_v51 = vpop.f32.mrb[218].mxu0  ;;  %v8596_v57 = vpop.f32.mrb[218].mxu1 }
 0x546   : > { %v8316_v52 = vsel %vm8252_vm8, %v8105_v51, 0.0  ;;  %v8807_v33 = vsel %vm8743_vm10, %v8596_v57, 0.0  ;;  %v8107_v15 = vpop.f32.mrb[219].mxu0  ;;  %v8598_v45 = vpop.f32.mrb[219].mxu1  ;;  %vm8260_vm8 = vcmp.eq.s32.totalorder %v17809_v17, %v16720_v58  ;;  %vm8751_vm10 = vcmp.eq.s32.totalorder %v17809_v17, %v16736_v18 }
 0x547   : > { %v8366_v53 = vadd.f32 %v8365_v23, %v8316_v52  ;;  %v8857_v5 = vadd.f32 %v8856_v11, %v8807_v33  ;;  %v8317_v1 = vsel %vm8253_vm1, %v8107_v15, 0.0  ;;  %v8808_v61 = vsel %vm8744_vm12, %v8598_v45, 0.0 }
 0x548   : > { %v8403_v59 = vadd.f32 %v8402_v10, %v8317_v1  ;;  %v8894_v42 = vadd.f32 %v8893_v39, %v8808_v61  ;;  %vm8261_vm1 = vcmp.eq.s32.totalorder %v17809_v17, %v16716_v49  ;;  %vm8752_vm12 = vcmp.eq.s32.totalorder %v17809_v17, %v16732_v55 }
 0x549   : > { %v8111_v32 = vpop.f32.mrb[220].mxu0  ;;  %v8602_v24 = vpop.f32.mrb[220].mxu1 }
 0x54a   : > { %v8318_v20 = vsel %vm8254_vm9, %v8111_v32, 0.0  ;;  %v8809_v50 = vsel %vm8745_vm6, %v8602_v24, 0.0  ;;  %v8113_v26 = vpop.f32.mrb[221].mxu0  ;;  %v8604_v38 = vpop.f32.mrb[221].mxu1  ;;  %vm8262_vm9 = vcmp.eq.s32.totalorder %v17812_v6, %v16720_v58  ;;  %vm8753_vm6 = vcmp.eq.s32.totalorder %v17812_v6, %v16736_v18 }
 0x54b   : > { %v8367_v9 = vadd.f32 %v8366_v53, %v8318_v20  ;;  %v8858_v35 = vadd.f32 %v8857_v5, %v8809_v50  ;;  %v8319_v3 = vsel %vm8255_vm4, %v8113_v26, 0.0  ;;  %v8810_v22 = vsel %vm8746_vm11, %v8604_v38, 0.0 }
 0x54c   : > { %v8404_v34 = vadd.f32 %v8403_v59, %v8319_v3  ;;  %v8895_v56 = vadd.f32 %v8894_v42, %v8810_v22  ;;  %vm8263_vm4 = vcmp.eq.s32.totalorder %v17812_v6, %v16716_v49  ;;  %vm8754_vm11 = vcmp.eq.s32.totalorder %v17812_v6, %v16732_v55 }
 0x54d   : > { %v8117_v4 = vpop.f32.mrb[222].mxu0  ;;  %v8608_v16 = vpop.f32.mrb[222].mxu1 }
 0x54e   : > { %v8320_v44 = vsel %vm8256_vm7, %v8117_v4, 0.0  ;;  %v8811_v19 = vsel %vm8747_vm13, %v8608_v16, 0.0  ;;  %v8119_v29 = vpop.f32.mrb[223].mxu0  ;;  %v8610_v40 = vpop.f32.mrb[223].mxu1  ;;  %vm8264_vm7 = vcmp.eq.s32.totalorder %v17815_v62, %v16720_v58  ;;  %vm8755_vm13 = vcmp.eq.s32.totalorder %v17815_v62, %v16736_v18 }
 0x54f   : > { %v8368_v27 = vadd.f32 %v8367_v9, %v8320_v44  ;;  %v8859_v37 = vadd.f32 %v8858_v35, %v8811_v19  ;;  %v8321_v23 = vsel %vm8257_vm14, %v8119_v29, 0.0  ;;  %v8812_v11 = vsel %vm8748_vm2, %v8610_v40, 0.0 }
 0x550   : > { %v8405_v54 = vadd.f32 %v8404_v34, %v8321_v23  ;;  %v8896_v28 = vadd.f32 %v8895_v56, %v8812_v11  ;;  %vm8265_vm14 = vcmp.eq.s32.totalorder %v17815_v62, %v16716_v49  ;;  %vm8756_vm2 = vcmp.eq.s32.totalorder %v17815_v62, %v16732_v55 }
 0x551   : > { %v8123_v36 = vpop.f32.mrb[224].mxu0  ;;  %v8614_v10 = vpop.f32.mrb[224].mxu1 }
 0x552   : > { %v8322_v39 = vsel %vm8258_vm3, %v8123_v36, 0.0  ;;  %v8813_v51 = vsel %vm8749_vm15, %v8614_v10, 0.0  ;;  %v8125_v57 = vpop.f32.mrb[225].mxu0  ;;  %v8616_v52 = vpop.f32.mrb[225].mxu1  ;;  %vm8266_vm3 = vcmp.eq.s32.totalorder %v17575_v12, %v16720_v58  ;;  %vm8757_vm15 = vcmp.eq.s32.totalorder %v17575_v12, %v16736_v18 }
 0x553   : > { %v8369_v33 = vadd.f32 %v8368_v27, %v8322_v39  ;;  %v8860_v15 = vadd.f32 %v8859_v37, %v8813_v51  ;;  %v8323_v45 = vsel %vm8259_vm5, %v8125_v57, 0.0  ;;  %v8814_v53 = vsel %vm8750_vm0, %v8616_v52, 0.0 }
 0x554   : > { %v8406_v5 = vadd.f32 %v8405_v54, %v8323_v45  ;;  %v8897_v1 = vadd.f32 %v8896_v28, %v8814_v53  ;;  %vm8267_vm5 = vcmp.eq.s32.totalorder %v17575_v12, %v16716_v49  ;;  %vm8758_vm0 = vcmp.eq.s32.totalorder %v17575_v12, %v16732_v55 }
 0x555   : > { %v8129_v13 = vpop.f32.mrb[226].mxu0  ;;  %v8620_v61 = vpop.f32.mrb[226].mxu1 }
 0x556   : > { %v8324_v59 = vsel %vm8260_vm8, %v8129_v13, 0.0  ;;  %v8815_v42 = vsel %vm8751_vm10, %v8620_v61, 0.0  ;;  %v8131_v32 = vpop.f32.mrb[227].mxu0  ;;  %v8622_v24 = vpop.f32.mrb[227].mxu1  ;;  %vm8268_vm8 = vcmp.eq.s32.totalorder %v17586_v47, %v16720_v58  ;;  %vm8759_vm10 = vcmp.eq.s32.totalorder %v17586_v47, %v16736_v18 }
 0x557   : > { %v8370_v20 = vadd.f32 %v8369_v33, %v8324_v59  ;;  %v8861_v50 = vadd.f32 %v8860_v15, %v8815_v42  ;;  %v8325_v26 = vsel %vm8261_vm1, %v8131_v32, 0.0  ;;  %v8816_v38 = vsel %vm8752_vm12, %v8622_v24, 0.0 }
 0x558   : > { %v8407_v9 = vadd.f32 %v8406_v5, %v8325_v26  ;;  %v8898_v35 = vadd.f32 %v8897_v1, %v8816_v38  ;;  %vm8269_vm1 = vcmp.eq.s32.totalorder %v17586_v47, %v16716_v49  ;;  %vm8760_vm12 = vcmp.eq.s32.totalorder %v17586_v47, %v16732_v55 }
 0x559   : > { %v8135_v17 = vpop.f32.mrb[228].mxu0  ;;  %v8626_v3 = vpop.f32.mrb[228].mxu1 }
 0x55a   : > { %v8326_v22 = vsel %vm8262_vm9, %v8135_v17, 0.0  ;;  %v8817_v34 = vsel %vm8753_vm6, %v8626_v3, 0.0  ;;  %v8137_v56 = vpop.f32.mrb[229].mxu0  ;;  %v8628_v4 = vpop.f32.mrb[229].mxu1  ;;  %vm8270_vm9 = vcmp.eq.s32.totalorder %v17594_v30, %v16720_v58  ;;  %vm8761_vm6 = vcmp.eq.s32.totalorder %v17594_v30, %v16736_v18 }
 0x55b   : > { %v8371_v16 = vadd.f32 %v8370_v20, %v8326_v22  ;;  %v8862_v44 = vadd.f32 %v8861_v50, %v8817_v34  ;;  %v8327_v19 = vsel %vm8263_vm4, %v8137_v56, 0.0  ;;  %v8818_v29 = vsel %vm8754_vm11, %v8628_v4, 0.0 }
 0x55c   : > { %v8408_v40 = vadd.f32 %v8407_v9, %v8327_v19  ;;  %v8899_v27 = vadd.f32 %v8898_v35, %v8818_v29  ;;  %vm8271_vm4 = vcmp.eq.s32.totalorder %v17594_v30, %v16716_v49  ;;  %vm8762_vm11 = vcmp.eq.s32.totalorder %v17594_v30, %v16732_v55 }
 0x55d   : > { %v8141_v6 = vpop.f32.mrb[230].mxu0  ;;  %v8632_v37 = vpop.f32.mrb[230].mxu1 }
 0x55e   : > { %v8328_v23 = vsel %vm8264_vm7, %v8141_v6, 0.0  ;;  %v8819_v11 = vsel %vm8755_vm13, %v8632_v37, 0.0  ;;  %v8143_v54 = vpop.f32.mrb[231].mxu0  ;;  %v8634_v28 = vpop.f32.mrb[231].mxu1  ;;  %vm8272_vm7 = vcmp.eq.s32.totalorder %v17608_v60, %v16720_v58  ;;  %vm8763_vm13 = vcmp.eq.s32.totalorder %v17608_v60, %v16736_v18 }
 0x55f   : > { %v8372_v36 = vadd.f32 %v8371_v16, %v8328_v23  ;;  %v8863_v10 = vadd.f32 %v8862_v44, %v8819_v11  ;;  %v8329_v39 = vsel %vm8265_vm14, %v8143_v54, 0.0  ;;  %v8820_v51 = vsel %vm8756_vm2, %v8634_v28, 0.0 }
 0x560   : > { %v8409_v57 = vadd.f32 %v8408_v40, %v8329_v39  ;;  %v8900_v52 = vadd.f32 %v8899_v27, %v8820_v51  ;;  %vm8273_vm14 = vcmp.eq.s32.totalorder %v17608_v60, %v16716_v49  ;;  %vm8764_vm2 = vcmp.eq.s32.totalorder %v17608_v60, %v16732_v55 }
 0x561   : > { %v8147_v62 = vpop.f32.mrb[232].mxu0  ;;  %v8638_v33 = vpop.f32.mrb[232].mxu1 }
 0x562   : > { %v8330_v15 = vsel %vm8266_vm3, %v8147_v62, 0.0  ;;  %v8821_v45 = vsel %vm8757_vm15, %v8638_v33, 0.0  ;;  %v8149_v53 = vpop.f32.mrb[233].mxu0  ;;  %v8640_v5 = vpop.f32.mrb[233].mxu1  ;;  %vm8274_vm3 = vcmp.eq.s32.totalorder %v17978_v14, %v16720_v58  ;;  %vm8765_vm15 = vcmp.eq.s32.totalorder %v17978_v14, %v16736_v18 }
 0x563   : > { %v8373_v1 = vadd.f32 %v8372_v36, %v8330_v15  ;;  %v8864_v13 = vadd.f32 %v8863_v10, %v8821_v45  ;;  %v8331_v61 = vsel %vm8267_vm5, %v8149_v53, 0.0  ;;  %v8822_v59 = vsel %vm8758_vm0, %v8640_v5, 0.0 }
 0x564   : > { %v8410_v42 = vadd.f32 %v8409_v57, %v8331_v61  ;;  %v8901_v32 = vadd.f32 %v8900_v52, %v8822_v59  ;;  %vm8275_vm5 = vcmp.eq.s32.totalorder %v17978_v14, %v16716_v49  ;;  %vm8766_vm0 = vcmp.eq.s32.totalorder %v17978_v14, %v16732_v55 }
 0x565   : > { %v8153_v12 = vpop.f32.mrb[234].mxu0  ;;  %v8644_v24 = vpop.f32.mrb[234].mxu1 }
 0x566   : > { %v8332_v20 = vsel %vm8268_vm8, %v8153_v12, 0.0  ;;  %v8823_v50 = vsel %vm8759_vm10, %v8644_v24, 0.0  ;;  %v8155_v26 = vpop.f32.mrb[235].mxu0  ;;  %v8646_v38 = vpop.f32.mrb[235].mxu1  ;;  %vm8276_vm8 = vcmp.eq.s32.totalorder %v17981_v63, %v16720_v58  ;;  %vm8767_vm10 = vcmp.eq.s32.totalorder %v17981_v63, %v16736_v18 }
 0x567   : > { %v8374_v9 = vadd.f32 %v8373_v1, %v8332_v20  ;;  %v8865_v35 = vadd.f32 %v8864_v13, %v8823_v50  ;;  %v8333_v17 = vsel %vm8269_vm1, %v8155_v26, 0.0  ;;  %v8824_v3 = vsel %vm8760_vm12, %v8646_v38, 0.0 }
 0x568   : > { %v8411_v22 = vadd.f32 %v8410_v42, %v8333_v17  ;;  %v8902_v34 = vadd.f32 %v8901_v32, %v8824_v3  ;;  %vm8277_vm1 = vcmp.eq.s32.totalorder %v17981_v63, %v16716_v49  ;;  %vm8768_vm12 = vcmp.eq.s32.totalorder %v17981_v63, %v16732_v55 }
 0x569   : > { %v8159_v47 = vpop.f32.mrb[236].mxu0  ;;  %v8650_v56 = vpop.f32.mrb[236].mxu1 }
 0x56a   : > { %v8334_v4 = vsel %vm8270_vm9, %v8159_v47, 0.0  ;;  %v8825_v16 = vsel %vm8761_vm6, %v8650_v56, 0.0  ;;  %v8161_v44 = vpop.f32.mrb[237].mxu0  ;;  %v8652_v19 = vpop.f32.mrb[237].mxu1  ;;  %vm8278_vm9 = vcmp.eq.s32.totalorder %v17984_v43, %v16720_v58  ;;  %vm8769_vm6 = vcmp.eq.s32.totalorder %v17984_v43, %v16736_v18 }
 0x56b   : > { %v8375_v29 = vadd.f32 %v8374_v9, %v8334_v4  ;;  %v8866_v40 = vadd.f32 %v8865_v35, %v8825_v16  ;;  %v8335_v27 = vsel %vm8271_vm4, %v8161_v44, 0.0  ;;  %v8826_v6 = vsel %vm8762_vm11, %v8652_v19, 0.0 }
 0x56c   : > { %v8412_v37 = vadd.f32 %v8411_v22, %v8335_v27  ;;  %v8903_v23 = vadd.f32 %v8902_v34, %v8826_v6  ;;  %vm8279_vm4 = vcmp.eq.s32.totalorder %v17984_v43, %v16716_v49  ;;  %vm8770_vm11 = vcmp.eq.s32.totalorder %v17984_v43, %v16732_v55 }
 0x56d   : > { %v8165_v30 = vpop.f32.mrb[238].mxu0  ;;  %v8656_v11 = vpop.f32.mrb[238].mxu1 }
 0x56e   : > { %v8336_v54 = vsel %vm8272_vm7, %v8165_v30, 0.0  ;;  %v8827_v28 = vsel %vm8763_vm13, %v8656_v11, 0.0  ;;  %v8167_v36 = vpop.f32.mrb[239].mxu0  ;;  %v8658_v10 = vpop.f32.mrb[239].mxu1  ;;  %vm8280_vm7 = vcmp.eq.s32.totalorder %v18081_v0, %v16720_v58  ;;  %vm8771_vm13 = vcmp.eq.s32.totalorder %v18081_v0, %v16736_v18 }
 0x56f   : > { %v8376_v39 = vadd.f32 %v8375_v29, %v8336_v54  ;;  %v8867_v51 = vadd.f32 %v8866_v40, %v8827_v28  ;;  %v8337_v57 = vsel %vm8273_vm14, %v8167_v36, 0.0  ;;  %v8828_v52 = vsel %vm8764_vm2, %v8658_v10, 0.0 }
 0x570   : > { %v8413_v62 = vadd.f32 %v8412_v37, %v8337_v57  ;;  %v8904_v33 = vadd.f32 %v8903_v23, %v8828_v52  ;;  %vm8281_vm14 = vcmp.eq.s32.totalorder %v18081_v0, %v16716_v49  ;;  %vm8772_vm2 = vcmp.eq.s32.totalorder %v18081_v0, %v16732_v55 }
 0x571   : > { %v8171_v60 = vpop.f32.mrb[240].mxu0  ;;  %v8662_v15 = vpop.f32.mrb[240].mxu1 }
 0x572   : > { %v8338_v45 = vsel %vm8274_vm3, %v8171_v60, 0.0  ;;  %v8829_v53 = vsel %vm8765_vm15, %v8662_v15, 0.0  ;;  %v8173_v5 = vpop.f32.mrb[241].mxu0  ;;  %v8664_v1 = vpop.f32.mrb[241].mxu1  ;;  %vm8282_vm3 = vcmp.eq.s32.totalorder %v18086_v8, %v16720_v58  ;;  %vm8773_vm15 = vcmp.eq.s32.totalorder %v18086_v8, %v16736_v18 }
 0x573   : > { %v8377_v13 = vadd.f32 %v8376_v39, %v8338_v45  ;;  %v8868_v61 = vadd.f32 %v8867_v51, %v8829_v53  ;;  %v8339_v59 = vsel %vm8275_vm5, %v8173_v5, 0.0  ;;  %v8830_v42 = vsel %vm8766_vm0, %v8664_v1, 0.0 }
 0x574   : > { %v8414_v32 = vadd.f32 %v8413_v62, %v8339_v59  ;;  %v8905_v12 = vadd.f32 %v8904_v33, %v8830_v42  ;;  %vm8283_vm5 = vcmp.eq.s32.totalorder %v18086_v8, %v16716_v49  ;;  %vm8774_vm0 = vcmp.eq.s32.totalorder %v18086_v8, %v16732_v55 }
 0x575   : > { %v8177_v14 = vpop.f32.mrb[242].mxu0  ;;  %v8668_v24 = vpop.f32.mrb[242].mxu1 }
 0x576   : > { %v8340_v20 = vsel %vm8276_vm8, %v8177_v14, 0.0  ;;  %v8831_v50 = vsel %vm8767_vm10, %v8668_v24, 0.0  ;;  %v8179_v26 = vpop.f32.mrb[243].mxu0  ;;  %v8670_v38 = vpop.f32.mrb[243].mxu1  ;;  %vm8284_vm8 = vcmp.eq.s32.totalorder %v18089_v25, %v16720_v58  ;;  %vm8775_vm10 = vcmp.eq.s32.totalorder %v18089_v25, %v16736_v18 }
 0x577   : > { %v8378_v9 = vadd.f32 %v8377_v13, %v8340_v20  ;;  %v8869_v35 = vadd.f32 %v8868_v61, %v8831_v50  ;;  %v8341_v17 = vsel %vm8277_vm1, %v8179_v26, 0.0  ;;  %v8832_v3 = vsel %vm8768_vm12, %v8670_v38, 0.0 }
 0x578   : > { %v8415_v22 = vadd.f32 %v8414_v32, %v8341_v17  ;;  %v8906_v34 = vadd.f32 %v8905_v12, %v8832_v3  ;;  %vm8285_vm1 = vcmp.eq.s32.totalorder %v18089_v25, %v16716_v49  ;;  %vm8776_vm12 = vcmp.eq.s32.totalorder %v18089_v25, %v16732_v55 }
 0x579   : > { %v8183_v63 = vpop.f32.mrb[244].mxu0  ;;  %v8674_v47 = vpop.f32.mrb[244].mxu1 }
 0x57a   : > { %v8342_v56 = vsel %vm8278_vm9, %v8183_v63, 0.0  ;;  %v8833_v4 = vsel %vm8769_vm6, %v8674_v47, 0.0  ;;  %v8185_v16 = vpop.f32.mrb[245].mxu0  ;;  %v8676_v44 = vpop.f32.mrb[245].mxu1  ;;  %vm8286_vm9 = vcmp.eq.s32.totalorder %v18199_v46, %v16720_v58  ;;  %vm8777_vm6 = vcmp.eq.s32.totalorder %v18199_v46, %v16736_v18 }
 0x57b   : > { %v8379_v19 = vadd.f32 %v8378_v9, %v8342_v56  ;;  %v8870_v29 = vadd.f32 %v8869_v35, %v8833_v4  ;;  %v8343_v40 = vsel %vm8279_vm4, %v8185_v16, 0.0  ;;  %v8834_v27 = vsel %vm8770_vm11, %v8676_v44, 0.0 }
 0x57c   : > { %v8416_v6 = vadd.f32 %v8415_v22, %v8343_v40  ;;  %v8907_v37 = vadd.f32 %v8906_v34, %v8834_v27  ;;  %vm8287_vm4 = vcmp.eq.s32.totalorder %v18199_v46, %v16716_v49  ;;  %vm8778_vm11 = vcmp.eq.s32.totalorder %v18199_v46, %v16732_v55 }
 0x57d   : > { %v8189_v43 = vpop.f32.mrb[246].mxu0  ;;  %v8680_v23 = vpop.f32.mrb[246].mxu1 }
 0x57e   : > { %v8344_v30 = vsel %vm8280_vm7, %v8189_v43, 0.0  ;;  %v8835_v11 = vsel %vm8771_vm13, %v8680_v23, 0.0  ;;  %v8191_v54 = vpop.f32.mrb[247].mxu0  ;;  %v8682_v28 = vpop.f32.mrb[247].mxu1  ;;  %vm8288_vm7 = vcmp.eq.s32.totalorder %v18201_v31, %v16720_v58  ;;  %vm8779_vm13 = vcmp.eq.s32.totalorder %v18201_v31, %v16736_v18 }
 0x57f   : > { %v8380_v36 = vadd.f32 %v8379_v19, %v8344_v30  ;;  %v8871_v10 = vadd.f32 %v8870_v29, %v8835_v11  ;;  %v8345_v39 = vsel %vm8281_vm14, %v8191_v54, 0.0  ;;  %v8836_v51 = vsel %vm8772_vm2, %v8682_v28, 0.0 }
 0x580   : > { %v8417_v57 = vadd.f32 %v8416_v6, %v8345_v39  ;;  %v8908_v52 = vadd.f32 %v8907_v37, %v8836_v51  ;;  %vm8289_vm14 = vcmp.eq.s32.totalorder %v18201_v31, %v16716_v49  ;;  %vm8780_vm2 = vcmp.eq.s32.totalorder %v18201_v31, %v16732_v55 }
 0x581   : > { %v8195_v0 = vpop.f32.mrb[248].mxu0  ;;  %v8686_v62 = vpop.f32.mrb[248].mxu1 }
 0x582   : > { %v8346_v33 = vsel %vm8282_vm3, %v8195_v0, 0.0  ;;  %v8837_v60 = vsel %vm8773_vm15, %v8686_v62, 0.0  ;;  %v8197_v15 = vpop.f32.mrb[249].mxu0  ;;  %v8688_v45 = vpop.f32.mrb[249].mxu1 }
 0x583   : > { %v8381_v53 = vadd.f32 %v8380_v36, %v8346_v33  ;;  %v8872_v5 = vadd.f32 %v8871_v10, %v8837_v60  ;;  %v8347_v1 = vsel %vm8283_vm5, %v8197_v15, 0.0  ;;  %v8838_v13 = vsel %vm8774_vm0, %v8688_v45, 0.0 }
 0x584   : > { %v8418_v61 = vadd.f32 %v8417_v57, %v8347_v1  ;;  %v8909_v59 = vadd.f32 %v8908_v52, %v8838_v13 }
 0x585   : > { %v8201_v8 = vpop.f32.mrb[250].mxu0  ;;  %v8692_v42 = vpop.f32.mrb[250].mxu1 }
 0x586   : > { %v8348_v32 = vsel %vm8284_vm8, %v8201_v8, 0.0  ;;  %v8839_v12 = vsel %vm8775_vm10, %v8692_v42, 0.0  ;;  %v8203_v14 = vpop.f32.mrb[251].mxu0  ;;  %v8694_v24 = vpop.f32.mrb[251].mxu1  ;;  %v10051_v42 = vmov 1966171168  }
 0x587   : > { %v8382_v20 = vadd.f32 %v8381_v53, %v8348_v32  ;;  %v8873_v50 = vadd.f32 %v8872_v5, %v8839_v12  ;;  %v8349_v26 = vsel %vm8285_vm1, %v8203_v14, 0.0  ;;  %v8840_v38 = vsel %vm8776_vm12, %v8694_v24, 0.0 }
 0x588   : > { %v8419_v9 = vadd.f32 %v8418_v61, %v8349_v26  ;;  %v8910_v35 = vadd.f32 %v8909_v59, %v8840_v38  ;;  %v8933_v32 = vunpack.c.l.s4 %v10051_v42 }
 0x589   : > { %v8207_v25 = vpop.f32.mrb[252].mxu0  ;;  %v8698_v17 = vpop.f32.mrb[252].mxu1 }
 0x58a   : > { %v8350_v3 = vsel %vm8286_vm9, %v8207_v25, 0.0  ;;  %v8841_v22 = vsel %vm8777_vm6, %v8698_v17, 0.0  ;;  %v8209_v34 = vpop.f32.mrb[253].mxu0  ;;  %v8700_v63 = vpop.f32.mrb[253].mxu1  ;;  %v8934_v38 = vunpack.c.0.s8 %v8933_v32 }
 0x58b   : > { %v8383_v47 = vadd.f32 %v8382_v20, %v8350_v3  ;;  %v8874_v56 = vadd.f32 %v8873_v50, %v8841_v22  ;;  %v8351_v4 = vsel %vm8287_vm4, %v8209_v34, 0.0  ;;  %v8842_v16 = vsel %vm8778_vm11, %v8700_v63, 0.0 }
 0x58c   : > { %v8420_v44 = vadd.f32 %v8419_v9, %v8351_v4  ;;  %v8911_v19 = vadd.f32 %v8910_v35, %v8842_v16  ;;  %v18204_v63 = vlaneseq }
 0x58d   : > { %v8213_v46 = vpop.f32.mrb[254].mxu0  ;;  %v8704_v29 = vpop.f32.mrb[254].mxu1 }
 0x58e   : > { %v8352_v40 = vsel %vm8288_vm7, %v8213_v46, 0.0  ;;  %v8843_v27 = vsel %vm8779_vm13, %v8704_v29, 0.0  ;;  %v8215_v58 = vpop.f32.mrb[255].mxu0  ;;  %v8706_v6 = vpop.f32.mrb[255].mxu1  ;;  %vm8949_vm3 = vcmp.lt.s32.totalorder %v18204_v63, 256 }
 0x58f   : > { %v8384_v37 = vadd.f32 %v8383_v47, %v8352_v40  ;;  %v8875_v18 = vadd.f32 %v8874_v56, %v8843_v27  ;;  %v8353_v43 = vsel %vm8289_vm14, %v8215_v58, 0.0  ;;  %v8844_v23 = vsel %vm8780_vm2, %v8706_v6, 0.0 }
 0x590   : > { %v8421_v30 = vadd.f32 %v8420_v44, %v8353_v43  ;;  %v8912_v11 = vadd.f32 %v8911_v19, %v8844_v23 }
 0x591   : > { %v8385_v54 = vrot.slane %v8384_v37, 4  ;;  %v8876_v28 = vrot.slane %v8875_v18, 4 }
 0x592   : > { %v8422_v36 = vrot.slane %v8421_v30, 4  ;;  %v8913_v10 = vrot.slane %v8912_v11, 4 }
 0x593   : > { %v8386_v49 = vadd.f32 %v8385_v54, %v8384_v37  ;;  %v8877_v39 = vadd.f32 %v8876_v28, %v8875_v18 }
 0x594   : > { %v8423_v51 = vadd.f32 %v8422_v36, %v8421_v30  ;;  %v8914_v55 = vadd.f32 %v8913_v10, %v8912_v11 }
 0x595   : > { %v8387_v31 = vrot.slane %v8386_v49, 2  ;;  %v8878_v57 = vrot.slane %v8877_v39, 2 }
 0x596   : > { %v8424_v52 = vrot.slane %v8423_v51, 2  ;;  %v8915_v0 = vrot.slane %v8914_v55, 2 }
 0x597   : > { %v8388_v62 = vadd.f32 %v8387_v31, %v8386_v49  ;;  %v8879_v33 = vadd.f32 %v8878_v57, %v8877_v39 }
 0x598   : > { %v8425_v60 = vadd.f32 %v8424_v52, %v8423_v51  ;;  %v8916_v15 = vadd.f32 %v8915_v0, %v8914_v55 }
 0x599   : > { %v8389_v45 = vrot.slane %v8388_v62, 1  ;;  %v8880_v53 = vrot.slane %v8879_v33, 1 }
 0x59a   : > { %v8426_v5 = vrot.slane %v8425_v60, 1  ;;  %v8917_v1 = vrot.slane %v8916_v15, 1 }
 0x59b   : > { %v8390_v13 = vadd.f32 %v8389_v45, %v8388_v62  ;;  %v8881_v61 = vadd.f32 %v8880_v53, %v8879_v33 }
 0x59c   : > { %v8427_v59 = vadd.f32 %v8426_v5, %v8425_v60  ;;  %v8918_v8 = vadd.f32 %v8917_v1, %v8916_v15 }
 0x59d   : > { %v8428_v12 = vmul.f32 %v8390_v13, %v15676_v48  ;;  %v8919_v14 = vmul.f32 %v8881_v61, %v15676_v48  ;;  %v8937_v48 = vsub.s32 %v8934_v38, %v18202_v21 }
 0x59e   : > { %v8429_v24 = vmul.f32 %v8427_v59, %v15757_v41  ;;  %v8920_v20 = vmul.f32 %v8918_v8, %v15757_v41 }
 0x59f   : > { %v8432_v50 = vrot.slane %v8428_v12, 6  ;;  %v8923_v35 = vrot.slane %v8919_v14, 7 }
 0x5a0   : > { %v8433_v26 = vrot.slane %v8429_v24, 6  ;;  %v8924_v17 = vrot.slane %v8920_v20, 7 }
 0x5a1   : > { %v8436_v9 = vadd.f32 %v8432_v50, %v16876_v2 }
 0x5a2   : > { %v8437_v25 = vadd.f32 %v8433_v26, %v16881_v7 }
 0x5a3   : > { %v8927_v3 = vadd.f32 %v8923_v35, %v8436_v9 }
 0x5a4   : > { %v8928_v22 = vadd.f32 %v8924_v17, %v8437_v25 }
 0x5a6   : > { %v8931_v34 = vcombine.low %v8927_v3, %v8928_v22 }
 0x5a8   : > { %v8938_v41 = vrot.slane %v8931_v34, %v8937_v48 }
 0x5aa   : > { %v8945_v47 = vrot.slane %v8938_v41, %v8937_v48 }
 0x5ac   : > { %8951 = vst.msk [vmem:[%s255_s10] sm:$0x3] %vm8949_vm3, %v8945_v47 }
 0x5ad   : > { %9991 = shalt.err (!%p9988_p3)
}
 0x5ae   : > { %s9992_s20 = scalar_lea.hbm %s17118_s13, 32  ;;  %s9996_s5 = scalar_lea.hbm %s17166_s4, 64 }
 0x5af   : > { %p9993_p4 = scmp.ne.s32.totalorder %s17118_s13, %s9992_s20  ;;  %p9997_p9 = scmp.lt.u32.totalorder %s17118_s13, %s17166_s4 }
 0x5b0   : > { %p9998_p5 = scmp.lt.u32.totalorder %s9996_s5, %s9992_s20  ;;  %p10000_p12 = scmp.lt.u32.totalorder %s9992_s20, %s17118_s13 }
 0x5b1   : > { %p9994_p7 = pnand %p9993_p4, %p18205_p11 }
 0x5b2   : > { %p9999_p10 = por %p9998_p5, %p9997_p9 }
 0x5b3   : > { %p9995_p8 = pneg %p9994_p7 }
 0x5b4   : > { %p10001_p13 = por %p10000_p12, %p9999_p10 }
 0x5b6   : > { %p10002_p0 = pnand %p10001_p13, %p9995_p8 }
 0x5b8   : > { %10005 = shalt.err (!%p10002_p0)
}
 0x5b9   : > { %9708 = dma.vmem_to_hbm [thread:$0]  (%p18205_p11), %s17120_s11, 32, %s17118_s13, %s8953_s14  }
 0x5ba PF: > { %s8979_s8 = sand.u32 1, %s10032_s15   ;;  %p18206_p1 = scmp.ne.s32.totalorder %s17385_s27, 0 }
 0x5bb   : > { %s8980_s9 = scalar_lea.sflag [#allocation3], %s8979_s8 }
 0x5bc   : > { %p9715_p2 = pnand %p9059_p6, %p18206_p1 }
 0x5be   : > { %10027 = dma.done.wait (!%p9715_p2), %s8980_s9, 32  }
 0x5bf   : > { %10029 = vsyncadd (!%p9715_p2), %s8980_s9, 4294967264  ;;  %p15_p3 = scmp.ge.s32.totalorder %s10103_s21, 4   ;;  %s18207_s15 = smov %s10036_s16 }
 0x5c0   : > { %s18208_s16 = smov %s10040_s17  ;;  %s18209_s17 = smov %s10115_s24 }
 0x5c1   : > { %s18210_s18 = smov %s10103_s21  ;;  %17 = sbr.rel (!%p15_p3) target bundleno = 4 (0x4), region = 112 }
 0x5c8   :  { %8985 = vsyncpa [#allocation3], 1 }
 0x5c9   :  { %8987 = vsyncpa [#allocation3 + $0x1], 1 }
 0x5ca   :  { %8988 = vsyncpa [#allocation4], 1 }
 0x5cb   :  { %8990 = vsyncpa [#allocation4 + $0x1], 1 }

</bundles_post_ra>
